<compile_context>
chip_gen: v7x
topology: tpu7x:2x2x1
jax: 0.10.0
libtpu: 0.0.40
codegen_flags: <defaults>
</compile_context>

<pallas_src>
import functools

import jax
import jax.numpy as jnp
from jax import lax
from jax.experimental import pallas as pl
from jax.experimental.pallas import tpu as pltpu

NDF = 32
EPS = 1e-5
SLOPE = 0.2
ACC_VREG_ELEMS = 32 * 1024          # ~32 vregs of f32 for the strip accumulator


def _tpu_vmem_capacity_bytes():
    try:
        return int(pltpu.get_tpu_info().vmem_capacity_bytes)
    except Exception:
        return 64 * 1024 * 1024      # conservative fallback (v7x-sized)


_VMEM_CAP = _tpu_vmem_capacity_bytes()
if _VMEM_CAP >= 100 * 1024 * 1024:   # v5e / v6e: 128 MiB physical VMEM
    VMEM_LIMIT = 64 * 1024 * 1024
    TILE_TARGET_ROWS = 2048
else:                                # v7x: 64 MiB physical VMEM -> cap scoped VMEM
    VMEM_LIMIT = 44 * 1024 * 1024
    TILE_TARGET_ROWS = 1024


def _round_up(x, m):
    return ((x + m - 1) // m) * m


def _pick_tile_h(h_out, w_out, target_rows=None, min_th=24):
    """Smallest divisor th of h_out with th*w_out >= target_rows and th >= min_th
    (keeps the 6-row halo <= 25% of a tile); falls back to a single tile."""
    if target_rows is None:
        target_rows = TILE_TARGET_ROWS
    floor = min(min_th, h_out)
    for th in range(1, h_out + 1):
        if h_out % th == 0 and th >= floor and th * w_out >= target_rows:
            return th
    return h_out


def _pick_strip_rows(mt, cp, budget=ACC_VREG_ELEMS):
    """Largest divisor of mt whose (rows, cp) f32 accumulator fits the vreg budget."""
    cap = max(1, budget // cp)
    best = 1
    for s in range(1, mt + 1):
        if mt % s == 0 and s <= cap:
            best = s
    return best


# ------------------------------ Pallas kernels ------------------------------ #
def _conv_kernel(a_ref, w_ref, y_ref, *rest, kh, wo, mt, sr, with_stats):
    """Conv tile as strip-accumulated small matmuls (+ optional BN partial sums).

    a_ref: (1, mt + (kh-1)*wo, cu) bf16  kW-folded, flattened-(H,Wo) input window
    w_ref: (kh, cu, cp)            bf16  resident conv weights (kw folded into cu)
    y_ref: (1, mt, cp)             bf16/f32 raw conv output tile
    rest:  (st_ref,) when with_stats: (1, 2, cp) f32 [sum(y), sum(y*y)] per tile
    """
    st_ref = rest[0] if with_stats else None
    cp = y_ref.shape[-1]
    nstrip = mt // sr

    if with_stats:
        ssum = jnp.zeros((1, cp), jnp.float32)
        ssq = jnp.zeros((1, cp), jnp.float32)

    for s in range(nstrip):                     # M strips: acc lives in vregs
        r0 = s * sr
        acc = jnp.zeros((sr, cp), jnp.float32)
        for i in range(kh):                     # kernel-H taps, innermost
            lhs = a_ref[0, r0 + i * wo:r0 + i * wo + sr, :]        # (sr, cu) bf16
            acc = acc + jnp.dot(lhs, w_ref[i],
                                preferred_element_type=jnp.float32)
        y_ref[0, r0:r0 + sr, :] = acc.astype(y_ref.dtype)          # single store
        if with_stats:
            ssum = ssum + jnp.sum(acc, axis=0, keepdims=True)
            ssq = ssq + jnp.sum(acc * acc, axis=0, keepdims=True)

    if with_stats:
        st_ref[0, 0:1, :] = ssum
        st_ref[0, 1:2, :] = ssq


def _bn_lrelu_kernel(y_ref, sb_ref, o_ref):
    """y*scale + bias (training-mode BN, f32 math) then LeakyReLU(0.2)."""
    y = y_ref[0].astype(jnp.float32)                     # (mt, cp)
    z = y * sb_ref[0:1, :] + sb_ref[1:2, :]
    o_ref[0] = jnp.where(z > 0, z, SLOPE * z).astype(o_ref.dtype)


# ----------------------------- pallas_call wrappers ------------------------- #
def _conv_pass(a, wr, *, nt, mt, wo, kh, cu, cp, halo_rows, with_stats, y_dtype):
    rows = mt + halo_rows
    sr = _pick_strip_rows(mt, cp)
    kernel = functools.partial(_conv_kernel, kh=kh, wo=wo, mt=mt, sr=sr,
                               with_stats=with_stats)
    in_specs = [pl.BlockSpec((1, rows, cu), lambda i: (i, 0, 0)),
                pl.BlockSpec((kh, cu, cp), lambda i: (0, 0, 0))]   # resident W
    if with_stats:
        out_specs = (pl.BlockSpec((1, mt, cp), lambda i: (i, 0, 0)),
                     pl.BlockSpec((1, 2, cp), lambda i: (i, 0, 0)))
        out_shape = (jax.ShapeDtypeStruct((nt, mt, cp), y_dtype),
                     jax.ShapeDtypeStruct((nt, 2, cp), jnp.float32))
    else:
        out_specs = pl.BlockSpec((1, mt, cp), lambda i: (i, 0, 0))
        out_shape = jax.ShapeDtypeStruct((nt, mt, cp), y_dtype)
    return pl.pallas_call(
        kernel,
        grid=(nt,),
        in_specs=in_specs,
        out_specs=out_specs,
        out_shape=out_shape,
        compiler_params=pltpu.CompilerParams(
            dimension_semantics=("parallel",),
            vmem_limit_bytes=VMEM_LIMIT),
    )(a, wr)


def _bn_lrelu_pass(y, sb):
    nt, mt, cp = y.shape
    return pl.pallas_call(
        _bn_lrelu_kernel,
        grid=(nt,),
        in_specs=[pl.BlockSpec((1, mt, cp), lambda i: (i, 0, 0)),
                  pl.BlockSpec((2, cp), lambda i: (0, 0))],
        out_specs=pl.BlockSpec((1, mt, cp), lambda i: (i, 0, 0)),
        out_shape=jax.ShapeDtypeStruct((nt, mt, cp), jnp.bfloat16),
        compiler_params=pltpu.CompilerParams(
            dimension_semantics=("parallel",),
            vmem_limit_bytes=VMEM_LIMIT),
    )(y, sb)


# --------------------------------- JAX glue --------------------------------- #
def _tile_rows(x, t, mt, halo):
    """(N, R, C) -> (N*t, mt+halo, C) row tiles with a (kh-1)*Wo halo.
    No copy at all when the layer fits one tile (t == 1)."""
    if t == 1:
        return x
    n, _, c = x.shape
    tiles = [lax.slice_in_dim(x, k * mt, k * mt + mt + halo, axis=1)
             for k in range(t)]
    return jnp.stack(tiles, axis=1).reshape(n * t, mt + halo, c)


def downsample_conv(h, w_hwio):
    """DownSampleConv.forward: circular-H pad 3, zero-W pad 1, (7,4)/(1,2) conv
    (bias=False), training-mode BatchNorm (gamma=1, beta=0), LeakyReLU(0.2).
    h: (N, H, W, Cin) bf16 NHWC -> (N, H, W//2, Cout) bf16."""
    N, H, W, Cin = h.shape
    Cout = w_hwio.shape[-1]
    Cp = _round_up(Cout, 128)            # lane-dense output channels
    Wo = W // 2
    Hp = H + 6
    cu = 4 * Cin                         # all 4 kW taps folded into the K axis

    # F.pad(x, (0,0,3,3), 'circular') then F.pad(x, (1,1,0,0), 'constant').
    xp = jnp.concatenate([h[:, -3:], h, h[:, :3]], axis=1)
    xp = jnp.pad(xp, ((0, 0), (0, 0), (1, 1), (0, 0)))       # (N, Hp, W+2, Cin)

    th = _pick_tile_h(H, Wo)
    t = H // th
    mt, halo = th * Wo, 6 * Wo

    # kW-folded view (kw-major): a[n, h*Wo+wo, kw*Cin+c] = xp[n, h, 2*wo+kw, c].
    # Every kernel-H tap is then a constant in-kernel row shift of i*Wo.
    taps = [lax.slice_in_dim(xp, kw, kw + 2 * Wo - 1, stride=2, axis=2)
            for kw in range(4)]
    a = jnp.stack(taps, axis=3).reshape(N, Hp * Wo, cu).astype(jnp.bfloat16)
    a = _tile_rows(a, t, mt, halo)                           # (N*t, mt+halo, cu)

    wr = w_hwio.reshape(7, cu, Cout)
    wr = jnp.pad(wr, ((0, 0), (0, 0), (0, Cp - Cout))).astype(jnp.bfloat16)

    y, st = _conv_pass(a, wr, nt=N * t, mt=mt, wo=Wo, kh=7, cu=cu, cp=Cp,
                       halo_rows=halo, with_stats=True, y_dtype=jnp.bfloat16)

    # Global batch statistics from f32 per-tile partial sums (tiny XLA reduce).
    m_total = float(N * t * mt)
    s = jnp.sum(st, axis=0)                                  # (2, Cp) f32
    mean = s[0] / m_total
    var = jnp.maximum(s[1] / m_total - mean * mean, 0.0)     # clamp cancellation
    scale = lax.rsqrt(var + EPS)
    sb = jnp.stack([scale, -mean * scale], axis=0)           # (2, Cp) f32

    out = _bn_lrelu_pass(y, sb)                              # (N*t, mt, Cp) bf16
    return out.reshape(N, H, Wo, Cp)[..., :Cout]


def final_conv(h, w_hwio):
    """nn.Conv2d(ndf*8, 1, (7,4), stride=1, padding=1, bias=False); no BN/act."""
    N, H, W, Cin = h.shape
    Ho, Wo = H - 4, W - 1
    Cp = 128                                                 # pad Cout 1 -> 128
    cu = 4 * Cin

    xp = jnp.pad(h, ((0, 0), (1, 1), (1, 1), (0, 0)))        # (N, H+2, W+2, Cin)
    th = _pick_tile_h(Ho, Wo)
    t = Ho // th
    mt, halo = th * Wo, 6 * Wo

    taps = [lax.slice_in_dim(xp, kw, kw + Wo, axis=2) for kw in range(4)]
    a = jnp.stack(taps, axis=3).reshape(N, (H + 2) * Wo, cu).astype(jnp.bfloat16)
    a = _tile_rows(a, t, mt, halo)

    wr = jnp.pad(w_hwio.reshape(7, cu, 1),
                 ((0, 0), (0, 0), (0, Cp - 1))).astype(jnp.bfloat16)
    y = _conv_pass(a, wr, nt=N * t, mt=mt, wo=Wo, kh=7, cu=cu, cp=Cp,
                   halo_rows=halo, with_stats=False, y_dtype=jnp.float32)
    return y.reshape(N, Ho, Wo, Cp)[..., :1]                 # f32, drop lane pad


def init_params(key, input_channels):
    """Deterministic synthetic weights, HWIO layout: (KH, KW, Cin, Cout)."""
    chans = [input_channels, NDF, NDF * 2, NDF * 4, NDF * 8]
    params = []
    for i in range(4):
        key, sub = jax.random.split(key)
        params.append(0.05 * jax.random.normal(sub, (7, 4, chans[i], chans[i + 1]),
                                               jnp.float32))
    key, sub = jax.random.split(key)
    params.append(0.05 * jax.random.normal(sub, (7, 4, NDF * 8, 1), jnp.float32))
    return params


@jax.jit
def patchgan_forward(x_nchw, y_nchw, params):
    x = jnp.concatenate([x_nchw, y_nchw], axis=1)               # channel concat
    h = jnp.transpose(x, (0, 2, 3, 1)).astype(jnp.bfloat16)     # NCHW -> NHWC
    for w in params[:4]:
        h = downsample_conv(h, w)                               # d1..d4
    out = final_conv(h, params[4])                              # (N, Ho, Wo, 1) f32
    return jnp.transpose(out, (0, 3, 1, 2))                     # NHWC -> NCHW


# ------------------------------ XLA references ------------------------------ #
def _reference_forward(x_nchw, y_nchw, params, *, operand_dtype=jnp.float32,
                       quantize_y=False):
    """Pure-XLA reference.  operand_dtype=bfloat16 + quantize_y=True mimics the
    kernel's precision exactly (bf16 MXU operands, f32 accumulation, f32 BN
    statistics, bf16 storage of the raw conv output before the BN apply)."""
    dn = ("NHWC", "HWIO", "NHWC")
    x = jnp.concatenate([x_nchw, y_nchw], axis=1)
    h = jnp.transpose(x, (0, 2, 3, 1))
    for w in params[:4]:
        hp = jnp.concatenate([h[:, -3:], h, h[:, :3]], axis=1)
        hp = jnp.pad(hp, ((0, 0), (0, 0), (1, 1), (0, 0)))
        c = lax.conv_general_dilated(
            hp.astype(operand_dtype), w.astype(operand_dtype), (1, 2), "VALID",
            dimension_numbers=dn, preferred_element_type=jnp.float32)
        m = jnp.mean(c, axis=(0, 1, 2), keepdims=True)
        v = jnp.mean((c - m) ** 2, axis=(0, 1, 2), keepdims=True)
        cq = c.astype(jnp.bfloat16).astype(jnp.float32) if quantize_y else c
        z = (cq - m) * lax.rsqrt(v + EPS)
        h = jnp.where(z > 0, z, SLOPE * z)
    hp = jnp.pad(h, ((0, 0), (1, 1), (1, 1), (0, 0)))
    c = lax.conv_general_dilated(
        hp.astype(operand_dtype), params[4].astype(operand_dtype), (1, 1), "VALID",
        dimension_numbers=dn, preferred_element_type=jnp.float32)
    return jnp.transpose(c, (0, 3, 1, 2))


if __name__ == "__main__":
    key = jax.random.PRNGKey(0)
    kx, ky, kp = jax.random.split(key, 3)

    B, C, H, W = 2, 4, 16, 32
    x = jax.random.normal(kx, (B, C, H, W), jnp.float32)
    y = jax.random.normal(ky, (B, C, H, W), jnp.float32)
    params = init_params(kp, 2 * C)          # d1 sees the concatenated channels

    out = jax.block_until_ready(patchgan_forward(x, y, params))
    assert out.shape == (B, 1, H - 4, W // 16 - 1), out.shape

    # Structural check vs a reference with matching matmul/storage precision.
    ref_bf16 = _reference_forward(x, y, params, operand_dtype=jnp.bfloat16,
                                  quantize_y=True)
    err_t = float(jnp.max(jnp.abs(out - ref_bf16)))
    assert jnp.allclose(out, ref_bf16, atol=2e-2, rtol=2e-2), err_t

    # Loose precision sanity vs the full-f32 spec reference (bf16 operand drift).
    ref_f32 = _reference_forward(x, y, params, operand_dtype=jnp.float32)
    err_l = float(jnp.max(jnp.abs(out - ref_f32)))
    assert jnp.allclose(out, ref_f32, atol=2e-1, rtol=1e-1), err_l

    print("KERNEL_OK")
</pallas_src>

<mosaic_0001>
module attributes {stable_mosaic.version = 11 : i64} {
  func.func @_conv_kernel(%arg0: i32, %arg1: memref<1x352x32xbf16, #tpu.memory_space<vmem>>, %arg2: memref<7x32x128xbf16, #tpu.memory_space<vmem>>, %arg3: memref<1x256x128xbf16, #tpu.memory_space<vmem>>, %arg4: memref<1x2x128xf32, #tpu.memory_space<vmem>>) attributes {dimension_semantics = [#tpu.dimension_semantics<parallel>], iteration_bounds = array<i64: 2>, scalar_prefetch = 0 : i64, scratch_operands = 0 : i64, tpu.core_type = #tpu.core_type<tc>, window_params = [{transform_indices = @transform_0, window_bounds = array<i64: 1, 352, 32>}, {pipeline_mode = #tpu.pipeline_mode<synchronous>, transform_indices = @transform_1, window_bounds = array<i64: 7, 32, 128>}, {transform_indices = @transform_2, window_bounds = array<i64: 1, 256, 128>}, {transform_indices = @transform_3, window_bounds = array<i64: 1, 2, 128>}]} {
    %cst = arith.constant 0.000000e+00 : f32
    %0 = vector.broadcast %cst : f32 to vector<1x128xf32>
    %cst_0 = arith.constant 0.000000e+00 : f32
    %1 = vector.broadcast %cst_0 : f32 to vector<1x128xf32>
    %cst_1 = arith.constant 0.000000e+00 : f32
    %2 = vector.broadcast %cst_1 : f32 to vector<256x128xf32>
    %c0 = arith.constant 0 : index
    %c0_2 = arith.constant 0 : index
    %c0_3 = arith.constant 0 : index
    %3 = vector.load %arg1[%c0, %c0_2, %c0_3] : memref<1x352x32xbf16, #tpu.memory_space<vmem>>, vector<1x256x32xbf16>
    %4 = vector.shape_cast %3 : vector<1x256x32xbf16> to vector<256x32xbf16>
    %c0_4 = arith.constant 0 : index
    %c0_5 = arith.constant 0 : index
    %c0_6 = arith.constant 0 : index
    %5 = vector.load %arg2[%c0_4, %c0_5, %c0_6] : memref<7x32x128xbf16, #tpu.memory_space<vmem>>, vector<1x32x128xbf16>
    %6 = vector.shape_cast %5 : vector<1x32x128xbf16> to vector<32x128xbf16>
    %cst_7 = arith.constant dense<0.000000e+00> : vector<256x128xf32>
    %7 = tpu.matmul %4, %6, %cst_7 {dimension_numbers = #tpu.dot_dimension_numbers<[1], [0], [0], [1], [0, 0, 1, 1], [], []>} : vector<256x32xbf16>, vector<32x128xbf16>, vector<256x128xf32> -> vector<256x128xf32>
    %8 = arith.addf %2, %7 : vector<256x128xf32>
    %c0_8 = arith.constant 0 : index
    %c16 = arith.constant 16 : index
    %c0_9 = arith.constant 0 : index
    %9 = vector.load %arg1[%c0_8, %c16, %c0_9] : memref<1x352x32xbf16, #tpu.memory_space<vmem>>, vector<1x256x32xbf16>
    %10 = vector.shape_cast %9 : vector<1x256x32xbf16> to vector<256x32xbf16>
    %c1 = arith.constant 1 : index
    %c0_10 = arith.constant 0 : index
    %c0_11 = arith.constant 0 : index
    %11 = vector.load %arg2[%c1, %c0_10, %c0_11] : memref<7x32x128xbf16, #tpu.memory_space<vmem>>, vector<1x32x128xbf16>
    %12 = vector.shape_cast %11 : vector<1x32x128xbf16> to vector<32x128xbf16>
    %cst_12 = arith.constant dense<0.000000e+00> : vector<256x128xf32>
    %13 = tpu.matmul %10, %12, %cst_12 {dimension_numbers = #tpu.dot_dimension_numbers<[1], [0], [0], [1], [0, 0, 1, 1], [], []>} : vector<256x32xbf16>, vector<32x128xbf16>, vector<256x128xf32> -> vector<256x128xf32>
    %14 = arith.addf %8, %13 : vector<256x128xf32>
    %c0_13 = arith.constant 0 : index
    %c32 = arith.constant 32 : index
    %c0_14 = arith.constant 0 : index
    %15 = vector.load %arg1[%c0_13, %c32, %c0_14] : memref<1x352x32xbf16, #tpu.memory_space<vmem>>, vector<1x256x32xbf16>
    %16 = vector.shape_cast %15 : vector<1x256x32xbf16> to vector<256x32xbf16>
    %c2 = arith.constant 2 : index
    %c0_15 = arith.constant 0 : index
    %c0_16 = arith.constant 0 : index
    %17 = vector.load %arg2[%c2, %c0_15, %c0_16] : memref<7x32x128xbf16, #tpu.memory_space<vmem>>, vector<1x32x128xbf16>
    %18 = vector.shape_cast %17 : vector<1x32x128xbf16> to vector<32x128xbf16>
    %cst_17 = arith.constant dense<0.000000e+00> : vector<256x128xf32>
    %19 = tpu.matmul %16, %18, %cst_17 {dimension_numbers = #tpu.dot_dimension_numbers<[1], [0], [0], [1], [0, 0, 1, 1], [], []>} : vector<256x32xbf16>, vector<32x128xbf16>, vector<256x128xf32> -> vector<256x128xf32>
    %20 = arith.addf %14, %19 : vector<256x128xf32>
    %c0_18 = arith.constant 0 : index
    %c48 = arith.constant 48 : index
    %c0_19 = arith.constant 0 : index
    %21 = vector.load %arg1[%c0_18, %c48, %c0_19] : memref<1x352x32xbf16, #tpu.memory_space<vmem>>, vector<1x256x32xbf16>
    %22 = vector.shape_cast %21 : vector<1x256x32xbf16> to vector<256x32xbf16>
    %c3 = arith.constant 3 : index
    %c0_20 = arith.constant 0 : index
    %c0_21 = arith.constant 0 : index
    %23 = vector.load %arg2[%c3, %c0_20, %c0_21] : memref<7x32x128xbf16, #tpu.memory_space<vmem>>, vector<1x32x128xbf16>
    %24 = vector.shape_cast %23 : vector<1x32x128xbf16> to vector<32x128xbf16>
    %cst_22 = arith.constant dense<0.000000e+00> : vector<256x128xf32>
    %25 = tpu.matmul %22, %24, %cst_22 {dimension_numbers = #tpu.dot_dimension_numbers<[1], [0], [0], [1], [0, 0, 1, 1], [], []>} : vector<256x32xbf16>, vector<32x128xbf16>, vector<256x128xf32> -> vector<256x128xf32>
    %26 = arith.addf %20, %25 : vector<256x128xf32>
    %c0_23 = arith.constant 0 : index
    %c64 = arith.constant 64 : index
    %c0_24 = arith.constant 0 : index
    %27 = vector.load %arg1[%c0_23, %c64, %c0_24] : memref<1x352x32xbf16, #tpu.memory_space<vmem>>, vector<1x256x32xbf16>
    %28 = vector.shape_cast %27 : vector<1x256x32xbf16> to vector<256x32xbf16>
    %c4 = arith.constant 4 : index
    %c0_25 = arith.constant 0 : index
    %c0_26 = arith.constant 0 : index
    %29 = vector.load %arg2[%c4, %c0_25, %c0_26] : memref<7x32x128xbf16, #tpu.memory_space<vmem>>, vector<1x32x128xbf16>
    %30 = vector.shape_cast %29 : vector<1x32x128xbf16> to vector<32x128xbf16>
    %cst_27 = arith.constant dense<0.000000e+00> : vector<256x128xf32>
    %31 = tpu.matmul %28, %30, %cst_27 {dimension_numbers = #tpu.dot_dimension_numbers<[1], [0], [0], [1], [0, 0, 1, 1], [], []>} : vector<256x32xbf16>, vector<32x128xbf16>, vector<256x128xf32> -> vector<256x128xf32>
    %32 = arith.addf %26, %31 : vector<256x128xf32>
    %c0_28 = arith.constant 0 : index
    %c80 = arith.constant 80 : index
    %c0_29 = arith.constant 0 : index
    %33 = vector.load %arg1[%c0_28, %c80, %c0_29] : memref<1x352x32xbf16, #tpu.memory_space<vmem>>, vector<1x256x32xbf16>
    %34 = vector.shape_cast %33 : vector<1x256x32xbf16> to vector<256x32xbf16>
    %c5 = arith.constant 5 : index
    %c0_30 = arith.constant 0 : index
    %c0_31 = arith.constant 0 : index
    %35 = vector.load %arg2[%c5, %c0_30, %c0_31] : memref<7x32x128xbf16, #tpu.memory_space<vmem>>, vector<1x32x128xbf16>
    %36 = vector.shape_cast %35 : vector<1x32x128xbf16> to vector<32x128xbf16>
    %cst_32 = arith.constant dense<0.000000e+00> : vector<256x128xf32>
    %37 = tpu.matmul %34, %36, %cst_32 {dimension_numbers = #tpu.dot_dimension_numbers<[1], [0], [0], [1], [0, 0, 1, 1], [], []>} : vector<256x32xbf16>, vector<32x128xbf16>, vector<256x128xf32> -> vector<256x128xf32>
    %38 = arith.addf %32, %37 : vector<256x128xf32>
    %c0_33 = arith.constant 0 : index
    %c96 = arith.constant 96 : index
    %c0_34 = arith.constant 0 : index
    %39 = vector.load %arg1[%c0_33, %c96, %c0_34] : memref<1x352x32xbf16, #tpu.memory_space<vmem>>, vector<1x256x32xbf16>
    %40 = vector.shape_cast %39 : vector<1x256x32xbf16> to vector<256x32xbf16>
    %c6 = arith.constant 6 : index
    %c0_35 = arith.constant 0 : index
    %c0_36 = arith.constant 0 : index
    %41 = vector.load %arg2[%c6, %c0_35, %c0_36] : memref<7x32x128xbf16, #tpu.memory_space<vmem>>, vector<1x32x128xbf16>
    %42 = vector.shape_cast %41 : vector<1x32x128xbf16> to vector<32x128xbf16>
    %cst_37 = arith.constant dense<0.000000e+00> : vector<256x128xf32>
    %43 = tpu.matmul %40, %42, %cst_37 {dimension_numbers = #tpu.dot_dimension_numbers<[1], [0], [0], [1], [0, 0, 1, 1], [], []>} : vector<256x32xbf16>, vector<32x128xbf16>, vector<256x128xf32> -> vector<256x128xf32>
    %44 = arith.addf %38, %43 : vector<256x128xf32>
    %45 = arith.truncf %44 : vector<256x128xf32> to vector<256x128xbf16>
    %c0_38 = arith.constant 0 : index
    %c0_39 = arith.constant 0 : index
    %c0_40 = arith.constant 0 : index
    %46 = vector.load %arg3[%c0_38, %c0_39, %c0_40] : memref<1x256x128xbf16, #tpu.memory_space<vmem>>, vector<1x256x128xbf16>
    %47 = vector.shape_cast %46 : vector<1x256x128xbf16> to vector<256x128xbf16>
    %48 = vector.shape_cast %45 : vector<256x128xbf16> to vector<1x256x128xbf16>
    tpu.vector_store %arg3[%c0_38, %c0_39, %c0_40], %48 {strides = array<i32>} : memref<1x256x128xbf16, #tpu.memory_space<vmem>>, vector<1x256x128xbf16>,
    %cst_41 = arith.constant dense<0.000000e+00> : vector<128xf32>
    %49 = vector.multi_reduction <add>, %44, %cst_41 [0] : vector<256x128xf32> to vector<128xf32>
    %50 = vector.shape_cast %49 : vector<128xf32> to vector<1x128xf32>
    %51 = arith.addf %0, %50 : vector<1x128xf32>
    %52 = arith.mulf %44, %44 : vector<256x128xf32>
    %cst_42 = arith.constant dense<0.000000e+00> : vector<128xf32>
    %53 = vector.multi_reduction <add>, %52, %cst_42 [0] : vector<256x128xf32> to vector<128xf32>
    %54 = vector.shape_cast %53 : vector<128xf32> to vector<1x128xf32>
    %55 = arith.addf %1, %54 : vector<1x128xf32>
    %c0_43 = arith.constant 0 : index
    %c0_44 = arith.constant 0 : index
    %c0_45 = arith.constant 0 : index
    %56 = vector.load %arg4[%c0_43, %c0_44, %c0_45] : memref<1x2x128xf32, #tpu.memory_space<vmem>>, vector<1x1x128xf32>
    %57 = vector.shape_cast %56 : vector<1x1x128xf32> to vector<1x128xf32>
    %58 = vector.shape_cast %51 : vector<1x128xf32> to vector<1x1x128xf32>
    tpu.vector_store %arg4[%c0_43, %c0_44, %c0_45], %58 {strides = array<i32>} : memref<1x2x128xf32, #tpu.memory_space<vmem>>, vector<1x1x128xf32>,
    %c0_46 = arith.constant 0 : index
    %c1_47 = arith.constant 1 : index
    %c0_48 = arith.constant 0 : index
    %59 = vector.load %arg4[%c0_46, %c1_47, %c0_48] : memref<1x2x128xf32, #tpu.memory_space<vmem>>, vector<1x1x128xf32>
    %60 = vector.shape_cast %59 : vector<1x1x128xf32> to vector<1x128xf32>
    %61 = vector.shape_cast %55 : vector<1x128xf32> to vector<1x1x128xf32>
    tpu.vector_store %arg4[%c0_46, %c1_47, %c0_48], %61 {strides = array<i32>} : memref<1x2x128xf32, #tpu.memory_space<vmem>>, vector<1x1x128xf32>,
    return
  }
  func.func @transform_0(%arg0: i32) -> (i32, i32, i32) {
    %c0_i32 = arith.constant 0 : i32
    %c0_i32_0 = arith.constant 0 : i32
    %c0_i32_1 = arith.constant 0 : i32
    return %arg0, %c0_i32, %c0_i32_0 : i32, i32, i32
  }
  func.func @transform_1(%arg0: i32) -> (i32, i32, i32) {
    %c0_i32 = arith.constant 0 : i32
    %c0_i32_0 = arith.constant 0 : i32
    %c0_i32_1 = arith.constant 0 : i32
    %c0_i32_2 = arith.constant 0 : i32
    return %c0_i32, %c0_i32_0, %c0_i32_1 : i32, i32, i32
  }
  func.func @transform_2(%arg0: i32) -> (i32, i32, i32) {
    %c0_i32 = arith.constant 0 : i32
    %c0_i32_0 = arith.constant 0 : i32
    %c0_i32_1 = arith.constant 0 : i32
    return %arg0, %c0_i32, %c0_i32_0 : i32, i32, i32
  }
  func.func @transform_3(%arg0: i32) -> (i32, i32, i32) {
    %c0_i32 = arith.constant 0 : i32
    %c0_i32_0 = arith.constant 0 : i32
    %c0_i32_1 = arith.constant 0 : i32
    return %arg0, %c0_i32, %c0_i32_0 : i32, i32, i32
  }
}

module attributes {stable_mosaic.version = 11 : i64} {
  func.func @_bn_lrelu_kernel(%arg0: i32, %arg1: memref<1x256x128xbf16, #tpu.memory_space<vmem>>, %arg2: memref<2x128xf32, #tpu.memory_space<vmem>>, %arg3: memref<1x256x128xbf16, #tpu.memory_space<vmem>>) attributes {dimension_semantics = [#tpu.dimension_semantics<parallel>], iteration_bounds = array<i64: 2>, scalar_prefetch = 0 : i64, scratch_operands = 0 : i64, tpu.core_type = #tpu.core_type<tc>, window_params = [{transform_indices = @transform_0, window_bounds = array<i64: 1, 256, 128>}, {pipeline_mode = #tpu.pipeline_mode<synchronous>, transform_indices = @transform_1, window_bounds = array<i64: 2, 128>}, {transform_indices = @transform_2, window_bounds = array<i64: 1, 256, 128>}]} {
    %c0 = arith.constant 0 : index
    %c0_0 = arith.constant 0 : index
    %c0_1 = arith.constant 0 : index
    %0 = vector.load %arg1[%c0, %c0_0, %c0_1] : memref<1x256x128xbf16, #tpu.memory_space<vmem>>, vector<1x256x128xbf16>
    %1 = vector.shape_cast %0 : vector<1x256x128xbf16> to vector<256x128xbf16>
    %2 = arith.extf %1 : vector<256x128xbf16> to vector<256x128xf32>
    %c0_2 = arith.constant 0 : index
    %c0_3 = arith.constant 0 : index
    %3 = vector.load %arg2[%c0_2, %c0_3] : memref<2x128xf32, #tpu.memory_space<vmem>>, vector<1x128xf32>
    %4 = vector.broadcast %3 : vector<1x128xf32> to vector<256x128xf32>
    %5 = arith.mulf %2, %4 : vector<256x128xf32>
    %c1 = arith.constant 1 : index
    %c0_4 = arith.constant 0 : index
    %6 = vector.load %arg2[%c1, %c0_4] : memref<2x128xf32, #tpu.memory_space<vmem>>, vector<1x128xf32>
    %7 = vector.broadcast %6 : vector<1x128xf32> to vector<256x128xf32>
    %8 = arith.addf %5, %7 : vector<256x128xf32>
    %cst = arith.constant 0.000000e+00 : f32
    %9 = vector.broadcast %cst : f32 to vector<256x128xf32>
    %10 = arith.cmpf ogt, %8, %9 : vector<256x128xf32>
    %cst_5 = arith.constant 2.000000e-01 : f32
    %11 = vector.broadcast %cst_5 : f32 to vector<256x128xf32>
    %12 = arith.mulf %11, %8 : vector<256x128xf32>
    %13 = arith.select %10, %8, %12 : vector<256x128xi1>, vector<256x128xf32>
    %14 = arith.truncf %13 : vector<256x128xf32> to vector<256x128xbf16>
    %c0_6 = arith.constant 0 : index
    %c0_7 = arith.constant 0 : index
    %c0_8 = arith.constant 0 : index
    %15 = vector.load %arg3[%c0_6, %c0_7, %c0_8] : memref<1x256x128xbf16, #tpu.memory_space<vmem>>, vector<1x256x128xbf16>
    %16 = vector.shape_cast %15 : vector<1x256x128xbf16> to vector<256x128xbf16>
    %17 = vector.shape_cast %14 : vector<256x128xbf16> to vector<1x256x128xbf16>
    tpu.vector_store %arg3[%c0_6, %c0_7, %c0_8], %17 {strides = array<i32>} : memref<1x256x128xbf16, #tpu.memory_space<vmem>>, vector<1x256x128xbf16>,
    return
  }
  func.func @transform_0(%arg0: i32) -> (i32, i32, i32) {
    %c0_i32 = arith.constant 0 : i32
    %c0_i32_0 = arith.constant 0 : i32
    %c0_i32_1 = arith.constant 0 : i32
    return %arg0, %c0_i32, %c0_i32_0 : i32, i32, i32
  }
  func.func @transform_1(%arg0: i32) -> (i32, i32) {
    %c0_i32 = arith.constant 0 : i32
    %c0_i32_0 = arith.constant 0 : i32
    %c0_i32_1 = arith.constant 0 : i32
    return %c0_i32, %c0_i32_0 : i32, i32
  }
  func.func @transform_2(%arg0: i32) -> (i32, i32, i32) {
    %c0_i32 = arith.constant 0 : i32
    %c0_i32_0 = arith.constant 0 : i32
    %c0_i32_1 = arith.constant 0 : i32
    return %arg0, %c0_i32, %c0_i32_0 : i32, i32, i32
  }
}

module attributes {stable_mosaic.version = 11 : i64} {
  func.func @_conv_kernel(%arg0: i32, %arg1: memref<1x176x128xbf16, #tpu.memory_space<vmem>>, %arg2: memref<7x128x128xbf16, #tpu.memory_space<vmem>>, %arg3: memref<1x128x128xbf16, #tpu.memory_space<vmem>>, %arg4: memref<1x2x128xf32, #tpu.memory_space<vmem>>) attributes {dimension_semantics = [#tpu.dimension_semantics<parallel>], iteration_bounds = array<i64: 2>, scalar_prefetch = 0 : i64, scratch_operands = 0 : i64, tpu.core_type = #tpu.core_type<tc>, window_params = [{transform_indices = @transform_0, window_bounds = array<i64: 1, 176, 128>}, {pipeline_mode = #tpu.pipeline_mode<synchronous>, transform_indices = @transform_1, window_bounds = array<i64: 7, 128, 128>}, {transform_indices = @transform_2, window_bounds = array<i64: 1, 128, 128>}, {transform_indices = @transform_3, window_bounds = array<i64: 1, 2, 128>}]} {
    %cst = arith.constant 0.000000e+00 : f32
    %0 = vector.broadcast %cst : f32 to vector<1x128xf32>
    %cst_0 = arith.constant 0.000000e+00 : f32
    %1 = vector.broadcast %cst_0 : f32 to vector<1x128xf32>
    %cst_1 = arith.constant 0.000000e+00 : f32
    %2 = vector.broadcast %cst_1 : f32 to vector<128x128xf32>
    %c0 = arith.constant 0 : index
    %c0_2 = arith.constant 0 : index
    %c0_3 = arith.constant 0 : index
    %3 = vector.load %arg1[%c0, %c0_2, %c0_3] : memref<1x176x128xbf16, #tpu.memory_space<vmem>>, vector<1x128x128xbf16>
    %4 = vector.shape_cast %3 : vector<1x128x128xbf16> to vector<128x128xbf16>
    %c0_4 = arith.constant 0 : index
    %c0_5 = arith.constant 0 : index
    %c0_6 = arith.constant 0 : index
    %5 = vector.load %arg2[%c0_4, %c0_5, %c0_6] : memref<7x128x128xbf16, #tpu.memory_space<vmem>>, vector<1x128x128xbf16>
    %6 = vector.shape_cast %5 : vector<1x128x128xbf16> to vector<128x128xbf16>
    %cst_7 = arith.constant dense<0.000000e+00> : vector<128x128xf32>
    %7 = tpu.matmul %4, %6, %cst_7 {dimension_numbers = #tpu.dot_dimension_numbers<[1], [0], [0], [1], [0, 0, 1, 1], [], []>} : vector<128x128xbf16>, vector<128x128xbf16>, vector<128x128xf32> -> vector<128x128xf32>
    %8 = arith.addf %2, %7 : vector<128x128xf32>
    %c0_8 = arith.constant 0 : index
    %c8 = arith.constant 8 : index
    %c0_9 = arith.constant 0 : index
    %9 = vector.load %arg1[%c0_8, %c8, %c0_9] : memref<1x176x128xbf16, #tpu.memory_space<vmem>>, vector<1x128x128xbf16>
    %10 = vector.shape_cast %9 : vector<1x128x128xbf16> to vector<128x128xbf16>
    %c1 = arith.constant 1 : index
    %c0_10 = arith.constant 0 : index
    %c0_11 = arith.constant 0 : index
    %11 = vector.load %arg2[%c1, %c0_10, %c0_11] : memref<7x128x128xbf16, #tpu.memory_space<vmem>>, vector<1x128x128xbf16>
    %12 = vector.shape_cast %11 : vector<1x128x128xbf16> to vector<128x128xbf16>
    %cst_12 = arith.constant dense<0.000000e+00> : vector<128x128xf32>
    %13 = tpu.matmul %10, %12, %cst_12 {dimension_numbers = #tpu.dot_dimension_numbers<[1], [0], [0], [1], [0, 0, 1, 1], [], []>} : vector<128x128xbf16>, vector<128x128xbf16>, vector<128x128xf32> -> vector<128x128xf32>
    %14 = arith.addf %8, %13 : vector<128x128xf32>
    %c0_13 = arith.constant 0 : index
    %c16 = arith.constant 16 : index
    %c0_14 = arith.constant 0 : index
    %15 = vector.load %arg1[%c0_13, %c16, %c0_14] : memref<1x176x128xbf16, #tpu.memory_space<vmem>>, vector<1x128x128xbf16>
    %16 = vector.shape_cast %15 : vector<1x128x128xbf16> to vector<128x128xbf16>
    %c2 = arith.constant 2 : index
    %c0_15 = arith.constant 0 : index
    %c0_16 = arith.constant 0 : index
    %17 = vector.load %arg2[%c2, %c0_15, %c0_16] : memref<7x128x128xbf16, #tpu.memory_space<vmem>>, vector<1x128x128xbf16>
    %18 = vector.shape_cast %17 : vector<1x128x128xbf16> to vector<128x128xbf16>
    %cst_17 = arith.constant dense<0.000000e+00> : vector<128x128xf32>
    %19 = tpu.matmul %16, %18, %cst_17 {dimension_numbers = #tpu.dot_dimension_numbers<[1], [0], [0], [1], [0, 0, 1, 1], [], []>} : vector<128x128xbf16>, vector<128x128xbf16>, vector<128x128xf32> -> vector<128x128xf32>
    %20 = arith.addf %14, %19 : vector<128x128xf32>
    %c0_18 = arith.constant 0 : index
    %c24 = arith.constant 24 : index
    %c0_19 = arith.constant 0 : index
    %21 = vector.load %arg1[%c0_18, %c24, %c0_19] : memref<1x176x128xbf16, #tpu.memory_space<vmem>>, vector<1x128x128xbf16>
    %22 = vector.shape_cast %21 : vector<1x128x128xbf16> to vector<128x128xbf16>
    %c3 = arith.constant 3 : index
    %c0_20 = arith.constant 0 : index
    %c0_21 = arith.constant 0 : index
    %23 = vector.load %arg2[%c3, %c0_20, %c0_21] : memref<7x128x128xbf16, #tpu.memory_space<vmem>>, vector<1x128x128xbf16>
    %24 = vector.shape_cast %23 : vector<1x128x128xbf16> to vector<128x128xbf16>
    %cst_22 = arith.constant dense<0.000000e+00> : vector<128x128xf32>
    %25 = tpu.matmul %22, %24, %cst_22 {dimension_numbers = #tpu.dot_dimension_numbers<[1], [0], [0], [1], [0, 0, 1, 1], [], []>} : vector<128x128xbf16>, vector<128x128xbf16>, vector<128x128xf32> -> vector<128x128xf32>
    %26 = arith.addf %20, %25 : vector<128x128xf32>
    %c0_23 = arith.constant 0 : index
    %c32 = arith.constant 32 : index
    %c0_24 = arith.constant 0 : index
    %27 = vector.load %arg1[%c0_23, %c32, %c0_24] : memref<1x176x128xbf16, #tpu.memory_space<vmem>>, vector<1x128x128xbf16>
    %28 = vector.shape_cast %27 : vector<1x128x128xbf16> to vector<128x128xbf16>
    %c4 = arith.constant 4 : index
    %c0_25 = arith.constant 0 : index
    %c0_26 = arith.constant 0 : index
    %29 = vector.load %arg2[%c4, %c0_25, %c0_26] : memref<7x128x128xbf16, #tpu.memory_space<vmem>>, vector<1x128x128xbf16>
    %30 = vector.shape_cast %29 : vector<1x128x128xbf16> to vector<128x128xbf16>
    %cst_27 = arith.constant dense<0.000000e+00> : vector<128x128xf32>
    %31 = tpu.matmul %28, %30, %cst_27 {dimension_numbers = #tpu.dot_dimension_numbers<[1], [0], [0], [1], [0, 0, 1, 1], [], []>} : vector<128x128xbf16>, vector<128x128xbf16>, vector<128x128xf32> -> vector<128x128xf32>
    %32 = arith.addf %26, %31 : vector<128x128xf32>
    %c0_28 = arith.constant 0 : index
    %c40 = arith.constant 40 : index
    %c0_29 = arith.constant 0 : index
    %33 = vector.load %arg1[%c0_28, %c40, %c0_29] : memref<1x176x128xbf16, #tpu.memory_space<vmem>>, vector<1x128x128xbf16>
    %34 = vector.shape_cast %33 : vector<1x128x128xbf16> to vector<128x128xbf16>
    %c5 = arith.constant 5 : index
    %c0_30 = arith.constant 0 : index
    %c0_31 = arith.constant 0 : index
    %35 = vector.load %arg2[%c5, %c0_30, %c0_31] : memref<7x128x128xbf16, #tpu.memory_space<vmem>>, vector<1x128x128xbf16>
    %36 = vector.shape_cast %35 : vector<1x128x128xbf16> to vector<128x128xbf16>
    %cst_32 = arith.constant dense<0.000000e+00> : vector<128x128xf32>
    %37 = tpu.matmul %34, %36, %cst_32 {dimension_numbers = #tpu.dot_dimension_numbers<[1], [0], [0], [1], [0, 0, 1, 1], [], []>} : vector<128x128xbf16>, vector<128x128xbf16>, vector<128x128xf32> -> vector<128x128xf32>
    %38 = arith.addf %32, %37 : vector<128x128xf32>
    %c0_33 = arith.constant 0 : index
    %c48 = arith.constant 48 : index
    %c0_34 = arith.constant 0 : index
    %39 = vector.load %arg1[%c0_33, %c48, %c0_34] : memref<1x176x128xbf16, #tpu.memory_space<vmem>>, vector<1x128x128xbf16>
    %40 = vector.shape_cast %39 : vector<1x128x128xbf16> to vector<128x128xbf16>
    %c6 = arith.constant 6 : index
    %c0_35 = arith.constant 0 : index
    %c0_36 = arith.constant 0 : index
    %41 = vector.load %arg2[%c6, %c0_35, %c0_36] : memref<7x128x128xbf16, #tpu.memory_space<vmem>>, vector<1x128x128xbf16>
    %42 = vector.shape_cast %41 : vector<1x128x128xbf16> to vector<128x128xbf16>
    %cst_37 = arith.constant dense<0.000000e+00> : vector<128x128xf32>
    %43 = tpu.matmul %40, %42, %cst_37 {dimension_numbers = #tpu.dot_dimension_numbers<[1], [0], [0], [1], [0, 0, 1, 1], [], []>} : vector<128x128xbf16>, vector<128x128xbf16>, vector<128x128xf32> -> vector<128x128xf32>
    %44 = arith.addf %38, %43 : vector<128x128xf32>
    %45 = arith.truncf %44 : vector<128x128xf32> to vector<128x128xbf16>
    %c0_38 = arith.constant 0 : index
    %c0_39 = arith.constant 0 : index
    %c0_40 = arith.constant 0 : index
    %46 = vector.load %arg3[%c0_38, %c0_39, %c0_40] : memref<1x128x128xbf16, #tpu.memory_space<vmem>>, vector<1x128x128xbf16>
    %47 = vector.shape_cast %46 : vector<1x128x128xbf16> to vector<128x128xbf16>
    %48 = vector.shape_cast %45 : vector<128x128xbf16> to vector<1x128x128xbf16>
    tpu.vector_store %arg3[%c0_38, %c0_39, %c0_40], %48 {strides = array<i32>} : memref<1x128x128xbf16, #tpu.memory_space<vmem>>, vector<1x128x128xbf16>,
    %cst_41 = arith.constant dense<0.000000e+00> : vector<128xf32>
    %49 = vector.multi_reduction <add>, %44, %cst_41 [0] : vector<128x128xf32> to vector<128xf32>
    %50 = vector.shape_cast %49 : vector<128xf32> to vector<1x128xf32>
    %51 = arith.addf %0, %50 : vector<1x128xf32>
    %52 = arith.mulf %44, %44 : vector<128x128xf32>
    %cst_42 = arith.constant dense<0.000000e+00> : vector<128xf32>
    %53 = vector.multi_reduction <add>, %52, %cst_42 [0] : vector<128x128xf32> to vector<128xf32>
    %54 = vector.shape_cast %53 : vector<128xf32> to vector<1x128xf32>
    %55 = arith.addf %1, %54 : vector<1x128xf32>
    %c0_43 = arith.constant 0 : index
    %c0_44 = arith.constant 0 : index
    %c0_45 = arith.constant 0 : index
    %56 = vector.load %arg4[%c0_43, %c0_44, %c0_45] : memref<1x2x128xf32, #tpu.memory_space<vmem>>, vector<1x1x128xf32>
    %57 = vector.shape_cast %56 : vector<1x1x128xf32> to vector<1x128xf32>
    %58 = vector.shape_cast %51 : vector<1x128xf32> to vector<1x1x128xf32>
    tpu.vector_store %arg4[%c0_43, %c0_44, %c0_45], %58 {strides = array<i32>} : memref<1x2x128xf32, #tpu.memory_space<vmem>>, vector<1x1x128xf32>,
    %c0_46 = arith.constant 0 : index
    %c1_47 = arith.constant 1 : index
    %c0_48 = arith.constant 0 : index
    %59 = vector.load %arg4[%c0_46, %c1_47, %c0_48] : memref<1x2x128xf32, #tpu.memory_space<vmem>>, vector<1x1x128xf32>
    %60 = vector.shape_cast %59 : vector<1x1x128xf32> to vector<1x128xf32>
    %61 = vector.shape_cast %55 : vector<1x128xf32> to vector<1x1x128xf32>
    tpu.vector_store %arg4[%c0_46, %c1_47, %c0_48], %61 {strides = array<i32>} : memref<1x2x128xf32, #tpu.memory_space<vmem>>, vector<1x1x128xf32>,
    return
  }
  func.func @transform_0(%arg0: i32) -> (i32, i32, i32) {
    %c0_i32 = arith.constant 0 : i32
    %c0_i32_0 = arith.constant 0 : i32
    %c0_i32_1 = arith.constant 0 : i32
    return %arg0, %c0_i32, %c0_i32_0 : i32, i32, i32
  }
  func.func @transform_1(%arg0: i32) -> (i32, i32, i32) {
    %c0_i32 = arith.constant 0 : i32
    %c0_i32_0 = arith.constant 0 : i32
    %c0_i32_1 = arith.constant 0 : i32
    %c0_i32_2 = arith.constant 0 : i32
    return %c0_i32, %c0_i32_0, %c0_i32_1 : i32, i32, i32
  }
  func.func @transform_2(%arg0: i32) -> (i32, i32, i32) {
    %c0_i32 = arith.constant 0 : i32
    %c0_i32_0 = arith.constant 0 : i32
    %c0_i32_1 = arith.constant 0 : i32
    return %arg0, %c0_i32, %c0_i32_0 : i32, i32, i32
  }
  func.func @transform_3(%arg0: i32) -> (i32, i32, i32) {
    %c0_i32 = arith.constant 0 : i32
    %c0_i32_0 = arith.constant 0 : i32
    %c0_i32_1 = arith.constant 0 : i32
    return %arg0, %c0_i32, %c0_i32_0 : i32, i32, i32
  }
}

module attributes {stable_mosaic.version = 11 : i64} {
  func.func @_bn_lrelu_kernel(%arg0: i32, %arg1: memref<1x128x128xbf16, #tpu.memory_space<vmem>>, %arg2: memref<2x128xf32, #tpu.memory_space<vmem>>, %arg3: memref<1x128x128xbf16, #tpu.memory_space<vmem>>) attributes {dimension_semantics = [#tpu.dimension_semantics<parallel>], iteration_bounds = array<i64: 2>, scalar_prefetch = 0 : i64, scratch_operands = 0 : i64, tpu.core_type = #tpu.core_type<tc>, window_params = [{transform_indices = @transform_0, window_bounds = array<i64: 1, 128, 128>}, {pipeline_mode = #tpu.pipeline_mode<synchronous>, transform_indices = @transform_1, window_bounds = array<i64: 2, 128>}, {transform_indices = @transform_2, window_bounds = array<i64: 1, 128, 128>}]} {
    %c0 = arith.constant 0 : index
    %c0_0 = arith.constant 0 : index
    %c0_1 = arith.constant 0 : index
    %0 = vector.load %arg1[%c0, %c0_0, %c0_1] : memref<1x128x128xbf16, #tpu.memory_space<vmem>>, vector<1x128x128xbf16>
    %1 = vector.shape_cast %0 : vector<1x128x128xbf16> to vector<128x128xbf16>
    %2 = arith.extf %1 : vector<128x128xbf16> to vector<128x128xf32>
    %c0_2 = arith.constant 0 : index
    %c0_3 = arith.constant 0 : index
    %3 = vector.load %arg2[%c0_2, %c0_3] : memref<2x128xf32, #tpu.memory_space<vmem>>, vector<1x128xf32>
    %4 = vector.broadcast %3 : vector<1x128xf32> to vector<128x128xf32>
    %5 = arith.mulf %2, %4 : vector<128x128xf32>
    %c1 = arith.constant 1 : index
    %c0_4 = arith.constant 0 : index
    %6 = vector.load %arg2[%c1, %c0_4] : memref<2x128xf32, #tpu.memory_space<vmem>>, vector<1x128xf32>
    %7 = vector.broadcast %6 : vector<1x128xf32> to vector<128x128xf32>
    %8 = arith.addf %5, %7 : vector<128x128xf32>
    %cst = arith.constant 0.000000e+00 : f32
    %9 = vector.broadcast %cst : f32 to vector<128x128xf32>
    %10 = arith.cmpf ogt, %8, %9 : vector<128x128xf32>
    %cst_5 = arith.constant 2.000000e-01 : f32
    %11 = vector.broadcast %cst_5 : f32 to vector<128x128xf32>
    %12 = arith.mulf %11, %8 : vector<128x128xf32>
    %13 = arith.select %10, %8, %12 : vector<128x128xi1>, vector<128x128xf32>
    %14 = arith.truncf %13 : vector<128x128xf32> to vector<128x128xbf16>
    %c0_6 = arith.constant 0 : index
    %c0_7 = arith.constant 0 : index
    %c0_8 = arith.constant 0 : index
    %15 = vector.load %arg3[%c0_6, %c0_7, %c0_8] : memref<1x128x128xbf16, #tpu.memory_space<vmem>>, vector<1x128x128xbf16>
    %16 = vector.shape_cast %15 : vector<1x128x128xbf16> to vector<128x128xbf16>
    %17 = vector.shape_cast %14 : vector<128x128xbf16> to vector<1x128x128xbf16>
    tpu.vector_store %arg3[%c0_6, %c0_7, %c0_8], %17 {strides = array<i32>} : memref<1x128x128xbf16, #tpu.memory_space<vmem>>, vector<1x128x128xbf16>,
    return
  }
  func.func @transform_0(%arg0: i32) -> (i32, i32, i32) {
    %c0_i32 = arith.constant 0 : i32
    %c0_i32_0 = arith.constant 0 : i32
    %c0_i32_1 = arith.constant 0 : i32
    return %arg0, %c0_i32, %c0_i32_0 : i32, i32, i32
  }
  func.func @transform_1(%arg0: i32) -> (i32, i32) {
    %c0_i32 = arith.constant 0 : i32
    %c0_i32_0 = arith.constant 0 : i32
    %c0_i32_1 = arith.constant 0 : i32
    return %c0_i32, %c0_i32_0 : i32, i32
  }
  func.func @transform_2(%arg0: i32) -> (i32, i32, i32) {
    %c0_i32 = arith.constant 0 : i32
    %c0_i32_0 = arith.constant 0 : i32
    %c0_i32_1 = arith.constant 0 : i32
    return %arg0, %c0_i32, %c0_i32_0 : i32, i32, i32
  }
}

module attributes {stable_mosaic.version = 11 : i64} {
  func.func @_conv_kernel(%arg0: i32, %arg1: memref<1x88x256xbf16, #tpu.memory_space<vmem>>, %arg2: memref<7x256x128xbf16, #tpu.memory_space<vmem>>, %arg3: memref<1x64x128xbf16, #tpu.memory_space<vmem>>, %arg4: memref<1x2x128xf32, #tpu.memory_space<vmem>>) attributes {dimension_semantics = [#tpu.dimension_semantics<parallel>], iteration_bounds = array<i64: 2>, scalar_prefetch = 0 : i64, scratch_operands = 0 : i64, tpu.core_type = #tpu.core_type<tc>, window_params = [{transform_indices = @transform_0, window_bounds = array<i64: 1, 88, 256>}, {pipeline_mode = #tpu.pipeline_mode<synchronous>, transform_indices = @transform_1, window_bounds = array<i64: 7, 256, 128>}, {transform_indices = @transform_2, window_bounds = array<i64: 1, 64, 128>}, {transform_indices = @transform_3, window_bounds = array<i64: 1, 2, 128>}]} {
    %cst = arith.constant 0.000000e+00 : f32
    %0 = vector.broadcast %cst : f32 to vector<1x128xf32>
    %cst_0 = arith.constant 0.000000e+00 : f32
    %1 = vector.broadcast %cst_0 : f32 to vector<1x128xf32>
    %cst_1 = arith.constant 0.000000e+00 : f32
    %2 = vector.broadcast %cst_1 : f32 to vector<64x128xf32>
    %c0 = arith.constant 0 : index
    %c0_2 = arith.constant 0 : index
    %c0_3 = arith.constant 0 : index
    %3 = vector.load %arg1[%c0, %c0_2, %c0_3] : memref<1x88x256xbf16, #tpu.memory_space<vmem>>, vector<1x64x256xbf16>
    %4 = vector.shape_cast %3 : vector<1x64x256xbf16> to vector<64x256xbf16>
    %c0_4 = arith.constant 0 : index
    %c0_5 = arith.constant 0 : index
    %c0_6 = arith.constant 0 : index
    %5 = vector.load %arg2[%c0_4, %c0_5, %c0_6] : memref<7x256x128xbf16, #tpu.memory_space<vmem>>, vector<1x256x128xbf16>
    %6 = vector.shape_cast %5 : vector<1x256x128xbf16> to vector<256x128xbf16>
    %cst_7 = arith.constant dense<0.000000e+00> : vector<64x128xf32>
    %7 = tpu.matmul %4, %6, %cst_7 {dimension_numbers = #tpu.dot_dimension_numbers<[1], [0], [0], [1], [0, 0, 1, 1], [], []>} : vector<64x256xbf16>, vector<256x128xbf16>, vector<64x128xf32> -> vector<64x128xf32>
    %8 = arith.addf %2, %7 : vector<64x128xf32>
    %c0_8 = arith.constant 0 : index
    %c4 = arith.constant 4 : index
    %c0_9 = arith.constant 0 : index
    %9 = vector.load %arg1[%c0_8, %c4, %c0_9] : memref<1x88x256xbf16, #tpu.memory_space<vmem>>, vector<1x64x256xbf16>
    %10 = vector.shape_cast %9 : vector<1x64x256xbf16> to vector<64x256xbf16>
    %c1 = arith.constant 1 : index
    %c0_10 = arith.constant 0 : index
    %c0_11 = arith.constant 0 : index
    %11 = vector.load %arg2[%c1, %c0_10, %c0_11] : memref<7x256x128xbf16, #tpu.memory_space<vmem>>, vector<1x256x128xbf16>
    %12 = vector.shape_cast %11 : vector<1x256x128xbf16> to vector<256x128xbf16>
    %cst_12 = arith.constant dense<0.000000e+00> : vector<64x128xf32>
    %13 = tpu.matmul %10, %12, %cst_12 {dimension_numbers = #tpu.dot_dimension_numbers<[1], [0], [0], [1], [0, 0, 1, 1], [], []>} : vector<64x256xbf16>, vector<256x128xbf16>, vector<64x128xf32> -> vector<64x128xf32>
    %14 = arith.addf %8, %13 : vector<64x128xf32>
    %c0_13 = arith.constant 0 : index
    %c8 = arith.constant 8 : index
    %c0_14 = arith.constant 0 : index
    %15 = vector.load %arg1[%c0_13, %c8, %c0_14] : memref<1x88x256xbf16, #tpu.memory_space<vmem>>, vector<1x64x256xbf16>
    %16 = vector.shape_cast %15 : vector<1x64x256xbf16> to vector<64x256xbf16>
    %c2 = arith.constant 2 : index
    %c0_15 = arith.constant 0 : index
    %c0_16 = arith.constant 0 : index
    %17 = vector.load %arg2[%c2, %c0_15, %c0_16] : memref<7x256x128xbf16, #tpu.memory_space<vmem>>, vector<1x256x128xbf16>
    %18 = vector.shape_cast %17 : vector<1x256x128xbf16> to vector<256x128xbf16>
    %cst_17 = arith.constant dense<0.000000e+00> : vector<64x128xf32>
    %19 = tpu.matmul %16, %18, %cst_17 {dimension_numbers = #tpu.dot_dimension_numbers<[1], [0], [0], [1], [0, 0, 1, 1], [], []>} : vector<64x256xbf16>, vector<256x128xbf16>, vector<64x128xf32> -> vector<64x128xf32>
    %20 = arith.addf %14, %19 : vector<64x128xf32>
    %c0_18 = arith.constant 0 : index
    %c12 = arith.constant 12 : index
    %c0_19 = arith.constant 0 : index
    %21 = vector.load %arg1[%c0_18, %c12, %c0_19] : memref<1x88x256xbf16, #tpu.memory_space<vmem>>, vector<1x64x256xbf16>
    %22 = vector.shape_cast %21 : vector<1x64x256xbf16> to vector<64x256xbf16>
    %c3 = arith.constant 3 : index
    %c0_20 = arith.constant 0 : index
    %c0_21 = arith.constant 0 : index
    %23 = vector.load %arg2[%c3, %c0_20, %c0_21] : memref<7x256x128xbf16, #tpu.memory_space<vmem>>, vector<1x256x128xbf16>
    %24 = vector.shape_cast %23 : vector<1x256x128xbf16> to vector<256x128xbf16>
    %cst_22 = arith.constant dense<0.000000e+00> : vector<64x128xf32>
    %25 = tpu.matmul %22, %24, %cst_22 {dimension_numbers = #tpu.dot_dimension_numbers<[1], [0], [0], [1], [0, 0, 1, 1], [], []>} : vector<64x256xbf16>, vector<256x128xbf16>, vector<64x128xf32> -> vector<64x128xf32>
    %26 = arith.addf %20, %25 : vector<64x128xf32>
    %c0_23 = arith.constant 0 : index
    %c16 = arith.constant 16 : index
    %c0_24 = arith.constant 0 : index
    %27 = vector.load %arg1[%c0_23, %c16, %c0_24] : memref<1x88x256xbf16, #tpu.memory_space<vmem>>, vector<1x64x256xbf16>
    %28 = vector.shape_cast %27 : vector<1x64x256xbf16> to vector<64x256xbf16>
    %c4_25 = arith.constant 4 : index
    %c0_26 = arith.constant 0 : index
    %c0_27 = arith.constant 0 : index
    %29 = vector.load %arg2[%c4_25, %c0_26, %c0_27] : memref<7x256x128xbf16, #tpu.memory_space<vmem>>, vector<1x256x128xbf16>
    %30 = vector.shape_cast %29 : vector<1x256x128xbf16> to vector<256x128xbf16>
    %cst_28 = arith.constant dense<0.000000e+00> : vector<64x128xf32>
    %31 = tpu.matmul %28, %30, %cst_28 {dimension_numbers = #tpu.dot_dimension_numbers<[1], [0], [0], [1], [0, 0, 1, 1], [], []>} : vector<64x256xbf16>, vector<256x128xbf16>, vector<64x128xf32> -> vector<64x128xf32>
    %32 = arith.addf %26, %31 : vector<64x128xf32>
    %c0_29 = arith.constant 0 : index
    %c20 = arith.constant 20 : index
    %c0_30 = arith.constant 0 : index
    %33 = vector.load %arg1[%c0_29, %c20, %c0_30] : memref<1x88x256xbf16, #tpu.memory_space<vmem>>, vector<1x64x256xbf16>
    %34 = vector.shape_cast %33 : vector<1x64x256xbf16> to vector<64x256xbf16>
    %c5 = arith.constant 5 : index
    %c0_31 = arith.constant 0 : index
    %c0_32 = arith.constant 0 : index
    %35 = vector.load %arg2[%c5, %c0_31, %c0_32] : memref<7x256x128xbf16, #tpu.memory_space<vmem>>, vector<1x256x128xbf16>
    %36 = vector.shape_cast %35 : vector<1x256x128xbf16> to vector<256x128xbf16>
    %cst_33 = arith.constant dense<0.000000e+00> : vector<64x128xf32>
    %37 = tpu.matmul %34, %36, %cst_33 {dimension_numbers = #tpu.dot_dimension_numbers<[1], [0], [0], [1], [0, 0, 1, 1], [], []>} : vector<64x256xbf16>, vector<256x128xbf16>, vector<64x128xf32> -> vector<64x128xf32>
    %38 = arith.addf %32, %37 : vector<64x128xf32>
    %c0_34 = arith.constant 0 : index
    %c24 = arith.constant 24 : index
    %c0_35 = arith.constant 0 : index
    %39 = vector.load %arg1[%c0_34, %c24, %c0_35] : memref<1x88x256xbf16, #tpu.memory_space<vmem>>, vector<1x64x256xbf16>
    %40 = vector.shape_cast %39 : vector<1x64x256xbf16> to vector<64x256xbf16>
    %c6 = arith.constant 6 : index
    %c0_36 = arith.constant 0 : index
    %c0_37 = arith.constant 0 : index
    %41 = vector.load %arg2[%c6, %c0_36, %c0_37] : memref<7x256x128xbf16, #tpu.memory_space<vmem>>, vector<1x256x128xbf16>
    %42 = vector.shape_cast %41 : vector<1x256x128xbf16> to vector<256x128xbf16>
    %cst_38 = arith.constant dense<0.000000e+00> : vector<64x128xf32>
    %43 = tpu.matmul %40, %42, %cst_38 {dimension_numbers = #tpu.dot_dimension_numbers<[1], [0], [0], [1], [0, 0, 1, 1], [], []>} : vector<64x256xbf16>, vector<256x128xbf16>, vector<64x128xf32> -> vector<64x128xf32>
    %44 = arith.addf %38, %43 : vector<64x128xf32>
    %45 = arith.truncf %44 : vector<64x128xf32> to vector<64x128xbf16>
    %c0_39 = arith.constant 0 : index
    %c0_40 = arith.constant 0 : index
    %c0_41 = arith.constant 0 : index
    %46 = vector.load %arg3[%c0_39, %c0_40, %c0_41] : memref<1x64x128xbf16, #tpu.memory_space<vmem>>, vector<1x64x128xbf16>
    %47 = vector.shape_cast %46 : vector<1x64x128xbf16> to vector<64x128xbf16>
    %48 = vector.shape_cast %45 : vector<64x128xbf16> to vector<1x64x128xbf16>
    tpu.vector_store %arg3[%c0_39, %c0_40, %c0_41], %48 {strides = array<i32>} : memref<1x64x128xbf16, #tpu.memory_space<vmem>>, vector<1x64x128xbf16>,
    %cst_42 = arith.constant dense<0.000000e+00> : vector<128xf32>
    %49 = vector.multi_reduction <add>, %44, %cst_42 [0] : vector<64x128xf32> to vector<128xf32>
    %50 = vector.shape_cast %49 : vector<128xf32> to vector<1x128xf32>
    %51 = arith.addf %0, %50 : vector<1x128xf32>
    %52 = arith.mulf %44, %44 : vector<64x128xf32>
    %cst_43 = arith.constant dense<0.000000e+00> : vector<128xf32>
    %53 = vector.multi_reduction <add>, %52, %cst_43 [0] : vector<64x128xf32> to vector<128xf32>
    %54 = vector.shape_cast %53 : vector<128xf32> to vector<1x128xf32>
    %55 = arith.addf %1, %54 : vector<1x128xf32>
    %c0_44 = arith.constant 0 : index
    %c0_45 = arith.constant 0 : index
    %c0_46 = arith.constant 0 : index
    %56 = vector.load %arg4[%c0_44, %c0_45, %c0_46] : memref<1x2x128xf32, #tpu.memory_space<vmem>>, vector<1x1x128xf32>
    %57 = vector.shape_cast %56 : vector<1x1x128xf32> to vector<1x128xf32>
    %58 = vector.shape_cast %51 : vector<1x128xf32> to vector<1x1x128xf32>
    tpu.vector_store %arg4[%c0_44, %c0_45, %c0_46], %58 {strides = array<i32>} : memref<1x2x128xf32, #tpu.memory_space<vmem>>, vector<1x1x128xf32>,
    %c0_47 = arith.constant 0 : index
    %c1_48 = arith.constant 1 : index
    %c0_49 = arith.constant 0 : index
    %59 = vector.load %arg4[%c0_47, %c1_48, %c0_49] : memref<1x2x128xf32, #tpu.memory_space<vmem>>, vector<1x1x128xf32>
    %60 = vector.shape_cast %59 : vector<1x1x128xf32> to vector<1x128xf32>
    %61 = vector.shape_cast %55 : vector<1x128xf32> to vector<1x1x128xf32>
    tpu.vector_store %arg4[%c0_47, %c1_48, %c0_49], %61 {strides = array<i32>} : memref<1x2x128xf32, #tpu.memory_space<vmem>>, vector<1x1x128xf32>,
    return
  }
  func.func @transform_0(%arg0: i32) -> (i32, i32, i32) {
    %c0_i32 = arith.constant 0 : i32
    %c0_i32_0 = arith.constant 0 : i32
    %c0_i32_1 = arith.constant 0 : i32
    return %arg0, %c0_i32, %c0_i32_0 : i32, i32, i32
  }
  func.func @transform_1(%arg0: i32) -> (i32, i32, i32) {
    %c0_i32 = arith.constant 0 : i32
    %c0_i32_0 = arith.constant 0 : i32
    %c0_i32_1 = arith.constant 0 : i32
    %c0_i32_2 = arith.constant 0 : i32
    return %c0_i32, %c0_i32_0, %c0_i32_1 : i32, i32, i32
  }
  func.func @transform_2(%arg0: i32) -> (i32, i32, i32) {
    %c0_i32 = arith.constant 0 : i32
    %c0_i32_0 = arith.constant 0 : i32
    %c0_i32_1 = arith.constant 0 : i32
    return %arg0, %c0_i32, %c0_i32_0 : i32, i32, i32
  }
  func.func @transform_3(%arg0: i32) -> (i32, i32, i32) {
    %c0_i32 = arith.constant 0 : i32
    %c0_i32_0 = arith.constant 0 : i32
    %c0_i32_1 = arith.constant 0 : i32
    return %arg0, %c0_i32, %c0_i32_0 : i32, i32, i32
  }
}

module attributes {stable_mosaic.version = 11 : i64} {
  func.func @_bn_lrelu_kernel(%arg0: i32, %arg1: memref<1x64x128xbf16, #tpu.memory_space<vmem>>, %arg2: memref<2x128xf32, #tpu.memory_space<vmem>>, %arg3: memref<1x64x128xbf16, #tpu.memory_space<vmem>>) attributes {dimension_semantics = [#tpu.dimension_semantics<parallel>], iteration_bounds = array<i64: 2>, scalar_prefetch = 0 : i64, scratch_operands = 0 : i64, tpu.core_type = #tpu.core_type<tc>, window_params = [{transform_indices = @transform_0, window_bounds = array<i64: 1, 64, 128>}, {pipeline_mode = #tpu.pipeline_mode<synchronous>, transform_indices = @transform_1, window_bounds = array<i64: 2, 128>}, {transform_indices = @transform_2, window_bounds = array<i64: 1, 64, 128>}]} {
    %c0 = arith.constant 0 : index
    %c0_0 = arith.constant 0 : index
    %c0_1 = arith.constant 0 : index
    %0 = vector.load %arg1[%c0, %c0_0, %c0_1] : memref<1x64x128xbf16, #tpu.memory_space<vmem>>, vector<1x64x128xbf16>
    %1 = vector.shape_cast %0 : vector<1x64x128xbf16> to vector<64x128xbf16>
    %2 = arith.extf %1 : vector<64x128xbf16> to vector<64x128xf32>
    %c0_2 = arith.constant 0 : index
    %c0_3 = arith.constant 0 : index
    %3 = vector.load %arg2[%c0_2, %c0_3] : memref<2x128xf32, #tpu.memory_space<vmem>>, vector<1x128xf32>
    %4 = vector.broadcast %3 : vector<1x128xf32> to vector<64x128xf32>
    %5 = arith.mulf %2, %4 : vector<64x128xf32>
    %c1 = arith.constant 1 : index
    %c0_4 = arith.constant 0 : index
    %6 = vector.load %arg2[%c1, %c0_4] : memref<2x128xf32, #tpu.memory_space<vmem>>, vector<1x128xf32>
    %7 = vector.broadcast %6 : vector<1x128xf32> to vector<64x128xf32>
    %8 = arith.addf %5, %7 : vector<64x128xf32>
    %cst = arith.constant 0.000000e+00 : f32
    %9 = vector.broadcast %cst : f32 to vector<64x128xf32>
    %10 = arith.cmpf ogt, %8, %9 : vector<64x128xf32>
    %cst_5 = arith.constant 2.000000e-01 : f32
    %11 = vector.broadcast %cst_5 : f32 to vector<64x128xf32>
    %12 = arith.mulf %11, %8 : vector<64x128xf32>
    %13 = arith.select %10, %8, %12 : vector<64x128xi1>, vector<64x128xf32>
    %14 = arith.truncf %13 : vector<64x128xf32> to vector<64x128xbf16>
    %c0_6 = arith.constant 0 : index
    %c0_7 = arith.constant 0 : index
    %c0_8 = arith.constant 0 : index
    %15 = vector.load %arg3[%c0_6, %c0_7, %c0_8] : memref<1x64x128xbf16, #tpu.memory_space<vmem>>, vector<1x64x128xbf16>
    %16 = vector.shape_cast %15 : vector<1x64x128xbf16> to vector<64x128xbf16>
    %17 = vector.shape_cast %14 : vector<64x128xbf16> to vector<1x64x128xbf16>
    tpu.vector_store %arg3[%c0_6, %c0_7, %c0_8], %17 {strides = array<i32>} : memref<1x64x128xbf16, #tpu.memory_space<vmem>>, vector<1x64x128xbf16>,
    return
  }
  func.func @transform_0(%arg0: i32) -> (i32, i32, i32) {
    %c0_i32 = arith.constant 0 : i32
    %c0_i32_0 = arith.constant 0 : i32
    %c0_i32_1 = arith.constant 0 : i32
    return %arg0, %c0_i32, %c0_i32_0 : i32, i32, i32
  }
  func.func @transform_1(%arg0: i32) -> (i32, i32) {
    %c0_i32 = arith.constant 0 : i32
    %c0_i32_0 = arith.constant 0 : i32
    %c0_i32_1 = arith.constant 0 : i32
    return %c0_i32, %c0_i32_0 : i32, i32
  }
  func.func @transform_2(%arg0: i32) -> (i32, i32, i32) {
    %c0_i32 = arith.constant 0 : i32
    %c0_i32_0 = arith.constant 0 : i32
    %c0_i32_1 = arith.constant 0 : i32
    return %arg0, %c0_i32, %c0_i32_0 : i32, i32, i32
  }
}

module attributes {stable_mosaic.version = 11 : i64} {
  func.func @_conv_kernel(%arg0: i32, %arg1: memref<1x44x512xbf16, #tpu.memory_space<vmem>>, %arg2: memref<7x512x256xbf16, #tpu.memory_space<vmem>>, %arg3: memref<1x32x256xbf16, #tpu.memory_space<vmem>>, %arg4: memref<1x2x256xf32, #tpu.memory_space<vmem>>) attributes {dimension_semantics = [#tpu.dimension_semantics<parallel>], iteration_bounds = array<i64: 2>, scalar_prefetch = 0 : i64, scratch_operands = 0 : i64, tpu.core_type = #tpu.core_type<tc>, window_params = [{transform_indices = @transform_0, window_bounds = array<i64: 1, 44, 512>}, {pipeline_mode = #tpu.pipeline_mode<synchronous>, transform_indices = @transform_1, window_bounds = array<i64: 7, 512, 256>}, {transform_indices = @transform_2, window_bounds = array<i64: 1, 32, 256>}, {transform_indices = @transform_3, window_bounds = array<i64: 1, 2, 256>}]} {
    %cst = arith.constant 0.000000e+00 : f32
    %0 = vector.broadcast %cst : f32 to vector<1x256xf32>
    %cst_0 = arith.constant 0.000000e+00 : f32
    %1 = vector.broadcast %cst_0 : f32 to vector<1x256xf32>
    %cst_1 = arith.constant 0.000000e+00 : f32
    %2 = vector.broadcast %cst_1 : f32 to vector<32x256xf32>
    %c0 = arith.constant 0 : index
    %c0_2 = arith.constant 0 : index
    %c0_3 = arith.constant 0 : index
    %3 = vector.load %arg1[%c0, %c0_2, %c0_3] : memref<1x44x512xbf16, #tpu.memory_space<vmem>>, vector<1x32x512xbf16>
    %4 = vector.shape_cast %3 : vector<1x32x512xbf16> to vector<32x512xbf16>
    %c0_4 = arith.constant 0 : index
    %c0_5 = arith.constant 0 : index
    %c0_6 = arith.constant 0 : index
    %5 = vector.load %arg2[%c0_4, %c0_5, %c0_6] : memref<7x512x256xbf16, #tpu.memory_space<vmem>>, vector<1x512x256xbf16>
    %6 = vector.shape_cast %5 : vector<1x512x256xbf16> to vector<512x256xbf16>
    %cst_7 = arith.constant dense<0.000000e+00> : vector<32x256xf32>
    %7 = tpu.matmul %4, %6, %cst_7 {dimension_numbers = #tpu.dot_dimension_numbers<[1], [0], [0], [1], [0, 0, 1, 1], [], []>} : vector<32x512xbf16>, vector<512x256xbf16>, vector<32x256xf32> -> vector<32x256xf32>
    %8 = arith.addf %2, %7 : vector<32x256xf32>
    %c0_8 = arith.constant 0 : index
    %c2 = arith.constant 2 : index
    %c0_9 = arith.constant 0 : index
    %9 = vector.load %arg1[%c0_8, %c2, %c0_9] : memref<1x44x512xbf16, #tpu.memory_space<vmem>>, vector<1x32x512xbf16>
    %10 = vector.shape_cast %9 : vector<1x32x512xbf16> to vector<32x512xbf16>
    %c1 = arith.constant 1 : index
    %c0_10 = arith.constant 0 : index
    %c0_11 = arith.constant 0 : index
    %11 = vector.load %arg2[%c1, %c0_10, %c0_11] : memref<7x512x256xbf16, #tpu.memory_space<vmem>>, vector<1x512x256xbf16>
    %12 = vector.shape_cast %11 : vector<1x512x256xbf16> to vector<512x256xbf16>
    %cst_12 = arith.constant dense<0.000000e+00> : vector<32x256xf32>
    %13 = tpu.matmul %10, %12, %cst_12 {dimension_numbers = #tpu.dot_dimension_numbers<[1], [0], [0], [1], [0, 0, 1, 1], [], []>} : vector<32x512xbf16>, vector<512x256xbf16>, vector<32x256xf32> -> vector<32x256xf32>
    %14 = arith.addf %8, %13 : vector<32x256xf32>
    %c0_13 = arith.constant 0 : index
    %c4 = arith.constant 4 : index
    %c0_14 = arith.constant 0 : index
    %15 = vector.load %arg1[%c0_13, %c4, %c0_14] : memref<1x44x512xbf16, #tpu.memory_space<vmem>>, vector<1x32x512xbf16>
    %16 = vector.shape_cast %15 : vector<1x32x512xbf16> to vector<32x512xbf16>
    %c2_15 = arith.constant 2 : index
    %c0_16 = arith.constant 0 : index
    %c0_17 = arith.constant 0 : index
    %17 = vector.load %arg2[%c2_15, %c0_16, %c0_17] : memref<7x512x256xbf16, #tpu.memory_space<vmem>>, vector<1x512x256xbf16>
    %18 = vector.shape_cast %17 : vector<1x512x256xbf16> to vector<512x256xbf16>
    %cst_18 = arith.constant dense<0.000000e+00> : vector<32x256xf32>
    %19 = tpu.matmul %16, %18, %cst_18 {dimension_numbers = #tpu.dot_dimension_numbers<[1], [0], [0], [1], [0, 0, 1, 1], [], []>} : vector<32x512xbf16>, vector<512x256xbf16>, vector<32x256xf32> -> vector<32x256xf32>
    %20 = arith.addf %14, %19 : vector<32x256xf32>
    %c0_19 = arith.constant 0 : index
    %c6 = arith.constant 6 : index
    %c0_20 = arith.constant 0 : index
    %21 = vector.load %arg1[%c0_19, %c6, %c0_20] : memref<1x44x512xbf16, #tpu.memory_space<vmem>>, vector<1x32x512xbf16>
    %22 = vector.shape_cast %21 : vector<1x32x512xbf16> to vector<32x512xbf16>
    %c3 = arith.constant 3 : index
    %c0_21 = arith.constant 0 : index
    %c0_22 = arith.constant 0 : index
    %23 = vector.load %arg2[%c3, %c0_21, %c0_22] : memref<7x512x256xbf16, #tpu.memory_space<vmem>>, vector<1x512x256xbf16>
    %24 = vector.shape_cast %23 : vector<1x512x256xbf16> to vector<512x256xbf16>
    %cst_23 = arith.constant dense<0.000000e+00> : vector<32x256xf32>
    %25 = tpu.matmul %22, %24, %cst_23 {dimension_numbers = #tpu.dot_dimension_numbers<[1], [0], [0], [1], [0, 0, 1, 1], [], []>} : vector<32x512xbf16>, vector<512x256xbf16>, vector<32x256xf32> -> vector<32x256xf32>
    %26 = arith.addf %20, %25 : vector<32x256xf32>
    %c0_24 = arith.constant 0 : index
    %c8 = arith.constant 8 : index
    %c0_25 = arith.constant 0 : index
    %27 = vector.load %arg1[%c0_24, %c8, %c0_25] : memref<1x44x512xbf16, #tpu.memory_space<vmem>>, vector<1x32x512xbf16>
    %28 = vector.shape_cast %27 : vector<1x32x512xbf16> to vector<32x512xbf16>
    %c4_26 = arith.constant 4 : index
    %c0_27 = arith.constant 0 : index
    %c0_28 = arith.constant 0 : index
    %29 = vector.load %arg2[%c4_26, %c0_27, %c0_28] : memref<7x512x256xbf16, #tpu.memory_space<vmem>>, vector<1x512x256xbf16>
    %30 = vector.shape_cast %29 : vector<1x512x256xbf16> to vector<512x256xbf16>
    %cst_29 = arith.constant dense<0.000000e+00> : vector<32x256xf32>
    %31 = tpu.matmul %28, %30, %cst_29 {dimension_numbers = #tpu.dot_dimension_numbers<[1], [0], [0], [1], [0, 0, 1, 1], [], []>} : vector<32x512xbf16>, vector<512x256xbf16>, vector<32x256xf32> -> vector<32x256xf32>
    %32 = arith.addf %26, %31 : vector<32x256xf32>
    %c0_30 = arith.constant 0 : index
    %c10 = arith.constant 10 : index
    %c0_31 = arith.constant 0 : index
    %33 = vector.load %arg1[%c0_30, %c10, %c0_31] : memref<1x44x512xbf16, #tpu.memory_space<vmem>>, vector<1x32x512xbf16>
    %34 = vector.shape_cast %33 : vector<1x32x512xbf16> to vector<32x512xbf16>
    %c5 = arith.constant 5 : index
    %c0_32 = arith.constant 0 : index
    %c0_33 = arith.constant 0 : index
    %35 = vector.load %arg2[%c5, %c0_32, %c0_33] : memref<7x512x256xbf16, #tpu.memory_space<vmem>>, vector<1x512x256xbf16>
    %36 = vector.shape_cast %35 : vector<1x512x256xbf16> to vector<512x256xbf16>
    %cst_34 = arith.constant dense<0.000000e+00> : vector<32x256xf32>
    %37 = tpu.matmul %34, %36, %cst_34 {dimension_numbers = #tpu.dot_dimension_numbers<[1], [0], [0], [1], [0, 0, 1, 1], [], []>} : vector<32x512xbf16>, vector<512x256xbf16>, vector<32x256xf32> -> vector<32x256xf32>
    %38 = arith.addf %32, %37 : vector<32x256xf32>
    %c0_35 = arith.constant 0 : index
    %c12 = arith.constant 12 : index
    %c0_36 = arith.constant 0 : index
    %39 = vector.load %arg1[%c0_35, %c12, %c0_36] : memref<1x44x512xbf16, #tpu.memory_space<vmem>>, vector<1x32x512xbf16>
    %40 = vector.shape_cast %39 : vector<1x32x512xbf16> to vector<32x512xbf16>
    %c6_37 = arith.constant 6 : index
    %c0_38 = arith.constant 0 : index
    %c0_39 = arith.constant 0 : index
    %41 = vector.load %arg2[%c6_37, %c0_38, %c0_39] : memref<7x512x256xbf16, #tpu.memory_space<vmem>>, vector<1x512x256xbf16>
    %42 = vector.shape_cast %41 : vector<1x512x256xbf16> to vector<512x256xbf16>
    %cst_40 = arith.constant dense<0.000000e+00> : vector<32x256xf32>
    %43 = tpu.matmul %40, %42, %cst_40 {dimension_numbers = #tpu.dot_dimension_numbers<[1], [0], [0], [1], [0, 0, 1, 1], [], []>} : vector<32x512xbf16>, vector<512x256xbf16>, vector<32x256xf32> -> vector<32x256xf32>
    %44 = arith.addf %38, %43 : vector<32x256xf32>
    %45 = arith.truncf %44 : vector<32x256xf32> to vector<32x256xbf16>
    %c0_41 = arith.constant 0 : index
    %c0_42 = arith.constant 0 : index
    %c0_43 = arith.constant 0 : index
    %46 = vector.load %arg3[%c0_41, %c0_42, %c0_43] : memref<1x32x256xbf16, #tpu.memory_space<vmem>>, vector<1x32x256xbf16>
    %47 = vector.shape_cast %46 : vector<1x32x256xbf16> to vector<32x256xbf16>
    %48 = vector.shape_cast %45 : vector<32x256xbf16> to vector<1x32x256xbf16>
    tpu.vector_store %arg3[%c0_41, %c0_42, %c0_43], %48 {strides = array<i32>} : memref<1x32x256xbf16, #tpu.memory_space<vmem>>, vector<1x32x256xbf16>,
    %cst_44 = arith.constant dense<0.000000e+00> : vector<256xf32>
    %49 = vector.multi_reduction <add>, %44, %cst_44 [0] : vector<32x256xf32> to vector<256xf32>
    %50 = vector.shape_cast %49 : vector<256xf32> to vector<1x256xf32>
    %51 = arith.addf %0, %50 : vector<1x256xf32>
    %52 = arith.mulf %44, %44 : vector<32x256xf32>
    %cst_45 = arith.constant dense<0.000000e+00> : vector<256xf32>
    %53 = vector.multi_reduction <add>, %52, %cst_45 [0] : vector<32x256xf32> to vector<256xf32>
    %54 = vector.shape_cast %53 : vector<256xf32> to vector<1x256xf32>
    %55 = arith.addf %1, %54 : vector<1x256xf32>
    %c0_46 = arith.constant 0 : index
    %c0_47 = arith.constant 0 : index
    %c0_48 = arith.constant 0 : index
    %56 = vector.load %arg4[%c0_46, %c0_47, %c0_48] : memref<1x2x256xf32, #tpu.memory_space<vmem>>, vector<1x1x256xf32>
    %57 = vector.shape_cast %56 : vector<1x1x256xf32> to vector<1x256xf32>
    %58 = vector.shape_cast %51 : vector<1x256xf32> to vector<1x1x256xf32>
    tpu.vector_store %arg4[%c0_46, %c0_47, %c0_48], %58 {strides = array<i32>} : memref<1x2x256xf32, #tpu.memory_space<vmem>>, vector<1x1x256xf32>,
    %c0_49 = arith.constant 0 : index
    %c1_50 = arith.constant 1 : index
    %c0_51 = arith.constant 0 : index
    %59 = vector.load %arg4[%c0_49, %c1_50, %c0_51] : memref<1x2x256xf32, #tpu.memory_space<vmem>>, vector<1x1x256xf32>
    %60 = vector.shape_cast %59 : vector<1x1x256xf32> to vector<1x256xf32>
    %61 = vector.shape_cast %55 : vector<1x256xf32> to vector<1x1x256xf32>
    tpu.vector_store %arg4[%c0_49, %c1_50, %c0_51], %61 {strides = array<i32>} : memref<1x2x256xf32, #tpu.memory_space<vmem>>, vector<1x1x256xf32>,
    return
  }
  func.func @transform_0(%arg0: i32) -> (i32, i32, i32) {
    %c0_i32 = arith.constant 0 : i32
    %c0_i32_0 = arith.constant 0 : i32
    %c0_i32_1 = arith.constant 0 : i32
    return %arg0, %c0_i32, %c0_i32_0 : i32, i32, i32
  }
  func.func @transform_1(%arg0: i32) -> (i32, i32, i32) {
    %c0_i32 = arith.constant 0 : i32
    %c0_i32_0 = arith.constant 0 : i32
    %c0_i32_1 = arith.constant 0 : i32
    %c0_i32_2 = arith.constant 0 : i32
    return %c0_i32, %c0_i32_0, %c0_i32_1 : i32, i32, i32
  }
  func.func @transform_2(%arg0: i32) -> (i32, i32, i32) {
    %c0_i32 = arith.constant 0 : i32
    %c0_i32_0 = arith.constant 0 : i32
    %c0_i32_1 = arith.constant 0 : i32
    return %arg0, %c0_i32, %c0_i32_0 : i32, i32, i32
  }
  func.func @transform_3(%arg0: i32) -> (i32, i32, i32) {
    %c0_i32 = arith.constant 0 : i32
    %c0_i32_0 = arith.constant 0 : i32
    %c0_i32_1 = arith.constant 0 : i32
    return %arg0, %c0_i32, %c0_i32_0 : i32, i32, i32
  }
}

module attributes {stable_mosaic.version = 11 : i64} {
  func.func @_bn_lrelu_kernel(%arg0: i32, %arg1: memref<1x32x256xbf16, #tpu.memory_space<vmem>>, %arg2: memref<2x256xf32, #tpu.memory_space<vmem>>, %arg3: memref<1x32x256xbf16, #tpu.memory_space<vmem>>) attributes {dimension_semantics = [#tpu.dimension_semantics<parallel>], iteration_bounds = array<i64: 2>, scalar_prefetch = 0 : i64, scratch_operands = 0 : i64, tpu.core_type = #tpu.core_type<tc>, window_params = [{transform_indices = @transform_0, window_bounds = array<i64: 1, 32, 256>}, {pipeline_mode = #tpu.pipeline_mode<synchronous>, transform_indices = @transform_1, window_bounds = array<i64: 2, 256>}, {transform_indices = @transform_2, window_bounds = array<i64: 1, 32, 256>}]} {
    %c0 = arith.constant 0 : index
    %c0_0 = arith.constant 0 : index
    %c0_1 = arith.constant 0 : index
    %0 = vector.load %arg1[%c0, %c0_0, %c0_1] : memref<1x32x256xbf16, #tpu.memory_space<vmem>>, vector<1x32x256xbf16>
    %1 = vector.shape_cast %0 : vector<1x32x256xbf16> to vector<32x256xbf16>
    %2 = arith.extf %1 : vector<32x256xbf16> to vector<32x256xf32>
    %c0_2 = arith.constant 0 : index
    %c0_3 = arith.constant 0 : index
    %3 = vector.load %arg2[%c0_2, %c0_3] : memref<2x256xf32, #tpu.memory_space<vmem>>, vector<1x256xf32>
    %4 = vector.broadcast %3 : vector<1x256xf32> to vector<32x256xf32>
    %5 = arith.mulf %2, %4 : vector<32x256xf32>
    %c1 = arith.constant 1 : index
    %c0_4 = arith.constant 0 : index
    %6 = vector.load %arg2[%c1, %c0_4] : memref<2x256xf32, #tpu.memory_space<vmem>>, vector<1x256xf32>
    %7 = vector.broadcast %6 : vector<1x256xf32> to vector<32x256xf32>
    %8 = arith.addf %5, %7 : vector<32x256xf32>
    %cst = arith.constant 0.000000e+00 : f32
    %9 = vector.broadcast %cst : f32 to vector<32x256xf32>
    %10 = arith.cmpf ogt, %8, %9 : vector<32x256xf32>
    %cst_5 = arith.constant 2.000000e-01 : f32
    %11 = vector.broadcast %cst_5 : f32 to vector<32x256xf32>
    %12 = arith.mulf %11, %8 : vector<32x256xf32>
    %13 = arith.select %10, %8, %12 : vector<32x256xi1>, vector<32x256xf32>
    %14 = arith.truncf %13 : vector<32x256xf32> to vector<32x256xbf16>
    %c0_6 = arith.constant 0 : index
    %c0_7 = arith.constant 0 : index
    %c0_8 = arith.constant 0 : index
    %15 = vector.load %arg3[%c0_6, %c0_7, %c0_8] : memref<1x32x256xbf16, #tpu.memory_space<vmem>>, vector<1x32x256xbf16>
    %16 = vector.shape_cast %15 : vector<1x32x256xbf16> to vector<32x256xbf16>
    %17 = vector.shape_cast %14 : vector<32x256xbf16> to vector<1x32x256xbf16>
    tpu.vector_store %arg3[%c0_6, %c0_7, %c0_8], %17 {strides = array<i32>} : memref<1x32x256xbf16, #tpu.memory_space<vmem>>, vector<1x32x256xbf16>,
    return
  }
  func.func @transform_0(%arg0: i32) -> (i32, i32, i32) {
    %c0_i32 = arith.constant 0 : i32
    %c0_i32_0 = arith.constant 0 : i32
    %c0_i32_1 = arith.constant 0 : i32
    return %arg0, %c0_i32, %c0_i32_0 : i32, i32, i32
  }
  func.func @transform_1(%arg0: i32) -> (i32, i32) {
    %c0_i32 = arith.constant 0 : i32
    %c0_i32_0 = arith.constant 0 : i32
    %c0_i32_1 = arith.constant 0 : i32
    return %c0_i32, %c0_i32_0 : i32, i32
  }
  func.func @transform_2(%arg0: i32) -> (i32, i32, i32) {
    %c0_i32 = arith.constant 0 : i32
    %c0_i32_0 = arith.constant 0 : i32
    %c0_i32_1 = arith.constant 0 : i32
    return %arg0, %c0_i32, %c0_i32_0 : i32, i32, i32
  }
}

module attributes {stable_mosaic.version = 11 : i64} {
  func.func @_conv_kernel(%arg0: i32, %arg1: memref<1x18x1024xbf16, #tpu.memory_space<vmem>>, %arg2: memref<7x1024x128xbf16, #tpu.memory_space<vmem>>, %arg3: memref<1x12x128xf32, #tpu.memory_space<vmem>>) attributes {dimension_semantics = [#tpu.dimension_semantics<parallel>], iteration_bounds = array<i64: 2>, scalar_prefetch = 0 : i64, scratch_operands = 0 : i64, tpu.core_type = #tpu.core_type<tc>, window_params = [{transform_indices = @transform_0, window_bounds = array<i64: 1, 18, 1024>}, {pipeline_mode = #tpu.pipeline_mode<synchronous>, transform_indices = @transform_1, window_bounds = array<i64: 7, 1024, 128>}, {transform_indices = @transform_2, window_bounds = array<i64: 1, 12, 128>}]} {
    %cst = arith.constant 0.000000e+00 : f32
    %0 = vector.broadcast %cst : f32 to vector<12x128xf32>
    %c0 = arith.constant 0 : index
    %c0_0 = arith.constant 0 : index
    %c0_1 = arith.constant 0 : index
    %1 = vector.load %arg1[%c0, %c0_0, %c0_1] : memref<1x18x1024xbf16, #tpu.memory_space<vmem>>, vector<1x12x1024xbf16>
    %2 = vector.shape_cast %1 : vector<1x12x1024xbf16> to vector<12x1024xbf16>
    %c0_2 = arith.constant 0 : index
    %c0_3 = arith.constant 0 : index
    %c0_4 = arith.constant 0 : index
    %3 = vector.load %arg2[%c0_2, %c0_3, %c0_4] : memref<7x1024x128xbf16, #tpu.memory_space<vmem>>, vector<1x1024x128xbf16>
    %4 = vector.shape_cast %3 : vector<1x1024x128xbf16> to vector<1024x128xbf16>
    %cst_5 = arith.constant dense<0.000000e+00> : vector<12x128xf32>
    %5 = tpu.matmul %2, %4, %cst_5 {dimension_numbers = #tpu.dot_dimension_numbers<[1], [0], [0], [1], [0, 0, 1, 1], [], []>} : vector<12x1024xbf16>, vector<1024x128xbf16>, vector<12x128xf32> -> vector<12x128xf32>
    %6 = arith.addf %0, %5 : vector<12x128xf32>
    %c0_6 = arith.constant 0 : index
    %c1 = arith.constant 1 : index
    %c0_7 = arith.constant 0 : index
    %7 = vector.load %arg1[%c0_6, %c1, %c0_7] : memref<1x18x1024xbf16, #tpu.memory_space<vmem>>, vector<1x12x1024xbf16>
    %8 = vector.shape_cast %7 : vector<1x12x1024xbf16> to vector<12x1024xbf16>
    %c1_8 = arith.constant 1 : index
    %c0_9 = arith.constant 0 : index
    %c0_10 = arith.constant 0 : index
    %9 = vector.load %arg2[%c1_8, %c0_9, %c0_10] : memref<7x1024x128xbf16, #tpu.memory_space<vmem>>, vector<1x1024x128xbf16>
    %10 = vector.shape_cast %9 : vector<1x1024x128xbf16> to vector<1024x128xbf16>
    %cst_11 = arith.constant dense<0.000000e+00> : vector<12x128xf32>
    %11 = tpu.matmul %8, %10, %cst_11 {dimension_numbers = #tpu.dot_dimension_numbers<[1], [0], [0], [1], [0, 0, 1, 1], [], []>} : vector<12x1024xbf16>, vector<1024x128xbf16>, vector<12x128xf32> -> vector<12x128xf32>
    %12 = arith.addf %6, %11 : vector<12x128xf32>
    %c0_12 = arith.constant 0 : index
    %c2 = arith.constant 2 : index
    %c0_13 = arith.constant 0 : index
    %13 = vector.load %arg1[%c0_12, %c2, %c0_13] : memref<1x18x1024xbf16, #tpu.memory_space<vmem>>, vector<1x12x1024xbf16>
    %14 = vector.shape_cast %13 : vector<1x12x1024xbf16> to vector<12x1024xbf16>
    %c2_14 = arith.constant 2 : index
    %c0_15 = arith.constant 0 : index
    %c0_16 = arith.constant 0 : index
    %15 = vector.load %arg2[%c2_14, %c0_15, %c0_16] : memref<7x1024x128xbf16, #tpu.memory_space<vmem>>, vector<1x1024x128xbf16>
    %16 = vector.shape_cast %15 : vector<1x1024x128xbf16> to vector<1024x128xbf16>
    %cst_17 = arith.constant dense<0.000000e+00> : vector<12x128xf32>
    %17 = tpu.matmul %14, %16, %cst_17 {dimension_numbers = #tpu.dot_dimension_numbers<[1], [0], [0], [1], [0, 0, 1, 1], [], []>} : vector<12x1024xbf16>, vector<1024x128xbf16>, vector<12x128xf32> -> vector<12x128xf32>
    %18 = arith.addf %12, %17 : vector<12x128xf32>
    %c0_18 = arith.constant 0 : index
    %c3 = arith.constant 3 : index
    %c0_19 = arith.constant 0 : index
    %19 = vector.load %arg1[%c0_18, %c3, %c0_19] : memref<1x18x1024xbf16, #tpu.memory_space<vmem>>, vector<1x12x1024xbf16>
    %20 = vector.shape_cast %19 : vector<1x12x1024xbf16> to vector<12x1024xbf16>
    %c3_20 = arith.constant 3 : index
    %c0_21 = arith.constant 0 : index
    %c0_22 = arith.constant 0 : index
    %21 = vector.load %arg2[%c3_20, %c0_21, %c0_22] : memref<7x1024x128xbf16, #tpu.memory_space<vmem>>, vector<1x1024x128xbf16>
    %22 = vector.shape_cast %21 : vector<1x1024x128xbf16> to vector<1024x128xbf16>
    %cst_23 = arith.constant dense<0.000000e+00> : vector<12x128xf32>
    %23 = tpu.matmul %20, %22, %cst_23 {dimension_numbers = #tpu.dot_dimension_numbers<[1], [0], [0], [1], [0, 0, 1, 1], [], []>} : vector<12x1024xbf16>, vector<1024x128xbf16>, vector<12x128xf32> -> vector<12x128xf32>
    %24 = arith.addf %18, %23 : vector<12x128xf32>
    %c0_24 = arith.constant 0 : index
    %c4 = arith.constant 4 : index
    %c0_25 = arith.constant 0 : index
    %25 = vector.load %arg1[%c0_24, %c4, %c0_25] : memref<1x18x1024xbf16, #tpu.memory_space<vmem>>, vector<1x12x1024xbf16>
    %26 = vector.shape_cast %25 : vector<1x12x1024xbf16> to vector<12x1024xbf16>
    %c4_26 = arith.constant 4 : index
    %c0_27 = arith.constant 0 : index
    %c0_28 = arith.constant 0 : index
    %27 = vector.load %arg2[%c4_26, %c0_27, %c0_28] : memref<7x1024x128xbf16, #tpu.memory_space<vmem>>, vector<1x1024x128xbf16>
    %28 = vector.shape_cast %27 : vector<1x1024x128xbf16> to vector<1024x128xbf16>
    %cst_29 = arith.constant dense<0.000000e+00> : vector<12x128xf32>
    %29 = tpu.matmul %26, %28, %cst_29 {dimension_numbers = #tpu.dot_dimension_numbers<[1], [0], [0], [1], [0, 0, 1, 1], [], []>} : vector<12x1024xbf16>, vector<1024x128xbf16>, vector<12x128xf32> -> vector<12x128xf32>
    %30 = arith.addf %24, %29 : vector<12x128xf32>
    %c0_30 = arith.constant 0 : index
    %c5 = arith.constant 5 : index
    %c0_31 = arith.constant 0 : index
    %31 = vector.load %arg1[%c0_30, %c5, %c0_31] : memref<1x18x1024xbf16, #tpu.memory_space<vmem>>, vector<1x12x1024xbf16>
    %32 = vector.shape_cast %31 : vector<1x12x1024xbf16> to vector<12x1024xbf16>
    %c5_32 = arith.constant 5 : index
    %c0_33 = arith.constant 0 : index
    %c0_34 = arith.constant 0 : index
    %33 = vector.load %arg2[%c5_32, %c0_33, %c0_34] : memref<7x1024x128xbf16, #tpu.memory_space<vmem>>, vector<1x1024x128xbf16>
    %34 = vector.shape_cast %33 : vector<1x1024x128xbf16> to vector<1024x128xbf16>
    %cst_35 = arith.constant dense<0.000000e+00> : vector<12x128xf32>
    %35 = tpu.matmul %32, %34, %cst_35 {dimension_numbers = #tpu.dot_dimension_numbers<[1], [0], [0], [1], [0, 0, 1, 1], [], []>} : vector<12x1024xbf16>, vector<1024x128xbf16>, vector<12x128xf32> -> vector<12x128xf32>
    %36 = arith.addf %30, %35 : vector<12x128xf32>
    %c0_36 = arith.constant 0 : index
    %c6 = arith.constant 6 : index
    %c0_37 = arith.constant 0 : index
    %37 = vector.load %arg1[%c0_36, %c6, %c0_37] : memref<1x18x1024xbf16, #tpu.memory_space<vmem>>, vector<1x12x1024xbf16>
    %38 = vector.shape_cast %37 : vector<1x12x1024xbf16> to vector<12x1024xbf16>
    %c6_38 = arith.constant 6 : index
    %c0_39 = arith.constant 0 : index
    %c0_40 = arith.constant 0 : index
    %39 = vector.load %arg2[%c6_38, %c0_39, %c0_40] : memref<7x1024x128xbf16, #tpu.memory_space<vmem>>, vector<1x1024x128xbf16>
    %40 = vector.shape_cast %39 : vector<1x1024x128xbf16> to vector<1024x128xbf16>
    %cst_41 = arith.constant dense<0.000000e+00> : vector<12x128xf32>
    %41 = tpu.matmul %38, %40, %cst_41 {dimension_numbers = #tpu.dot_dimension_numbers<[1], [0], [0], [1], [0, 0, 1, 1], [], []>} : vector<12x1024xbf16>, vector<1024x128xbf16>, vector<12x128xf32> -> vector<12x128xf32>
    %42 = arith.addf %36, %41 : vector<12x128xf32>
    %c0_42 = arith.constant 0 : index
    %c0_43 = arith.constant 0 : index
    %c0_44 = arith.constant 0 : index
    %43 = vector.load %arg3[%c0_42, %c0_43, %c0_44] : memref<1x12x128xf32, #tpu.memory_space<vmem>>, vector<1x12x128xf32>
    %44 = vector.shape_cast %43 : vector<1x12x128xf32> to vector<12x128xf32>
    %45 = vector.shape_cast %42 : vector<12x128xf32> to vector<1x12x128xf32>
    tpu.vector_store %arg3[%c0_42, %c0_43, %c0_44], %45 {strides = array<i32>} : memref<1x12x128xf32, #tpu.memory_space<vmem>>, vector<1x12x128xf32>,
    return
  }
  func.func @transform_0(%arg0: i32) -> (i32, i32, i32) {
    %c0_i32 = arith.constant 0 : i32
    %c0_i32_0 = arith.constant 0 : i32
    %c0_i32_1 = arith.constant 0 : i32
    return %arg0, %c0_i32, %c0_i32_0 : i32, i32, i32
  }
  func.func @transform_1(%arg0: i32) -> (i32, i32, i32) {
    %c0_i32 = arith.constant 0 : i32
    %c0_i32_0 = arith.constant 0 : i32
    %c0_i32_1 = arith.constant 0 : i32
    %c0_i32_2 = arith.constant 0 : i32
    return %c0_i32, %c0_i32_0, %c0_i32_1 : i32, i32, i32
  }
  func.func @transform_2(%arg0: i32) -> (i32, i32, i32) {
    %c0_i32 = arith.constant 0 : i32
    %c0_i32_0 = arith.constant 0 : i32
    %c0_i32_1 = arith.constant 0 : i32
    return %arg0, %c0_i32, %c0_i32_0 : i32, i32, i32
  }
}

</mosaic_0001>

<bundles_post_ra>
// kernel: patchgan_forward.10
= control target key start
LH: loop header
LB: loop body
LE: loop exit
PB: predicated region body
PF: predicated region fallthrough
CT: control target
= control target key end

     0   :  { %s877_s9 = smov 0   ;;  %s1012_s0 = inlined_call_operand.vmem [shape: bf16[2,256,128], index: 0, kind: input, shape index: {}]   ;;  %s1013_s1 = inlined_call_operand.vmem [shape: f32[2,128], index: 1, kind: input, shape index: {}]   ;;  %s1014_s2 = inlined_call_operand.vmem [shape: bf16[2,256,128], index: 2, kind: output, shape index: {}]  }
   0x1 LB: > { %s593_s10 = sadd.s32 4294967295, %s860_s9   ;;  %p597_p0 = scmp.ge.s32.totalorder %s860_s9, 1  ;;  %s860_s9 = sphi %s877_s9, %s12_s9  }
   0x2   : > { %p112_p1 = scmp.lt.s32.totalorder %s860_s9, 3 }
   0x4   : > { %p113_p2 = pnand %p597_p0, %p112_p1 }
   0x5   : > { %p134_p3 = scmp.lt.s32.totalorder (!%p113_p2), %s593_s10, 1  ;;  %v898_v0 = vld [vmem:[%s1013_s1] ss:$0 sm:$0xff] (!%p113_p2)  ;;  %v907_v9 = vld [vmem:[%s1013_s1 + $0x1] ss:$0 sm:$0xff] (!%p113_p2) }
   0x6   : > { %116 = sbr.rel (%p113_p2) target bundleno = 76 (0x4c), region = 28 }
   0xd   : > { %s1016_s10 = smov (!%p134_p3, %s593_s10), 1 }
   0xe   : > { %s638_s11 = sshll.u32 %s1016_s10, 7 }
   0xf   : > { %s893_s14 = scalar_lea.vmem %s1012_s0, %s638_s11  ;;  %s930_s21 = scalar_lea.vmem %s1014_s2, %s638_s11 }
  0x10   : > { %v673_v1 = vld [vmem:[%s893_s14] sm:$0xff]   ;;  %v816_v2 = vld [vmem:[%s893_s14 + $0x8] sm:$0xff]   ;;  %v817_v3 = vld [vmem:[%s893_s14 + $0x10] sm:$0xff]  }
  0x11   : > { %v674_v4 = vunpack.c.l.bf16 %v673_v1  ;;  %v675_v5 = vunpack.c.h.bf16 %v673_v1  ;;  %v678_v6 = vunpack.c.l.bf16 %v816_v2  ;;  %v679_v7 = vunpack.c.h.bf16 %v816_v2  ;;  %v818_v8 = vld [vmem:[%s893_s14 + $0x18] sm:$0xff]   ;;  %v819_v36 = vld [vmem:[%s893_s14 + $0x20] sm:$0xff]   ;;  %v820_v41 = vld [vmem:[%s893_s14 + $0x28] sm:$0xff]  }
  0x12   : > { %v682_v10 = vunpack.c.l.bf16 %v817_v3  ;;  %v683_v11 = vunpack.c.h.bf16 %v817_v3  ;;  %v686_v12 = vunpack.c.l.bf16 %v818_v8  ;;  %v687_v13 = vunpack.c.h.bf16 %v818_v8  ;;  %v821_v52 = vld [vmem:[%s893_s14 + $0x30] sm:$0xff]   ;;  %v822_v53 = vld [vmem:[%s893_s14 + $0x38] sm:$0xff]  }
  0x13   : > { %v213_v14 = vmul.f32 %v674_v4, %v898_v0  ;;  %v214_v15 = vmul.f32 %v675_v5, %v898_v0  ;;  %v215_v16 = vmul.f32 %v678_v6, %v898_v0  ;;  %v216_v17 = vmul.f32 %v679_v7, %v898_v0 }
  0x14   : > { %v217_v18 = vmul.f32 %v682_v10, %v898_v0  ;;  %v218_v19 = vmul.f32 %v683_v11, %v898_v0  ;;  %v219_v20 = vmul.f32 %v686_v12, %v898_v0  ;;  %v220_v21 = vmul.f32 %v687_v13, %v898_v0 }
  0x15   : > { %v250_v22 = vadd.f32 %v907_v9, %v213_v14  ;;  %v251_v23 = vadd.f32 %v907_v9, %v214_v15  ;;  %v252_v24 = vadd.f32 %v907_v9, %v215_v16  ;;  %v253_v25 = vadd.f32 %v907_v9, %v216_v17 }
  0x16   : > { %v254_v26 = vadd.f32 %v907_v9, %v217_v18  ;;  %v255_v27 = vadd.f32 %v907_v9, %v218_v19  ;;  %v256_v28 = vadd.f32 %v907_v9, %v219_v20  ;;  %v257_v29 = vadd.f32 %v907_v9, %v220_v21  ;;  %v823_v20 = vld [vmem:[%s893_s14 + $0x40] sm:$0xff]  }
  0x17   : > { %vm282_vm0 = vcmp.gt.f32.partialorder %v250_v22, 0.0  ;;  %vm283_vm1 = vcmp.gt.f32.partialorder %v251_v23, 0.0  ;;  %v314_v30 = vmul.f32 0.2, %v250_v22  ;;  %v315_v31 = vmul.f32 0.2, %v251_v23 }
  0x18   : > { %vm284_vm2 = vcmp.gt.f32.partialorder %v252_v24, 0.0  ;;  %vm285_vm3 = vcmp.gt.f32.partialorder %v253_v25, 0.0  ;;  %v316_v32 = vmul.f32 0.2, %v252_v24  ;;  %v317_v33 = vmul.f32 0.2, %v253_v25 }
  0x19   : > { %v346_v34 = vsel %vm282_vm0, %v250_v22, %v314_v30  ;;  %v347_v35 = vsel %vm283_vm1, %v251_v23, %v315_v31  ;;  %vm286_vm4 = vcmp.gt.f32.partialorder %v254_v26, 0.0  ;;  %vm287_vm5 = vcmp.gt.f32.partialorder %v255_v27, 0.0 }
  0x1a   : > { %v739_v37 = vpack.c.bf16 %v347_v35, %v346_v34  ;;  %v348_v38 = vsel %vm284_vm2, %v252_v24, %v316_v32  ;;  %v349_v39 = vsel %vm285_vm3, %v253_v25, %v317_v33  ;;  %v318_v40 = vmul.f32 0.2, %v254_v26  ;;  %v824_v24 = vld [vmem:[%s893_s14 + $0x48] sm:$0xff]  }
  0x1b   : > { %v744_v42 = vpack.c.bf16 %v349_v39, %v348_v38  ;;  %v319_v43 = vmul.f32 0.2, %v255_v27  ;;  %vm288_vm6 = vcmp.gt.f32.partialorder %v256_v28, 0.0  ;;  %vm289_vm7 = vcmp.gt.f32.partialorder %v257_v29, 0.0 }
  0x1c   : > { %740 = vst [vmem:[%s930_s21] sm:$0xff] %v739_v37   ;;  %v350_v44 = vsel %vm286_vm4, %v254_v26, %v318_v40  ;;  %v320_v45 = vmul.f32 0.2, %v256_v28  ;;  %v321_v46 = vmul.f32 0.2, %v257_v29  ;;  %v690_v47 = vunpack.c.l.bf16 %v819_v36 }
  0x1d   : > { %831 = vst [vmem:[%s930_s21 + $0x8] sm:$0xff] %v744_v42   ;;  %v351_v48 = vsel %vm287_vm5, %v255_v27, %v319_v43  ;;  %v691_v49 = vunpack.c.h.bf16 %v819_v36  ;;  %v694_v50 = vunpack.c.l.bf16 %v820_v41  ;;  %v695_v51 = vunpack.c.h.bf16 %v820_v41  ;;  %v825_v36 = vld [vmem:[%s893_s14 + $0x50] sm:$0xff]  }
  0x1e   : > { %v749_v54 = vpack.c.bf16 %v351_v48, %v350_v44  ;;  %v352_v55 = vsel %vm288_vm6, %v256_v28, %v320_v45  ;;  %v353_v56 = vsel %vm289_vm7, %v257_v29, %v321_v46  ;;  %v221_v57 = vmul.f32 %v690_v47, %v898_v0 }
  0x1f   : > { %v754_v58 = vpack.c.bf16 %v353_v56, %v352_v55  ;;  %v222_v59 = vmul.f32 %v691_v49, %v898_v0  ;;  %v223_v60 = vmul.f32 %v694_v50, %v898_v0  ;;  %v224_v61 = vmul.f32 %v695_v51, %v898_v0  ;;  %v826_v55 = vld [vmem:[%s893_s14 + $0x58] sm:$0xff]  }
  0x20   : > { %832 = vst [vmem:[%s930_s21 + $0x10] sm:$0xff] %v749_v54   ;;  %v258_v62 = vadd.f32 %v907_v9, %v221_v57  ;;  %v698_v63 = vunpack.c.l.bf16 %v821_v52  ;;  %v699_v1 = vunpack.c.h.bf16 %v821_v52  ;;  %v702_v2 = vunpack.c.l.bf16 %v822_v53 }
  0x21   : > { %833 = vst [vmem:[%s930_s21 + $0x18] sm:$0xff] %v754_v58   ;;  %v259_v3 = vadd.f32 %v907_v9, %v222_v59  ;;  %v260_v4 = vadd.f32 %v907_v9, %v223_v60  ;;  %v261_v5 = vadd.f32 %v907_v9, %v224_v61  ;;  %v703_v6 = vunpack.c.h.bf16 %v822_v53 }
  0x22   : > { %vm290_vm8 = vcmp.gt.f32.partialorder %v258_v62, 0.0  ;;  %v322_v7 = vmul.f32 0.2, %v258_v62  ;;  %v225_v8 = vmul.f32 %v698_v63, %v898_v0  ;;  %v226_v10 = vmul.f32 %v699_v1, %v898_v0  ;;  %v827_v1 = vld [vmem:[%s893_s14 + $0x60] sm:$0xff]  }
  0x23   : > { %vm291_vm9 = vcmp.gt.f32.partialorder %v259_v3, 0.0  ;;  %v323_v11 = vmul.f32 0.2, %v259_v3  ;;  %vm292_vm10 = vcmp.gt.f32.partialorder %v260_v4, 0.0  ;;  %vm293_vm11 = vcmp.gt.f32.partialorder %v261_v5, 0.0 }
  0x24   : > { %v354_v12 = vsel %vm290_vm8, %v258_v62, %v322_v7  ;;  %v324_v13 = vmul.f32 0.2, %v260_v4  ;;  %v325_v14 = vmul.f32 0.2, %v261_v5  ;;  %v262_v15 = vadd.f32 %v907_v9, %v225_v8 }
  0x25   : > { %v355_v16 = vsel %vm291_vm9, %v259_v3, %v323_v11  ;;  %v263_v17 = vadd.f32 %v907_v9, %v226_v10  ;;  %v227_v18 = vmul.f32 %v702_v2, %v898_v0  ;;  %v228_v19 = vmul.f32 %v703_v6, %v898_v0  ;;  %v828_v6 = vld [vmem:[%s893_s14 + $0x68] sm:$0xff]  }
  0x26   : > { %v759_v21 = vpack.c.bf16 %v355_v16, %v354_v12  ;;  %v356_v22 = vsel %vm292_vm10, %v260_v4, %v324_v13  ;;  %v357_v23 = vsel %vm293_vm11, %v261_v5, %v325_v14  ;;  %vm294_vm12 = vcmp.gt.f32.partialorder %v262_v15, 0.0 }
  0x27   : > { %v764_v25 = vpack.c.bf16 %v357_v23, %v356_v22  ;;  %vm295_vm13 = vcmp.gt.f32.partialorder %v263_v17, 0.0  ;;  %v326_v26 = vmul.f32 0.2, %v262_v15  ;;  %v327_v27 = vmul.f32 0.2, %v263_v17  ;;  %v829_v22 = vld [vmem:[%s893_s14 + $0x70] sm:$0xff]  }
  0x28   : > { %834 = vst [vmem:[%s930_s21 + $0x20] sm:$0xff] %v759_v21   ;;  %v264_v28 = vadd.f32 %v907_v9, %v227_v18  ;;  %v265_v29 = vadd.f32 %v907_v9, %v228_v19  ;;  %v706_v30 = vunpack.c.l.bf16 %v823_v20  ;;  %v707_v31 = vunpack.c.h.bf16 %v823_v20 }
  0x29   : > { %835 = vst [vmem:[%s930_s21 + $0x28] sm:$0xff] %v764_v25   ;;  %v358_v32 = vsel %vm294_vm12, %v262_v15, %v326_v26  ;;  %v359_v33 = vsel %vm295_vm13, %v263_v17, %v327_v27  ;;  %v710_v34 = vunpack.c.l.bf16 %v824_v24  ;;  %v711_v35 = vunpack.c.h.bf16 %v824_v24 }
  0x2a   : > { %v769_v37 = vpack.c.bf16 %v359_v33, %v358_v32  ;;  %vm296_vm14 = vcmp.gt.f32.partialorder %v264_v28, 0.0  ;;  %vm297_vm15 = vcmp.gt.f32.partialorder %v265_v29, 0.0  ;;  %v328_v38 = vmul.f32 0.2, %v264_v28 }
  0x2b   : > { %v329_v39 = vmul.f32 0.2, %v265_v29  ;;  %v229_v40 = vmul.f32 %v706_v30, %v898_v0  ;;  %v230_v41 = vmul.f32 %v707_v31, %v898_v0  ;;  %v231_v42 = vmul.f32 %v710_v34, %v898_v0 }
  0x2c   : > { %836 = vst [vmem:[%s930_s21 + $0x30] sm:$0xff] %v769_v37   ;;  %v360_v43 = vsel %vm296_vm14, %v264_v28, %v328_v38  ;;  %v232_v44 = vmul.f32 %v711_v35, %v898_v0  ;;  %v714_v45 = vunpack.c.l.bf16 %v825_v36  ;;  %v715_v46 = vunpack.c.h.bf16 %v825_v36 }
  0x2d   : > { %v361_v47 = vsel %vm297_vm15, %v265_v29, %v329_v39  ;;  %v266_v48 = vadd.f32 %v907_v9, %v229_v40  ;;  %v267_v49 = vadd.f32 %v907_v9, %v230_v41  ;;  %v268_v50 = vadd.f32 %v907_v9, %v231_v42  ;;  %v830_v41 = vld [vmem:[%s893_s14 + $0x78] sm:$0xff]  }
  0x2e   : > { %v774_v51 = vpack.c.bf16 %v361_v47, %v360_v43  ;;  %v269_v52 = vadd.f32 %v907_v9, %v232_v44  ;;  %v233_v53 = vmul.f32 %v714_v45, %v898_v0  ;;  %v234_v54 = vmul.f32 %v715_v46, %v898_v0 }
  0x2f   : > { %vm298_vm0 = vcmp.gt.f32.partialorder %v266_v48, 0.0  ;;  %vm299_vm1 = vcmp.gt.f32.partialorder %v267_v49, 0.0  ;;  %v330_v56 = vmul.f32 0.2, %v266_v48  ;;  %v331_v57 = vmul.f32 0.2, %v267_v49 }
  0x30   : > { %837 = vst [vmem:[%s930_s21 + $0x38] sm:$0xff] %v774_v51   ;;  %vm300_vm2 = vcmp.gt.f32.partialorder %v268_v50, 0.0  ;;  %vm301_vm3 = vcmp.gt.f32.partialorder %v269_v52, 0.0  ;;  %v332_v58 = vmul.f32 0.2, %v268_v50  ;;  %v270_v62 = vadd.f32 %v907_v9, %v233_v53 }
  0x31   : > { %v333_v59 = vmul.f32 0.2, %v269_v52  ;;  %v362_v60 = vsel %vm298_vm0, %v266_v48, %v330_v56  ;;  %v363_v61 = vsel %vm299_vm1, %v267_v49, %v331_v57  ;;  %v271_v63 = vadd.f32 %v907_v9, %v234_v54 }
  0x32   : > { %v779_v2 = vpack.c.bf16 %v363_v61, %v362_v60  ;;  %v364_v3 = vsel %vm300_vm2, %v268_v50, %v332_v58  ;;  %v718_v5 = vunpack.c.l.bf16 %v826_v55  ;;  %vm302_vm4 = vcmp.gt.f32.partialorder %v270_v62, 0.0 }
  0x33   : > { %v365_v4 = vsel %vm301_vm3, %v269_v52, %v333_v59  ;;  %vm303_vm5 = vcmp.gt.f32.partialorder %v271_v63, 0.0  ;;  %v334_v8 = vmul.f32 0.2, %v270_v62  ;;  %v335_v10 = vmul.f32 0.2, %v271_v63 }
  0x34   : > { %v784_v7 = vpack.c.bf16 %v365_v4, %v364_v3  ;;  %838 = vst [vmem:[%s930_s21 + $0x40] sm:$0xff] %v779_v2   ;;  %v719_v11 = vunpack.c.h.bf16 %v826_v55  ;;  %v235_v12 = vmul.f32 %v718_v5, %v898_v0  ;;  %v722_v13 = vunpack.c.l.bf16 %v827_v1 }
  0x35   : > { %v366_v14 = vsel %vm302_vm4, %v270_v62, %v334_v8  ;;  %v723_v15 = vunpack.c.h.bf16 %v827_v1  ;;  %v726_v16 = vunpack.c.l.bf16 %v828_v6  ;;  %v727_v17 = vunpack.c.h.bf16 %v828_v6 }
  0x36   : > { %839 = vst [vmem:[%s930_s21 + $0x48] sm:$0xff] %v784_v7   ;;  %v367_v18 = vsel %vm303_vm5, %v271_v63, %v335_v10  ;;  %v236_v19 = vmul.f32 %v719_v11, %v898_v0  ;;  %v272_v20 = vadd.f32 %v907_v9, %v235_v12  ;;  %v237_v21 = vmul.f32 %v722_v13, %v898_v0 }
  0x37   : > { %v789_v23 = vpack.c.bf16 %v367_v18, %v366_v14  ;;  %v238_v24 = vmul.f32 %v723_v15, %v898_v0  ;;  %v239_v25 = vmul.f32 %v726_v16, %v898_v0  ;;  %v240_v26 = vmul.f32 %v727_v17, %v898_v0 }
  0x38   : > { %v273_v27 = vadd.f32 %v907_v9, %v236_v19  ;;  %vm304_vm6 = vcmp.gt.f32.partialorder %v272_v20, 0.0  ;;  %v336_v28 = vmul.f32 0.2, %v272_v20  ;;  %v274_v29 = vadd.f32 %v907_v9, %v237_v21 }
  0x39   : > { %840 = vst [vmem:[%s930_s21 + $0x50] sm:$0xff] %v789_v23   ;;  %v275_v30 = vadd.f32 %v907_v9, %v238_v24  ;;  %v276_v31 = vadd.f32 %v907_v9, %v239_v25  ;;  %v277_v32 = vadd.f32 %v907_v9, %v240_v26  ;;  %v730_v33 = vunpack.c.l.bf16 %v829_v22 }
  0x3a   : > { %vm305_vm7 = vcmp.gt.f32.partialorder %v273_v27, 0.0  ;;  %v337_v34 = vmul.f32 0.2, %v273_v27  ;;  %v368_v35 = vsel %vm304_vm6, %v272_v20, %v336_v28  ;;  %vm306_vm8 = vcmp.gt.f32.partialorder %v274_v29, 0.0 }
  0x3b   : > { %vm307_vm9 = vcmp.gt.f32.partialorder %v275_v30, 0.0  ;;  %v338_v36 = vmul.f32 0.2, %v274_v29  ;;  %v339_v37 = vmul.f32 0.2, %v275_v30  ;;  %vm308_vm10 = vcmp.gt.f32.partialorder %v276_v31, 0.0 }
  0x3c   : > { %v369_v38 = vsel %vm305_vm7, %v273_v27, %v337_v34  ;;  %vm309_vm11 = vcmp.gt.f32.partialorder %v277_v32, 0.0  ;;  %v340_v39 = vmul.f32 0.2, %v276_v31  ;;  %v341_v40 = vmul.f32 0.2, %v277_v32 }
  0x3d   : > { %v794_v42 = vpack.c.bf16 %v369_v38, %v368_v35  ;;  %v370_v43 = vsel %vm306_vm8, %v274_v29, %v338_v36  ;;  %v371_v44 = vsel %vm307_vm9, %v275_v30, %v339_v37  ;;  %v731_v45 = vunpack.c.h.bf16 %v829_v22 }
  0x3e   : > { %v799_v46 = vpack.c.bf16 %v371_v44, %v370_v43  ;;  %v372_v47 = vsel %vm308_vm10, %v276_v31, %v340_v39  ;;  %v373_v48 = vsel %vm309_vm11, %v277_v32, %v341_v40  ;;  %v241_v49 = vmul.f32 %v730_v33, %v898_v0 }
  0x3f   : > { %841 = vst [vmem:[%s930_s21 + $0x58] sm:$0xff] %v794_v42   ;;  %v804_v50 = vpack.c.bf16 %v373_v48, %v372_v47  ;;  %v242_v51 = vmul.f32 %v731_v45, %v898_v0  ;;  %v734_v52 = vunpack.c.l.bf16 %v830_v41  ;;  %v735_v53 = vunpack.c.h.bf16 %v830_v41 }
  0x40   : > { %842 = vst [vmem:[%s930_s21 + $0x60] sm:$0xff] %v799_v46   ;;  %v278_v54 = vadd.f32 %v907_v9, %v241_v49 }
  0x41   : > { %843 = vst [vmem:[%s930_s21 + $0x68] sm:$0xff] %v804_v50   ;;  %v279_v55 = vadd.f32 %v907_v9, %v242_v51  ;;  %v243_v56 = vmul.f32 %v734_v52, %v898_v0  ;;  %v244_v57 = vmul.f32 %v735_v53, %v898_v0 }
  0x42   : > { %vm310_vm12 = vcmp.gt.f32.partialorder %v278_v54, 0.0  ;;  %v342_v58 = vmul.f32 0.2, %v278_v54 }
  0x43   : > { %vm311_vm13 = vcmp.gt.f32.partialorder %v279_v55, 0.0  ;;  %v343_v59 = vmul.f32 0.2, %v279_v55  ;;  %v280_v60 = vadd.f32 %v907_v9, %v243_v56  ;;  %v281_v61 = vadd.f32 %v907_v9, %v244_v57 }
  0x44   : > { %v374_v62 = vsel %vm310_vm12, %v278_v54, %v342_v58 }
  0x45   : > { %v375_v63 = vsel %vm311_vm13, %v279_v55, %v343_v59  ;;  %vm312_vm14 = vcmp.gt.f32.partialorder %v280_v60, 0.0  ;;  %vm313_vm15 = vcmp.gt.f32.partialorder %v281_v61, 0.0  ;;  %v344_v1 = vmul.f32 0.2, %v280_v60 }
  0x46   : > { %v809_v2 = vpack.c.bf16 %v375_v63, %v374_v62  ;;  %v345_v3 = vmul.f32 0.2, %v281_v61 }
  0x47   : > { %v376_v4 = vsel %vm312_vm14, %v280_v60, %v344_v1 }
  0x48   : > { %844 = vst [vmem:[%s930_s21 + $0x70] sm:$0xff] %v809_v2   ;;  %v377_v5 = vsel %vm313_vm15, %v281_v61, %v345_v3 }
  0x49   : > { %v814_v0 = vpack.c.bf16 %v377_v5, %v376_v4 }
  0x4b   : > { %845 = vst [vmem:[%s930_s21 + $0x78] sm:$0xff] %v814_v0  }
  0x4c PF: > { %s12_s9 = sadd.s32 1, %s860_s9  }
  0x4d   : > { %p9_p4 = scmp.ge.s32.totalorder %s12_s9, 4  }
  0x4f   :  { %11 = sbr.rel (!%p9_p4) target bundleno = 1 (0x1), region = 58 }

// kernel: patchgan_forward.9
= control target key start
LH: loop header
LB: loop body
LE: loop exit
PB: predicated region body
PF: predicated region fallthrough
CT: control target
= control target key end

     0   :  { %s4055_s12 = smov 0   ;;  %s4435_s0 = inlined_call_operand.vmem [shape: bf16[2,352,32], index: 0, kind: input, shape index: {}]   ;;  %s4436_s1 = inlined_call_operand.vmem [shape: bf16[7,32,128], index: 1, kind: input, shape index: {}]   ;;  %s4437_s2 = inlined_call_operand.vmem [shape: bf16[2,256,128], index: 2, kind: output, shape index: {0}]   ;;  %s4438_s3 = inlined_call_operand.vmem [shape: f32[2,2,128], index: 3, kind: output, shape index: {1}]  }
   0x1 LB: > { %s2915_s13 = sadd.s32 4294967295, %s4033_s12   ;;  %p2919_p0 = scmp.ge.s32.totalorder %s4033_s12, 1  ;;  %s4033_s12 = sphi %s4055_s12, %s14_s12  }
   0x2   : > { %p140_p1 = scmp.lt.s32.totalorder %s4033_s12, 3 }
   0x4   : > { %p141_p2 = pnand %p2919_p0, %p140_p1 }
   0x5   : > { %v3916_v0 = vld [vmem:[%s4436_s1 + $0x10] sm:$0xff] (!%p141_p2)   ;;  %p168_p3 = scmp.lt.s32.totalorder (!%p141_p2), %s2915_s13, 1  ;;  %v3918_v2 = vld [vmem:[%s4436_s1 + $0x18] sm:$0xff] (!%p141_p2)   ;;  %v3923_v4 = vld [vmem:[%s4436_s1] sm:$0xff] (!%p141_p2)   ;;  %vm318_vm0 = vcmask (!%p141_p2), 261120  }
   0x6   : > { %144 = sbr.rel (%p141_p2) target bundleno = 473 (0x1d9), region = 28  ;;  %v4069_v1 = vld [vmem:[%s4436_s1 + $0x30] sm:$0xff] (!%p141_p2)   ;;  %3459 = vmatprep.subr.bf16.mxu1 (!%p141_p2), %v3916_v0  ;;  %v4080_v3 = vld [vmem:[%s4436_s1 + $0x38] sm:$0xff] (!%p141_p2)   ;;  %v3925_v5 = vld [vmem:[%s4436_s1 + $0x40] sm:$0xff] (!%p141_p2)  }
   0x7   : > { %3567 = vmatprep.subr.bf16.mxu0 (!%p141_p2), %v4069_v1  ;;  %3460 = vmatpush3.bf16.msra.mxu1 (!%p141_p2), %v3916_v0  ;;  %v3934_v8 = vld [vmem:[%s4436_s1 + $0x48] sm:$0xff] (!%p141_p2)   ;;  %v3944_v22 = vld [vmem:[%s4436_s1 + $0x50] sm:$0xff] (!%p141_p2)   ;;  %v3959_v31 = vld [vmem:[%s4436_s1 + $0x20] sm:$0xff] (!%p141_p2)  }
   0x8   : > { %3568 = vmatpush3.bf16.msra.mxu0 (!%p141_p2), %v4069_v1  ;;  %3461 = vmatprep.subr.bf16.mxu1 (!%p141_p2), %v3918_v2  ;;  %v3942_v21 = vld [vmem:[%s4436_s1 + $0x8] sm:$0xff] (!%p141_p2)   ;;  %v3961_v32 = vld [vmem:[%s4436_s1 + $0x58] sm:$0xff] (!%p141_p2)   ;;  %v3971_v39 = vld [vmem:[%s4436_s1 + $0x60] sm:$0xff] (!%p141_p2)  }
   0x9   : > { %3569 = vmatprep.subr.bf16.mxu0 (!%p141_p2), %v4080_v3  ;;  %v3969_v48 = vld [vmem:[%s4436_s1 + $0x28] sm:$0xff] (!%p141_p2)  }
   0xa   : > { %v3982_v57 = vld [vmem:[%s4436_s1 + $0x68] sm:$0xff] (!%p141_p2)  }
   0xb   : > { %3462 = vmatpush3.bf16.msra.mxu1 (!%p141_p2), %v3918_v2 }
   0xc   : > { %3570 = vmatpush3.bf16.msra.mxu0 (!%p141_p2), %v4080_v3  ;;  %3495 = vmatprep.subr.bf16.mxu1 (!%p141_p2), %v3923_v4 }
   0xd   : > { %s4440_s13 = smov (!%p168_p3, %s2915_s13), 1  ;;  %3603 = vmatprep.subr.bf16.mxu0 %v3925_v5 }
   0xe   : > { %s3907_s22 = smul.u32 176, %s4440_s13  ;;  %s3205_s21 = sshll.u32 %s4440_s13, 7 }
   0xf   : > { %s4406_s24 = scalar_lea.vmem %s4437_s2, %s3205_s21  ;;  %s2923_s25 = sshll.u32 %s4440_s13, 1 }
  0x10   : > { %s4094_s29 = scalar_lea.vmem %s4435_s0, %s3907_s22  ;;  %s181_s28 = scalar_lea.vmem %s4438_s3, %s2923_s25 }
  0x11   : > { %v4097_v6 = vld [vmem:[%s4094_s29 + $0x8] sm:$0xff]   ;;  %v3921_v7 = vld [vmem:[%s4094_s29 + $0x18] sm:$0xff]   ;;  %v4107_v9 = vld [vmem:[%s4094_s29 + $0x10] sm:$0xff]  }
  0x12   : > { %3463 = vmatprep.mubr.msk.bf16.mxu1 %vm318_vm0, %v4097_v6  ;;  %3571 = vmatprep.mubr.msk.bf16.mxu0 %vm318_vm0, %v3921_v7  ;;  %v3924_v10 = vld [vmem:[%s4094_s29 + $0x20] sm:$0xff]   ;;  %v4114_v11 = vld [vmem:[%s4094_s29 + $0x18] sm:$0xff]   ;;  %v3927_v12 = vld [vmem:[%s4094_s29 + $0x28] sm:$0xff]  }
  0x13   : > { %3464 = vmatmul.mubr.msk.bf16.vlgmr.msra.gmra.mrb[0].mxu1 %vm318_vm0, %v4107_v9  ;;  %3572 = vmatmul.mubr.msk.bf16.vlgmr.msra.gmra.mrb[0].mxu0 %vm318_vm0, %v3924_v10  ;;  %v4122_v13 = vld [vmem:[%s4094_s29 + $0x20] sm:$0xff]   ;;  %v3929_v14 = vld [vmem:[%s4094_s29 + $0x30] sm:$0xff]   ;;  %v4126_v15 = vld [vmem:[%s4094_s29 + $0x28] sm:$0xff]  }
  0x14   : > { %3496 = vmatpush3.bf16.msra.mxu1 %v3923_v4  ;;  %3604 = vmatpush3.bf16.msra.mxu0 %v3925_v5  ;;  %v3931_v16 = vld [vmem:[%s4094_s29 + $0x38] sm:$0xff]   ;;  %v4136_v17 = vld [vmem:[%s4094_s29 + $0x30] sm:$0xff]   ;;  %v3933_v18 = vld [vmem:[%s4094_s29 + $0x40] sm:$0xff]  }
  0x15   : > { %3467 = vmatprep.mubr.msk.bf16.mxu1 %vm318_vm0, %v4114_v11  ;;  %3575 = vmatprep.mubr.msk.bf16.mxu0 %vm318_vm0, %v3927_v12  ;;  %v4140_v19 = vld [vmem:[%s4094_s29 + $0x38] sm:$0xff]   ;;  %v3936_v20 = vld [vmem:[%s4094_s29 + $0x48] sm:$0xff]   ;;  %v4156_v23 = vld [vmem:[%s4094_s29 + $0x40] sm:$0xff]  }
  0x16   : > { %3605 = vmatprep.subr.bf16.mxu0 %v3934_v8  ;;  %3497 = vmatprep.subr.bf16.mxu1 %v3942_v21  ;;  %v3938_v24 = vld [vmem:[%s4094_s29 + $0x50] sm:$0xff]   ;;  %v4160_v25 = vld [vmem:[%s4094_s29 + $0x48] sm:$0xff]   ;;  %v3940_v26 = vld [vmem:[%s4094_s29 + $0x20] sm:$0xff]  }
  0x17   : > { %v4170_v27 = vld [vmem:[%s4094_s29 + $0x50] sm:$0xff]   ;;  %v3943_v28 = vld [vmem:[%s4094_s29 + $0x28] sm:$0xff]   ;;  %v4174_v29 = vld [vmem:[%s4094_s29 + $0x58] sm:$0xff]  }
  0x18   : > { %3606 = vmatpush3.bf16.msra.mxu0 %v3934_v8  ;;  %3498 = vmatpush3.bf16.msra.mxu1 %v3942_v21  ;;  %v3946_v30 = vld [vmem:[%s4094_s29 + $0x30] sm:$0xff]   ;;  %v4190_v33 = vld [vmem:[%s4094_s29 + $0x60] sm:$0xff]   ;;  %v3948_v34 = vld [vmem:[%s4094_s29 + $0x38] sm:$0xff]  }
  0x19   : > { %3639 = vmatprep.subr.bf16.mxu0 %v3944_v22  ;;  %3531 = vmatprep.subr.bf16.mxu1 %v3959_v31  ;;  %v4194_v35 = vld [vmem:[%s4094_s29 + $0x68] sm:$0xff]   ;;  %v3950_v36 = vld [vmem:[%s4094_s29 + $0x40] sm:$0xff]   ;;  %v4204_v37 = vld [vmem:[%s4094_s29 + $0x70] sm:$0xff]  }
  0x1a   : > { %v3952_v38 = vld [vmem:[%s4094_s29 + $0x48] sm:$0xff]   ;;  %v4211_v40 = vld [vmem:[%s4094_s29 + $0x78] sm:$0xff]   ;;  %v3954_v41 = vld [vmem:[%s4094_s29 + $0x50] sm:$0xff]  }
  0x1b   : > { %3468 = vmatmul.mubr.msk.bf16.gmra.mrb[4].mxu1 %vm318_vm0, %v4122_v13  ;;  %3576 = vmatmul.mubr.msk.bf16.gmra.mrb[4].mxu0 %vm318_vm0, %v3929_v14  ;;  %v3955_v42 = vld [vmem:[%s4094_s29 + $0x80] sm:$0xff]   ;;  %v3956_v43 = vld [vmem:[%s4094_s29 + $0x58] sm:$0xff]   ;;  %v3960_v46 = vld [vmem:[%s4094_s29 + $0x68] sm:$0xff]  }
  0x1c   : > { %3471 = vmatprep.mubr.msk.bf16.mxu1 %vm318_vm0, %v4126_v15  ;;  %3579 = vmatprep.mubr.msk.bf16.mxu0 %vm318_vm0, %v3931_v16  ;;  %v3957_v44 = vld [vmem:[%s4094_s29] sm:$0xff]   ;;  %v3962_v47 = vld [vmem:[%s4094_s29 + $0x70] sm:$0xff]   ;;  %v3963_v49 = vld [vmem:[%s4094_s29 + $0x78] sm:$0xff]  }
  0x1d   : > { %v3958_v45 = vld [vmem:[%s4094_s29 + $0x60] sm:$0xff]   ;;  %v3965_v51 = vld [vmem:[%s4094_s29 + $0x88] sm:$0xff]   ;;  %v3966_v52 = vld [vmem:[%s4094_s29 + $0x90] sm:$0xff]  }
  0x1e   : > { %v3964_v50 = vld [vmem:[%s4094_s29 + $0x80] sm:$0xff]   ;;  %v3967_v53 = vld [vmem:[%s4094_s29 + $0x98] sm:$0xff]   ;;  %v3968_v54 = vld [vmem:[%s4094_s29 + $0x28] sm:$0xff]  }
  0x1f   : > { %v3970_v55 = vld [vmem:[%s4094_s29 + $0x30] sm:$0xff]   ;;  %v3972_v56 = vld [vmem:[%s4094_s29 + $0x38] sm:$0xff]   ;;  %v3973_v58 = vld [vmem:[%s4094_s29 + $0x40] sm:$0xff]  }
  0x20   : > { %v3974_v59 = vld [vmem:[%s4094_s29 + $0x48] sm:$0xff]   ;;  %v3975_v60 = vld [vmem:[%s4094_s29 + $0x50] sm:$0xff]   ;;  %v3976_v61 = vld [vmem:[%s4094_s29 + $0x58] sm:$0xff]  }
  0x21   : > { %v3977_v62 = vld [vmem:[%s4094_s29 + $0x60] sm:$0xff]   ;;  %v3978_v63 = vld [vmem:[%s4094_s29 + $0x10] sm:$0xff]   ;;  %v3979_v0 = vld [vmem:[%s4094_s29 + $0x68] sm:$0xff]  }
  0x22   : > { %v3980_v2 = vld [vmem:[%s4094_s29 + $0x18] sm:$0xff]   ;;  %v3981_v4 = vld [vmem:[%s4094_s29 + $0x70] sm:$0xff]   ;;  %v3983_v5 = vld [vmem:[%s4094_s29 + $0x20] sm:$0xff]  }
  0x23   : > { %3472 = vmatmul.mubr.msk.bf16.gmra.mrb[8].mxu1 %vm318_vm0, %v4136_v17  ;;  %3580 = vmatmul.mubr.msk.bf16.gmra.mrb[8].mxu0 %vm318_vm0, %v3933_v18  ;;  %v3985_v7 = vld [vmem:[%s4094_s29 + $0x28] sm:$0xff]   ;;  %v3986_v8 = vld [vmem:[%s4094_s29 + $0x80] sm:$0xff]   ;;  %v3996_v16 = vld [vmem:[%s4094_s29 + $0x30] sm:$0xff]  }
  0x24   : > { %3475 = vmatprep.mubr.msk.bf16.mxu1 %vm318_vm0, %v4140_v19  ;;  %3583 = vmatprep.mubr.msk.bf16.mxu0 %vm318_vm0, %v3936_v20  ;;  %v3988_v10 = vld [vmem:[%s4094_s29 + $0x88] sm:$0xff]   ;;  %v3991_v12 = vld [vmem:[%s4094_s29 + $0x40] sm:$0xff]   ;;  %v3998_v18 = vld [vmem:[%s4094_s29 + $0x38] sm:$0xff]  }
  0x25   : > { %v3994_v14 = vld [vmem:[%s4094_s29 + $0xa0] sm:$0xff]   ;;  %v4001_v21 = vld [vmem:[%s4094_s29 + $0x68] sm:$0xff]  }
  0x26   : > { %v4000_v20 = vld [vmem:[%s4094_s29 + $0x40] sm:$0xff]  }
  0x2b   : > { %3476 = vmatmul.mubr.msk.bf16.gmra.mrb[12].mxu1 %vm318_vm0, %v4156_v23  ;;  %3584 = vmatmul.mubr.msk.bf16.gmra.mrb[12].mxu0 %vm318_vm0, %v3938_v24  ;;  %v4004_v24 = vld [vmem:[%s4094_s29 + $0x50] sm:$0xff]  }
  0x2c   : > { %3479 = vmatprep.mubr.msk.bf16.mxu1 %vm318_vm0, %v4160_v25  ;;  %3607 = vmatprep.mubr.msk.bf16.mxu0 %vm318_vm0, %v3940_v26  ;;  %v4006_v26 = vld [vmem:[%s4094_s29 + $0x58] sm:$0xff]  }
  0x33   : > { %3480 = vmatmul.mubr.msk.bf16.gmra.mrb[16].mxu1 %vm318_vm0, %v4170_v27  ;;  %3608 = vmatmul.mubr.msk.bf16.vlgmr.msra.gmra.mrb[0].mxu0 %vm318_vm0, %v3943_v28  ;;  %v4008_v28 = vld [vmem:[%s4094_s29 + $0x60] sm:$0xff]  }
  0x34   : > { %3483 = vmatprep.mubr.msk.bf16.mxu1 %vm318_vm0, %v4174_v29  ;;  %3640 = vmatpush3.bf16.msra.mxu0 %v3944_v22  ;;  %v4002_v22 = vld [vmem:[%s4094_s29 + $0x48] sm:$0xff]  }
  0x35   : > { %3611 = vmatprep.mubr.msk.bf16.mxu0 %vm318_vm0, %v3946_v30  ;;  %3641 = vmatprep.subr.bf16.mxu0 %v3961_v32  ;;  %v4010_v30 = vld [vmem:[%s4094_s29 + $0x68] sm:$0xff]  }
  0x38   : > { %3642 = vmatpush3.bf16.msra.mxu0 %v3961_v32  ;;  %v4012_v32 = vld [vmem:[%s4094_s29 + $0x70] sm:$0xff]  }
  0x39   : > { %3675 = vmatprep.subr.bf16.mxu0 %v3971_v39 }
  0x3b   : > { %3484 = vmatmul.mubr.msk.bf16.gmra.mrb[20].mxu1 %vm318_vm0, %v4190_v33  ;;  %3612 = vmatmul.mubr.msk.bf16.gmra.mrb[4].mxu0 %vm318_vm0, %v3948_v34  ;;  %v4014_v34 = vld [vmem:[%s4094_s29 + $0x78] sm:$0xff]  }
  0x3c   : > { %3487 = vmatprep.mubr.msk.bf16.mxu1 %vm318_vm0, %v4194_v35  ;;  %3615 = vmatprep.mubr.msk.bf16.mxu0 %vm318_vm0, %v3950_v36  ;;  %v4016_v36 = vld [vmem:[%s4094_s29 + $0x80] sm:$0xff]  }
  0x43   : > { %3488 = vmatmul.mubr.msk.bf16.gmra.mrb[24].mxu1 %vm318_vm0, %v4204_v37  ;;  %3616 = vmatmul.mubr.msk.bf16.gmra.mrb[8].mxu0 %vm318_vm0, %v3952_v38  ;;  %v4018_v38 = vld [vmem:[%s4094_s29 + $0x88] sm:$0xff]  }
  0x44   : > { %3491 = vmatprep.mubr.msk.bf16.mxu1 %vm318_vm0, %v4211_v40  ;;  %3619 = vmatprep.mubr.msk.bf16.mxu0 %vm318_vm0, %v3954_v41  ;;  %v4021_v41 = vld [vmem:[%s4094_s29 + $0x80] sm:$0xff]  }
  0x4b   : > { %3492 = vmatmul.mubr.msk.bf16.gmra.mrb[28].mxu1 %vm318_vm0, %v3955_v42  ;;  %3620 = vmatmul.mubr.msk.bf16.gmra.mrb[12].mxu0 %vm318_vm0, %v3956_v43  ;;  %v4022_v42 = vld [vmem:[%s4094_s29 + $0x98] sm:$0xff]   ;;  %v4023_v43 = vld [vmem:[%s4094_s29 + $0x88] sm:$0xff]  }
  0x4c   : > { %3499 = vmatprep.mubr.msk.bf16.mxu1 %vm318_vm0, %v3957_v44  ;;  %3623 = vmatprep.mubr.msk.bf16.mxu0 %vm318_vm0, %v3958_v45  ;;  %v4024_v44 = vld [vmem:[%s4094_s29 + $0xa0] sm:$0xff]   ;;  %v4025_v45 = vld [vmem:[%s4094_s29 + $0x90] sm:$0xff]  }
  0x53   : > { %3500 = vmatmul.mubr.msk.bf16.vlgmr.msra.gmra.mrb[0].mxu1 %vm318_vm0, %v4097_v6  ;;  %3624 = vmatmul.mubr.msk.bf16.gmra.mrb[16].mxu0 %vm318_vm0, %v3960_v46  ;;  %v3984_v6 = vld [vmem:[%s4094_s29 + $0x78] sm:$0xff]   ;;  %v4026_v46 = vld [vmem:[%s4094_s29 + $0xa8] sm:$0xff]  }
  0x54   : > { %3532 = vmatpush3.bf16.msra.mxu1 %v3959_v31  ;;  %3503 = vmatprep.mubr.msk.bf16.mxu1 %vm318_vm0, %v4107_v9  ;;  %v3987_v9 = vld [vmem:[%s4094_s29 + $0x30] sm:$0xff]   ;;  %v4011_v31 = vld [vmem:[%s4094_s29 + $0x58] sm:$0xff]  }
  0x55   : > { %3627 = vmatprep.mubr.msk.bf16.mxu0 %vm318_vm0, %v3962_v47  ;;  %3533 = vmatprep.subr.bf16.mxu1 %v3969_v48 }
  0x58   : > { %3534 = vmatpush3.bf16.msra.mxu1 %v3969_v48 }
  0x59   : > { %3711 = vmatprep.subr.bf16.mxu1 %v4069_v1 }
  0x5b   : > { %3504 = vmatmul.mubr.msk.bf16.gmra.mrb[4].mxu1 %vm318_vm0, %v4114_v11  ;;  %3628 = vmatmul.mubr.msk.bf16.gmra.mrb[20].mxu0 %vm318_vm0, %v3963_v49  ;;  %v3990_v11 = vld [vmem:[%s4094_s29 + $0x90] sm:$0xff]  }
  0x5c   : > { %3507 = vmatprep.mubr.msk.bf16.mxu1 %vm318_vm0, %v4122_v13  ;;  %3631 = vmatprep.mubr.msk.bf16.mxu0 %vm318_vm0, %v3964_v50  ;;  %v3992_v13 = vld [vmem:[%s4094_s29 + $0x98] sm:$0xff]  }
  0x63   : > { %3508 = vmatmul.mubr.msk.bf16.gmra.mrb[8].mxu1 %vm318_vm0, %v4126_v15  ;;  %3632 = vmatmul.mubr.msk.bf16.gmra.mrb[24].mxu0 %vm318_vm0, %v3965_v51  ;;  %v3995_v15 = vld [vmem:[%s4094_s29 + $0x50] sm:$0xff]  }
  0x64   : > { %3511 = vmatprep.mubr.msk.bf16.mxu1 %vm318_vm0, %v4136_v17  ;;  %3635 = vmatprep.mubr.msk.bf16.mxu0 %vm318_vm0, %v3966_v52  ;;  %v3997_v17 = vld [vmem:[%s4094_s29 + $0x58] sm:$0xff]  }
  0x6b   : > { %3512 = vmatmul.mubr.msk.bf16.gmra.mrb[12].mxu1 %vm318_vm0, %v4140_v19  ;;  %3636 = vmatmul.mubr.msk.bf16.gmra.mrb[28].mxu0 %vm318_vm0, %v3967_v53  ;;  %v3999_v19 = vld [vmem:[%s4094_s29 + $0x60] sm:$0xff]  }
  0x6c   : > { %3515 = vmatprep.mubr.msk.bf16.mxu1 %vm318_vm0, %v4156_v23  ;;  %3643 = vmatprep.mubr.msk.bf16.mxu0 %vm318_vm0, %v3968_v54  ;;  %v4003_v23 = vld [vmem:[%s4094_s29 + $0x70] sm:$0xff]  }
  0x73   : > { %3516 = vmatmul.mubr.msk.bf16.gmra.mrb[16].mxu1 %vm318_vm0, %v4160_v25  ;;  %3644 = vmatmul.mubr.msk.bf16.vlgmr.msra.gmra.mrb[0].mxu0 %vm318_vm0, %v3970_v55  ;;  %v4005_v25 = vld [vmem:[%s4094_s29 + $0x78] sm:$0xff]  }
  0x74   : > { %3519 = vmatprep.mubr.msk.bf16.mxu1 %vm318_vm0, %v4170_v27  ;;  %3676 = vmatpush3.bf16.msra.mxu0 %v3971_v39  ;;  %v4007_v27 = vld [vmem:[%s4094_s29 + $0x80] sm:$0xff]   ;;  %v4019_v39 = vld [vmem:[%s4094_s29 + $0x78] sm:$0xff]  }
  0x75   : > { %3647 = vmatprep.mubr.msk.bf16.mxu0 %vm318_vm0, %v3972_v56  ;;  %3677 = vmatprep.subr.bf16.mxu0 %v3982_v57 }
  0x78   : > { %3678 = vmatpush3.bf16.msra.mxu0 %v3982_v57 }
  0x7b   : > { %3520 = vmatmul.mubr.msk.bf16.gmra.mrb[20].mxu1 %vm318_vm0, %v4174_v29  ;;  %3648 = vmatmul.mubr.msk.bf16.gmra.mrb[4].mxu0 %vm318_vm0, %v3973_v58  ;;  %v4009_v29 = vld [vmem:[%s4094_s29 + $0x88] sm:$0xff]  }
  0x7c   : > { %3523 = vmatprep.mubr.msk.bf16.mxu1 %vm318_vm0, %v4190_v33  ;;  %3651 = vmatprep.mubr.msk.bf16.mxu0 %vm318_vm0, %v3974_v59  ;;  %v4013_v33 = vld [vmem:[%s4094_s29 + $0x60] sm:$0xff]  }
  0x83   : > { %3524 = vmatmul.mubr.msk.bf16.gmra.mrb[24].mxu1 %vm318_vm0, %v4194_v35  ;;  %3652 = vmatmul.mubr.msk.bf16.gmra.mrb[8].mxu0 %vm318_vm0, %v3975_v60  ;;  %v4015_v35 = vld [vmem:[%s4094_s29 + $0x68] sm:$0xff]  }
  0x84   : > { %3527 = vmatprep.mubr.msk.bf16.mxu1 %vm318_vm0, %v4204_v37  ;;  %3655 = vmatprep.mubr.msk.bf16.mxu0 %vm318_vm0, %v3976_v61  ;;  %v4017_v37 = vld [vmem:[%s4094_s29 + $0x70] sm:$0xff]  }
  0x8b   : > { %3528 = vmatmul.mubr.msk.bf16.gmra.mrb[28].mxu1 %vm318_vm0, %v4211_v40  ;;  %3656 = vmatmul.mubr.msk.bf16.gmra.mrb[12].mxu0 %vm318_vm0, %v3977_v62  ;;  %v4020_v40 = vld [vmem:[%s4094_s29 + $0x90] sm:$0xff]  }
  0x8c   : > { %3535 = vmatprep.mubr.msk.bf16.mxu1 %vm318_vm0, %v3978_v63  ;;  %3659 = vmatprep.mubr.msk.bf16.mxu0 %vm318_vm0, %v3979_v0 }
  0x93   : > { %3536 = vmatmul.mubr.msk.bf16.vlgmr.msra.gmra.mrb[0].mxu1 %vm318_vm0, %v3980_v2  ;;  %3660 = vmatmul.mubr.msk.bf16.gmra.mrb[16].mxu0 %vm318_vm0, %v3981_v4 }
  0x94   : > { %3713 = vmatpush3.bf16.msra.mxu1 %v4069_v1  ;;  %3539 = vmatprep.mubr.msk.bf16.mxu1 %vm318_vm0, %v3983_v5  ;;  %v3989_v1 = vld [vmem:[%s4094_s29 + $0x38] sm:$0xff]  }
  0x95   : > { %3663 = vmatprep.mubr.msk.bf16.mxu0 %vm318_vm0, %v3984_v6  ;;  %3712 = vmatprep.subr.bf16.mxu1 %v4080_v3 }
  0x98   : > { %3714 = vmatpush3.bf16.msra.mxu1 %v4080_v3  ;;  %v3993_v3 = vld [vmem:[%s4094_s29 + $0x48] sm:$0xff]  }
  0x9b   : > { %3540 = vmatmul.mubr.msk.bf16.gmra.mrb[4].mxu1 %vm318_vm0, %v3985_v7  ;;  %3664 = vmatmul.mubr.msk.bf16.gmra.mrb[20].mxu0 %vm318_vm0, %v3986_v8 }
  0x9c   : > { %3543 = vmatprep.mubr.msk.bf16.mxu1 %vm318_vm0, %v3987_v9  ;;  %3667 = vmatprep.mubr.msk.bf16.mxu0 %vm318_vm0, %v3988_v10 }
  0xa3   : > { %3544 = vmatmul.mubr.msk.bf16.gmra.mrb[8].mxu1 %vm318_vm0, %v3989_v1  ;;  %3668 = vmatmul.mubr.msk.bf16.gmra.mrb[24].mxu0 %vm318_vm0, %v3990_v11 }
  0xa4   : > { %3547 = vmatprep.mubr.msk.bf16.mxu1 %vm318_vm0, %v3991_v12  ;;  %3671 = vmatprep.mubr.msk.bf16.mxu0 %vm318_vm0, %v3992_v13 }
  0xab   : > { %3548 = vmatmul.mubr.msk.bf16.gmra.mrb[12].mxu1 %vm318_vm0, %v3993_v3  ;;  %3672 = vmatmul.mubr.msk.bf16.gmra.mrb[28].mxu0 %vm318_vm0, %v3994_v14 }
  0xac   : > { %3551 = vmatprep.mubr.msk.bf16.mxu1 %vm318_vm0, %v3995_v15  ;;  %3679 = vmatprep.mubr.msk.bf16.mxu0 %vm318_vm0, %v3996_v16 }
  0xb3   : > { %3552 = vmatmul.mubr.msk.bf16.gmra.mrb[16].mxu1 %vm318_vm0, %v3997_v17  ;;  %3680 = vmatmul.mubr.msk.bf16.vlgmr.msra.gmra.mrb[0].mxu0 %vm318_vm0, %v3998_v18 }
  0xb4   : > { %3555 = vmatprep.mubr.msk.bf16.mxu1 %vm318_vm0, %v3999_v19  ;;  %3683 = vmatprep.mubr.msk.bf16.mxu0 %vm318_vm0, %v4000_v20 }
  0xbb   : > { %3556 = vmatmul.mubr.msk.bf16.gmra.mrb[20].mxu1 %vm318_vm0, %v4001_v21  ;;  %3684 = vmatmul.mubr.msk.bf16.gmra.mrb[4].mxu0 %vm318_vm0, %v4002_v22 }
  0xbc   : > { %3559 = vmatprep.mubr.msk.bf16.mxu1 %vm318_vm0, %v4003_v23  ;;  %3687 = vmatprep.mubr.msk.bf16.mxu0 %vm318_vm0, %v4004_v24 }
  0xc3   : > { %3560 = vmatmul.mubr.msk.bf16.gmra.mrb[24].mxu1 %vm318_vm0, %v4005_v25  ;;  %3688 = vmatmul.mubr.msk.bf16.gmra.mrb[8].mxu0 %vm318_vm0, %v4006_v26 }
  0xc4   : > { %3563 = vmatprep.mubr.msk.bf16.mxu1 %vm318_vm0, %v4007_v27  ;;  %3691 = vmatprep.mubr.msk.bf16.mxu0 %vm318_vm0, %v4008_v28 }
  0xcb   : > { %3564 = vmatmul.mubr.msk.bf16.gmra.mrb[28].mxu1 %vm318_vm0, %v4009_v29  ;;  %3692 = vmatmul.mubr.msk.bf16.gmra.mrb[12].mxu0 %vm318_vm0, %v4010_v30 }
  0xcc   : > { %3587 = vmatprep.mubr.msk.bf16.mxu1 %vm318_vm0, %v4011_v31  ;;  %3695 = vmatprep.mubr.msk.bf16.mxu0 %vm318_vm0, %v4012_v32 }
  0xd3   : > { %3588 = vmatmul.mubr.msk.bf16.vlgmr.msra.gmra.mrb[16].mxu1 %vm318_vm0, %v4013_v33  ;;  %3696 = vmatmul.mubr.msk.bf16.gmra.mrb[16].mxu0 %vm318_vm0, %v4014_v34 }
  0xd4   : > { %3591 = vmatprep.mubr.msk.bf16.mxu1 %vm318_vm0, %v4015_v35  ;;  %3699 = vmatprep.mubr.msk.bf16.mxu0 %vm318_vm0, %v4016_v36 }
  0xdb   : > { %3592 = vmatmul.mubr.msk.bf16.gmra.mrb[20].mxu1 %vm318_vm0, %v4017_v37  ;;  %3700 = vmatmul.mubr.msk.bf16.gmra.mrb[20].mxu0 %vm318_vm0, %v4018_v38 }
  0xdc   : > { %3595 = vmatprep.mubr.msk.bf16.mxu1 %vm318_vm0, %v4019_v39  ;;  %3703 = vmatprep.mubr.msk.bf16.mxu0 %vm318_vm0, %v4020_v40 }
  0xe3   : > { %3596 = vmatmul.mubr.msk.bf16.gmra.mrb[24].mxu1 %vm318_vm0, %v4021_v41  ;;  %3704 = vmatmul.mubr.msk.bf16.gmra.mrb[24].mxu0 %vm318_vm0, %v4022_v42 }
  0xe4   : > { %3599 = vmatprep.mubr.msk.bf16.mxu1 %vm318_vm0, %v4023_v43  ;;  %3707 = vmatprep.mubr.msk.bf16.mxu0 %vm318_vm0, %v4024_v44 }
  0xeb   : > { %3600 = vmatmul.mubr.msk.bf16.gmra.mrb[28].mxu1 %vm318_vm0, %v4025_v45  ;;  %3708 = vmatmul.mubr.msk.bf16.gmra.mrb[28].mxu0 %vm318_vm0, %v4026_v46 }
 0x166   : > { %v3537_v47 = vpop.f32.mrb[0].mxu1 }
 0x167   : > { %v920_v48 = vpop.f32.mrb[1].mxu1 }
 0x168   : > { %v3538_v49 = vpop.f32.mrb[2].mxu1 }
 0x169   : > { %v923_v50 = vpop.f32.mrb[3].mxu1 }
 0x16e   : > { %v3541_v51 = vpop.f32.mrb[4].mxu1 }
 0x16f   : > { %v936_v52 = vpop.f32.mrb[5].mxu1 }
 0x170   : > { %v3542_v53 = vpop.f32.mrb[6].mxu1 }
 0x171   : > { %v939_v54 = vpop.f32.mrb[7].mxu1 }
 0x176   : > { %v3545_v55 = vpop.f32.mrb[8].mxu1 }
 0x177   : > { %v952_v56 = vpop.f32.mrb[9].mxu1 }
 0x178   : > { %v3546_v57 = vpop.f32.mrb[10].mxu1 }
 0x179   : > { %v955_v58 = vpop.f32.mrb[11].mxu1 }
 0x17e   : > { %v4394_v59 = vpop.f32.mrb[12].mxu1 }
 0x17f   : > { %v4396_v60 = vpop.f32.mrb[13].mxu1 }
 0x180   : > { %v4398_v61 = vpop.f32.mrb[14].mxu1 }
 0x181   : > { %v4400_v62 = vpop.f32.mrb[15].mxu1 }
 0x186   : > { %v3681_v63 = vpop.f32.mrb[0].mxu0 }
 0x187   : > { %v3715_v0 = vadd.f32 %v3681_v63, %v3537_v47  ;;  %v2400_v2 = vpop.f32.mrb[1].mxu0 }
 0x188   : > { %v3716_v4 = vadd.f32 %v2400_v2, %v920_v48  ;;  %v3682_v5 = vpop.f32.mrb[2].mxu0 }
 0x189   : > { %v3717_v6 = vadd.f32 %v3682_v5, %v3538_v49  ;;  %v2403_v7 = vpop.f32.mrb[3].mxu0  ;;  %v2759_v13 = vmul.f32 %v3715_v0, %v3715_v0 }
 0x18a   : > { %v3718_v8 = vadd.f32 %v2403_v7, %v923_v50  ;;  %v2757_v10 = vmul.f32 %v3716_v4, %v3716_v4 }
 0x18b   : > { %v3246_v9 = vpack.c.bf16 %v3717_v6, %v3715_v0  ;;  %v2760_v18 = vmul.f32 %v3717_v6, %v3717_v6 }
 0x18c   : > { %v3241_v1 = vpack.c.bf16 %v3718_v8, %v3716_v4  ;;  %v2719_v11 = vadd.f32 %v3718_v8, %v3716_v4  ;;  %v2758_v12 = vmul.f32 %v3718_v8, %v3718_v8 }
 0x18d   : > { %3318 = vst [vmem:[%s4406_s24 + $0x8] sm:$0xff] %v3246_v9  }
 0x18e   : > { %3242 = vst [vmem:[%s4406_s24] sm:$0xff] %v3241_v1   ;;  %v2720_v3 = vadd.f32 %v3715_v0, %v2719_v11  ;;  %v2789_v14 = vadd.f32 %v2758_v12, %v2757_v10  ;;  %v3685_v15 = vpop.f32.mrb[4].mxu0 }
 0x18f   : > { %v3719_v16 = vadd.f32 %v3685_v15, %v3541_v51  ;;  %v2416_v17 = vpop.f32.mrb[5].mxu0 }
 0x190   : > { %v2790_v19 = vadd.f32 %v2789_v14, %v2759_v13  ;;  %v3720_v20 = vadd.f32 %v2416_v17, %v936_v52  ;;  %v2721_v21 = vadd.f32 %v3717_v6, %v2720_v3  ;;  %v3686_v22 = vpop.f32.mrb[6].mxu0 }
 0x191   : > { %v3721_v23 = vadd.f32 %v3686_v22, %v3542_v53  ;;  %v2419_v24 = vpop.f32.mrb[7].mxu0  ;;  %v2763_v34 = vmul.f32 %v3719_v16, %v3719_v16 }
 0x192   : > { %v2722_v25 = vadd.f32 %v3720_v20, %v2721_v21  ;;  %v2761_v26 = vmul.f32 %v3720_v20, %v3720_v20  ;;  %v2791_v27 = vadd.f32 %v2790_v19, %v2760_v18  ;;  %v3722_v28 = vadd.f32 %v2419_v24, %v939_v54 }
 0x193   : > { %v3256_v29 = vpack.c.bf16 %v3721_v23, %v3719_v16  ;;  %v2764_v40 = vmul.f32 %v3721_v23, %v3721_v23 }
 0x194   : > { %v2792_v30 = vadd.f32 %v2791_v27, %v2761_v26  ;;  %v3251_v31 = vpack.c.bf16 %v3722_v28, %v3720_v20  ;;  %v2723_v32 = vadd.f32 %v3722_v28, %v2722_v25  ;;  %v2762_v33 = vmul.f32 %v3722_v28, %v3722_v28 }
 0x195   : > { %3320 = vst [vmem:[%s4406_s24 + $0x18] sm:$0xff] %v3256_v29  }
 0x196   : > { %3319 = vst [vmem:[%s4406_s24 + $0x10] sm:$0xff] %v3251_v31   ;;  %v2724_v35 = vadd.f32 %v3719_v16, %v2723_v32  ;;  %v2793_v36 = vadd.f32 %v2792_v30, %v2762_v33  ;;  %v3689_v37 = vpop.f32.mrb[8].mxu0 }
 0x197   : > { %v3723_v38 = vadd.f32 %v3689_v37, %v3545_v55  ;;  %v2432_v39 = vpop.f32.mrb[9].mxu0 }
 0x198   : > { %v2794_v41 = vadd.f32 %v2793_v36, %v2763_v34  ;;  %v3724_v42 = vadd.f32 %v2432_v39, %v952_v56  ;;  %v2725_v43 = vadd.f32 %v3721_v23, %v2724_v35  ;;  %v3690_v44 = vpop.f32.mrb[10].mxu0 }
 0x199   : > { %v3725_v45 = vadd.f32 %v3690_v44, %v3546_v57  ;;  %v2435_v46 = vpop.f32.mrb[11].mxu0  ;;  %v2767_v55 = vmul.f32 %v3723_v38, %v3723_v38 }
 0x19a   : > { %v2726_v47 = vadd.f32 %v3724_v42, %v2725_v43  ;;  %v2765_v48 = vmul.f32 %v3724_v42, %v3724_v42  ;;  %v2795_v49 = vadd.f32 %v2794_v41, %v2764_v40  ;;  %v3726_v50 = vadd.f32 %v2435_v46, %v955_v58 }
 0x19b   : > { %v3266_v51 = vpack.c.bf16 %v3725_v45, %v3723_v38  ;;  %v2768_v57 = vmul.f32 %v3725_v45, %v3725_v45 }
 0x19c   : > { %v2796_v52 = vadd.f32 %v2795_v49, %v2765_v48  ;;  %v3261_v53 = vpack.c.bf16 %v3726_v50, %v3724_v42  ;;  %v2727_v54 = vadd.f32 %v3726_v50, %v2726_v47  ;;  %v2766_v63 = vmul.f32 %v3726_v50, %v3726_v50 }
 0x19d   : > { %3322 = vst [vmem:[%s4406_s24 + $0x28] sm:$0xff] %v3266_v51  }
 0x19e   : > { %3321 = vst [vmem:[%s4406_s24 + $0x20] sm:$0xff] %v3261_v53   ;;  %v2728_v0 = vadd.f32 %v3723_v38, %v2727_v54  ;;  %v2797_v2 = vadd.f32 %v2796_v52, %v2766_v63  ;;  %v3693_v56 = vpop.f32.mrb[12].mxu0 }
 0x19f   : > { %v3727_v4 = vadd.f32 %v3693_v56, %v4394_v59  ;;  %v2448_v5 = vpop.f32.mrb[13].mxu0 }
 0x1a0   : > { %v2798_v6 = vadd.f32 %v2797_v2, %v2767_v55  ;;  %v3728_v7 = vadd.f32 %v2448_v5, %v4396_v60  ;;  %v2729_v58 = vadd.f32 %v3725_v45, %v2728_v0  ;;  %v3694_v8 = vpop.f32.mrb[14].mxu0 }
 0x1a1   : > { %v3729_v9 = vadd.f32 %v3694_v8, %v4398_v61  ;;  %v2451_v10 = vpop.f32.mrb[15].mxu0  ;;  %v2771_v18 = vmul.f32 %v3727_v4, %v3727_v4 }
 0x1a2   : > { %v2730_v1 = vadd.f32 %v3728_v7, %v2729_v58  ;;  %v2769_v11 = vmul.f32 %v3728_v7, %v3728_v7  ;;  %v2799_v12 = vadd.f32 %v2798_v6, %v2768_v57  ;;  %v3730_v13 = vadd.f32 %v2451_v10, %v4400_v62 }
 0x1a3   : > { %v3276_v3 = vpack.c.bf16 %v3729_v9, %v3727_v4  ;;  %v2772_v24 = vmul.f32 %v3729_v9, %v3729_v9 }
 0x1a4   : > { %v2800_v14 = vadd.f32 %v2799_v12, %v2769_v11  ;;  %v3271_v59 = vpack.c.bf16 %v3730_v13, %v3728_v7  ;;  %v2731_v15 = vadd.f32 %v3730_v13, %v2730_v1  ;;  %v2770_v16 = vmul.f32 %v3730_v13, %v3730_v13 }
 0x1a5   : > { %3324 = vst [vmem:[%s4406_s24 + $0x38] sm:$0xff] %v3276_v3  }
 0x1a6   : > { %v3589_v17 = vpop.f32.mrb[16].mxu1  ;;  %3323 = vst [vmem:[%s4406_s24 + $0x30] sm:$0xff] %v3271_v59   ;;  %v2732_v60 = vadd.f32 %v3727_v4, %v2731_v15  ;;  %v2801_v19 = vadd.f32 %v2800_v14, %v2770_v16  ;;  %v3697_v20 = vpop.f32.mrb[16].mxu0 }
 0x1a7   : > { %v1354_v21 = vpop.f32.mrb[17].mxu1  ;;  %v3731_v61 = vadd.f32 %v3697_v20, %v3589_v17  ;;  %v2464_v22 = vpop.f32.mrb[17].mxu0 }
 0x1a8   : > { %v3590_v23 = vpop.f32.mrb[18].mxu1  ;;  %v2802_v25 = vadd.f32 %v2801_v19, %v2771_v18  ;;  %v3732_v62 = vadd.f32 %v2464_v22, %v1354_v21  ;;  %v2733_v26 = vadd.f32 %v3729_v9, %v2732_v60  ;;  %v3698_v27 = vpop.f32.mrb[18].mxu0 }
 0x1a9   : > { %v1357_v28 = vpop.f32.mrb[19].mxu1  ;;  %v3733_v29 = vadd.f32 %v3698_v27, %v3590_v23  ;;  %v2467_v30 = vpop.f32.mrb[19].mxu0  ;;  %v2775_v41 = vmul.f32 %v3731_v61, %v3731_v61 }
 0x1aa   : > { %v2734_v31 = vadd.f32 %v3732_v62, %v2733_v26  ;;  %v2773_v32 = vmul.f32 %v3732_v62, %v3732_v62  ;;  %v2803_v33 = vadd.f32 %v2802_v25, %v2772_v24  ;;  %v3734_v34 = vadd.f32 %v2467_v30, %v1357_v28 }
 0x1ab   : > { %v3286_v35 = vpack.c.bf16 %v3733_v29, %v3731_v61  ;;  %v2776_v49 = vmul.f32 %v3733_v29, %v3733_v29 }
 0x1ac   : > { %v2804_v36 = vadd.f32 %v2803_v33, %v2773_v32  ;;  %v3281_v37 = vpack.c.bf16 %v3734_v34, %v3732_v62  ;;  %v2735_v38 = vadd.f32 %v3734_v34, %v2734_v31  ;;  %v2774_v39 = vmul.f32 %v3734_v34, %v3734_v34 }
 0x1ad   : > { %3326 = vst [vmem:[%s4406_s24 + $0x48] sm:$0xff] %v3286_v35  }
 0x1ae   : > { %v3593_v40 = vpop.f32.mrb[20].mxu1  ;;  %3325 = vst [vmem:[%s4406_s24 + $0x40] sm:$0xff] %v3281_v37   ;;  %v2736_v42 = vadd.f32 %v3731_v61, %v2735_v38  ;;  %v2805_v43 = vadd.f32 %v2804_v36, %v2774_v39  ;;  %v3701_v44 = vpop.f32.mrb[20].mxu0 }
 0x1af   : > { %v1370_v45 = vpop.f32.mrb[21].mxu1  ;;  %v3735_v46 = vadd.f32 %v3701_v44, %v3593_v40  ;;  %v2480_v47 = vpop.f32.mrb[21].mxu0 }
 0x1b0   : > { %v3594_v48 = vpop.f32.mrb[22].mxu1  ;;  %v2806_v50 = vadd.f32 %v2805_v43, %v2775_v41  ;;  %v3736_v51 = vadd.f32 %v2480_v47, %v1370_v45  ;;  %v2737_v52 = vadd.f32 %v3733_v29, %v2736_v42  ;;  %v3702_v53 = vpop.f32.mrb[22].mxu0 }
 0x1b1   : > { %v1373_v54 = vpop.f32.mrb[23].mxu1  ;;  %v3737_v63 = vadd.f32 %v3702_v53, %v3594_v48  ;;  %v2483_v55 = vpop.f32.mrb[23].mxu0  ;;  %v2779_v9 = vmul.f32 %v3735_v46, %v3735_v46 }
 0x1b2   : > { %v2738_v0 = vadd.f32 %v3736_v51, %v2737_v52  ;;  %v2777_v2 = vmul.f32 %v3736_v51, %v3736_v51  ;;  %v2807_v56 = vadd.f32 %v2806_v50, %v2776_v49  ;;  %v3738_v4 = vadd.f32 %v2483_v55, %v1373_v54 }
 0x1b3   : > { %v3296_v5 = vpack.c.bf16 %v3737_v63, %v3735_v46  ;;  %v2780_v59 = vmul.f32 %v3737_v63, %v3737_v63 }
 0x1b4   : > { %v2808_v57 = vadd.f32 %v2807_v56, %v2777_v2  ;;  %v3291_v6 = vpack.c.bf16 %v3738_v4, %v3736_v51  ;;  %v2739_v7 = vadd.f32 %v3738_v4, %v2738_v0  ;;  %v2778_v58 = vmul.f32 %v3738_v4, %v3738_v4 }
 0x1b5   : > { %3328 = vst [vmem:[%s4406_s24 + $0x58] sm:$0xff] %v3296_v5  }
 0x1b6   : > { %v3597_v8 = vpop.f32.mrb[24].mxu1  ;;  %3327 = vst [vmem:[%s4406_s24 + $0x50] sm:$0xff] %v3291_v6   ;;  %v2740_v10 = vadd.f32 %v3735_v46, %v2739_v7  ;;  %v2809_v1 = vadd.f32 %v2808_v57, %v2778_v58  ;;  %v3705_v11 = vpop.f32.mrb[24].mxu0 }
 0x1b7   : > { %v1386_v12 = vpop.f32.mrb[25].mxu1  ;;  %v3739_v13 = vadd.f32 %v3705_v11, %v3597_v8  ;;  %v2496_v3 = vpop.f32.mrb[25].mxu0 }
 0x1b8   : > { %v3598_v14 = vpop.f32.mrb[26].mxu1  ;;  %v2810_v15 = vadd.f32 %v2809_v1, %v2779_v9  ;;  %v3740_v16 = vadd.f32 %v2496_v3, %v1386_v12  ;;  %v2741_v17 = vadd.f32 %v3737_v63, %v2740_v10  ;;  %v3706_v18 = vpop.f32.mrb[26].mxu0 }
 0x1b9   : > { %v1389_v60 = vpop.f32.mrb[27].mxu1  ;;  %v3741_v19 = vadd.f32 %v3706_v18, %v3598_v14  ;;  %v2499_v20 = vpop.f32.mrb[27].mxu0  ;;  %v2783_v29 = vmul.f32 %v3739_v13, %v3739_v13 }
 0x1ba   : > { %v2742_v21 = vadd.f32 %v3740_v16, %v2741_v17  ;;  %v2781_v61 = vmul.f32 %v3740_v16, %v3740_v16  ;;  %v2811_v22 = vadd.f32 %v2810_v15, %v2780_v59  ;;  %v3742_v23 = vadd.f32 %v2499_v20, %v1389_v60 }
 0x1bb   : > { %v3306_v24 = vpack.c.bf16 %v3741_v19, %v3739_v13  ;;  %v2784_v37 = vmul.f32 %v3741_v19, %v3741_v19 }
 0x1bc   : > { %v2812_v25 = vadd.f32 %v2811_v22, %v2781_v61  ;;  %v3301_v62 = vpack.c.bf16 %v3742_v23, %v3740_v16  ;;  %v2743_v26 = vadd.f32 %v3742_v23, %v2742_v21  ;;  %v2782_v27 = vmul.f32 %v3742_v23, %v3742_v23 }
 0x1bd   : > { %3330 = vst [vmem:[%s4406_s24 + $0x68] sm:$0xff] %v3306_v24  }
 0x1be   : > { %v3601_v28 = vpop.f32.mrb[28].mxu1  ;;  %3329 = vst [vmem:[%s4406_s24 + $0x60] sm:$0xff] %v3301_v62   ;;  %v2744_v30 = vadd.f32 %v3739_v13, %v2743_v26  ;;  %v2813_v31 = vadd.f32 %v2812_v25, %v2782_v27  ;;  %v3709_v32 = vpop.f32.mrb[28].mxu0 }
 0x1bf   : > { %v1402_v33 = vpop.f32.mrb[29].mxu1  ;;  %v3743_v34 = vadd.f32 %v3709_v32, %v3601_v28  ;;  %v2512_v35 = vpop.f32.mrb[29].mxu0 }
 0x1c0   : > { %v3602_v36 = vpop.f32.mrb[30].mxu1  ;;  %v2814_v38 = vadd.f32 %v2813_v31, %v2783_v29  ;;  %v3744_v39 = vadd.f32 %v2512_v35, %v1402_v33  ;;  %v2745_v40 = vadd.f32 %v3741_v19, %v2744_v30  ;;  %v3710_v41 = vpop.f32.mrb[30].mxu0 }
 0x1c1   : > { %v1405_v42 = vpop.f32.mrb[31].mxu1  ;;  %v3745_v43 = vadd.f32 %v3710_v41, %v3602_v36  ;;  %v2515_v44 = vpop.f32.mrb[31].mxu0  ;;  %v2787_v54 = vmul.f32 %v3743_v34, %v3743_v34 }
 0x1c2   : > { %v2746_v45 = vadd.f32 %v3744_v39, %v2745_v40  ;;  %v2785_v46 = vmul.f32 %v3744_v39, %v3744_v39  ;;  %v2815_v47 = vadd.f32 %v2814_v38, %v2784_v37  ;;  %v3746_v48 = vadd.f32 %v2515_v44, %v1405_v42 }
 0x1c3   : > { %v3316_v49 = vpack.c.bf16 %v3745_v43, %v3743_v34  ;;  %v2788_v0 = vmul.f32 %v3745_v43, %v3745_v43 }
 0x1c4   : > { %v2816_v50 = vadd.f32 %v2815_v47, %v2785_v46  ;;  %v3311_v51 = vpack.c.bf16 %v3746_v48, %v3744_v39  ;;  %v2747_v52 = vadd.f32 %v3746_v48, %v2746_v45  ;;  %v2786_v53 = vmul.f32 %v3746_v48, %v3746_v48 }
 0x1c5   : > { %3332 = vst [vmem:[%s4406_s24 + $0x78] sm:$0xff] %v3316_v49  }
 0x1c6   : > { %3331 = vst [vmem:[%s4406_s24 + $0x70] sm:$0xff] %v3311_v51   ;;  %v2748_v63 = vadd.f32 %v3743_v34, %v2747_v52  ;;  %v2817_v55 = vadd.f32 %v2816_v50, %v2786_v53 }
 0x1c8   : > { %v2749_v2 = vadd.f32 %v3745_v43, %v2748_v63  ;;  %v2818_v56 = vadd.f32 %v2817_v55, %v2787_v54 }
 0x1ca   : > { %v2750_v4 = vrot.slane %v2749_v2, 4  ;;  %v2819_v5 = vadd.f32 %v2818_v56, %v2788_v0 }
 0x1cc   : > { %v2751_v57 = vadd.f32 %v2750_v4, %v2749_v2  ;;  %v2820_v6 = vrot.slane %v2819_v5, 4 }
 0x1ce   : > { %v2752_v7 = vrot.slane %v2751_v57, 2  ;;  %v2821_v58 = vadd.f32 %v2820_v6, %v2819_v5 }
 0x1d0   : > { %v2753_v8 = vadd.f32 %v2752_v7, %v2751_v57  ;;  %v2822_v9 = vrot.slane %v2821_v58, 2 }
 0x1d2   : > { %v2754_v10 = vrot.slane %v2753_v8, 1  ;;  %v2823_v1 = vadd.f32 %v2822_v9, %v2821_v58 }
 0x1d4   : > { %v2755_v11 = vadd.f32 %v2754_v10, %v2753_v8  ;;  %v2824_v12 = vrot.slane %v2823_v1, 1 }
 0x1d6   : > { %v2825_v13 = vadd.f32 %v2824_v12, %v2823_v1  ;;  %2827 = vst [vmem:[%s181_s28] sm:$0x1] %v2755_v11 }
 0x1d8   : > { %2828 = vst [vmem:[%s181_s28 + $0x1] sm:$0x1] %v2825_v13 }
 0x1d9 PF: > { %s14_s12 = sadd.s32 1, %s4033_s12  }
 0x1da   : > { %p11_p4 = scmp.ge.s32.totalorder %s14_s12, 4  }
 0x1dc   :  { %13 = sbr.rel (!%p11_p4) target bundleno = 1 (0x1), region = 76 }

// kernel: patchgan_forward.12
= control target key start
LH: loop header
LB: loop body
LE: loop exit
PB: predicated region body
PF: predicated region fallthrough
CT: control target
= control target key end

     0   :  { %s565_s9 = smov 0   ;;  %s652_s0 = inlined_call_operand.vmem [shape: bf16[2,128,128], index: 0, kind: input, shape index: {}]   ;;  %s653_s1 = inlined_call_operand.vmem [shape: f32[2,128], index: 1, kind: input, shape index: {}]   ;;  %s654_s2 = inlined_call_operand.vmem [shape: bf16[2,128,128], index: 2, kind: output, shape index: {}]  }
   0x1 LB: > { %s401_s10 = sadd.s32 4294967295, %s548_s9   ;;  %p405_p0 = scmp.ge.s32.totalorder %s548_s9, 1  ;;  %s548_s9 = sphi %s565_s9, %s12_s9  }
   0x2   : > { %p112_p1 = scmp.lt.s32.totalorder %s548_s9, 3 }
   0x4   : > { %p113_p2 = pnand %p405_p0, %p112_p1 }
   0x5   : > { %p134_p3 = scmp.lt.s32.totalorder (!%p113_p2), %s401_s10, 1  ;;  %v586_v0 = vld [vmem:[%s653_s1] ss:$0 sm:$0xff] (!%p113_p2)  ;;  %v595_v9 = vld [vmem:[%s653_s1 + $0x1] ss:$0 sm:$0xff] (!%p113_p2) }
   0x6   : > { %116 = sbr.rel (%p113_p2) target bundleno = 49 (0x31), region = 28 }
   0xd   : > { %s656_s10 = smov (!%p134_p3, %s401_s10), 1 }
   0xe   : > { %s430_s11 = sshll.u32 %s656_s10, 6 }
   0xf   : > { %s581_s14 = scalar_lea.vmem %s652_s0, %s430_s11  ;;  %s618_s21 = scalar_lea.vmem %s654_s2, %s430_s11 }
  0x10   : > { %v449_v1 = vld [vmem:[%s581_s14] sm:$0xff]   ;;  %v520_v2 = vld [vmem:[%s581_s14 + $0x8] sm:$0xff]   ;;  %v521_v3 = vld [vmem:[%s581_s14 + $0x10] sm:$0xff]  }
  0x11   : > { %v450_v4 = vunpack.c.l.bf16 %v449_v1  ;;  %v451_v5 = vunpack.c.h.bf16 %v449_v1  ;;  %v454_v6 = vunpack.c.l.bf16 %v520_v2  ;;  %v455_v7 = vunpack.c.h.bf16 %v520_v2  ;;  %v522_v8 = vld [vmem:[%s581_s14 + $0x18] sm:$0xff]   ;;  %v523_v36 = vld [vmem:[%s581_s14 + $0x20] sm:$0xff]   ;;  %v524_v41 = vld [vmem:[%s581_s14 + $0x28] sm:$0xff]  }
  0x12   : > { %v458_v10 = vunpack.c.l.bf16 %v521_v3  ;;  %v459_v11 = vunpack.c.h.bf16 %v521_v3  ;;  %v462_v12 = vunpack.c.l.bf16 %v522_v8  ;;  %v463_v13 = vunpack.c.h.bf16 %v522_v8  ;;  %v525_v52 = vld [vmem:[%s581_s14 + $0x30] sm:$0xff]   ;;  %v526_v53 = vld [vmem:[%s581_s14 + $0x38] sm:$0xff]  }
  0x13   : > { %v181_v14 = vmul.f32 %v450_v4, %v586_v0  ;;  %v182_v15 = vmul.f32 %v451_v5, %v586_v0  ;;  %v183_v16 = vmul.f32 %v454_v6, %v586_v0  ;;  %v184_v17 = vmul.f32 %v455_v7, %v586_v0 }
  0x14   : > { %v185_v18 = vmul.f32 %v458_v10, %v586_v0  ;;  %v186_v19 = vmul.f32 %v459_v11, %v586_v0  ;;  %v187_v20 = vmul.f32 %v462_v12, %v586_v0  ;;  %v188_v21 = vmul.f32 %v463_v13, %v586_v0 }
  0x15   : > { %v202_v22 = vadd.f32 %v595_v9, %v181_v14  ;;  %v203_v23 = vadd.f32 %v595_v9, %v182_v15  ;;  %v204_v24 = vadd.f32 %v595_v9, %v183_v16  ;;  %v205_v25 = vadd.f32 %v595_v9, %v184_v17 }
  0x16   : > { %v206_v26 = vadd.f32 %v595_v9, %v185_v18  ;;  %v207_v27 = vadd.f32 %v595_v9, %v186_v19  ;;  %v208_v28 = vadd.f32 %v595_v9, %v187_v20  ;;  %v209_v29 = vadd.f32 %v595_v9, %v188_v21 }
  0x17   : > { %vm218_vm0 = vcmp.gt.f32.partialorder %v202_v22, 0.0  ;;  %vm219_vm1 = vcmp.gt.f32.partialorder %v203_v23, 0.0  ;;  %v234_v30 = vmul.f32 0.2, %v202_v22  ;;  %v235_v31 = vmul.f32 0.2, %v203_v23 }
  0x18   : > { %vm220_vm2 = vcmp.gt.f32.partialorder %v204_v24, 0.0  ;;  %vm221_vm3 = vcmp.gt.f32.partialorder %v205_v25, 0.0  ;;  %v236_v32 = vmul.f32 0.2, %v204_v24  ;;  %v237_v33 = vmul.f32 0.2, %v205_v25 }
  0x19   : > { %v250_v34 = vsel %vm218_vm0, %v202_v22, %v234_v30  ;;  %v251_v35 = vsel %vm219_vm1, %v203_v23, %v235_v31  ;;  %vm222_vm4 = vcmp.gt.f32.partialorder %v206_v26, 0.0  ;;  %vm223_vm5 = vcmp.gt.f32.partialorder %v207_v27, 0.0 }
  0x1a   : > { %v483_v37 = vpack.c.bf16 %v251_v35, %v250_v34  ;;  %v252_v38 = vsel %vm220_vm2, %v204_v24, %v236_v32  ;;  %v253_v39 = vsel %vm221_vm3, %v205_v25, %v237_v33  ;;  %v238_v40 = vmul.f32 0.2, %v206_v26 }
  0x1b   : > { %v488_v42 = vpack.c.bf16 %v253_v39, %v252_v38  ;;  %v239_v43 = vmul.f32 0.2, %v207_v27  ;;  %vm224_vm6 = vcmp.gt.f32.partialorder %v208_v28, 0.0  ;;  %vm225_vm7 = vcmp.gt.f32.partialorder %v209_v29, 0.0 }
  0x1c   : > { %484 = vst [vmem:[%s618_s21] sm:$0xff] %v483_v37   ;;  %v254_v44 = vsel %vm222_vm4, %v206_v26, %v238_v40  ;;  %v240_v45 = vmul.f32 0.2, %v208_v28  ;;  %v241_v46 = vmul.f32 0.2, %v209_v29  ;;  %v466_v47 = vunpack.c.l.bf16 %v523_v36 }
  0x1d   : > { %527 = vst [vmem:[%s618_s21 + $0x8] sm:$0xff] %v488_v42   ;;  %v255_v48 = vsel %vm223_vm5, %v207_v27, %v239_v43  ;;  %v467_v49 = vunpack.c.h.bf16 %v523_v36  ;;  %v470_v50 = vunpack.c.l.bf16 %v524_v41  ;;  %v471_v51 = vunpack.c.h.bf16 %v524_v41 }
  0x1e   : > { %v493_v54 = vpack.c.bf16 %v255_v48, %v254_v44  ;;  %v256_v55 = vsel %vm224_vm6, %v208_v28, %v240_v45  ;;  %v257_v56 = vsel %vm225_vm7, %v209_v29, %v241_v46  ;;  %v189_v57 = vmul.f32 %v466_v47, %v586_v0 }
  0x1f   : > { %v498_v58 = vpack.c.bf16 %v257_v56, %v256_v55  ;;  %v190_v59 = vmul.f32 %v467_v49, %v586_v0  ;;  %v191_v60 = vmul.f32 %v470_v50, %v586_v0  ;;  %v192_v61 = vmul.f32 %v471_v51, %v586_v0 }
  0x20   : > { %528 = vst [vmem:[%s618_s21 + $0x10] sm:$0xff] %v493_v54   ;;  %v210_v62 = vadd.f32 %v595_v9, %v189_v57  ;;  %v474_v63 = vunpack.c.l.bf16 %v525_v52  ;;  %v475_v1 = vunpack.c.h.bf16 %v525_v52  ;;  %v478_v2 = vunpack.c.l.bf16 %v526_v53 }
  0x21   : > { %529 = vst [vmem:[%s618_s21 + $0x18] sm:$0xff] %v498_v58   ;;  %v211_v3 = vadd.f32 %v595_v9, %v190_v59  ;;  %v212_v4 = vadd.f32 %v595_v9, %v191_v60  ;;  %v213_v5 = vadd.f32 %v595_v9, %v192_v61  ;;  %v479_v6 = vunpack.c.h.bf16 %v526_v53 }
  0x22   : > { %vm226_vm8 = vcmp.gt.f32.partialorder %v210_v62, 0.0  ;;  %v242_v7 = vmul.f32 0.2, %v210_v62  ;;  %v193_v8 = vmul.f32 %v474_v63, %v586_v0  ;;  %v194_v10 = vmul.f32 %v475_v1, %v586_v0 }
  0x23   : > { %vm227_vm9 = vcmp.gt.f32.partialorder %v211_v3, 0.0  ;;  %v243_v11 = vmul.f32 0.2, %v211_v3  ;;  %vm228_vm10 = vcmp.gt.f32.partialorder %v212_v4, 0.0  ;;  %vm229_vm11 = vcmp.gt.f32.partialorder %v213_v5, 0.0 }
  0x24   : > { %v258_v12 = vsel %vm226_vm8, %v210_v62, %v242_v7  ;;  %v244_v13 = vmul.f32 0.2, %v212_v4  ;;  %v245_v14 = vmul.f32 0.2, %v213_v5  ;;  %v214_v15 = vadd.f32 %v595_v9, %v193_v8 }
  0x25   : > { %v259_v16 = vsel %vm227_vm9, %v211_v3, %v243_v11  ;;  %v215_v17 = vadd.f32 %v595_v9, %v194_v10  ;;  %v195_v18 = vmul.f32 %v478_v2, %v586_v0  ;;  %v196_v19 = vmul.f32 %v479_v6, %v586_v0 }
  0x26   : > { %v503_v20 = vpack.c.bf16 %v259_v16, %v258_v12  ;;  %v260_v21 = vsel %vm228_vm10, %v212_v4, %v244_v13  ;;  %v261_v22 = vsel %vm229_vm11, %v213_v5, %v245_v14  ;;  %vm230_vm12 = vcmp.gt.f32.partialorder %v214_v15, 0.0 }
  0x27   : > { %v508_v23 = vpack.c.bf16 %v261_v22, %v260_v21  ;;  %vm231_vm13 = vcmp.gt.f32.partialorder %v215_v17, 0.0  ;;  %v246_v24 = vmul.f32 0.2, %v214_v15  ;;  %v247_v25 = vmul.f32 0.2, %v215_v17 }
  0x28   : > { %530 = vst [vmem:[%s618_s21 + $0x20] sm:$0xff] %v503_v20   ;;  %v216_v26 = vadd.f32 %v595_v9, %v195_v18  ;;  %v217_v27 = vadd.f32 %v595_v9, %v196_v19 }
  0x29   : > { %531 = vst [vmem:[%s618_s21 + $0x28] sm:$0xff] %v508_v23   ;;  %v262_v28 = vsel %vm230_vm12, %v214_v15, %v246_v24  ;;  %v263_v29 = vsel %vm231_vm13, %v215_v17, %v247_v25 }
  0x2a   : > { %v513_v30 = vpack.c.bf16 %v263_v29, %v262_v28  ;;  %vm232_vm14 = vcmp.gt.f32.partialorder %v216_v26, 0.0  ;;  %vm233_vm15 = vcmp.gt.f32.partialorder %v217_v27, 0.0  ;;  %v248_v0 = vmul.f32 0.2, %v216_v26 }
  0x2b   : > { %v249_v31 = vmul.f32 0.2, %v217_v27 }
  0x2c   : > { %532 = vst [vmem:[%s618_s21 + $0x30] sm:$0xff] %v513_v30   ;;  %v264_v32 = vsel %vm232_vm14, %v216_v26, %v248_v0 }
  0x2d   : > { %v265_v33 = vsel %vm233_vm15, %v217_v27, %v249_v31 }
  0x2e   : > { %v518_v34 = vpack.c.bf16 %v265_v33, %v264_v32 }
  0x30   : > { %533 = vst [vmem:[%s618_s21 + $0x38] sm:$0xff] %v518_v34  }
  0x31 PF: > { %s12_s9 = sadd.s32 1, %s548_s9  }
  0x32   : > { %p9_p4 = scmp.ge.s32.totalorder %s12_s9, 4  }
  0x34   :  { %11 = sbr.rel (!%p9_p4) target bundleno = 1 (0x1), region = 58 }

// kernel: patchgan_forward.11
= control target key start
LH: loop header
LB: loop body
LE: loop exit
PB: predicated region body
PF: predicated region fallthrough
CT: control target
= control target key end

     0   :  { %s2923_s12 = smov 0   ;;  %s3275_s0 = inlined_call_operand.vmem [shape: bf16[2,176,128], index: 0, kind: input, shape index: {}]   ;;  %s3276_s1 = inlined_call_operand.vmem [shape: bf16[7,128,128], index: 1, kind: input, shape index: {}]   ;;  %s3277_s2 = inlined_call_operand.vmem [shape: bf16[2,128,128], index: 2, kind: output, shape index: {0}]   ;;  %s3278_s3 = inlined_call_operand.vmem [shape: f32[2,2,128], index: 3, kind: output, shape index: {1}]  }
   0x1 LB: > { %s2027_s13 = sadd.s32 4294967295, %s2901_s12   ;;  %p2031_p0 = scmp.ge.s32.totalorder %s2901_s12, 1  ;;  %s2901_s12 = sphi %s2923_s12, %s14_s12  }
   0x2   : > { %p140_p1 = scmp.lt.s32.totalorder %s2901_s12, 3 }
   0x4   : > { %p141_p2 = pnand %p2031_p0, %p140_p1 }
   0x5   : > { %v2783_v0 = vld [vmem:[%s3276_s1 + $0x40] sm:$0xff] (!%p141_p2)   ;;  %p168_p3 = scmp.lt.s32.totalorder (!%p141_p2), %s2027_s13, 1  ;;  %v2785_v2 = vld [vmem:[%s3276_s1 + $0x48] sm:$0xff] (!%p141_p2)   ;;  %v2787_v4 = vld [vmem:[%s3276_s1 + $0x50] sm:$0xff] (!%p141_p2)  }
   0x6   : > { %144 = sbr.rel (%p141_p2) target bundleno = 397 (0x18d), region = 28  ;;  %v2784_v1 = vld [vmem:[%s3276_s1 + $0xc0] sm:$0xff] (!%p141_p2)   ;;  %2438 = vmatprep.subr.bf16.mxu1 (!%p141_p2), %v2783_v0  ;;  %v2786_v3 = vld [vmem:[%s3276_s1 + $0xc8] sm:$0xff] (!%p141_p2)   ;;  %v2788_v5 = vld [vmem:[%s3276_s1 + $0xd0] sm:$0xff] (!%p141_p2)  }
   0x7   : > { %2534 = vmatprep.subr.bf16.mxu0 (!%p141_p2), %v2784_v1  ;;  %2439 = vmatpush3.bf16.msra.mxu1 (!%p141_p2), %v2783_v0  ;;  %v2789_v6 = vld [vmem:[%s3276_s1 + $0x58] sm:$0xff] (!%p141_p2)   ;;  %v2791_v8 = vld [vmem:[%s3276_s1 + $0x60] sm:$0xff] (!%p141_p2)   ;;  %v2793_v10 = vld [vmem:[%s3276_s1 + $0x68] sm:$0xff] (!%p141_p2)  }
   0x8   : > { %2535 = vmatpush3.bf16.msra.mxu0 (!%p141_p2), %v2784_v1  ;;  %2440 = vmatprep.subr.bf16.mxu1 (!%p141_p2), %v2785_v2  ;;  %v2790_v7 = vld [vmem:[%s3276_s1 + $0xd8] sm:$0xff] (!%p141_p2)   ;;  %v2792_v9 = vld [vmem:[%s3276_s1 + $0xe0] sm:$0xff] (!%p141_p2)   ;;  %v2794_v13 = vld [vmem:[%s3276_s1 + $0xe8] sm:$0xff] (!%p141_p2)  }
   0x9   : > { %2536 = vmatprep.subr.bf16.mxu0 (!%p141_p2), %v2786_v3  ;;  %v2795_v16 = vld [vmem:[%s3276_s1 + $0x70] sm:$0xff] (!%p141_p2)   ;;  %v2797_v18 = vld [vmem:[%s3276_s1 + $0x78] sm:$0xff] (!%p141_p2)   ;;  %v2804_v22 = vld [vmem:[%s3276_s1] sm:$0xff] (!%p141_p2)  }
   0xa   : > { %v2796_v17 = vld [vmem:[%s3276_s1 + $0xf0] sm:$0xff] (!%p141_p2)   ;;  %v2798_v19 = vld [vmem:[%s3276_s1 + $0xf8] sm:$0xff] (!%p141_p2)   ;;  %v2806_v23 = vld [vmem:[%s3276_s1 + $0x100] sm:$0xff] (!%p141_p2)  }
   0xb   : > { %2441 = vmatpush3.bf16.msra.mxu1 (!%p141_p2), %v2785_v2  ;;  %v2807_v28 = vld [vmem:[%s3276_s1 + $0x8] sm:$0xff] (!%p141_p2)   ;;  %v2812_v34 = vld [vmem:[%s3276_s1 + $0x10] sm:$0xff] (!%p141_p2)   ;;  %v2815_v40 = vld [vmem:[%s3276_s1 + $0x18] sm:$0xff] (!%p141_p2)  }
   0xc   : > { %2537 = vmatpush3.bf16.msra.mxu0 (!%p141_p2), %v2786_v3  ;;  %2442 = vmatprep.subr.bf16.mxu1 (!%p141_p2), %v2787_v4  ;;  %v2808_v29 = vld [vmem:[%s3276_s1 + $0x108] sm:$0xff] (!%p141_p2)   ;;  %v2814_v35 = vld [vmem:[%s3276_s1 + $0x110] sm:$0xff] (!%p141_p2)   ;;  %v2816_v41 = vld [vmem:[%s3276_s1 + $0x118] sm:$0xff] (!%p141_p2)  }
   0xd   : > { %s3280_s13 = smov (!%p168_p3, %s2027_s13), 1  ;;  %2538 = vmatprep.subr.bf16.mxu0 %v2788_v5  ;;  %v2820_v46 = vld [vmem:[%s3276_s1 + $0x20] sm:$0xff]   ;;  %v2823_v52 = vld [vmem:[%s3276_s1 + $0x28] sm:$0xff]   ;;  %v2828_v58 = vld [vmem:[%s3276_s1 + $0x30] sm:$0xff]  }
   0xe   : > { %s2774_s30 = smul.u32 88, %s3280_s13  ;;  %v2822_v47 = vld [vmem:[%s3276_s1 + $0x120] sm:$0xff]   ;;  %v2824_v53 = vld [vmem:[%s3276_s1 + $0x128] sm:$0xff]   ;;  %v2830_v59 = vld [vmem:[%s3276_s1 + $0x130] sm:$0xff]   ;;  %s2035_s9 = sshll.u32 %s3280_s13, 1 }
   0xf   : > { %2443 = vmatpush3.bf16.msra.mxu1 %v2787_v4  ;;  %v2831_v63 = vld [vmem:[%s3276_s1 + $0x38] sm:$0xff]   ;;  %v2834_v3 = vld [vmem:[%s3276_s1 + $0x80] sm:$0xff]   ;;  %s181_s15 = scalar_lea.vmem %s3278_s3, %s2035_s9 }
  0x10   : > { %2539 = vmatpush3.bf16.msra.mxu0 %v2788_v5  ;;  %2444 = vmatprep.subr.bf16.mxu1 %v2789_v6  ;;  %s2967_s10 = scalar_lea.vmem %s3275_s0, %s2774_s30  ;;  %v2832_v1 = vld [vmem:[%s3276_s1 + $0x138] sm:$0xff]   ;;  %v2836_v4 = vld [vmem:[%s3276_s1 + $0x140] sm:$0xff]  }
  0x11   : > { %2540 = vmatprep.subr.bf16.mxu0 %v2790_v7  ;;  %v2973_v11 = vld [vmem:[%s2967_s10 + $0x4] sm:$0xf]  ;;  %v2976_v12 = vld [vmem:[%s2967_s10 + $0x8] sm:$0xf]  ;;  %v2802_v15 = vld [vmem:[%s2967_s10 + $0xc] sm:$0xff]  }
  0x12   : > { %v2052_v14 = vcombine.low %v2973_v11, %v2976_v12  ;;  %2550 = vmatprep.mubr.bf16.mxu0 %v2802_v15  ;;  %v2997_v20 = vld [vmem:[%s2967_s10 + $0xc] sm:$0xf]  ;;  %v3000_v21 = vld [vmem:[%s2967_s10 + $0x10] sm:$0xf]  ;;  %v3009_v24 = vld [vmem:[%s2967_s10 + $0x14] sm:$0xf] }
  0x13   : > { %2445 = vmatpush3.bf16.msra.mxu1 %v2789_v6  ;;  %v2053_v25 = vcombine.low %v2997_v20, %v3000_v21  ;;  %v3014_v26 = vld [vmem:[%s2967_s10 + $0x18] sm:$0xf]  ;;  %v2810_v31 = vld [vmem:[%s2967_s10 + $0x1c] sm:$0xff]   ;;  %v2813_v37 = vld [vmem:[%s2967_s10 + $0x24] sm:$0xff]   ;;  %v2069_v5 = vcombine.low %v2976_v12, %v2997_v20 }
  0x14   : > { %2541 = vmatpush3.bf16.msra.mxu0 %v2790_v7  ;;  %2446 = vmatprep.subr.bf16.mxu1 %v2791_v8  ;;  %v2805_v27 = vld [vmem:[%s2967_s10 + $0x14] sm:$0xff]   ;;  %v2054_v30 = vcombine.low %v3009_v24, %v3014_v26  ;;  %v3027_v32 = vld [vmem:[%s2967_s10 + $0x1c] sm:$0xf]  ;;  %v3030_v33 = vld [vmem:[%s2967_s10 + $0x20] sm:$0xf] }
  0x15   : > { %2542 = vmatprep.subr.bf16.mxu0 %v2792_v9  ;;  %2454 = vmatprep.mubr.bf16.mxu1 %v2052_v14  ;;  %v2055_v36 = vcombine.low %v3027_v32, %v3030_v33  ;;  %v3042_v38 = vld [vmem:[%s2967_s10 + $0x24] sm:$0xf]  ;;  %v3045_v39 = vld [vmem:[%s2967_s10 + $0x28] sm:$0xf]  ;;  %v2818_v42 = vld [vmem:[%s2967_s10 + $0x2c] sm:$0xff]  }
  0x16   : > { %v2056_v43 = vcombine.low %v3042_v38, %v3045_v39  ;;  %v3057_v44 = vld [vmem:[%s2967_s10 + $0x2c] sm:$0xf]  ;;  %v3060_v45 = vld [vmem:[%s2967_s10 + $0x30] sm:$0xf]  ;;  %v2821_v48 = vld [vmem:[%s2967_s10 + $0x34] sm:$0xff]  }
  0x17   : > { %2447 = vmatpush3.bf16.msra.mxu1 %v2791_v8  ;;  %v3070_v49 = vld [vmem:[%s2967_s10 + $0x34] sm:$0xf]  ;;  %v2057_v50 = vcombine.low %v3057_v44, %v3060_v45  ;;  %v3075_v51 = vld [vmem:[%s2967_s10 + $0x38] sm:$0xf]  ;;  %v2826_v55 = vld [vmem:[%s2967_s10 + $0x3c] sm:$0xff]  }
  0x18   : > { %2543 = vmatpush3.bf16.msra.mxu0 %v2792_v9  ;;  %2448 = vmatprep.subr.bf16.mxu1 %v2793_v10  ;;  %v2058_v54 = vcombine.low %v3070_v49, %v3075_v51  ;;  %v3087_v56 = vld [vmem:[%s2967_s10 + $0x3c] sm:$0xf]  ;;  %v215_v57 = vld [vmem:[%s2967_s10 + $0x40] sm:$0xf]  ;;  %v2829_v62 = vld [vmem:[%s2967_s10 + $0x44] sm:$0xff]   ;;  %v2070_v9 = vcombine.low %v3000_v21, %v3009_v24  ;;  %v2073_v21 = vcombine.low %v3045_v39, %v3057_v44 }
  0x19   : > { %2544 = vmatprep.subr.bf16.mxu0 %v2794_v13  ;;  %v183_v60 = vld [vmem:[%s2967_s10] sm:$0xf]  ;;  %v2059_v61 = vcombine.low %v3087_v56, %v215_v57  ;;  %v2833_v2 = vld [vmem:[%s2967_s10 + $0x10] sm:$0xff]   ;;  %v2835_v6 = vld [vmem:[%s2967_s10 + $0x18] sm:$0xff]  }
  0x1a   : > { %v2068_v0 = vcombine.low %v183_v60, %v2973_v11  ;;  %v2837_v7 = vld [vmem:[%s3276_s1 + $0x88] sm:$0xff]   ;;  %v2842_v11 = vld [vmem:[%s3276_s1 + $0x90] sm:$0xff]   ;;  %v2845_v15 = vld [vmem:[%s3276_s1 + $0x98] sm:$0xff]  }
  0x1b   : > { %2449 = vmatpush3.bf16.msra.mxu1 %v2793_v10  ;;  %v2838_v8 = vld [vmem:[%s3276_s1 + $0x148] sm:$0xff]   ;;  %v2840_v10 = vld [vmem:[%s2967_s10 + $0x20] sm:$0xff]   ;;  %v2844_v12 = vld [vmem:[%s3276_s1 + $0x150] sm:$0xff]  }
  0x1c   : > { %2545 = vmatpush3.bf16.msra.mxu0 %v2794_v13  ;;  %2450 = vmatprep.subr.bf16.mxu1 %v2795_v16  ;;  %v2071_v13 = vcombine.low %v3014_v26, %v3027_v32  ;;  %v2843_v14 = vld [vmem:[%s2967_s10 + $0x28] sm:$0xff]   ;;  %v2852_v20 = vld [vmem:[%s3276_s1 + $0x160] sm:$0xff]   ;;  %v2862_v32 = vld [vmem:[%s3276_s1 + $0x178] sm:$0xff]  }
  0x1d   : > { %2546 = vmatprep.subr.bf16.mxu0 %v2796_v17  ;;  %v2854_v24 = vld [vmem:[%s3276_s1 + $0x168] sm:$0xff]   ;;  %v2856_v26 = vld [vmem:[%s2967_s10 + $0x40] sm:$0xff]   ;;  %v2869_v39 = vld [vmem:[%s2967_s10 + $0x18] sm:$0xff]  }
  0x1e   : > { %v2874_v44 = vld [vmem:[%s3276_s1 + $0x198] sm:$0xff]   ;;  %v2889_v60 = vld [vmem:[%s2967_s10 + $0x20] sm:$0xff]  }
  0x1f   : > { %2451 = vmatpush3.bf16.msra.mxu1 %v2795_v16  ;;  %v2846_v16 = vld [vmem:[%s3276_s1 + $0x158] sm:$0xff]  }
  0x20   : > { %2547 = vmatpush3.bf16.msra.mxu0 %v2796_v17  ;;  %2452 = vmatprep.subr.bf16.mxu1 %v2797_v18  ;;  %v2072_v17 = vcombine.low %v3030_v33, %v3042_v38  ;;  %v2863_v33 = vld [vmem:[%s2967_s10 + $0x8] sm:$0xff]   ;;  %v2887_v57 = vld [vmem:[%s2967_s10 + $0x18] sm:$0xff]  }
  0x21   : > { %2548 = vmatprep.subr.bf16.mxu0 %v2798_v19  ;;  %v2868_v38 = vld [vmem:[%s3276_s1 + $0x188] sm:$0xff]  }
  0x23   : > { %2453 = vmatpush3.bf16.msra.mxu1 %v2797_v18  ;;  %v2848_v18 = vld [vmem:[%s2967_s10 + $0x30] sm:$0xff]  }
  0x24   : > { %2549 = vmatpush3.bf16.msra.mxu0 %v2798_v19  ;;  %2470 = vmatprep.subr.bf16.mxu1 %v2804_v22  ;;  %v2850_v19 = vld [vmem:[%s3276_s1 + $0xa0] sm:$0xff]  }
  0x25   : > { %2566 = vmatprep.subr.bf16.mxu0 %v2806_v23 }
  0x26   : > { %2455 = vmatmul.mubr.bf16.vlgmr.msra.gmra.mrb[0].mxu1 %v2053_v25  ;;  %v2074_v25 = vcombine.low %v3060_v45, %v3070_v49  ;;  %v2875_v45 = vld [vmem:[%s2967_s10 + $0x28] sm:$0xff]   ;;  %v2878_v49 = vld [vmem:[%s2967_s10 + $0x3c] sm:$0xff]  }
  0x27   : > { %2551 = vmatmul.mubr.bf16.vlgmr.msra.gmra.mrb[0].mxu0 %v2805_v27  ;;  %2471 = vmatpush3.bf16.msra.mxu1 %v2804_v22  ;;  %v2851_v22 = vld [vmem:[%s2967_s10 + $0x38] sm:$0xff]   ;;  %v2858_v27 = vld [vmem:[%s3276_s1 + $0xb0] sm:$0xff]  }
  0x28   : > { %2567 = vmatpush3.bf16.msra.mxu0 %v2806_v23  ;;  %2472 = vmatprep.subr.bf16.mxu1 %v2807_v28  ;;  %v2853_v23 = vld [vmem:[%s3276_s1 + $0xa8] sm:$0xff]  }
  0x29   : > { %2568 = vmatprep.subr.bf16.mxu0 %v2808_v29  ;;  %2458 = vmatprep.mubr.bf16.mxu1 %v2054_v30  ;;  %v2859_v30 = vld [vmem:[%s2967_s10 + $0x48] sm:$0xff]  }
  0x2a   : > { %2554 = vmatprep.mubr.bf16.mxu0 %v2810_v31  ;;  %v2861_v31 = vld [vmem:[%s3276_s1 + $0xb8] sm:$0xff]  }
  0x2b   : > { %2473 = vmatpush3.bf16.msra.mxu1 %v2807_v28  ;;  %v2860_v28 = vld [vmem:[%s3276_s1 + $0x170] sm:$0xff]  }
  0x2c   : > { %2569 = vmatpush3.bf16.msra.mxu0 %v2808_v29  ;;  %2474 = vmatprep.subr.bf16.mxu1 %v2812_v34  ;;  %v2075_v29 = vcombine.low %v3075_v51, %v3087_v56  ;;  %v2881_v51 = vld [vmem:[%s2967_s10 + $0x38] sm:$0xff]  }
  0x2d   : > { %2570 = vmatprep.subr.bf16.mxu0 %v2814_v35  ;;  %v2886_v56 = vld [vmem:[%s3276_s1 + $0x1b8] sm:$0xff]  }
  0x2e   : > { %2459 = vmatmul.mubr.bf16.gmra.mrb[4].mxu1 %v2055_v36  ;;  %v2865_v36 = vld [vmem:[%s2967_s10 + $0x10] sm:$0xff]  }
  0x2f   : > { %2555 = vmatmul.mubr.bf16.gmra.mrb[4].mxu0 %v2813_v37  ;;  %2475 = vmatpush3.bf16.msra.mxu1 %v2812_v34  ;;  %v2864_v34 = vld [vmem:[%s2967_s10 + $0x14] sm:$0xff]   ;;  %v2866_v37 = vld [vmem:[%s2967_s10 + $0x1c] sm:$0xff]  }
  0x30   : > { %2571 = vmatpush3.bf16.msra.mxu0 %v2814_v35  ;;  %2476 = vmatprep.subr.bf16.mxu1 %v2815_v40  ;;  %v2867_v35 = vld [vmem:[%s3276_s1 + $0x180] sm:$0xff]  }
  0x31   : > { %2572 = vmatprep.subr.bf16.mxu0 %v2816_v41  ;;  %2462 = vmatprep.mubr.bf16.mxu1 %v2056_v43  ;;  %v2872_v43 = vld [vmem:[%s2967_s10 + $0x2c] sm:$0xff]  }
  0x32   : > { %2558 = vmatprep.mubr.bf16.mxu0 %v2818_v42  ;;  %v2871_v42 = vld [vmem:[%s2967_s10 + $0x20] sm:$0xff]  }
  0x33   : > { %2477 = vmatpush3.bf16.msra.mxu1 %v2815_v40  ;;  %v2870_v40 = vld [vmem:[%s2967_s10 + $0x24] sm:$0xff]  }
  0x34   : > { %2573 = vmatpush3.bf16.msra.mxu0 %v2816_v41  ;;  %2478 = vmatprep.subr.bf16.mxu1 %v2820_v46  ;;  %v2873_v41 = vld [vmem:[%s3276_s1 + $0x190] sm:$0xff]  }
  0x35   : > { %2574 = vmatprep.subr.bf16.mxu0 %v2822_v47 }
  0x36   : > { %2463 = vmatmul.mubr.bf16.gmra.mrb[8].mxu1 %v2057_v50  ;;  %v2880_v50 = vld [vmem:[%s3276_s1 + $0x1a8] sm:$0xff]  }
  0x37   : > { %2559 = vmatmul.mubr.bf16.gmra.mrb[8].mxu0 %v2821_v48  ;;  %2479 = vmatpush3.bf16.msra.mxu1 %v2820_v46  ;;  %v2876_v46 = vld [vmem:[%s2967_s10 + $0x34] sm:$0xff]  }
  0x38   : > { %2575 = vmatpush3.bf16.msra.mxu0 %v2822_v47  ;;  %2480 = vmatprep.subr.bf16.mxu1 %v2823_v52  ;;  %v2879_v47 = vld [vmem:[%s3276_s1 + $0x1a0] sm:$0xff]   ;;  %v2877_v48 = vld [vmem:[%s2967_s10 + $0x30] sm:$0xff]  }
  0x39   : > { %2576 = vmatprep.subr.bf16.mxu0 %v2824_v53  ;;  %2466 = vmatprep.mubr.bf16.mxu1 %v2058_v54  ;;  %v2883_v54 = vld [vmem:[%s2967_s10 + $0x40] sm:$0xff]  }
  0x3a   : > { %2562 = vmatprep.mubr.bf16.mxu0 %v2826_v55  ;;  %v2884_v55 = vld [vmem:[%s2967_s10 + $0x4c] sm:$0xff]  }
  0x3b   : > { %2481 = vmatpush3.bf16.msra.mxu1 %v2823_v52  ;;  %v2882_v52 = vld [vmem:[%s2967_s10 + $0x44] sm:$0xff]  }
  0x3c   : > { %2577 = vmatpush3.bf16.msra.mxu0 %v2824_v53  ;;  %2482 = vmatprep.subr.bf16.mxu1 %v2828_v58  ;;  %v2885_v53 = vld [vmem:[%s3276_s1 + $0x1b0] sm:$0xff]  }
  0x3d   : > { %2578 = vmatprep.subr.bf16.mxu0 %v2830_v59 }
  0x3e   : > { %2467 = vmatmul.mubr.bf16.gmra.mrb[12].mxu1 %v2059_v61  ;;  %v2892_v61 = vld [vmem:[%s2967_s10 + $0x48] sm:$0xff]  }
  0x3f   : > { %2563 = vmatmul.mubr.bf16.gmra.mrb[12].mxu0 %v2829_v62  ;;  %2483 = vmatpush3.bf16.msra.mxu1 %v2828_v58  ;;  %v2888_v58 = vld [vmem:[%s2967_s10 + $0x38] sm:$0xff]   ;;  %v2891_v62 = vld [vmem:[%s2967_s10 + $0x28] sm:$0xff]  }
  0x40   : > { %2579 = vmatpush3.bf16.msra.mxu0 %v2830_v59  ;;  %2484 = vmatprep.subr.bf16.mxu1 %v2831_v63  ;;  %v2890_v59 = vld [vmem:[%s2967_s10 + $0x40] sm:$0xff]  }
  0x41   : > { %2580 = vmatprep.subr.bf16.mxu0 %v2832_v1  ;;  %2486 = vmatprep.mubr.bf16.mxu1 %v2068_v0  ;;  %v2893_v0 = vld [vmem:[%s2967_s10 + $0x30] sm:$0xff]  }
  0x42   : > { %2582 = vmatprep.mubr.bf16.mxu0 %v2833_v2 }
  0x43   : > { %2485 = vmatpush3.bf16.msra.mxu1 %v2831_v63  ;;  %v2894_v63 = vld [vmem:[%s2967_s10 + $0x50] sm:$0xff]   ;;  %s2262_s10 = sshll.u32 %s3280_s13, 6 }
  0x44   : > { %2581 = vmatpush3.bf16.msra.mxu0 %v2832_v1  ;;  %2502 = vmatprep.subr.bf16.mxu1 %v2834_v3  ;;  %s3242_s8 = scalar_lea.vmem %s3277_s2, %s2262_s10 }
  0x45   : > { %2598 = vmatprep.subr.bf16.mxu0 %v2836_v4 }
  0x46   : > { %2487 = vmatmul.mubr.bf16.vlgmr.msra.gmra.mrb[0].mxu1 %v2069_v5 }
  0x47   : > { %2583 = vmatmul.mubr.bf16.vlgmr.msra.gmra.mrb[0].mxu0 %v2835_v6  ;;  %2503 = vmatpush3.bf16.msra.mxu1 %v2834_v3 }
  0x48   : > { %2599 = vmatpush3.bf16.msra.mxu0 %v2836_v4  ;;  %2504 = vmatprep.subr.bf16.mxu1 %v2837_v7 }
  0x49   : > { %2600 = vmatprep.subr.bf16.mxu0 %v2838_v8  ;;  %2490 = vmatprep.mubr.bf16.mxu1 %v2070_v9 }
  0x4a   : > { %2586 = vmatprep.mubr.bf16.mxu0 %v2840_v10 }
  0x4b   : > { %2505 = vmatpush3.bf16.msra.mxu1 %v2837_v7 }
  0x4c   : > { %2601 = vmatpush3.bf16.msra.mxu0 %v2838_v8  ;;  %2506 = vmatprep.subr.bf16.mxu1 %v2842_v11 }
  0x4d   : > { %2602 = vmatprep.subr.bf16.mxu0 %v2844_v12 }
  0x4e   : > { %2491 = vmatmul.mubr.bf16.gmra.mrb[4].mxu1 %v2071_v13 }
  0x4f   : > { %2587 = vmatmul.mubr.bf16.gmra.mrb[4].mxu0 %v2843_v14  ;;  %2507 = vmatpush3.bf16.msra.mxu1 %v2842_v11 }
  0x50   : > { %2603 = vmatpush3.bf16.msra.mxu0 %v2844_v12  ;;  %2508 = vmatprep.subr.bf16.mxu1 %v2845_v15 }
  0x51   : > { %2604 = vmatprep.subr.bf16.mxu0 %v2846_v16  ;;  %2494 = vmatprep.mubr.bf16.mxu1 %v2072_v17 }
  0x52   : > { %2590 = vmatprep.mubr.bf16.mxu0 %v2848_v18 }
  0x53   : > { %2509 = vmatpush3.bf16.msra.mxu1 %v2845_v15 }
  0x54   : > { %2605 = vmatpush3.bf16.msra.mxu0 %v2846_v16  ;;  %2510 = vmatprep.subr.bf16.mxu1 %v2850_v19 }
  0x55   : > { %2606 = vmatprep.subr.bf16.mxu0 %v2852_v20 }
  0x56   : > { %2495 = vmatmul.mubr.bf16.gmra.mrb[8].mxu1 %v2073_v21 }
  0x57   : > { %2591 = vmatmul.mubr.bf16.gmra.mrb[8].mxu0 %v2851_v22  ;;  %2511 = vmatpush3.bf16.msra.mxu1 %v2850_v19 }
  0x58   : > { %2607 = vmatpush3.bf16.msra.mxu0 %v2852_v20  ;;  %2512 = vmatprep.subr.bf16.mxu1 %v2853_v23 }
  0x59   : > { %2608 = vmatprep.subr.bf16.mxu0 %v2854_v24  ;;  %2498 = vmatprep.mubr.bf16.mxu1 %v2074_v25 }
  0x5a   : > { %2594 = vmatprep.mubr.bf16.mxu0 %v2856_v26 }
  0x5b   : > { %2513 = vmatpush3.bf16.msra.mxu1 %v2853_v23 }
  0x5c   : > { %2609 = vmatpush3.bf16.msra.mxu0 %v2854_v24  ;;  %2514 = vmatprep.subr.bf16.mxu1 %v2858_v27 }
  0x5d   : > { %2610 = vmatprep.subr.bf16.mxu0 %v2860_v28 }
  0x5e   : > { %2499 = vmatmul.mubr.bf16.gmra.mrb[12].mxu1 %v2075_v29 }
  0x5f   : > { %2595 = vmatmul.mubr.bf16.gmra.mrb[12].mxu0 %v2859_v30  ;;  %2515 = vmatpush3.bf16.msra.mxu1 %v2858_v27 }
  0x60   : > { %2611 = vmatpush3.bf16.msra.mxu0 %v2860_v28  ;;  %2516 = vmatprep.subr.bf16.mxu1 %v2861_v31 }
  0x61   : > { %2612 = vmatprep.subr.bf16.mxu0 %v2862_v32  ;;  %2518 = vmatprep.mubr.bf16.mxu1 %v2863_v33 }
  0x62   : > { %2614 = vmatprep.mubr.bf16.mxu0 %v2864_v34 }
  0x63   : > { %2517 = vmatpush3.bf16.msra.mxu1 %v2861_v31 }
  0x64   : > { %2613 = vmatpush3.bf16.msra.mxu0 %v2862_v32  ;;  %2662 = vmatprep.subr.bf16.mxu1 %v2867_v35 }
  0x65   : > { %2630 = vmatprep.subr.bf16.mxu0 %v2867_v35 }
  0x66   : > { %2519 = vmatmul.mubr.bf16.vlgmr.msra.gmra.mrb[0].mxu1 %v2865_v36 }
  0x67   : > { %2615 = vmatmul.mubr.bf16.vlgmr.msra.gmra.mrb[0].mxu0 %v2866_v37  ;;  %2670 = vmatpush3.bf16.msra.mxu1 %v2867_v35 }
  0x68   : > { %2631 = vmatpush3.bf16.msra.mxu0 %v2867_v35  ;;  %2663 = vmatprep.subr.bf16.mxu1 %v2868_v38 }
  0x69   : > { %2632 = vmatprep.subr.bf16.mxu0 %v2868_v38  ;;  %2522 = vmatprep.mubr.bf16.mxu1 %v2869_v39 }
  0x6a   : > { %2618 = vmatprep.mubr.bf16.mxu0 %v2870_v40 }
  0x6b   : > { %2671 = vmatpush3.bf16.msra.mxu1 %v2868_v38 }
  0x6c   : > { %2633 = vmatpush3.bf16.msra.mxu0 %v2868_v38  ;;  %2664 = vmatprep.subr.bf16.mxu1 %v2873_v41 }
  0x6d   : > { %2634 = vmatprep.subr.bf16.mxu0 %v2873_v41 }
  0x6e   : > { %2523 = vmatmul.mubr.bf16.gmra.mrb[4].mxu1 %v2871_v42 }
  0x6f   : > { %2619 = vmatmul.mubr.bf16.gmra.mrb[4].mxu0 %v2872_v43  ;;  %2672 = vmatpush3.bf16.msra.mxu1 %v2873_v41 }
  0x70   : > { %2635 = vmatpush3.bf16.msra.mxu0 %v2873_v41  ;;  %2665 = vmatprep.subr.bf16.mxu1 %v2874_v44 }
  0x71   : > { %2636 = vmatprep.subr.bf16.mxu0 %v2874_v44  ;;  %2526 = vmatprep.mubr.bf16.mxu1 %v2875_v45 }
  0x72   : > { %2622 = vmatprep.mubr.bf16.mxu0 %v2876_v46 }
  0x73   : > { %2673 = vmatpush3.bf16.msra.mxu1 %v2874_v44 }
  0x74   : > { %2637 = vmatpush3.bf16.msra.mxu0 %v2874_v44  ;;  %2666 = vmatprep.subr.bf16.mxu1 %v2879_v47 }
  0x75   : > { %2638 = vmatprep.subr.bf16.mxu0 %v2879_v47 }
  0x76   : > { %2527 = vmatmul.mubr.bf16.gmra.mrb[8].mxu1 %v2877_v48 }
  0x77   : > { %2623 = vmatmul.mubr.bf16.gmra.mrb[8].mxu0 %v2878_v49  ;;  %2674 = vmatpush3.bf16.msra.mxu1 %v2879_v47 }
  0x78   : > { %2639 = vmatpush3.bf16.msra.mxu0 %v2879_v47  ;;  %2667 = vmatprep.subr.bf16.mxu1 %v2880_v50 }
  0x79   : > { %2640 = vmatprep.subr.bf16.mxu0 %v2880_v50  ;;  %2530 = vmatprep.mubr.bf16.mxu1 %v2881_v51 }
  0x7a   : > { %2626 = vmatprep.mubr.bf16.mxu0 %v2882_v52 }
  0x7b   : > { %2675 = vmatpush3.bf16.msra.mxu1 %v2880_v50 }
  0x7c   : > { %2641 = vmatpush3.bf16.msra.mxu0 %v2880_v50  ;;  %2668 = vmatprep.subr.bf16.mxu1 %v2885_v53 }
  0x7d   : > { %2642 = vmatprep.subr.bf16.mxu0 %v2885_v53 }
  0x7e   : > { %2531 = vmatmul.mubr.bf16.gmra.mrb[12].mxu1 %v2883_v54 }
  0x7f   : > { %2627 = vmatmul.mubr.bf16.gmra.mrb[12].mxu0 %v2884_v55  ;;  %2676 = vmatpush3.bf16.msra.mxu1 %v2885_v53 }
  0x80   : > { %2643 = vmatpush3.bf16.msra.mxu0 %v2885_v53  ;;  %2669 = vmatprep.subr.bf16.mxu1 %v2886_v56 }
  0x81   : > { %2644 = vmatprep.subr.bf16.mxu0 %v2886_v56  ;;  %2646 = vmatprep.mubr.bf16.mxu0 %v2887_v57 }
  0x82   : > { %2654 = vmatprep.mubr.bf16.mxu1 %v2888_v58 }
  0x83   : > { %2677 = vmatpush3.bf16.msra.mxu1 %v2886_v56 }
  0x84   : > { %2645 = vmatpush3.bf16.msra.mxu0 %v2886_v56 }
  0x86   : > { %2655 = vmatmul.mubr.bf16.vlgmr.msra.gmra.mrb[16].mxu1 %v2890_v59 }
  0x87   : > { %2647 = vmatmul.mubr.bf16.vlgmr.msra.gmra.mrb[0].mxu0 %v2889_v60  ;;  %2658 = vmatprep.mubr.bf16.mxu1 %v2892_v61 }
  0x88   : > { %2650 = vmatprep.mubr.bf16.mxu0 %v2891_v62 }
  0x8e   : > { %2659 = vmatmul.mubr.bf16.gmra.mrb[20].mxu1 %v2894_v63 }
  0x8f   : > { %2651 = vmatmul.mubr.bf16.gmra.mrb[4].mxu0 %v2893_v0 }
 0x139   : > { %v2520_v1 = vpop.f32.mrb[0].mxu1 }
 0x13a   : > { %v752_v2 = vpop.f32.mrb[1].mxu1 }
 0x13b   : > { %v2521_v3 = vpop.f32.mrb[2].mxu1 }
 0x13c   : > { %v755_v4 = vpop.f32.mrb[3].mxu1 }
 0x141   : > { %v3224_v5 = vpop.f32.mrb[4].mxu1 }
 0x142   : > { %v3226_v6 = vpop.f32.mrb[5].mxu1 }
 0x143   : > { %v3228_v7 = vpop.f32.mrb[6].mxu1 }
 0x144   : > { %v3230_v8 = vpop.f32.mrb[7].mxu1 }
 0x149   : > { %v2528_v9 = vpop.f32.mrb[8].mxu1 }
 0x14a   : > { %v2624_v10 = vpop.f32.mrb[8].mxu0  ;;  %v784_v11 = vpop.f32.mrb[9].mxu1 }
 0x14b   : > { %v2686_v12 = vadd.f32 %v2624_v10, %v2528_v9  ;;  %v1510_v13 = vpop.f32.mrb[9].mxu0  ;;  %v2529_v14 = vpop.f32.mrb[10].mxu1 }
 0x14c   : > { %v2688_v15 = vadd.f32 %v1510_v13, %v784_v11  ;;  %v2625_v16 = vpop.f32.mrb[10].mxu0  ;;  %v787_v17 = vpop.f32.mrb[11].mxu1 }
 0x14d   : > { %v2690_v18 = vadd.f32 %v2625_v16, %v2529_v14  ;;  %v1513_v19 = vpop.f32.mrb[11].mxu0 }
 0x14e   : > { %v2692_v20 = vadd.f32 %v1513_v19, %v787_v17 }
 0x151   : > { %v2532_v21 = vpop.f32.mrb[12].mxu1 }
 0x152   : > { %v2628_v22 = vpop.f32.mrb[12].mxu0  ;;  %v800_v23 = vpop.f32.mrb[13].mxu1 }
 0x153   : > { %v2694_v24 = vadd.f32 %v2628_v22, %v2532_v21  ;;  %v1526_v25 = vpop.f32.mrb[13].mxu0  ;;  %v2533_v26 = vpop.f32.mrb[14].mxu1 }
 0x154   : > { %v2696_v27 = vadd.f32 %v1526_v25, %v800_v23  ;;  %v2629_v28 = vpop.f32.mrb[14].mxu0  ;;  %v803_v29 = vpop.f32.mrb[15].mxu1 }
 0x155   : > { %v2698_v30 = vadd.f32 %v2629_v28, %v2533_v26  ;;  %v1529_v31 = vpop.f32.mrb[15].mxu0 }
 0x156   : > { %v2700_v32 = vadd.f32 %v1529_v31, %v803_v29 }
 0x159   : > { %v2656_v33 = vpop.f32.mrb[16].mxu1 }
 0x15a   : > { %v2648_v34 = vpop.f32.mrb[0].mxu0  ;;  %v3232_v35 = vadd.f32 %v2686_v12, %v2656_v33  ;;  %v1752_v36 = vpop.f32.mrb[17].mxu1 }
 0x15b   : > { %v2678_v37 = vadd.f32 %v2648_v34, %v2520_v1  ;;  %v1720_v38 = vpop.f32.mrb[1].mxu0  ;;  %v3235_v39 = vadd.f32 %v2688_v15, %v1752_v36  ;;  %v2657_v40 = vpop.f32.mrb[18].mxu1 }
 0x15c   : > { %v2679_v41 = vadd.f32 %v1720_v38, %v752_v2  ;;  %v2649_v42 = vpop.f32.mrb[2].mxu0  ;;  %v3237_v43 = vadd.f32 %v2690_v18, %v2657_v40  ;;  %v1755_v44 = vpop.f32.mrb[19].mxu1 }
 0x15d   : > { %v2680_v45 = vadd.f32 %v2649_v42, %v2521_v3  ;;  %v1723_v46 = vpop.f32.mrb[3].mxu0  ;;  %v2693_v47 = vadd.f32 %v2692_v20, %v1755_v44  ;;  %v1903_v57 = vmul.f32 %v2678_v37, %v2678_v37 }
 0x15e   : > { %v2307_v48 = vpack.c.bf16 %v3237_v43, %v3232_v35  ;;  %v2681_v49 = vadd.f32 %v1723_v46, %v755_v4  ;;  %v1901_v52 = vmul.f32 %v2679_v41, %v2679_v41 }
 0x15f   : > { %v2287_v50 = vpack.c.bf16 %v2680_v45, %v2678_v37  ;;  %v2302_v51 = vpack.c.bf16 %v2693_v47, %v3235_v39  ;;  %v1904_v3 = vmul.f32 %v2680_v45, %v2680_v45  ;;  %v1910_v34 = vmul.f32 %v2693_v47, %v2693_v47 }
 0x160   : > { %2323 = vst [vmem:[%s3242_s8 + $0x28] sm:$0xff] %v2307_v48   ;;  %v2282_v53 = vpack.c.bf16 %v2681_v49, %v2679_v41  ;;  %v1879_v54 = vadd.f32 %v2681_v49, %v2679_v41  ;;  %v1902_v55 = vmul.f32 %v2681_v49, %v2681_v49  ;;  %v1912_v41 = vmul.f32 %v3237_v43, %v3237_v43 }
 0x161   : > { %2319 = vst [vmem:[%s3242_s8 + $0x8] sm:$0xff] %v2287_v50   ;;  %2322 = vst [vmem:[%s3242_s8 + $0x20] sm:$0xff] %v2302_v51   ;;  %v2660_v56 = vpop.f32.mrb[20].mxu1 }
 0x162   : > { %2283 = vst [vmem:[%s3242_s8] sm:$0xff] %v2282_v53   ;;  %v1880_v58 = vadd.f32 %v2678_v37, %v1879_v54  ;;  %v1917_v59 = vadd.f32 %v1902_v55, %v1901_v52  ;;  %v2652_v60 = vpop.f32.mrb[4].mxu0  ;;  %v2695_v61 = vadd.f32 %v2694_v24, %v2660_v56  ;;  %v1768_v62 = vpop.f32.mrb[21].mxu1 }
 0x163   : > { %v2682_v63 = vadd.f32 %v2652_v60, %v3224_v5  ;;  %v1736_v0 = vpop.f32.mrb[5].mxu0  ;;  %v2697_v1 = vadd.f32 %v2696_v27, %v1768_v62  ;;  %v2661_v2 = vpop.f32.mrb[22].mxu1 }
 0x164   : > { %v1918_v4 = vadd.f32 %v1917_v59, %v1903_v57  ;;  %v2683_v9 = vadd.f32 %v1736_v0, %v3226_v6  ;;  %v1881_v10 = vadd.f32 %v2680_v45, %v1880_v58  ;;  %v2653_v11 = vpop.f32.mrb[6].mxu0  ;;  %v1771_v12 = vpop.f32.mrb[23].mxu1  ;;  %v2699_v14 = vadd.f32 %v2698_v30, %v2661_v2 }
 0x165   : > { %v2684_v13 = vadd.f32 %v2653_v11, %v3228_v7  ;;  %v1739_v15 = vpop.f32.mrb[7].mxu0  ;;  %v2701_v24 = vadd.f32 %v2700_v32, %v1771_v12  ;;  %v1907_v25 = vmul.f32 %v2682_v63, %v2682_v63  ;;  %v1911_v32 = vmul.f32 %v3232_v35, %v3232_v35 }
 0x166   : > { %v1882_v16 = vadd.f32 %v2683_v9, %v1881_v10  ;;  %v1905_v17 = vmul.f32 %v2683_v9, %v2683_v9  ;;  %v1919_v5 = vadd.f32 %v1918_v4, %v1904_v3  ;;  %v2685_v18 = vadd.f32 %v1739_v15, %v3230_v8 }
 0x167   : > { %v2297_v19 = vpack.c.bf16 %v2684_v13, %v2682_v63  ;;  %v2317_v20 = vpack.c.bf16 %v2699_v14, %v2695_v61  ;;  %v2312_v27 = vpack.c.bf16 %v2701_v24, %v2697_v1  ;;  %v1908_v28 = vmul.f32 %v2684_v13, %v2684_v13 }
 0x168   : > { %v1920_v21 = vadd.f32 %v1919_v5, %v1905_v17  ;;  %v2292_v6 = vpack.c.bf16 %v2685_v18, %v2683_v9  ;;  %v1883_v22 = vadd.f32 %v2685_v18, %v1882_v16  ;;  %v1906_v23 = vmul.f32 %v2685_v18, %v2685_v18 }
 0x169   : > { %2321 = vst [vmem:[%s3242_s8 + $0x18] sm:$0xff] %v2297_v19   ;;  %2325 = vst [vmem:[%s3242_s8 + $0x38] sm:$0xff] %v2317_v20   ;;  %v1909_v8 = vmul.f32 %v3235_v39, %v3235_v39  ;;  %v1913_v45 = vmul.f32 %v2697_v1, %v2697_v1  ;;  %v1914_v49 = vmul.f32 %v2701_v24, %v2701_v24 }
 0x16a   : > { %2320 = vst [vmem:[%s3242_s8 + $0x10] sm:$0xff] %v2292_v6   ;;  %v1884_v7 = vadd.f32 %v2682_v63, %v1883_v22  ;;  %v1921_v26 = vadd.f32 %v1920_v21, %v1906_v23  ;;  %2324 = vst [vmem:[%s3242_s8 + $0x30] sm:$0xff] %v2312_v27   ;;  %v1916_v53 = vmul.f32 %v2699_v14, %v2699_v14 }
 0x16c   : > { %v1885_v29 = vadd.f32 %v2684_v13, %v1884_v7  ;;  %v1922_v30 = vadd.f32 %v1921_v26, %v1907_v25 }
 0x16e   : > { %v1886_v31 = vadd.f32 %v3235_v39, %v1885_v29  ;;  %v1923_v33 = vadd.f32 %v1922_v30, %v1908_v28 }
 0x170   : > { %v1924_v36 = vadd.f32 %v1923_v33, %v1909_v8  ;;  %v1887_v37 = vadd.f32 %v2693_v47, %v1886_v31  ;;  %v1915_v47 = vmul.f32 %v2695_v61, %v2695_v61 }
 0x172   : > { %v1888_v38 = vadd.f32 %v3232_v35, %v1887_v37  ;;  %v1925_v40 = vadd.f32 %v1924_v36, %v1910_v34 }
 0x174   : > { %v1889_v42 = vadd.f32 %v3237_v43, %v1888_v38  ;;  %v1926_v44 = vadd.f32 %v1925_v40, %v1911_v32 }
 0x176   : > { %v1890_v46 = vadd.f32 %v2697_v1, %v1889_v42  ;;  %v1927_v48 = vadd.f32 %v1926_v44, %v1912_v41 }
 0x178   : > { %v1891_v39 = vadd.f32 %v2701_v24, %v1890_v46  ;;  %v1928_v50 = vadd.f32 %v1927_v48, %v1913_v45 }
 0x17a   : > { %v1892_v51 = vadd.f32 %v2695_v61, %v1891_v39  ;;  %v1929_v52 = vadd.f32 %v1928_v50, %v1914_v49 }
 0x17c   : > { %v1893_v54 = vadd.f32 %v2699_v14, %v1892_v51  ;;  %v1930_v35 = vadd.f32 %v1929_v52, %v1915_v47 }
 0x17e   : > { %v1894_v55 = vrot.slane %v1893_v54, 4  ;;  %v1931_v56 = vadd.f32 %v1930_v35, %v1916_v53 }
 0x180   : > { %v1895_v57 = vadd.f32 %v1894_v55, %v1893_v54  ;;  %v1932_v58 = vrot.slane %v1931_v56, 4 }
 0x182   : > { %v1896_v59 = vrot.slane %v1895_v57, 2  ;;  %v1933_v43 = vadd.f32 %v1932_v58, %v1931_v56 }
 0x184   : > { %v1897_v60 = vadd.f32 %v1896_v59, %v1895_v57  ;;  %v1934_v62 = vrot.slane %v1933_v43, 2 }
 0x186   : > { %v1898_v63 = vrot.slane %v1897_v60, 1  ;;  %v1935_v0 = vadd.f32 %v1934_v62, %v1933_v43 }
 0x188   : > { %v1899_v61 = vadd.f32 %v1898_v63, %v1897_v60  ;;  %v1936_v1 = vrot.slane %v1935_v0, 1 }
 0x18a   : > { %v1937_v2 = vadd.f32 %v1936_v1, %v1935_v0  ;;  %1939 = vst [vmem:[%s181_s15] sm:$0x1] %v1899_v61 }
 0x18c   : > { %1940 = vst [vmem:[%s181_s15 + $0x1] sm:$0x1] %v1937_v2 }
 0x18d PF: > { %s14_s12 = sadd.s32 1, %s2901_s12  }
 0x18e   : > { %p11_p4 = scmp.ge.s32.totalorder %s14_s12, 4  }
 0x190   :  { %13 = sbr.rel (!%p11_p4) target bundleno = 1 (0x1), region = 76 }

// kernel: patchgan_forward.14
= control target key start
LH: loop header
LB: loop body
LE: loop exit
PB: predicated region body
PF: predicated region fallthrough
CT: control target
= control target key end

     0   :  { %s409_s9 = smov 0   ;;  %s439_s0 = inlined_call_operand.vmem [shape: bf16[2,64,128], index: 0, kind: input, shape index: {}]   ;;  %s440_s1 = inlined_call_operand.vmem [shape: f32[2,128], index: 1, kind: input, shape index: {}]   ;;  %s441_s2 = inlined_call_operand.vmem [shape: bf16[2,64,128], index: 2, kind: output, shape index: {}]  }
   0x1 LB: > { %s305_s10 = sadd.s32 4294967295, %s392_s9   ;;  %p309_p0 = scmp.ge.s32.totalorder %s392_s9, 1  ;;  %s392_s9 = sphi %s409_s9, %s12_s9  }
   0x2   : > { %p112_p1 = scmp.lt.s32.totalorder %s392_s9, 3 }
   0x4   : > { %p113_p2 = pnand %p309_p0, %p112_p1 }
   0x5   : > { %p134_p3 = scmp.lt.s32.totalorder (!%p113_p2), %s305_s10, 1  ;;  %v314_v0 = vld [vmem:[%s440_s1] ss:$0 sm:$0xff] (!%p113_p2)  ;;  %v315_v13 = vld [vmem:[%s440_s1 + $0x1] ss:$0 sm:$0xff] (!%p113_p2) }
   0x6   : > { %116 = sbr.rel (%p113_p2) target bundleno = 34 (0x22), region = 28 }
   0xd   : > { %s443_s10 = smov (!%p134_p3, %s305_s10), 1 }
   0xe   : > { %s326_s11 = sshll.u32 %s443_s10, 5 }
   0xf   : > { %s138_s14 = scalar_lea.vmem %s439_s0, %s326_s11  ;;  %s143_s21 = scalar_lea.vmem %s441_s2, %s326_s11 }
  0x10   : > { %v337_v1 = vld [vmem:[%s138_s14] sm:$0xff]   ;;  %v372_v2 = vld [vmem:[%s138_s14 + $0x8] sm:$0xff]   ;;  %v373_v3 = vld [vmem:[%s138_s14 + $0x10] sm:$0xff]  }
  0x11   : > { %v338_v4 = vunpack.c.l.bf16 %v337_v1  ;;  %v339_v5 = vunpack.c.h.bf16 %v337_v1  ;;  %v342_v6 = vunpack.c.l.bf16 %v372_v2  ;;  %v343_v7 = vunpack.c.h.bf16 %v372_v2  ;;  %v374_v8 = vld [vmem:[%s138_s14 + $0x18] sm:$0xff]  }
  0x12   : > { %v346_v9 = vunpack.c.l.bf16 %v373_v3  ;;  %v347_v10 = vunpack.c.h.bf16 %v373_v3  ;;  %v350_v11 = vunpack.c.l.bf16 %v374_v8  ;;  %v351_v12 = vunpack.c.h.bf16 %v374_v8 }
  0x13   : > { %v165_v14 = vmul.f32 %v338_v4, %v314_v0  ;;  %v166_v15 = vmul.f32 %v339_v5, %v314_v0  ;;  %v167_v16 = vmul.f32 %v342_v6, %v314_v0  ;;  %v168_v17 = vmul.f32 %v343_v7, %v314_v0 }
  0x14   : > { %v169_v18 = vmul.f32 %v346_v9, %v314_v0  ;;  %v170_v19 = vmul.f32 %v347_v10, %v314_v0  ;;  %v171_v20 = vmul.f32 %v350_v11, %v314_v0  ;;  %v172_v21 = vmul.f32 %v351_v12, %v314_v0 }
  0x15   : > { %v178_v22 = vadd.f32 %v315_v13, %v165_v14  ;;  %v179_v23 = vadd.f32 %v315_v13, %v166_v15  ;;  %v180_v24 = vadd.f32 %v315_v13, %v167_v16  ;;  %v181_v25 = vadd.f32 %v315_v13, %v168_v17 }
  0x16   : > { %v182_v26 = vadd.f32 %v315_v13, %v169_v18  ;;  %v183_v27 = vadd.f32 %v315_v13, %v170_v19  ;;  %v184_v28 = vadd.f32 %v315_v13, %v171_v20  ;;  %v185_v29 = vadd.f32 %v315_v13, %v172_v21 }
  0x17   : > { %vm186_vm0 = vcmp.gt.f32.partialorder %v178_v22, 0.0  ;;  %vm187_vm1 = vcmp.gt.f32.partialorder %v179_v23, 0.0  ;;  %v194_v30 = vmul.f32 0.2, %v178_v22  ;;  %v195_v31 = vmul.f32 0.2, %v179_v23 }
  0x18   : > { %vm188_vm2 = vcmp.gt.f32.partialorder %v180_v24, 0.0  ;;  %vm189_vm3 = vcmp.gt.f32.partialorder %v181_v25, 0.0  ;;  %v196_v32 = vmul.f32 0.2, %v180_v24  ;;  %v197_v33 = vmul.f32 0.2, %v181_v25 }
  0x19   : > { %v202_v34 = vsel %vm186_vm0, %v178_v22, %v194_v30  ;;  %v203_v35 = vsel %vm187_vm1, %v179_v23, %v195_v31  ;;  %vm190_vm4 = vcmp.gt.f32.partialorder %v182_v26, 0.0  ;;  %vm191_vm5 = vcmp.gt.f32.partialorder %v183_v27, 0.0 }
  0x1a   : > { %v355_v36 = vpack.c.bf16 %v203_v35, %v202_v34  ;;  %v204_v37 = vsel %vm188_vm2, %v180_v24, %v196_v32  ;;  %v205_v38 = vsel %vm189_vm3, %v181_v25, %v197_v33  ;;  %v198_v39 = vmul.f32 0.2, %v182_v26 }
  0x1b   : > { %v360_v40 = vpack.c.bf16 %v205_v38, %v204_v37  ;;  %v199_v41 = vmul.f32 0.2, %v183_v27  ;;  %vm192_vm6 = vcmp.gt.f32.partialorder %v184_v28, 0.0  ;;  %vm193_vm7 = vcmp.gt.f32.partialorder %v185_v29, 0.0 }
  0x1c   : > { %356 = vst [vmem:[%s143_s21] sm:$0xff] %v355_v36   ;;  %v206_v42 = vsel %vm190_vm4, %v182_v26, %v198_v39  ;;  %v200_v43 = vmul.f32 0.2, %v184_v28  ;;  %v201_v44 = vmul.f32 0.2, %v185_v29 }
  0x1d   : > { %375 = vst [vmem:[%s143_s21 + $0x8] sm:$0xff] %v360_v40   ;;  %v207_v45 = vsel %vm191_vm5, %v183_v27, %v199_v41 }
  0x1e   : > { %v365_v46 = vpack.c.bf16 %v207_v45, %v206_v42  ;;  %v208_v47 = vsel %vm192_vm6, %v184_v28, %v200_v43  ;;  %v209_v48 = vsel %vm193_vm7, %v185_v29, %v201_v44 }
  0x1f   : > { %v370_v49 = vpack.c.bf16 %v209_v48, %v208_v47 }
  0x20   : > { %376 = vst [vmem:[%s143_s21 + $0x10] sm:$0xff] %v365_v46  }
  0x21   : > { %377 = vst [vmem:[%s143_s21 + $0x18] sm:$0xff] %v370_v49  }
  0x22 PF: > { %s12_s9 = sadd.s32 1, %s392_s9  }
  0x23   : > { %p9_p4 = scmp.ge.s32.totalorder %s12_s9, 4  }
  0x25   :  { %11 = sbr.rel (!%p9_p4) target bundleno = 1 (0x1), region = 58 }

// kernel: patchgan_forward.13
= control target key start
LH: loop header
LB: loop body
LE: loop exit
PB: predicated region body
PF: predicated region fallthrough
CT: control target
= control target key end

     0   :  { %s2923_s12 = smov 0   ;;  %s3492_s0 = inlined_call_operand.vmem [shape: bf16[2,88,256], index: 0, kind: input, shape index: {}]   ;;  %s3493_s1 = inlined_call_operand.vmem [shape: bf16[7,256,128], index: 1, kind: input, shape index: {}]   ;;  %s3494_s2 = inlined_call_operand.vmem [shape: bf16[2,64,128], index: 2, kind: output, shape index: {0}]   ;;  %s3495_s3 = inlined_call_operand.vmem [shape: f32[2,2,128], index: 3, kind: output, shape index: {1}]  }
   0x1 LB: > { %s2035_s13 = sadd.s32 4294967295, %s2901_s12   ;;  %p2039_p0 = scmp.ge.s32.totalorder %s2901_s12, 1  ;;  %s2901_s12 = sphi %s2923_s12, %s14_s12  }
   0x2   : > { %p140_p1 = scmp.lt.s32.totalorder %s2901_s12, 3 }
   0x4   : > { %p141_p2 = pnand %p2039_p0, %p140_p1 }
   0x5   : > { %v2751_v0 = vld [vmem:[%s3493_s1 + $0xc0] sm:$0xff] (!%p141_p2)   ;;  %v2755_v4 = vld [vmem:[%s3493_s1 + $0xc8] sm:$0xff] (!%p141_p2)   ;;  %v2759_v8 = vld [vmem:[%s3493_s1 + $0xd0] sm:$0xff] (!%p141_p2)   ;;  %p168_p3 = scmp.lt.s32.totalorder (!%p141_p2), %s2035_s13, 1  ;;  %vm295_vm0 = vcmask (!%p141_p2), 1045504  }
   0x6   : > { %144 = sbr.rel (%p141_p2) target bundleno = 387 (0x183), region = 28  ;;  %v2752_v1 = vld [vmem:[%s3493_s1 + $0x40] sm:$0xff] (!%p141_p2)   ;;  %2446 = vmatprep.subr.bf16.mxu0 (!%p141_p2), %v2751_v0  ;;  %v2756_v5 = vld [vmem:[%s3493_s1 + $0x48] sm:$0xff] (!%p141_p2)   ;;  %v2760_v9 = vld [vmem:[%s3493_s1 + $0x50] sm:$0xff] (!%p141_p2)  }
   0x7   : > { %v2753_v2 = vld [vmem:[%s3493_s1 + $0x80] sm:$0xff] (!%p141_p2)   ;;  %2486 = vmatprep.subr.bf16.mxu1 (!%p141_p2), %v2752_v1  ;;  %v2757_v6 = vld [vmem:[%s3493_s1 + $0x88] sm:$0xff] (!%p141_p2)   ;;  %v2761_v10 = vld [vmem:[%s3493_s1 + $0x90] sm:$0xff] (!%p141_p2)  }
   0x8   : > { %v2754_v3 = vld [vmem:[%s3493_s1] sm:$0xff] (!%p141_p2)   ;;  %2447 = vmatpush3.bf16.msra.mxu0 (!%p141_p2), %v2753_v2  ;;  %v2758_v7 = vld [vmem:[%s3493_s1 + $0x8] sm:$0xff] (!%p141_p2)   ;;  %v2762_v11 = vld [vmem:[%s3493_s1 + $0x10] sm:$0xff] (!%p141_p2)  }
   0x9   : > { %2487 = vmatpush3.bf16.msra.mxu1 (!%p141_p2), %v2754_v3  ;;  %2448 = vmatprep.subr.bf16.mxu0 (!%p141_p2), %v2755_v4  ;;  %v2763_v12 = vld [vmem:[%s3493_s1 + $0xd8] sm:$0xff] (!%p141_p2)   ;;  %v2767_v16 = vld [vmem:[%s3493_s1 + $0xe0] sm:$0xff] (!%p141_p2)   ;;  %v2771_v20 = vld [vmem:[%s3493_s1 + $0xe8] sm:$0xff] (!%p141_p2)  }
   0xa   : > { %2488 = vmatprep.subr.bf16.mxu1 (!%p141_p2), %v2756_v5  ;;  %v2764_v13 = vld [vmem:[%s3493_s1 + $0x58] sm:$0xff] (!%p141_p2)   ;;  %v2768_v17 = vld [vmem:[%s3493_s1 + $0x60] sm:$0xff] (!%p141_p2)   ;;  %v2772_v21 = vld [vmem:[%s3493_s1 + $0x68] sm:$0xff] (!%p141_p2)  }
   0xb   : > { %v2765_v14 = vld [vmem:[%s3493_s1 + $0x98] sm:$0xff] (!%p141_p2)   ;;  %v2769_v18 = vld [vmem:[%s3493_s1 + $0xa0] sm:$0xff] (!%p141_p2)   ;;  %v2773_v22 = vld [vmem:[%s3493_s1 + $0xa8] sm:$0xff] (!%p141_p2)  }
   0xc   : > { %2449 = vmatpush3.bf16.msra.mxu0 (!%p141_p2), %v2757_v6  ;;  %v2766_v15 = vld [vmem:[%s3493_s1 + $0x18] sm:$0xff] (!%p141_p2)   ;;  %v2770_v19 = vld [vmem:[%s3493_s1 + $0x20] sm:$0xff] (!%p141_p2)   ;;  %v2774_v23 = vld [vmem:[%s3493_s1 + $0x28] sm:$0xff] (!%p141_p2)  }
   0xd   : > { %2489 = vmatpush3.bf16.msra.mxu1 %v2758_v7  ;;  %2450 = vmatprep.subr.bf16.mxu0 %v2759_v8  ;;  %s3497_s13 = smov (!%p168_p3, %s2035_s13), 1  ;;  %v2775_v24 = vld [vmem:[%s3493_s1 + $0xf0] sm:$0xff]   ;;  %v2779_v28 = vld [vmem:[%s3493_s1 + $0xf8] sm:$0xff]   ;;  %v2789_v43 = vld [vmem:[%s3493_s1 + $0x140] sm:$0xff]  }
   0xe   : > { %2490 = vmatprep.subr.bf16.mxu1 %v2760_v9  ;;  %v2776_v25 = vld [vmem:[%s3493_s1 + $0x70] sm:$0xff]   ;;  %s2742_s16 = smul.u32 88, %s3497_s13  ;;  %v2780_v29 = vld [vmem:[%s3493_s1 + $0x78] sm:$0xff]   ;;  %v2790_v46 = vld [vmem:[%s3493_s1 + $0x1c0] sm:$0xff]   ;;  %s2043_s26 = sshll.u32 %s3497_s13, 1 }
   0xf   : > { %v2777_v26 = vld [vmem:[%s3493_s1 + $0xb0] sm:$0xff]   ;;  %v2781_v30 = vld [vmem:[%s3493_s1 + $0xb8] sm:$0xff]   ;;  %v2791_v47 = vld [vmem:[%s3493_s1 + $0x100] sm:$0xff]   ;;  %s181_s30 = scalar_lea.vmem %s3495_s3, %s2043_s26 }
  0x10   : > { %2451 = vmatpush3.bf16.msra.mxu0 %v2761_v10  ;;  %v2778_v27 = vld [vmem:[%s3493_s1 + $0x30] sm:$0xff]   ;;  %s3031_s27 = scalar_lea.vmem %s3492_s0, %s2742_s16  ;;  %v2782_v31 = vld [vmem:[%s3493_s1 + $0x38] sm:$0xff]   ;;  %v2792_v50 = vld [vmem:[%s3493_s1 + $0x180] sm:$0xff]  }
  0x11   : > { %2491 = vmatpush3.bf16.msra.mxu1 %v2762_v11  ;;  %2452 = vmatprep.subr.bf16.mxu0 %v2763_v12  ;;  %v3040_v32 = vld [vmem:[%s3031_s27 + $0x8] sm:$0xff]  ;;  %v3043_v33 = vld [vmem:[%s3031_s27 + $0x10] sm:$0xff]  ;;  %v3046_v34 = vld [vmem:[%s3031_s27 + $0x18] sm:$0xff] }
  0x12   : > { %2492 = vmatprep.subr.bf16.mxu1 %v2764_v13  ;;  %v223_v35 = vld [vmem:[%s3031_s27] sm:$0xcc]  ;;  %v3051_v36 = vcombine.high %v3043_v33, %v3046_v34  ;;  %v3056_v38 = vcombine.low %v3043_v33, %v3046_v34  ;;  %v2793_v53 = vld [vmem:[%s3493_s1 + $0x148] sm:$0xff]   ;;  %v2799_v61 = vld [vmem:[%s3493_s1 + $0x150] sm:$0xff]  }
  0x13   : > { %v183_v37 = vld [vmem:[%s3031_s27] sm:$0xff]  ;;  %v2077_v39 = vcombine.high %v223_v35, %v3040_v32  ;;  %v2076_v42 = vcombine.low %v223_v35, %v3040_v32  ;;  %v2794_v54 = vld [vmem:[%s3493_s1 + $0x1c8] sm:$0xff]   ;;  %v2800_v62 = vld [vmem:[%s3493_s1 + $0x1d0] sm:$0xff]  }
  0x14   : > { %2453 = vmatpush3.bf16.msra.mxu0 %v2765_v14  ;;  %v2102_v40 = vcombine.low %v183_v37, %v3040_v32  ;;  %v2103_v41 = vcombine.high %v183_v37, %v3040_v32  ;;  %v300_v44 = vrot.slane %v3051_v36, 2  ;;  %v297_v45 = vrot.slane %v3056_v38, 2  ;;  %v2795_v55 = vld [vmem:[%s3493_s1 + $0x108] sm:$0xff]   ;;  %v3092_v57 = vld [vmem:[%s3031_s27 + $0x20] sm:$0xff]  ;;  %v2801_v1 = vld [vmem:[%s3493_s1 + $0x110] sm:$0xff]  }
  0x15   : > { %2493 = vmatpush3.bf16.msra.mxu1 %v2766_v15  ;;  %2454 = vmatprep.subr.bf16.mxu0 %v2767_v16  ;;  %v299_v48 = vrot.slane %v2077_v39, 2  ;;  %v296_v49 = vrot.slane %v2076_v42, 2  ;;  %v2796_v56 = vld [vmem:[%s3493_s1 + $0x188] sm:$0xff]   ;;  %v2802_v2 = vld [vmem:[%s3493_s1 + $0x190] sm:$0xff]   ;;  %v2803_v5 = vld [vmem:[%s3493_s1 + $0x158] sm:$0xff]   ;;  %v3215_v39 = vcombine.high %v3046_v34, %v3092_v57 }
  0x16   : > { %2494 = vmatprep.subr.bf16.mxu1 %v2768_v17  ;;  %624 = vmatprep.mubr.bf16.mxu1 %v2103_v41  ;;  %v3095_v58 = vld [vmem:[%s3031_s27 + $0x28] sm:$0xff]  ;;  %v2804_v6 = vld [vmem:[%s3493_s1 + $0x1d8] sm:$0xff]   ;;  %v3142_v9 = vld [vmem:[%s3031_s27 + $0x30] sm:$0xff] }
  0x17   : > { %v301_v51 = vsel %vm295_vm0, %v299_v48, %v300_v44  ;;  %v298_v52 = vsel %vm295_vm0, %v296_v49, %v297_v45  ;;  %v3099_v59 = vcombine.high %v3092_v57, %v3095_v58  ;;  %v3103_v60 = vcombine.low %v3092_v57, %v3095_v58  ;;  %v2805_v7 = vld [vmem:[%s3493_s1 + $0x118] sm:$0xff]   ;;  %v2809_v13 = vld [vmem:[%s3493_s1 + $0x160] sm:$0xff]   ;;  %v2821_v35 = vld [vmem:[%s3493_s1 + $0x130] sm:$0xff]  }
  0x18   : > { %2455 = vmatpush3.bf16.msra.mxu0 %v2769_v18  ;;  %450 = vmatprep.mubr.bf16.mxu0 %v301_v51  ;;  %v2806_v8 = vld [vmem:[%s3493_s1 + $0x198] sm:$0xff]   ;;  %v2810_v14 = vld [vmem:[%s3493_s1 + $0x1e0] sm:$0xff]   ;;  %v2822_v37 = vld [vmem:[%s3493_s1 + $0x1b0] sm:$0xff]  }
  0x19   : > { %2495 = vmatpush3.bf16.msra.mxu1 %v2770_v19  ;;  %2456 = vmatprep.subr.bf16.mxu0 %v2771_v20  ;;  %v3112_v63 = vrot.slane %v3099_v59, 2  ;;  %v3115_v0 = vrot.slane %v3103_v60, 2  ;;  %v3145_v10 = vld [vmem:[%s3031_s27 + $0x38] sm:$0xff]  ;;  %v2811_v17 = vld [vmem:[%s3493_s1 + $0x120] sm:$0xff]   ;;  %v879_v49 = vld [vmem:[%s3031_s27 + $0x8] sm:$0xcc] }
  0x1a   : > { %2496 = vmatprep.subr.bf16.mxu1 %v2772_v21  ;;  %v3149_v11 = vcombine.high %v3142_v9, %v3145_v10  ;;  %v3153_v12 = vcombine.low %v3142_v9, %v3145_v10  ;;  %v2812_v18 = vld [vmem:[%s3493_s1 + $0x1a0] sm:$0xff]   ;;  %v2813_v21 = vld [vmem:[%s3493_s1 + $0x168] sm:$0xff]   ;;  %v2823_v42 = vld [vmem:[%s3493_s1 + $0x178] sm:$0xff]   ;;  %v2208_v51 = vcombine.low %v879_v49, %v3043_v33 }
  0x1b   : > { %v305_v3 = vsel %vm295_vm0, %v300_v44, %v3112_v63  ;;  %v303_v4 = vsel %vm295_vm0, %v297_v45, %v3115_v0  ;;  %v3228_v44 = vcombine.low %v3046_v34, %v3092_v57  ;;  %v2824_v45 = vld [vmem:[%s3493_s1 + $0x1f8] sm:$0xff]  }
  0x1c   : > { %2457 = vmatpush3.bf16.msra.mxu0 %v2773_v22  ;;  %v3163_v15 = vrot.slane %v3149_v11, 2  ;;  %v3166_v16 = vrot.slane %v3153_v12, 2  ;;  %v2814_v22 = vld [vmem:[%s3493_s1 + $0x1e8] sm:$0xff]   ;;  %v2826_v48 = vld [vmem:[%s3493_s1 + $0x1b8] sm:$0xff]   ;;  %v958_v57 = vrot.slane %v2208_v51, 2  ;;  %v2864_v51 = vld [vmem:[%s3493_s1 + $0x2f0] sm:$0xff]  }
  0x1d   : > { %2497 = vmatpush3.bf16.msra.mxu1 %v2774_v23  ;;  %2458 = vmatprep.subr.bf16.mxu0 %v2775_v24  ;;  %v2815_v23 = vld [vmem:[%s3493_s1 + $0x128] sm:$0xff]  }
  0x1e   : > { %2498 = vmatprep.subr.bf16.mxu1 %v2776_v25  ;;  %v3178_v19 = vsel %vm295_vm0, %v3112_v63, %v3163_v15  ;;  %v3183_v20 = vsel %vm295_vm0, %v3115_v0, %v3166_v16  ;;  %v2816_v24 = vld [vmem:[%s3493_s1 + $0x1a8] sm:$0xff]   ;;  %v224_v25 = vld [vmem:[%s3031_s27 + $0x40] sm:$0x33] }
  0x20   : > { %2459 = vmatpush3.bf16.msra.mxu0 %v2777_v26  ;;  %v2085_v26 = vcombine.high %v224_v25, %v224_v25 }
  0x21   : > { %2499 = vmatpush3.bf16.msra.mxu1 %v2778_v27  ;;  %2460 = vmatprep.subr.bf16.mxu0 %v2779_v28  ;;  %v2084_v27 = vcombine.low %v224_v25, %v224_v25  ;;  %v2819_v28 = vld [vmem:[%s3493_s1 + $0x170] sm:$0xff]   ;;  %v3311_v25 = vld [vmem:[%s3031_s27 + $0x40] sm:$0xff] }
  0x22   : > { %2500 = vmatprep.subr.bf16.mxu1 %v2780_v29  ;;  %v2820_v29 = vld [vmem:[%s3493_s1 + $0x1f0] sm:$0xff]  }
  0x24   : > { %2461 = vmatpush3.bf16.msra.mxu0 %v2781_v30  ;;  %v312_v30 = vrot.slane %v2085_v26, 2  ;;  %v3316_v26 = vcombine.high %v3145_v10, %v3311_v25 }
  0x25   : > { %2501 = vmatpush3.bf16.msra.mxu1 %v2782_v31  ;;  %2526 = vmatprep.subr.bf16.mxu0 %v2789_v43  ;;  %v310_v31 = vrot.slane %v2084_v27, 2  ;;  %v2153_v43 = vcombine.high %v3040_v32, %v3043_v33  ;;  %v3320_v27 = vcombine.low %v3145_v10, %v3311_v25  ;;  %v2856_v10 = vld [vmem:[%s3493_s1 + $0x2a0] sm:$0xff]  }
  0x26   : > { %2566 = vmatprep.subr.bf16.mxu1 %v2790_v46  ;;  %v3235_v46 = vcombine.high %v3095_v58, %v3142_v9 }
  0x27   : > { %451 = vmatmul.mubr.bf16.vlgmr.msra.gmra.mrb[0].mxu0 %v298_v52  ;;  %v311_v41 = vsel %vm295_vm0, %v3166_v16, %v310_v31  ;;  %v2209_v52 = vcombine.high %v879_v49, %v3043_v33  ;;  %v968_v31 = vrot.slane %v3320_v27, 2 }
  0x28   : > { %625 = vmatmul.mubr.bf16.vlgmr.msra.gmra.mrb[0].mxu1 %v2102_v40  ;;  %2527 = vmatpush3.bf16.msra.mxu0 %v2791_v47  ;;  %v313_v40 = vsel %vm295_vm0, %v3163_v15, %v312_v30  ;;  %v2825_v47 = vld [vmem:[%s3493_s1 + $0x138] sm:$0xff]   ;;  %v970_v30 = vrot.slane %v3316_v26, 2 }
  0x29   : > { %632 = vmatprep.mubr.bf16.mxu1 %v3051_v36  ;;  %2567 = vmatpush3.bf16.msra.mxu1 %v2792_v50  ;;  %v962_v50 = vrot.slane %v3215_v39, 2 }
  0x2a   : > { %2568 = vmatprep.subr.bf16.mxu1 %v2794_v54  ;;  %2528 = vmatprep.subr.bf16.mxu0 %v2793_v53  ;;  %v959_v53 = vrot.slane %v3228_v44, 2  ;;  %v2833_v54 = vld [vmem:[%s3493_s1 + $0x240] sm:$0xff]  }
  0x2b   : > { %458 = vmatprep.mubr.bf16.mxu0 %v305_v3 }
  0x2c   : > { %2529 = vmatpush3.bf16.msra.mxu0 %v2795_v55  ;;  %v2834_v55 = vld [vmem:[%s3493_s1 + $0x2c0] sm:$0xff]  }
  0x2d   : > { %2569 = vmatpush3.bf16.msra.mxu1 %v2796_v56  ;;  %2530 = vmatprep.subr.bf16.mxu0 %v2799_v61  ;;  %v966_v56 = vrot.slane %v3235_v46, 2  ;;  %v961_v61 = vrot.slane %v2209_v52, 2 }
  0x2e   : > { %2570 = vmatprep.subr.bf16.mxu1 %v2800_v62  ;;  %v2152_v62 = vcombine.low %v3040_v32, %v3043_v33  ;;  %v2837_v32 = vld [vmem:[%s3493_s1 + $0x248] sm:$0xff]  }
  0x2f   : > { %459 = vmatmul.mubr.bf16.gmra.mrb[4].mxu0 %v303_v4  ;;  %v963_v3 = vsel %vm295_vm0, %v961_v61, %v962_v50  ;;  %v960_v4 = vsel %vm295_vm0, %v958_v57, %v959_v53  ;;  %v2838_v33 = vld [vmem:[%s3493_s1 + $0x2c8] sm:$0xff]   ;;  %v2866_v57 = vld [vmem:[%s3493_s1 + $0x2b0] sm:$0xff]   ;;  %v2867_v61 = vld [vmem:[%s3493_s1 + $0x278] sm:$0xff]  }
  0x30   : > { %633 = vmatmul.mubr.bf16.gmra.mrb[4].mxu1 %v3056_v38  ;;  %2531 = vmatpush3.bf16.msra.mxu0 %v2801_v1  ;;  %v2835_v1 = vld [vmem:[%s3493_s1 + $0x200] sm:$0xff]  }
  0x31   : > { %2571 = vmatpush3.bf16.msra.mxu1 %v2802_v2  ;;  %640 = vmatprep.mubr.bf16.mxu1 %v3099_v59  ;;  %v3262_v2 = vcombine.low %v3095_v58, %v3142_v9  ;;  %v967_v58 = vsel %vm295_vm0, %v962_v50, %v966_v56  ;;  %v2843_v9 = vld [vmem:[%s3493_s1 + $0x250] sm:$0xff]  }
  0x32   : > { %2572 = vmatprep.subr.bf16.mxu1 %v2804_v6  ;;  %2532 = vmatprep.subr.bf16.mxu0 %v2803_v5  ;;  %v2836_v5 = vld [vmem:[%s3493_s1 + $0x280] sm:$0xff]   ;;  %v2839_v6 = vld [vmem:[%s3493_s1 + $0x208] sm:$0xff]   ;;  %v2863_v50 = vld [vmem:[%s3493_s1 + $0x270] sm:$0xff]  }
  0x33   : > { %466 = vmatprep.mubr.bf16.mxu0 %v3178_v19 }
  0x34   : > { %2533 = vmatpush3.bf16.msra.mxu0 %v2805_v7  ;;  %v964_v7 = vrot.slane %v3262_v2, 2 }
  0x35   : > { %2573 = vmatpush3.bf16.msra.mxu1 %v2806_v8  ;;  %2534 = vmatprep.subr.bf16.mxu0 %v2809_v13  ;;  %v2840_v8 = vld [vmem:[%s3493_s1 + $0x288] sm:$0xff]   ;;  %v2844_v13 = vld [vmem:[%s3493_s1 + $0x2d0] sm:$0xff]  }
  0x36   : > { %2574 = vmatprep.subr.bf16.mxu1 %v2810_v14  ;;  %v965_v14 = vsel %vm295_vm0, %v959_v53, %v964_v7 }
  0x37   : > { %467 = vmatmul.mubr.bf16.gmra.mrb[8].mxu0 %v3183_v20 }
  0x38   : > { %641 = vmatmul.mubr.bf16.gmra.mrb[8].mxu1 %v3103_v60  ;;  %2535 = vmatpush3.bf16.msra.mxu0 %v2811_v17  ;;  %v2845_v17 = vld [vmem:[%s3493_s1 + $0x210] sm:$0xff]  }
  0x39   : > { %648 = vmatprep.mubr.bf16.mxu1 %v3149_v11  ;;  %2575 = vmatpush3.bf16.msra.mxu1 %v2812_v18  ;;  %v2846_v18 = vld [vmem:[%s3493_s1 + $0x290] sm:$0xff]  }
  0x3a   : > { %2576 = vmatprep.subr.bf16.mxu1 %v2814_v22  ;;  %2536 = vmatprep.subr.bf16.mxu0 %v2813_v21  ;;  %v2847_v21 = vld [vmem:[%s3493_s1 + $0x258] sm:$0xff]  }
  0x3b   : > { %474 = vmatprep.mubr.bf16.mxu0 %v313_v40  ;;  %v2848_v22 = vld [vmem:[%s3493_s1 + $0x2d8] sm:$0xff]   ;;  %v969_v40 = vsel %vm295_vm0, %v964_v7, %v968_v31 }
  0x3c   : > { %2537 = vmatpush3.bf16.msra.mxu0 %v2815_v23  ;;  %v2849_v23 = vld [vmem:[%s3493_s1 + $0x218] sm:$0xff]  }
  0x3d   : > { %2577 = vmatpush3.bf16.msra.mxu1 %v2816_v24  ;;  %2538 = vmatprep.subr.bf16.mxu0 %v2819_v28  ;;  %v2850_v24 = vld [vmem:[%s3493_s1 + $0x298] sm:$0xff]   ;;  %v2853_v28 = vld [vmem:[%s3493_s1 + $0x260] sm:$0xff]  }
  0x3e   : > { %2578 = vmatprep.subr.bf16.mxu1 %v2820_v29  ;;  %v2854_v29 = vld [vmem:[%s3493_s1 + $0x2e0] sm:$0xff]  }
  0x3f   : > { %475 = vmatmul.mubr.bf16.gmra.mrb[12].mxu0 %v311_v41  ;;  %v2857_v41 = vld [vmem:[%s3493_s1 + $0x268] sm:$0xff]  }
  0x40   : > { %649 = vmatmul.mubr.bf16.gmra.mrb[12].mxu1 %v3153_v12  ;;  %2539 = vmatpush3.bf16.msra.mxu0 %v2821_v35  ;;  %v2855_v35 = vld [vmem:[%s3493_s1 + $0x220] sm:$0xff]  }
  0x41   : > { %2579 = vmatpush3.bf16.msra.mxu1 %v2822_v37  ;;  %2540 = vmatprep.subr.bf16.mxu0 %v2823_v42  ;;  %v971_v37 = vsel %vm295_vm0, %v966_v56, %v970_v30  ;;  %v2858_v42 = vld [vmem:[%s3493_s1 + $0x2e8] sm:$0xff]  }
  0x42   : > { %2580 = vmatprep.subr.bf16.mxu1 %v2824_v45  ;;  %838 = vmatprep.mubr.bf16.mxu0 %v2153_v43  ;;  %v2859_v43 = vld [vmem:[%s3493_s1 + $0x228] sm:$0xff]  }
  0x43   : > { %1112 = vmatprep.mubr.bf16.mxu1 %v963_v3  ;;  %v2860_v45 = vld [vmem:[%s3493_s1 + $0x2a8] sm:$0xff]   ;;  %v2870_v3 = vld [vmem:[%s3493_s1 + $0x2b8] sm:$0xff]  }
  0x44   : > { %2541 = vmatpush3.bf16.msra.mxu0 %v2825_v47  ;;  %v887_v47 = vld [vmem:[%s3031_s27 + $0x48] sm:$0x33] }
  0x45   : > { %2581 = vmatpush3.bf16.msra.mxu1 %v2826_v48  ;;  %2606 = vmatprep.subr.bf16.mxu0 %v2833_v54  ;;  %v2217_v48 = vcombine.high %v887_v47, %v887_v47  ;;  %v2216_v49 = vcombine.low %v887_v47, %v887_v47  ;;  %v2865_v54 = vld [vmem:[%s3493_s1 + $0x230] sm:$0xff]  }
  0x46   : > { %2646 = vmatprep.subr.bf16.mxu1 %v2834_v55 }
  0x47   : > { %839 = vmatmul.mubr.bf16.vlgmr.msra.gmra.mrb[16].mxu0 %v2152_v62  ;;  %v974_v52 = vrot.slane %v2217_v48, 2  ;;  %v972_v53 = vrot.slane %v2216_v49, 2  ;;  %v2868_v62 = vld [vmem:[%s3493_s1 + $0x2f8] sm:$0xff]  }
  0x48   : > { %1113 = vmatmul.mubr.bf16.vlgmr.msra.gmra.mrb[16].mxu1 %v960_v4  ;;  %2607 = vmatpush3.bf16.msra.mxu0 %v2835_v1  ;;  %v2869_v1 = vld [vmem:[%s3493_s1 + $0x238] sm:$0xff]   ;;  %v1375_v4 = vld [vmem:[%s3031_s27 + $0x10] sm:$0xcc] }
  0x49   : > { %2647 = vmatpush3.bf16.msra.mxu1 %v2836_v5  ;;  %2608 = vmatprep.subr.bf16.mxu0 %v2837_v32  ;;  %v975_v55 = vsel %vm295_vm0, %v970_v30, %v974_v52  ;;  %v973_v56 = vsel %vm295_vm0, %v968_v31, %v972_v53  ;;  %v2322_v5 = vcombine.low %v1375_v4, %v3046_v34  ;;  %v2889_v30 = vld [vmem:[%s3493_s1 + $0x370] sm:$0xff]   ;;  %v2891_v31 = vld [vmem:[%s3493_s1 + $0x378] sm:$0xff]  }
  0x4a   : > { %2648 = vmatprep.subr.bf16.mxu1 %v2838_v33  ;;  %846 = vmatprep.mubr.bf16.mxu0 %v3215_v39  ;;  %v2323_v32 = vcombine.high %v1375_v4, %v3046_v34  ;;  %v2873_v33 = vld [vmem:[%s3493_s1 + $0x340] sm:$0xff]  }
  0x4b   : > { %1120 = vmatprep.mubr.bf16.mxu1 %v967_v58  ;;  %v2874_v58 = vld [vmem:[%s3493_s1 + $0x300] sm:$0xff]  }
  0x4c   : > { %2609 = vmatpush3.bf16.msra.mxu0 %v2839_v6  ;;  %v1454_v6 = vrot.slane %v2322_v5, 2  ;;  %v1457_v7 = vrot.slane %v2323_v32, 2 }
  0x4d   : > { %2649 = vmatpush3.bf16.msra.mxu1 %v2840_v8  ;;  %2610 = vmatprep.subr.bf16.mxu0 %v2843_v9  ;;  %v2876_v9 = vld [vmem:[%s3493_s1 + $0x308] sm:$0xff]  }
  0x4e   : > { %2650 = vmatprep.subr.bf16.mxu1 %v2844_v13  ;;  %v1459_v34 = vsel %vm295_vm0, %v1457_v7, %v3112_v63  ;;  %v1456_v8 = vsel %vm295_vm0, %v1454_v6, %v3115_v0  ;;  %v2877_v13 = vld [vmem:[%s3493_s1 + $0x350] sm:$0xff]  }
  0x4f   : > { %847 = vmatmul.mubr.bf16.gmra.mrb[20].mxu0 %v3228_v44  ;;  %v2878_v0 = vld [vmem:[%s3493_s1 + $0x310] sm:$0xff]  }
  0x50   : > { %1121 = vmatmul.mubr.bf16.gmra.mrb[20].mxu1 %v965_v14  ;;  %2611 = vmatpush3.bf16.msra.mxu0 %v2845_v17  ;;  %v2879_v14 = vld [vmem:[%s3493_s1 + $0x358] sm:$0xff]  }
  0x51   : > { %2651 = vmatpush3.bf16.msra.mxu1 %v2846_v18  ;;  %2612 = vmatprep.subr.bf16.mxu0 %v2847_v21  ;;  %v1383_v18 = vld [vmem:[%s3031_s27 + $0x50] sm:$0x33]  ;;  %v2880_v21 = vld [vmem:[%s3493_s1 + $0x318] sm:$0xff]  }
  0x52   : > { %2652 = vmatprep.subr.bf16.mxu1 %v2848_v22  ;;  %854 = vmatprep.mubr.bf16.mxu0 %v3235_v46  ;;  %v2331_v22 = vcombine.high %v1383_v18, %v1383_v18 }
  0x53   : > { %1128 = vmatprep.mubr.bf16.mxu1 %v971_v37  ;;  %v1649_v37 = vld [vmem:[%s3031_s27 + $0x50] sm:$0xff] }
  0x54   : > { %2613 = vmatpush3.bf16.msra.mxu0 %v2849_v23 }
  0x55   : > { %2653 = vmatpush3.bf16.msra.mxu1 %v2850_v24  ;;  %2614 = vmatprep.subr.bf16.mxu0 %v2853_v28  ;;  %v2884_v24 = vld [vmem:[%s3493_s1 + $0x320] sm:$0xff]  }
  0x56   : > { %2654 = vmatprep.subr.bf16.mxu1 %v2854_v29  ;;  %v2886_v29 = vld [vmem:[%s3493_s1 + $0x328] sm:$0xff]  }
  0x57   : > { %855 = vmatmul.mubr.bf16.gmra.mrb[24].mxu0 %v3262_v2 }
  0x58   : > { %1129 = vmatmul.mubr.bf16.gmra.mrb[24].mxu1 %v969_v40  ;;  %2615 = vmatpush3.bf16.msra.mxu0 %v2855_v35 }
  0x59   : > { %2655 = vmatpush3.bf16.msra.mxu1 %v2856_v10  ;;  %2616 = vmatprep.subr.bf16.mxu0 %v2857_v41  ;;  %v2892_v10 = vld [vmem:[%s3493_s1 + $0x338] sm:$0xff]  }
  0x5a   : > { %2656 = vmatprep.subr.bf16.mxu1 %v2858_v42  ;;  %862 = vmatprep.mubr.bf16.mxu0 %v3316_v26 }
  0x5b   : > { %1136 = vmatprep.mubr.bf16.mxu1 %v975_v55 }
  0x5c   : > { %2617 = vmatpush3.bf16.msra.mxu0 %v2859_v43 }
  0x5d   : > { %2657 = vmatpush3.bf16.msra.mxu1 %v2860_v45  ;;  %2618 = vmatprep.subr.bf16.mxu0 %v2863_v50 }
  0x5e   : > { %2658 = vmatprep.subr.bf16.mxu1 %v2864_v51 }
  0x5f   : > { %863 = vmatmul.mubr.bf16.gmra.mrb[28].mxu0 %v3320_v27 }
  0x60   : > { %1137 = vmatmul.mubr.bf16.gmra.mrb[28].mxu1 %v973_v56  ;;  %2619 = vmatpush3.bf16.msra.mxu0 %v2865_v54 }
  0x61   : > { %2659 = vmatpush3.bf16.msra.mxu1 %v2866_v57  ;;  %2620 = vmatprep.subr.bf16.mxu0 %v2867_v61 }
  0x62   : > { %2660 = vmatprep.subr.bf16.mxu1 %v2868_v62  ;;  %1334 = vmatprep.mubr.bf16.mxu0 %v3051_v36  ;;  %v2875_v36 = vld [vmem:[%s3493_s1 + $0x348] sm:$0xff]  }
  0x63   : > { %1608 = vmatprep.mubr.bf16.mxu1 %v1459_v34 }
  0x64   : > { %2621 = vmatpush3.bf16.msra.mxu0 %v2869_v1 }
  0x65   : > { %2661 = vmatpush3.bf16.msra.mxu1 %v2870_v3  ;;  %2686 = vmatprep.subr.bf16.mxu0 %v2873_v33 }
  0x66   : > { %2726 = vmatprep.subr.bf16.mxu1 %v2873_v33 }
  0x67   : > { %1335 = vmatmul.mubr.bf16.vlgmr.msra.gmra.mrb[32].mxu0 %v3056_v38  ;;  %v3406_v38 = vld [vmem:[%s3031_s27 + $0x48] sm:$0xff]  ;;  %s2414_s27 = sshll.u32 %s3497_s13, 5 }
  0x68   : > { %2687 = vmatpush3.bf16.msra.mxu0 %v2874_v58  ;;  %1609 = vmatmul.mubr.bf16.vlgmr.msra.gmra.mrb[32].mxu1 %v1456_v8  ;;  %v2329_v63 = vcombine.high %v3311_v25, %v3406_v38  ;;  %v2387_v40 = vcombine.high %v3406_v38, %v1649_v37  ;;  %s3477_s25 = scalar_lea.vmem %s3494_s2, %s2414_s27 }
  0x69   : > { %2688 = vmatprep.subr.bf16.mxu0 %v2875_v36  ;;  %2734 = vmatpush3.bf16.msra.mxu1 %v2874_v58 }
  0x6a   : > { %1342 = vmatprep.mubr.bf16.mxu0 %v3099_v59  ;;  %2727 = vmatprep.subr.bf16.mxu1 %v2875_v36  ;;  %v1466_v17 = vrot.slane %v2329_v63, 2  ;;  %v2328_v59 = vcombine.low %v3311_v25, %v3406_v38  ;;  %v2330_v25 = vcombine.low %v1383_v18, %v1383_v18 }
  0x6b   : > { %1616 = vmatprep.mubr.bf16.mxu1 %v3178_v19 }
  0x6c   : > { %2689 = vmatpush3.bf16.msra.mxu0 %v2876_v9  ;;  %v1467_v19 = vsel %vm295_vm0, %v3163_v15, %v1466_v17  ;;  %v1464_v23 = vrot.slane %v2328_v59, 2  ;;  %v1470_v15 = vrot.slane %v2331_v22, 2 }
  0x6d   : > { %2690 = vmatprep.subr.bf16.mxu0 %v2877_v13  ;;  %2735 = vmatpush3.bf16.msra.mxu1 %v2876_v9 }
  0x6e   : > { %2728 = vmatprep.subr.bf16.mxu1 %v2877_v13  ;;  %v1471_v28 = vsel %vm295_vm0, %v1466_v17, %v1470_v15 }
  0x6f   : > { %1343 = vmatmul.mubr.bf16.gmra.mrb[36].mxu0 %v3103_v60  ;;  %v2883_v60 = vld [vmem:[%s3493_s1 + $0x360] sm:$0xff]  }
  0x70   : > { %2691 = vmatpush3.bf16.msra.mxu0 %v2878_v0  ;;  %1350 = vmatprep.mubr.bf16.mxu0 %v3149_v11  ;;  %v2885_v11 = vld [vmem:[%s3493_s1 + $0x368] sm:$0xff]  }
  0x71   : > { %1617 = vmatmul.mubr.bf16.gmra.mrb[36].mxu1 %v3183_v20  ;;  %2692 = vmatprep.subr.bf16.mxu0 %v2879_v14  ;;  %v1465_v20 = vsel %vm295_vm0, %v3166_v16, %v1464_v23  ;;  %v1468_v16 = vrot.slane %v2330_v25, 2 }
  0x72   : > { %2736 = vmatpush3.bf16.msra.mxu1 %v2878_v0  ;;  %1624 = vmatprep.mubr.bf16.mxu1 %v1467_v19 }
  0x73   : > { %2729 = vmatprep.subr.bf16.mxu1 %v2879_v14  ;;  %v1469_v35 = vsel %vm295_vm0, %v1464_v23, %v1468_v16 }
  0x74   : > { %2693 = vmatpush3.bf16.msra.mxu0 %v2880_v21 }
  0x75   : > { %2694 = vmatprep.subr.bf16.mxu0 %v2883_v60 }
  0x76   : > { %2737 = vmatpush3.bf16.msra.mxu1 %v2880_v21 }
  0x77   : > { %1351 = vmatmul.mubr.bf16.gmra.mrb[40].mxu0 %v3153_v12  ;;  %2730 = vmatprep.subr.bf16.mxu1 %v2883_v60  ;;  %v2890_v12 = vld [vmem:[%s3493_s1 + $0x330] sm:$0xff]  }
  0x78   : > { %2695 = vmatpush3.bf16.msra.mxu0 %v2884_v24  ;;  %1358 = vmatprep.mubr.bf16.mxu0 %v2329_v63 }
  0x79   : > { %1625 = vmatmul.mubr.bf16.gmra.mrb[40].mxu1 %v1465_v20  ;;  %2696 = vmatprep.subr.bf16.mxu0 %v2885_v11 }
  0x7a   : > { %2738 = vmatpush3.bf16.msra.mxu1 %v2884_v24  ;;  %1632 = vmatprep.mubr.bf16.mxu1 %v1471_v28 }
  0x7b   : > { %2731 = vmatprep.subr.bf16.mxu1 %v2885_v11 }
  0x7c   : > { %2697 = vmatpush3.bf16.msra.mxu0 %v2886_v29 }
  0x7d   : > { %2698 = vmatprep.subr.bf16.mxu0 %v2889_v30 }
  0x7e   : > { %2739 = vmatpush3.bf16.msra.mxu1 %v2886_v29 }
  0x7f   : > { %1359 = vmatmul.mubr.bf16.gmra.mrb[44].mxu0 %v2328_v59  ;;  %2732 = vmatprep.subr.bf16.mxu1 %v2889_v30 }
  0x80   : > { %2699 = vmatpush3.bf16.msra.mxu0 %v2890_v12  ;;  %1830 = vmatprep.mubr.bf16.mxu0 %v3215_v39  ;;  %v2386_v39 = vcombine.low %v3406_v38, %v1649_v37 }
  0x81   : > { %1633 = vmatmul.mubr.bf16.gmra.mrb[44].mxu1 %v1469_v35  ;;  %2700 = vmatprep.subr.bf16.mxu0 %v2891_v31 }
  0x82   : > { %2740 = vmatpush3.bf16.msra.mxu1 %v2890_v12  ;;  %1846 = vmatprep.mubr.bf16.mxu1 %v3316_v26 }
  0x83   : > { %2733 = vmatprep.subr.bf16.mxu1 %v2891_v31 }
  0x84   : > { %2701 = vmatpush3.bf16.msra.mxu0 %v2892_v10 }
  0x86   : > { %2741 = vmatpush3.bf16.msra.mxu1 %v2892_v10 }
  0x87   : > { %1831 = vmatmul.mubr.bf16.vlgmr.msra.gmra.mrb[48].mxu0 %v3228_v44 }
  0x88   : > { %1838 = vmatprep.mubr.bf16.mxu0 %v3235_v46 }
  0x89   : > { %1847 = vmatmul.mubr.bf16.vlgmr.msra.gmra.mrb[48].mxu1 %v3320_v27 }
  0x8a   : > { %1854 = vmatprep.mubr.bf16.mxu1 %v2387_v40 }
  0x8f   : > { %1839 = vmatmul.mubr.bf16.gmra.mrb[52].mxu0 %v3262_v2 }
  0x91   : > { %1855 = vmatmul.mubr.bf16.gmra.mrb[52].mxu1 %v2386_v39 }
  0xfa   : > { %v2462_v45 = vpop.f32.mrb[0].mxu0 }
  0xfb   : > { %v2502_v41 = vpop.f32.mrb[0].mxu1  ;;  %v2463_v48 = vpop.f32.mrb[1].mxu0 }
  0xfc   : > { %v2503_v26 = vpop.f32.mrb[1].mxu1  ;;  %v2464_v50 = vadd.f32 %v2463_v48, %v2462_v45  ;;  %v2465_v44 = vpop.f32.mrb[2].mxu0 }
  0xfd   : > { %v2504_v42 = vadd.f32 %v2503_v26, %v2502_v41  ;;  %v2505_v43 = vpop.f32.mrb[2].mxu1  ;;  %v2466_v51 = vpop.f32.mrb[3].mxu0 }
  0xfe   : > { %v2506_v47 = vpop.f32.mrb[3].mxu1  ;;  %v2467_v52 = vadd.f32 %v2466_v51, %v2465_v44 }
  0xff   : > { %v2507_v49 = vadd.f32 %v2506_v47, %v2505_v43  ;;  %v627_v46 = vadd.f32 %v2504_v42, %v2464_v50 }
 0x101   : > { %v630_v53 = vadd.f32 %v2507_v49, %v2467_v52 }
 0x102   : > { %v2468_v57 = vpop.f32.mrb[4].mxu0 }
 0x103   : > { %v2508_v27 = vpop.f32.mrb[4].mxu1  ;;  %v2469_v62 = vpop.f32.mrb[5].mxu0 }
 0x104   : > { %v2509_v54 = vpop.f32.mrb[5].mxu1  ;;  %v2470_v1 = vadd.f32 %v2469_v62, %v2468_v57  ;;  %v2471_v3 = vpop.f32.mrb[6].mxu0 }
 0x105   : > { %v2510_v55 = vadd.f32 %v2509_v54, %v2508_v27  ;;  %v2511_v56 = vpop.f32.mrb[6].mxu1  ;;  %v2472_v4 = vpop.f32.mrb[7].mxu0 }
 0x106   : > { %v2512_v2 = vpop.f32.mrb[7].mxu1  ;;  %v2473_v32 = vadd.f32 %v2472_v4, %v2471_v3 }
 0x107   : > { %v2513_v61 = vadd.f32 %v2512_v2, %v2511_v56  ;;  %v635_v5 = vadd.f32 %v2510_v55, %v2470_v1 }
 0x109   : > { %v638_v6 = vadd.f32 %v2513_v61, %v2473_v32 }
 0x10a   : > { %v2474_v9 = vpop.f32.mrb[8].mxu0 }
 0x10b   : > { %v2514_v33 = vpop.f32.mrb[8].mxu1  ;;  %v2475_v13 = vpop.f32.mrb[9].mxu0 }
 0x10c   : > { %v2515_v58 = vpop.f32.mrb[9].mxu1  ;;  %v2476_v38 = vadd.f32 %v2475_v13, %v2474_v9  ;;  %v2477_v63 = vpop.f32.mrb[10].mxu0 }
 0x10d   : > { %v2516_v7 = vadd.f32 %v2515_v58, %v2514_v33  ;;  %v2517_v36 = vpop.f32.mrb[10].mxu1  ;;  %v2478_v0 = vpop.f32.mrb[11].mxu0 }
 0x10e   : > { %v2518_v34 = vpop.f32.mrb[11].mxu1  ;;  %v2479_v17 = vadd.f32 %v2478_v0, %v2477_v63 }
 0x10f   : > { %v2519_v8 = vadd.f32 %v2518_v34, %v2517_v36  ;;  %v643_v14 = vadd.f32 %v2516_v7, %v2476_v38 }
 0x111   : > { %v646_v18 = vadd.f32 %v2519_v8, %v2479_v17 }
 0x112   : > { %v2480_v23 = vpop.f32.mrb[12].mxu0 }
 0x113   : > { %v2520_v59 = vpop.f32.mrb[12].mxu1  ;;  %v2481_v24 = vpop.f32.mrb[13].mxu0 }
 0x114   : > { %v2521_v19 = vpop.f32.mrb[13].mxu1  ;;  %v2482_v11 = vadd.f32 %v2481_v24, %v2480_v23  ;;  %v2483_v20 = vpop.f32.mrb[14].mxu0 }
 0x115   : > { %v2522_v21 = vadd.f32 %v2521_v19, %v2520_v59  ;;  %v2523_v22 = vpop.f32.mrb[14].mxu1  ;;  %v2484_v25 = vpop.f32.mrb[15].mxu0 }
 0x116   : > { %v2524_v60 = vpop.f32.mrb[15].mxu1  ;;  %v2485_v29 = vadd.f32 %v2484_v25, %v2483_v20 }
 0x117   : > { %v2525_v15 = vadd.f32 %v2524_v60, %v2523_v22  ;;  %v651_v28 = vadd.f32 %v2522_v21, %v2482_v11 }
 0x119   : > { %v654_v30 = vadd.f32 %v2525_v15, %v2485_v29 }
 0x11a   : > { %v2542_v16 = vpop.f32.mrb[16].mxu0 }
 0x11b   : > { %v2582_v12 = vpop.f32.mrb[16].mxu1  ;;  %v2543_v31 = vpop.f32.mrb[17].mxu0 }
 0x11c   : > { %v2583_v35 = vpop.f32.mrb[17].mxu1  ;;  %v2544_v10 = vadd.f32 %v2543_v31, %v2542_v16  ;;  %v2545_v37 = vpop.f32.mrb[18].mxu0 }
 0x11d   : > { %v2584_v40 = vadd.f32 %v2583_v35, %v2582_v12  ;;  %v2585_v39 = vpop.f32.mrb[18].mxu1  ;;  %v2546_v41 = vpop.f32.mrb[19].mxu0 }
 0x11e   : > { %v2586_v26 = vpop.f32.mrb[19].mxu1  ;;  %v871_v42 = vadd.f32 %v2544_v10, %v627_v46  ;;  %v2547_v43 = vadd.f32 %v2546_v41, %v2545_v37 }
 0x11f   : > { %v2587_v45 = vadd.f32 %v2586_v26, %v2585_v39 }
 0x120   : > { %v872_v47 = vadd.f32 %v2547_v43, %v630_v53  ;;  %v1145_v48 = vadd.f32 %v2584_v40, %v871_v42 }
 0x122   : > { %v1146_v49 = vadd.f32 %v2587_v45, %v872_v47  ;;  %v2548_v50 = vpop.f32.mrb[20].mxu0 }
 0x123   : > { %v2588_v44 = vpop.f32.mrb[20].mxu1  ;;  %v2549_v51 = vpop.f32.mrb[21].mxu0 }
 0x124   : > { %v2589_v52 = vpop.f32.mrb[21].mxu1  ;;  %v2550_v27 = vadd.f32 %v2549_v51, %v2548_v50  ;;  %v2551_v54 = vpop.f32.mrb[22].mxu0 }
 0x125   : > { %v2590_v55 = vadd.f32 %v2589_v52, %v2588_v44  ;;  %v2591_v56 = vpop.f32.mrb[22].mxu1  ;;  %v2552_v2 = vpop.f32.mrb[23].mxu0 }
 0x126   : > { %v2592_v57 = vpop.f32.mrb[23].mxu1  ;;  %v873_v61 = vadd.f32 %v2550_v27, %v635_v5  ;;  %v2553_v62 = vadd.f32 %v2552_v2, %v2551_v54 }
 0x127   : > { %v2593_v1 = vadd.f32 %v2592_v57, %v2591_v56 }
 0x128   : > { %v874_v3 = vadd.f32 %v2553_v62, %v638_v6  ;;  %v1147_v46 = vadd.f32 %v2590_v55, %v873_v61 }
 0x12a   : > { %v1148_v4 = vadd.f32 %v2593_v1, %v874_v3  ;;  %v2554_v32 = vpop.f32.mrb[24].mxu0 }
 0x12b   : > { %v2555_v53 = vpop.f32.mrb[25].mxu0  ;;  %v2594_v33 = vpop.f32.mrb[24].mxu1 }
 0x12c   : > { %v2556_v58 = vadd.f32 %v2555_v53, %v2554_v32  ;;  %v2557_v7 = vpop.f32.mrb[26].mxu0  ;;  %v2595_v36 = vpop.f32.mrb[25].mxu1 }
 0x12d   : > { %v2558_v34 = vpop.f32.mrb[27].mxu0  ;;  %v2596_v8 = vadd.f32 %v2595_v36, %v2594_v33  ;;  %v2597_v9 = vpop.f32.mrb[26].mxu1 }
 0x12e   : > { %v875_v13 = vadd.f32 %v2556_v58, %v643_v14  ;;  %v2559_v38 = vadd.f32 %v2558_v34, %v2557_v7  ;;  %v2598_v63 = vpop.f32.mrb[27].mxu1 }
 0x12f   : > { %v2599_v0 = vadd.f32 %v2598_v63, %v2597_v9 }
 0x130   : > { %v876_v17 = vadd.f32 %v2559_v38, %v646_v18  ;;  %v1149_v5 = vadd.f32 %v2596_v8, %v875_v13 }
 0x132   : > { %v1150_v59 = vadd.f32 %v2599_v0, %v876_v17  ;;  %v2560_v19 = vpop.f32.mrb[28].mxu0 }
 0x133   : > { %v2561_v6 = vpop.f32.mrb[29].mxu0  ;;  %v2600_v21 = vpop.f32.mrb[28].mxu1 }
 0x134   : > { %v2562_v22 = vadd.f32 %v2561_v6, %v2560_v19  ;;  %v2563_v60 = vpop.f32.mrb[30].mxu0  ;;  %v2601_v23 = vpop.f32.mrb[29].mxu1 }
 0x135   : > { %v2564_v15 = vpop.f32.mrb[31].mxu0  ;;  %v2602_v24 = vadd.f32 %v2601_v23, %v2600_v21  ;;  %v2603_v11 = vpop.f32.mrb[30].mxu1 }
 0x136   : > { %v877_v20 = vadd.f32 %v2562_v22, %v651_v28  ;;  %v2565_v25 = vadd.f32 %v2564_v15, %v2563_v60  ;;  %v2604_v29 = vpop.f32.mrb[31].mxu1 }
 0x137   : > { %v2605_v16 = vadd.f32 %v2604_v29, %v2603_v11 }
 0x138   : > { %v878_v14 = vadd.f32 %v2565_v25, %v654_v30  ;;  %v1151_v12 = vadd.f32 %v2602_v24, %v877_v20 }
 0x13a   : > { %v1152_v31 = vadd.f32 %v2605_v16, %v878_v14  ;;  %v2622_v35 = vpop.f32.mrb[32].mxu0 }
 0x13b   : > { %v2623_v18 = vpop.f32.mrb[33].mxu0  ;;  %v2662_v40 = vpop.f32.mrb[32].mxu1 }
 0x13c   : > { %v2624_v10 = vadd.f32 %v2623_v18, %v2622_v35  ;;  %v2625_v37 = vpop.f32.mrb[34].mxu0  ;;  %v2663_v41 = vpop.f32.mrb[33].mxu1 }
 0x13d   : > { %v2626_v39 = vpop.f32.mrb[35].mxu0  ;;  %v2664_v43 = vadd.f32 %v2663_v41, %v2662_v40  ;;  %v2665_v45 = vpop.f32.mrb[34].mxu1 }
 0x13e   : > { %v1367_v26 = vadd.f32 %v2624_v10, %v1145_v48  ;;  %v2627_v42 = vadd.f32 %v2626_v39, %v2625_v37  ;;  %v2666_v47 = vpop.f32.mrb[35].mxu1 }
 0x13f   : > { %v2667_v44 = vadd.f32 %v2666_v47, %v2665_v45 }
 0x140   : > { %v1368_v50 = vadd.f32 %v2627_v42, %v1146_v49  ;;  %v1641_v28 = vadd.f32 %v2664_v43, %v1367_v26 }
 0x142   : > { %v3466_v51 = vadd.f32 %v2667_v44, %v1368_v50  ;;  %v2628_v30 = vpop.f32.mrb[36].mxu0 }
 0x143   : > { %v2629_v52 = vpop.f32.mrb[37].mxu0 }
 0x144   : > { %v2630_v27 = vadd.f32 %v2629_v52, %v2628_v30  ;;  %v2631_v54 = vpop.f32.mrb[38].mxu0  ;;  %v2668_v55 = vpop.f32.mrb[36].mxu1 }
 0x145   : > { %v2632_v56 = vpop.f32.mrb[39].mxu0  ;;  %v2669_v2 = vpop.f32.mrb[37].mxu1 }
 0x146   : > { %v1369_v57 = vadd.f32 %v2630_v27, %v1147_v46  ;;  %v2633_v61 = vadd.f32 %v2632_v56, %v2631_v54  ;;  %v2670_v62 = vadd.f32 %v2669_v2, %v2668_v55  ;;  %v2671_v48 = vpop.f32.mrb[38].mxu1 }
 0x147   : > { %v2672_v1 = vpop.f32.mrb[39].mxu1 }
 0x148   : > { %v1370_v3 = vadd.f32 %v2633_v61, %v1148_v4  ;;  %v3468_v32 = vadd.f32 %v2670_v62, %v1369_v57  ;;  %v2673_v49 = vadd.f32 %v2672_v1, %v2671_v48 }
 0x14a   : > { %v3470_v53 = vadd.f32 %v2673_v49, %v1370_v3  ;;  %v2634_v33 = vpop.f32.mrb[40].mxu0 }
 0x14b   : > { %v2635_v58 = vpop.f32.mrb[41].mxu0 }
 0x14c   : > { %v2636_v7 = vadd.f32 %v2635_v58, %v2634_v33  ;;  %v2637_v36 = vpop.f32.mrb[42].mxu0  ;;  %v2674_v34 = vpop.f32.mrb[40].mxu1 }
 0x14d   : > { %v2638_v8 = vpop.f32.mrb[43].mxu0  ;;  %v2675_v9 = vpop.f32.mrb[41].mxu1 }
 0x14e   : > { %v1371_v13 = vadd.f32 %v2636_v7, %v1149_v5  ;;  %v2639_v38 = vadd.f32 %v2638_v8, %v2637_v36  ;;  %v2676_v46 = vadd.f32 %v2675_v9, %v2674_v34  ;;  %v2677_v63 = vpop.f32.mrb[42].mxu1 }
 0x14f   : > { %v2678_v0 = vpop.f32.mrb[43].mxu1 }
 0x150   : > { %v1372_v17 = vadd.f32 %v2639_v38, %v1150_v59  ;;  %v1645_v19 = vadd.f32 %v2676_v46, %v1371_v13  ;;  %v2679_v4 = vadd.f32 %v2678_v0, %v2677_v63 }
 0x152   : > { %v1646_v6 = vadd.f32 %v2679_v4, %v1372_v17  ;;  %v2640_v21 = vpop.f32.mrb[44].mxu0 }
 0x153   : > { %v2641_v22 = vpop.f32.mrb[45].mxu0 }
 0x154   : > { %v2642_v60 = vadd.f32 %v2641_v22, %v2640_v21  ;;  %v2643_v23 = vpop.f32.mrb[46].mxu0  ;;  %v2680_v15 = vpop.f32.mrb[44].mxu1 }
 0x155   : > { %v2644_v24 = vpop.f32.mrb[47].mxu0  ;;  %v2681_v11 = vpop.f32.mrb[45].mxu1 }
 0x156   : > { %v1373_v20 = vadd.f32 %v2642_v60, %v1151_v12  ;;  %v2645_v25 = vadd.f32 %v2644_v24, %v2643_v23  ;;  %v2682_v29 = vadd.f32 %v2681_v11, %v2680_v15  ;;  %v2683_v16 = vpop.f32.mrb[46].mxu1 }
 0x157   : > { %v2684_v5 = vpop.f32.mrb[47].mxu1 }
 0x158   : > { %v1374_v14 = vadd.f32 %v2645_v25, %v1152_v31  ;;  %v1647_v35 = vadd.f32 %v2682_v29, %v1373_v20  ;;  %v2685_v18 = vadd.f32 %v2684_v5, %v2683_v16 }
 0x15a   : > { %v1648_v59 = vadd.f32 %v2685_v18, %v1374_v14  ;;  %v2702_v10 = vpop.f32.mrb[48].mxu0 }
 0x15b   : > { %v2703_v37 = vpop.f32.mrb[49].mxu0 }
 0x15c   : > { %v2714_v40 = vpop.f32.mrb[48].mxu1  ;;  %v2704_v39 = vadd.f32 %v2703_v37, %v2702_v10  ;;  %v2705_v41 = vpop.f32.mrb[50].mxu0 }
 0x15d   : > { %v2715_v26 = vpop.f32.mrb[49].mxu1  ;;  %v2706_v42 = vpop.f32.mrb[51].mxu0 }
 0x15e   : > { %v1863_v43 = vadd.f32 %v2704_v39, %v1641_v28  ;;  %v2716_v45 = vadd.f32 %v2715_v26, %v2714_v40  ;;  %v2717_v47 = vpop.f32.mrb[50].mxu1  ;;  %v2707_v12 = vadd.f32 %v2706_v42, %v2705_v41 }
 0x15f   : > { %v2718_v50 = vpop.f32.mrb[51].mxu1 }
 0x160   : > { %v1867_v44 = vadd.f32 %v2716_v45, %v1645_v19  ;;  %v1864_v30 = vadd.f32 %v2707_v12, %v3466_v51  ;;  %v2719_v31 = vadd.f32 %v2718_v50, %v2717_v47  ;;  %v1925_v52 = vmul.f32 %v1863_v43, %v1863_v43 }
 0x162   : > { %v2426_v27 = vpack.c.bf16 %v1864_v30, %v1863_v43  ;;  %v1911_v54 = vadd.f32 %v1864_v30, %v1863_v43  ;;  %v1926_v55 = vmul.f32 %v1864_v30, %v1864_v30  ;;  %v2708_v28 = vpop.f32.mrb[52].mxu0  ;;  %v1868_v56 = vadd.f32 %v2719_v31, %v1646_v6 }
 0x163   : > { %v2709_v2 = vpop.f32.mrb[53].mxu0  ;;  %v1929_v4 = vmul.f32 %v1867_v44, %v1867_v44 }
 0x164   : > { %2427 = vst [vmem:[%s3477_s25] sm:$0xff] %v2426_v27   ;;  %v1933_v57 = vadd.f32 %v1926_v55, %v1925_v52  ;;  %v2720_v61 = vpop.f32.mrb[52].mxu1  ;;  %v2710_v62 = vadd.f32 %v2709_v2, %v2708_v28  ;;  %v2711_v51 = vpop.f32.mrb[54].mxu0  ;;  %v2436_v48 = vpack.c.bf16 %v1868_v56, %v1867_v44  ;;  %v1930_v60 = vmul.f32 %v1868_v56, %v1868_v56 }
 0x165   : > { %v2721_v1 = vpop.f32.mrb[53].mxu1  ;;  %v2712_v3 = vpop.f32.mrb[55].mxu0 }
 0x166   : > { %v1865_v49 = vadd.f32 %v2710_v62, %v3468_v32  ;;  %v2722_v33 = vadd.f32 %v2721_v1, %v2720_v61  ;;  %v2723_v58 = vpop.f32.mrb[54].mxu1  ;;  %v2713_v7 = vadd.f32 %v2712_v3, %v2711_v51  ;;  %2444 = vst [vmem:[%s3477_s25 + $0x10] sm:$0xff] %v2436_v48  }
 0x167   : > { %v2724_v36 = vpop.f32.mrb[55].mxu1 }
 0x168   : > { %v1912_v34 = vadd.f32 %v1911_v54, %v1865_v49  ;;  %v1927_v8 = vmul.f32 %v1865_v49, %v1865_v49  ;;  %v1869_v9 = vadd.f32 %v2722_v33, %v1647_v35  ;;  %v1866_v13 = vadd.f32 %v2713_v7, %v3470_v53 }
 0x169   : > { %v2725_v38 = vadd.f32 %v2724_v36, %v2723_v58 }
 0x16a   : > { %v1934_v46 = vadd.f32 %v1933_v57, %v1927_v8  ;;  %v2431_v63 = vpack.c.bf16 %v1866_v13, %v1865_v49  ;;  %v1913_v0 = vadd.f32 %v1912_v34, %v1866_v13  ;;  %v1928_v17 = vmul.f32 %v1866_v13, %v1866_v13 }
 0x16b   : > { %v1870_v19 = vadd.f32 %v2725_v38, %v1648_v59  ;;  %v1931_v24 = vmul.f32 %v1869_v9, %v1869_v9 }
 0x16c   : > { %2443 = vst [vmem:[%s3477_s25 + $0x8] sm:$0xff] %v2431_v63   ;;  %v1914_v32 = vadd.f32 %v1913_v0, %v1867_v44  ;;  %v1935_v6 = vadd.f32 %v1934_v46, %v1928_v17 }
 0x16d   : > { %v2441_v21 = vpack.c.bf16 %v1870_v19, %v1869_v9  ;;  %v1932_v20 = vmul.f32 %v1870_v19, %v1870_v19 }
 0x16e   : > { %v1915_v22 = vadd.f32 %v1914_v32, %v1868_v56  ;;  %v1936_v23 = vadd.f32 %v1935_v6, %v1929_v4 }
 0x16f   : > { %2445 = vst [vmem:[%s3477_s25 + $0x18] sm:$0xff] %v2441_v21  }
 0x170   : > { %v1916_v15 = vadd.f32 %v1915_v22, %v1869_v9  ;;  %v1937_v11 = vadd.f32 %v1936_v23, %v1930_v60 }
 0x172   : > { %v1917_v53 = vadd.f32 %v1916_v15, %v1870_v19  ;;  %v1938_v25 = vadd.f32 %v1937_v11, %v1931_v24 }
 0x174   : > { %v1918_v29 = vrot.slane %v1917_v53, 4  ;;  %v1939_v16 = vadd.f32 %v1938_v25, %v1932_v20 }
 0x176   : > { %v1919_v5 = vadd.f32 %v1918_v29, %v1917_v53  ;;  %v1940_v14 = vrot.slane %v1939_v16, 4 }
 0x178   : > { %v1920_v35 = vrot.slane %v1919_v5, 2  ;;  %v1941_v18 = vadd.f32 %v1940_v14, %v1939_v16 }
 0x17a   : > { %v1921_v59 = vadd.f32 %v1920_v35, %v1919_v5  ;;  %v1942_v10 = vrot.slane %v1941_v18, 2 }
 0x17c   : > { %v1922_v37 = vrot.slane %v1921_v59, 1  ;;  %v1943_v40 = vadd.f32 %v1942_v10, %v1941_v18 }
 0x17e   : > { %v1923_v39 = vadd.f32 %v1922_v37, %v1921_v59  ;;  %v1944_v41 = vrot.slane %v1943_v40, 1 }
 0x180   : > { %1947 = vst [vmem:[%s181_s30] sm:$0x1] %v1923_v39  ;;  %v1945_v26 = vadd.f32 %v1944_v41, %v1943_v40 }
 0x182   : > { %1948 = vst [vmem:[%s181_s30 + $0x1] sm:$0x1] %v1945_v26 }
 0x183 PF: > { %s14_s12 = sadd.s32 1, %s2901_s12  }
 0x184   : > { %p11_p4 = scmp.ge.s32.totalorder %s14_s12, 4  }
 0x186   :  { %13 = sbr.rel (!%p11_p4) target bundleno = 1 (0x1), region = 76 }

// kernel: patchgan_forward.16
= control target key start
LH: loop header
LB: loop body
LE: loop exit
PB: predicated region body
PF: predicated region fallthrough
CT: control target
= control target key end

     0   :  { %s357_s9 = smov 0   ;;  %s387_s0 = inlined_call_operand.vmem [shape: bf16[2,32,256], index: 0, kind: input, shape index: {}]   ;;  %s388_s1 = inlined_call_operand.vmem [shape: f32[2,256], index: 1, kind: input, shape index: {}]   ;;  %s389_s2 = inlined_call_operand.vmem [shape: bf16[2,32,256], index: 2, kind: output, shape index: {}]  }
   0x1 LB: > { %s304_s10 = sadd.s32 4294967295, %s340_s9   ;;  %p308_p0 = scmp.ge.s32.totalorder %s340_s9, 1  ;;  %s340_s9 = sphi %s357_s9, %s12_s9  }
   0x2   : > { %p112_p1 = scmp.lt.s32.totalorder %s340_s9, 3 }
   0x4   : > { %p113_p2 = pnand %p308_p0, %p112_p1 }
   0x5   : > { %p134_p3 = scmp.lt.s32.totalorder (!%p113_p2), %s304_s10, 1  ;;  %v158_v0 = vlaneseq (!%p113_p2)  ;;  %v156_v2 = vld [vmem:[%s388_s1] ss:$2 sm:$0x3] (!%p113_p2) }
   0x6   : > { %116 = sbr.rel (%p113_p2) target bundleno = 34 (0x22), region = 28  ;;  %v313_v3 = vld [vmem:[%s388_s1 + $0x1] ss:$2 sm:$0x3] (!%p113_p2) }
   0x7   : > { %v159_v1 = vshrl.u32 (!%p113_p2), %v158_v0, 7 }
   0x9   : > { %v160_v4 = vsub.s32 (!%p113_p2), 0, %v159_v1  ;;  %v164_v5 = vsub.s32 (!%p113_p2), 1, %v159_v1 }
   0xb   : > { %v161_v9 = vrot.slane (!%p113_p2), %v156_v2, %v160_v4  ;;  %v165_v10 = vrot.slane (!%p113_p2), %v156_v2, %v164_v5  ;;  %v182_v11 = vrot.slane (!%p113_p2), %v313_v3, %v160_v4  ;;  %v186_v12 = vrot.slane (!%p113_p2), %v313_v3, %v164_v5 }
   0xd   : > { %s391_s10 = smov (!%p134_p3, %s304_s10), 1 }
   0xe   : > { %s320_s15 = sshll.u32 %s391_s10, 5 }
   0xf   : > { %s138_s18 = scalar_lea.vmem %s387_s0, %s320_s15  ;;  %s143_s21 = scalar_lea.vmem %s389_s2, %s320_s15 }
  0x10   : > { %v144_v6 = vld [vmem:[%s138_s18] sm:$0xff]  ;;  %v145_v7 = vld [vmem:[%s138_s18 + $0x8] sm:$0xff]  ;;  %v146_v8 = vld [vmem:[%s138_s18 + $0x10] sm:$0xff] }
  0x11   : > { %v147_v13 = vld [vmem:[%s138_s18 + $0x18] sm:$0xff]  ;;  %v148_v14 = vunpack.c.l.bf16 %v144_v6  ;;  %v149_v15 = vunpack.c.h.bf16 %v144_v6  ;;  %v150_v16 = vunpack.c.l.bf16 %v145_v7  ;;  %v151_v17 = vunpack.c.h.bf16 %v145_v7 }
  0x12   : > { %v152_v18 = vunpack.c.l.bf16 %v146_v8  ;;  %v153_v19 = vunpack.c.h.bf16 %v146_v8  ;;  %v154_v20 = vunpack.c.l.bf16 %v147_v13  ;;  %v155_v21 = vunpack.c.h.bf16 %v147_v13 }
  0x13   : > { %v168_v22 = vmul.f32 %v161_v9, %v148_v14  ;;  %v169_v23 = vmul.f32 %v165_v10, %v149_v15  ;;  %v170_v24 = vmul.f32 %v161_v9, %v150_v16  ;;  %v171_v25 = vmul.f32 %v165_v10, %v151_v17 }
  0x14   : > { %v172_v26 = vmul.f32 %v161_v9, %v152_v18  ;;  %v173_v27 = vmul.f32 %v165_v10, %v153_v19  ;;  %v174_v28 = vmul.f32 %v161_v9, %v154_v20  ;;  %v175_v29 = vmul.f32 %v165_v10, %v155_v21 }
  0x15   : > { %v189_v30 = vadd.f32 %v182_v11, %v168_v22  ;;  %v190_v31 = vadd.f32 %v186_v12, %v169_v23  ;;  %v191_v32 = vadd.f32 %v182_v11, %v170_v24  ;;  %v192_v33 = vadd.f32 %v186_v12, %v171_v25 }
  0x16   : > { %v193_v34 = vadd.f32 %v182_v11, %v172_v26  ;;  %v194_v35 = vadd.f32 %v186_v12, %v173_v27  ;;  %v195_v36 = vadd.f32 %v182_v11, %v174_v28  ;;  %v196_v37 = vadd.f32 %v186_v12, %v175_v29 }
  0x17   : > { %vm197_vm0 = vcmp.gt.f32.partialorder %v189_v30, 0.0  ;;  %vm198_vm1 = vcmp.gt.f32.partialorder %v190_v31, 0.0  ;;  %v205_v38 = vmul.f32 0.2, %v189_v30  ;;  %v206_v39 = vmul.f32 0.2, %v190_v31 }
  0x18   : > { %vm199_vm2 = vcmp.gt.f32.partialorder %v191_v32, 0.0  ;;  %vm200_vm3 = vcmp.gt.f32.partialorder %v192_v33, 0.0  ;;  %v207_v40 = vmul.f32 0.2, %v191_v32  ;;  %v208_v41 = vmul.f32 0.2, %v192_v33 }
  0x19   : > { %v213_v42 = vsel %vm197_vm0, %v189_v30, %v205_v38  ;;  %v214_v43 = vsel %vm198_vm1, %v190_v31, %v206_v39  ;;  %vm201_vm4 = vcmp.gt.f32.partialorder %v193_v34, 0.0  ;;  %vm202_vm5 = vcmp.gt.f32.partialorder %v194_v35, 0.0 }
  0x1a   : > { %v322_v44 = vpack.c.bf16 %v214_v43, %v213_v42  ;;  %v215_v45 = vsel %vm199_vm2, %v191_v32, %v207_v40  ;;  %v216_v46 = vsel %vm200_vm3, %v192_v33, %v208_v41  ;;  %v209_v47 = vmul.f32 0.2, %v193_v34 }
  0x1b   : > { %v323_v48 = vpack.c.bf16 %v216_v46, %v215_v45  ;;  %v210_v49 = vmul.f32 0.2, %v194_v35  ;;  %vm203_vm6 = vcmp.gt.f32.partialorder %v195_v36, 0.0  ;;  %vm204_vm7 = vcmp.gt.f32.partialorder %v196_v37, 0.0 }
  0x1c   : > { %245 = vst [vmem:[%s143_s21] sm:$0xff] %v322_v44  ;;  %v217_v50 = vsel %vm201_vm4, %v193_v34, %v209_v47  ;;  %v211_v51 = vmul.f32 0.2, %v195_v36  ;;  %v212_v52 = vmul.f32 0.2, %v196_v37 }
  0x1d   : > { %246 = vst [vmem:[%s143_s21 + $0x8] sm:$0xff] %v323_v48  ;;  %v218_v53 = vsel %vm202_vm5, %v194_v35, %v210_v49 }
  0x1e   : > { %v324_v54 = vpack.c.bf16 %v218_v53, %v217_v50  ;;  %v219_v55 = vsel %vm203_vm6, %v195_v36, %v211_v51  ;;  %v220_v56 = vsel %vm204_vm7, %v196_v37, %v212_v52 }
  0x1f   : > { %v325_v57 = vpack.c.bf16 %v220_v56, %v219_v55 }
  0x20   : > { %247 = vst [vmem:[%s143_s21 + $0x10] sm:$0xff] %v324_v54 }
  0x21   : > { %248 = vst [vmem:[%s143_s21 + $0x18] sm:$0xff] %v325_v57 }
  0x22 PF: > { %s12_s9 = sadd.s32 1, %s340_s9  }
  0x23   : > { %p9_p4 = scmp.ge.s32.totalorder %s12_s9, 4  }
  0x25   :  { %11 = sbr.rel (!%p9_p4) target bundleno = 1 (0x1), region = 59 }

// kernel: patchgan_forward.15
= control target key start
LH: loop header
LB: loop body
LE: loop exit
PB: predicated region body
PF: predicated region fallthrough
CT: control target
= control target key end

     0   :  { %s6028_s12 = smov 0   ;;  %s7698_s0 = inlined_call_operand.vmem [shape: bf16[2,44,512], index: 0, kind: input, shape index: {}]   ;;  %s7699_s1 = inlined_call_operand.vmem [shape: bf16[7,512,256], index: 1, kind: input, shape index: {}]   ;;  %s7700_s2 = inlined_call_operand.vmem [shape: bf16[2,32,256], index: 2, kind: output, shape index: {0}]   ;;  %s7701_s3 = inlined_call_operand.vmem [shape: f32[2,2,256], index: 3, kind: output, shape index: {1}]  }
   0x1 LB: > { %s4230_s13 = sadd.s32 4294967295, %s6005_s12   ;;  %p4234_p0 = scmp.ge.s32.totalorder %s6005_s12, 1  ;;  %s6005_s12 = sphi %s6028_s12, %s14_s12  }
   0x2   : > { %p140_p1 = scmp.lt.s32.totalorder %s6005_s12, 3 }
   0x4   : > { %p141_p2 = pnand %p4234_p0, %p140_p1 }
   0x5   : > { %v5259_v0 = vld [vmem:[%s7699_s1 + $0x204] ss:$8 sps:$4 sm:$0xff] (!%p141_p2)   ;;  %v5263_v2 = vld [vmem:[%s7699_s1 + $0x200] ss:$8 sps:$4 sm:$0xff] (!%p141_p2)   ;;  %v5265_v4 = vld [vmem:[%s7699_s1 + $0x214] ss:$8 sps:$4 sm:$0xff] (!%p141_p2)  }
   0x6   : > { %144 = sbr.rel (%p141_p2) target bundleno = 703 (0x2bf), region = 28  ;;  %v5261_v1 = vld [vmem:[%s7699_s1 + $0x704] ss:$8 sps:$4 sm:$0xff] (!%p141_p2)   ;;  %716 = vmatprep.subr.bf16.mxu1 (!%p141_p2), %v5259_v0  ;;  %v5264_v3 = vld [vmem:[%s7699_s1 + $0x700] ss:$8 sps:$4 sm:$0xff] (!%p141_p2)   ;;  %p169_p3 = scmp.lt.s32.totalorder (!%p141_p2), %s4230_s13, 1 }
   0x7   : > { %2309 = vmatprep.subr.bf16.mxu0 (!%p141_p2), %v5261_v1  ;;  %717 = vmatpush1.bf16.msra.mxu1 (!%p141_p2), %v5263_v2  ;;  %v5267_v5 = vld [vmem:[%s7699_s1 + $0x714] ss:$8 sps:$4 sm:$0xff] (!%p141_p2)   ;;  %v5269_v6 = vld [vmem:[%s7699_s1 + $0x210] ss:$8 sps:$4 sm:$0xff] (!%p141_p2)   ;;  %v5271_v8 = vld [vmem:[%s7699_s1 + $0x224] ss:$8 sps:$4 sm:$0xff] (!%p141_p2)  }
   0x8   : > { %2310 = vmatpush1.bf16.msra.mxu0 (!%p141_p2), %v5264_v3  ;;  %718 = vmatprep.subr.bf16.mxu1 (!%p141_p2), %v5265_v4  ;;  %v5270_v7 = vld [vmem:[%s7699_s1 + $0x710] ss:$8 sps:$4 sm:$0xff] (!%p141_p2)   ;;  %v5273_v9 = vld [vmem:[%s7699_s1 + $0x724] ss:$8 sps:$4 sm:$0xff] (!%p141_p2)   ;;  %v5275_v10 = vld [vmem:[%s7699_s1 + $0x220] ss:$8 sps:$4 sm:$0xff] (!%p141_p2)  }
   0x9   : > { %2311 = vmatprep.subr.bf16.mxu0 (!%p141_p2), %v5267_v5  ;;  %v5276_v11 = vld [vmem:[%s7699_s1 + $0x720] ss:$8 sps:$4 sm:$0xff] (!%p141_p2)   ;;  %v5277_v12 = vld [vmem:[%s7699_s1 + $0x234] ss:$8 sps:$4 sm:$0xff] (!%p141_p2)   ;;  %v5281_v14 = vld [vmem:[%s7699_s1 + $0x230] ss:$8 sps:$4 sm:$0xff] (!%p141_p2)  }
   0xa   : > { %v5279_v13 = vld [vmem:[%s7699_s1 + $0x734] ss:$8 sps:$4 sm:$0xff] (!%p141_p2)   ;;  %v5282_v15 = vld [vmem:[%s7699_s1 + $0x730] ss:$8 sps:$4 sm:$0xff] (!%p141_p2)   ;;  %v5283_v16 = vld [vmem:[%s7699_s1 + $0x244] ss:$8 sps:$4 sm:$0xff] (!%p141_p2)  }
   0xb   : > { %719 = vmatpush1.bf16.msra.mxu1 (!%p141_p2), %v5269_v6  ;;  %v5285_v17 = vld [vmem:[%s7699_s1 + $0x744] ss:$8 sps:$4 sm:$0xff] (!%p141_p2)   ;;  %v5287_v18 = vld [vmem:[%s7699_s1 + $0x240] ss:$8 sps:$4 sm:$0xff] (!%p141_p2)   ;;  %v5289_v20 = vld [vmem:[%s7699_s1 + $0x254] ss:$8 sps:$4 sm:$0xff] (!%p141_p2)  }
   0xc   : > { %2312 = vmatpush1.bf16.msra.mxu0 (!%p141_p2), %v5270_v7  ;;  %720 = vmatprep.subr.bf16.mxu1 (!%p141_p2), %v5271_v8  ;;  %v5288_v19 = vld [vmem:[%s7699_s1 + $0x740] ss:$8 sps:$4 sm:$0xff] (!%p141_p2)   ;;  %v5291_v21 = vld [vmem:[%s7699_s1 + $0x754] ss:$8 sps:$4 sm:$0xff] (!%p141_p2)   ;;  %v5293_v22 = vld [vmem:[%s7699_s1 + $0x250] ss:$8 sps:$4 sm:$0xff] (!%p141_p2)  }
   0xd   : > { %2313 = vmatprep.subr.bf16.mxu0 %v5273_v9  ;;  %v5294_v23 = vld [vmem:[%s7699_s1 + $0x750] ss:$8 sps:$4 sm:$0xff]   ;;  %v5295_v24 = vld [vmem:[%s7699_s1 + $0x264] ss:$8 sps:$4 sm:$0xff]   ;;  %v5299_v26 = vld [vmem:[%s7699_s1 + $0x260] ss:$8 sps:$4 sm:$0xff]  }
   0xe   : > { %v5297_v25 = vld [vmem:[%s7699_s1 + $0x764] ss:$8 sps:$4 sm:$0xff]   ;;  %v5300_v27 = vld [vmem:[%s7699_s1 + $0x760] ss:$8 sps:$4 sm:$0xff]   ;;  %v5301_v28 = vld [vmem:[%s7699_s1 + $0x274] ss:$8 sps:$4 sm:$0xff]  }
   0xf   : > { %721 = vmatpush1.bf16.msra.mxu1 %v5275_v10  ;;  %v5303_v29 = vld [vmem:[%s7699_s1 + $0x774] ss:$8 sps:$4 sm:$0xff]   ;;  %v5305_v30 = vld [vmem:[%s7699_s1 + $0x270] ss:$8 sps:$4 sm:$0xff]   ;;  %v5307_v32 = vld [vmem:[%s7699_s1 + $0x284] ss:$8 sps:$4 sm:$0xff]  }
  0x10   : > { %2314 = vmatpush1.bf16.msra.mxu0 %v5276_v11  ;;  %722 = vmatprep.subr.bf16.mxu1 %v5277_v12  ;;  %v5306_v31 = vld [vmem:[%s7699_s1 + $0x770] ss:$8 sps:$4 sm:$0xff]   ;;  %v5309_v33 = vld [vmem:[%s7699_s1 + $0x784] ss:$8 sps:$4 sm:$0xff]   ;;  %v5311_v34 = vld [vmem:[%s7699_s1 + $0x280] ss:$8 sps:$4 sm:$0xff]  }
  0x11   : > { %2315 = vmatprep.subr.bf16.mxu0 %v5279_v13  ;;  %v5312_v35 = vld [vmem:[%s7699_s1 + $0x780] ss:$8 sps:$4 sm:$0xff]   ;;  %s7703_s13 = smov (!%p169_p3, %s4230_s13), 1  ;;  %v5313_v36 = vld [vmem:[%s7699_s1 + $0x294] ss:$8 sps:$4 sm:$0xff]   ;;  %vm367_vm0 = vcmask 1046528  }
  0x12   : > { %v5315_v37 = vld [vmem:[%s7699_s1 + $0x794] ss:$8 sps:$4 sm:$0xff]   ;;  %v5317_v38 = vld [vmem:[%s7699_s1 + $0x290] ss:$8 sps:$4 sm:$0xff]   ;;  %s5249_s17 = smul.u32 96, %s7703_s13  ;;  %vm1907_vm1 = vcmask 1044480  }
  0x13   : > { %723 = vmatpush1.bf16.msra.mxu1 %v5281_v14  ;;  %v5318_v39 = vld [vmem:[%s7699_s1 + $0x790] ss:$8 sps:$4 sm:$0xff]   ;;  %v5319_v40 = vld [vmem:[%s7699_s1 + $0x2a4] ss:$8 sps:$4 sm:$0xff]   ;;  %v5323_v42 = vld [vmem:[%s7699_s1 + $0x2a0] ss:$8 sps:$4 sm:$0xff]  }
  0x14   : > { %2316 = vmatpush1.bf16.msra.mxu0 %v5282_v15  ;;  %724 = vmatprep.subr.bf16.mxu1 %v5283_v16  ;;  %v5321_v41 = vld [vmem:[%s7699_s1 + $0x7a4] ss:$8 sps:$4 sm:$0xff]   ;;  %v5324_v43 = vld [vmem:[%s7699_s1 + $0x7a0] ss:$8 sps:$4 sm:$0xff]   ;;  %s6178_s30 = scalar_lea.vmem %s7698_s0, %s5249_s17  ;;  %v5325_v44 = vld [vmem:[%s7699_s1 + $0x2b4] ss:$8 sps:$4 sm:$0xff]  }
  0x15   : > { %2317 = vmatprep.subr.bf16.mxu0 %v5285_v17  ;;  %v5327_v45 = vld [vmem:[%s7699_s1 + $0x7b4] ss:$8 sps:$4 sm:$0xff]   ;;  %v5329_v46 = vld [vmem:[%s7699_s1 + $0x2b0] ss:$8 sps:$4 sm:$0xff]   ;;  %v6196_v49 = vld [vmem:[%s6178_s30 + $0x20] sm:$0xff]  ;;  %vm1355_vm2 = vcmask 1045504  }
  0x16   : > { %v5330_v47 = vld [vmem:[%s7699_s1 + $0x7b0] ss:$8 sps:$4 sm:$0xff]   ;;  %v256_v51 = vld [vmem:[%s6178_s30] sm:$0xee]  ;;  %v6217_v57 = vld [vmem:[%s6178_s30 + $0x28] sm:$0xff]  ;;  %s5139_s21 = sshll.u32 %s7703_s13, 5 }
  0x17   : > { %725 = vmatpush1.bf16.msra.mxu1 %v5287_v18  ;;  %v6193_v48 = vld [vmem:[%s6178_s30 + $0x10] sm:$0xff]  ;;  %v5331_v52 = vld [vmem:[%s7699_s1 + $0x2c4] ss:$8 sps:$4 sm:$0xff]   ;;  %v6214_v56 = vld [vmem:[%s6178_s30 + $0x18] sm:$0xff]  ;;  %s7685_s24 = scalar_lea.vmem %s7700_s2, %s5139_s21  ;;  %s5140_s25 = sshll.u32 %s7703_s13, 2 }
  0x18   : > { %2318 = vmatpush1.bf16.msra.mxu0 %v5288_v19  ;;  %726 = vmatprep.subr.bf16.mxu1 %v5289_v20  ;;  %v6199_v50 = vld [vmem:[%s6178_s30 + $0x30] sm:$0xff]  ;;  %v4305_v53 = vcombine.high %v256_v51, %v6193_v48  ;;  %v5333_v55 = vld [vmem:[%s7699_s1 + $0x7c4] ss:$8 sps:$4 sm:$0xff]   ;;  %v191_v60 = vld [vmem:[%s6178_s30 + $0x38] sm:$0xff]  ;;  %v4304_v13 = vcombine.low %v256_v51, %v6193_v48  ;;  %s183_s28 = scalar_lea.vmem %s7701_s3, %s5140_s25 }
  0x19   : > { %2319 = vmatprep.subr.bf16.mxu0 %v5291_v21  ;;  %v6208_v54 = vcombine.high %v6196_v49, %v6199_v50  ;;  %v1819_v61 = vld [vmem:[%s6178_s30 + $0x8] sm:$0x88]  ;;  %v6229_v0 = vcombine.high %v6217_v57, %v191_v60  ;;  %v5337_v2 = vld [vmem:[%s7699_s1 + $0x2d4] ss:$8 sps:$4 sm:$0xff]   ;;  %v5341_v7 = vld [vmem:[%s7699_s1 + $0x2d0] ss:$8 sps:$4 sm:$0xff]   ;;  %v6266_v15 = vcombine.low %v6196_v49, %v6199_v50  ;;  %v6269_v16 = vcombine.low %v6217_v57, %v191_v60 }
  0x1a   : > { %v371_v58 = vrot.slane %v4305_v53, 1  ;;  %v5335_v62 = vld [vmem:[%s7699_s1 + $0x2c0] ss:$8 sps:$4 sm:$0xff]   ;;  %v4651_v1 = vcombine.high %v1819_v61, %v6214_v56  ;;  %v5339_v4 = vld [vmem:[%s7699_s1 + $0x7d4] ss:$8 sps:$4 sm:$0xff]   ;;  %v4650_v17 = vcombine.low %v1819_v61, %v6214_v56 }
  0x1b   : > { %727 = vmatpush1.bf16.msra.mxu1 %v5293_v22  ;;  %v372_v59 = vrot.slane %v6208_v54, 1  ;;  %v5336_v63 = vld [vmem:[%s7699_s1 + $0x7c0] ss:$8 sps:$4 sm:$0xff]   ;;  %v1918_v6 = vrot.slane %v6229_v0, 3  ;;  %v5342_v9 = vld [vmem:[%s7699_s1 + $0x7d0] ss:$8 sps:$4 sm:$0xff]  }
  0x1c   : > { %2320 = vmatpush1.bf16.msra.mxu0 %v5294_v23  ;;  %728 = vmatprep.subr.bf16.mxu1 %v5295_v24  ;;  %v1917_v5 = vrot.slane %v4651_v1, 3  ;;  %v5343_v10 = vld [vmem:[%s7699_s1 + $0x2e4] ss:$8 sps:$4 sm:$0xff]   ;;  %v5347_v12 = vld [vmem:[%s7699_s1 + $0x2e0] ss:$8 sps:$4 sm:$0xff]   ;;  %v368_v22 = vrot.slane %v4304_v13, 1 }
  0x1d   : > { %2321 = vmatprep.subr.bf16.mxu0 %v5297_v25  ;;  %v373_v3 = vsel %vm367_vm0, %v371_v58, %v372_v59  ;;  %v5345_v11 = vld [vmem:[%s7699_s1 + $0x7e4] ss:$8 sps:$4 sm:$0xff]   ;;  %v5348_v14 = vld [vmem:[%s7699_s1 + $0x7e0] ss:$8 sps:$4 sm:$0xff]   ;;  %v5349_v18 = vld [vmem:[%s7699_s1 + $0x2f4] ss:$8 sps:$4 sm:$0xff]  }
  0x1e   : > { %748 = vmatprep.mubr.bf16.mxu1 %v373_v3  ;;  %v1919_v8 = vsel %vm1907_vm1, %v1917_v5, %v1918_v6  ;;  %v5351_v19 = vld [vmem:[%s7699_s1 + $0x7f4] ss:$8 sps:$4 sm:$0xff]   ;;  %v5353_v20 = vld [vmem:[%s7699_s1 + $0x2f0] ss:$8 sps:$4 sm:$0xff]   ;;  %v369_v23 = vrot.slane %v6266_v15, 1  ;;  %v1914_v24 = vrot.slane %v4650_v17, 3 }
  0x1f   : > { %729 = vmatpush1.bf16.msra.mxu1 %v5299_v26  ;;  %2341 = vmatprep.mubr.bf16.mxu0 %v1919_v8  ;;  %v5354_v21 = vld [vmem:[%s7699_s1 + $0x7f0] ss:$8 sps:$4 sm:$0xff]   ;;  %v1915_v25 = vrot.slane %v6269_v16, 3  ;;  %v5359_v26 = vld [vmem:[%s7699_s1 + $0x304] ss:$8 sps:$4 sm:$0xff]  }
  0x20   : > { %2322 = vmatpush1.bf16.msra.mxu0 %v5300_v27  ;;  %730 = vmatprep.subr.bf16.mxu1 %v5301_v28  ;;  %v5364_v27 = vld [vmem:[%s7699_s1 + $0x804] ss:$8 sps:$4 sm:$0xff]   ;;  %v5357_v28 = vld [vmem:[%s7699_s1 + $0x300] ss:$8 sps:$4 sm:$0xff]   ;;  %v5395_v51 = vld [vmem:[%s7699_s1 + $0x354] ss:$8 sps:$4 sm:$0xff]  }
  0x21   : > { %2323 = vmatprep.subr.bf16.mxu0 %v5303_v29  ;;  %v5362_v29 = vld [vmem:[%s7699_s1 + $0x800] ss:$8 sps:$4 sm:$0xff]   ;;  %v5393_v53 = vld [vmem:[%s7699_s1 + $0x350] ss:$8 sps:$4 sm:$0xff]   ;;  %v5401_v60 = vld [vmem:[%s7699_s1 + $0x364] ss:$8 sps:$4 sm:$0xff]  }
  0x22   : > { %v5396_v58 = vld [vmem:[%s7699_s1 + $0x850] ss:$8 sps:$4 sm:$0xff]   ;;  %v5404_v1 = vld [vmem:[%s7699_s1 + $0x864] ss:$8 sps:$4 sm:$0xff]   ;;  %v5402_v8 = vld [vmem:[%s7699_s1 + $0x860] ss:$8 sps:$4 sm:$0xff]  }
  0x23   : > { %731 = vmatpush1.bf16.msra.mxu1 %v5305_v30  ;;  %v370_v30 = vsel %vm367_vm0, %v368_v22, %v369_v23  ;;  %v5408_v22 = vld [vmem:[%s7699_s1 + $0x870] ss:$8 sps:$4 sm:$0xff]  }
  0x24   : > { %2324 = vmatpush1.bf16.msra.mxu0 %v5306_v31  ;;  %732 = vmatprep.subr.bf16.mxu1 %v5307_v32  ;;  %v1916_v31 = vsel %vm1907_vm1, %v1914_v24, %v1915_v25  ;;  %v5371_v32 = vld [vmem:[%s7699_s1 + $0x314] ss:$8 sps:$4 sm:$0xff]   ;;  %v5413_v24 = vld [vmem:[%s7699_s1 + $0x384] ss:$8 sps:$4 sm:$0xff]  }
  0x25   : > { %2325 = vmatprep.subr.bf16.mxu0 %v5309_v33  ;;  %v5374_v33 = vld [vmem:[%s7699_s1 + $0x814] ss:$8 sps:$4 sm:$0xff]  }
  0x27   : > { %733 = vmatpush1.bf16.msra.mxu1 %v5311_v34  ;;  %v5369_v34 = vld [vmem:[%s7699_s1 + $0x310] ss:$8 sps:$4 sm:$0xff]  }
  0x28   : > { %2326 = vmatpush1.bf16.msra.mxu0 %v5312_v35  ;;  %734 = vmatprep.subr.bf16.mxu1 %v5313_v36  ;;  %v5372_v35 = vld [vmem:[%s7699_s1 + $0x810] ss:$8 sps:$4 sm:$0xff]   ;;  %v5377_v36 = vld [vmem:[%s7699_s1 + $0x324] ss:$8 sps:$4 sm:$0xff]  }
  0x29   : > { %2327 = vmatprep.subr.bf16.mxu0 %v5315_v37  ;;  %v5380_v37 = vld [vmem:[%s7699_s1 + $0x824] ss:$8 sps:$4 sm:$0xff]  }
  0x2b   : > { %735 = vmatpush1.bf16.msra.mxu1 %v5317_v38  ;;  %v5375_v38 = vld [vmem:[%s7699_s1 + $0x320] ss:$8 sps:$4 sm:$0xff]  }
  0x2c   : > { %2328 = vmatpush1.bf16.msra.mxu0 %v5318_v39  ;;  %736 = vmatprep.subr.bf16.mxu1 %v5319_v40  ;;  %v5378_v39 = vld [vmem:[%s7699_s1 + $0x820] ss:$8 sps:$4 sm:$0xff]   ;;  %v5383_v40 = vld [vmem:[%s7699_s1 + $0x334] ss:$8 sps:$4 sm:$0xff]  }
  0x2d   : > { %2329 = vmatprep.subr.bf16.mxu0 %v5321_v41  ;;  %v5386_v41 = vld [vmem:[%s7699_s1 + $0x834] ss:$8 sps:$4 sm:$0xff]  }
  0x2f   : > { %737 = vmatpush1.bf16.msra.mxu1 %v5323_v42  ;;  %v5381_v42 = vld [vmem:[%s7699_s1 + $0x330] ss:$8 sps:$4 sm:$0xff]  }
  0x30   : > { %2330 = vmatpush1.bf16.msra.mxu0 %v5324_v43  ;;  %738 = vmatprep.subr.bf16.mxu1 %v5325_v44  ;;  %v5384_v43 = vld [vmem:[%s7699_s1 + $0x830] ss:$8 sps:$4 sm:$0xff]   ;;  %v5389_v44 = vld [vmem:[%s7699_s1 + $0x344] ss:$8 sps:$4 sm:$0xff]  }
  0x31   : > { %2331 = vmatprep.subr.bf16.mxu0 %v5327_v45  ;;  %v5392_v45 = vld [vmem:[%s7699_s1 + $0x844] ss:$8 sps:$4 sm:$0xff]  }
  0x33   : > { %739 = vmatpush1.bf16.msra.mxu1 %v5329_v46  ;;  %v5387_v46 = vld [vmem:[%s7699_s1 + $0x340] ss:$8 sps:$4 sm:$0xff]  }
  0x34   : > { %2332 = vmatpush1.bf16.msra.mxu0 %v5330_v47  ;;  %740 = vmatprep.subr.bf16.mxu1 %v5331_v52  ;;  %v5390_v47 = vld [vmem:[%s7699_s1 + $0x840] ss:$8 sps:$4 sm:$0xff]   ;;  %v5398_v52 = vld [vmem:[%s7699_s1 + $0x854] ss:$8 sps:$4 sm:$0xff]  }
  0x35   : > { %2333 = vmatprep.subr.bf16.mxu0 %v5333_v55  ;;  %v258_v55 = vld [vmem:[%s6178_s30 + $0x40] sm:$0x11] }
  0x36   : > { %v4313_v61 = vcombine.high %v258_v55, %v258_v55 }
  0x37   : > { %741 = vmatpush1.bf16.msra.mxu1 %v5335_v62  ;;  %v1821_v62 = vld [vmem:[%s6178_s30 + $0x48] sm:$0x77] }
  0x38   : > { %2334 = vmatpush1.bf16.msra.mxu0 %v5336_v63  ;;  %742 = vmatprep.subr.bf16.mxu1 %v5337_v2  ;;  %v4312_v63 = vcombine.low %v258_v55, %v258_v55  ;;  %v4655_v2 = vcombine.high %v1821_v62, %v1821_v62  ;;  %v4654_v3 = vcombine.low %v1821_v62, %v1821_v62  ;;  %v5448_v55 = vld [vmem:[%s7699_s1 + $0x3e0] ss:$8 sps:$4 sm:$0xff]   ;;  %v5462_v62 = vld [vmem:[%s7699_s1 + $0x8f4] ss:$8 sps:$4 sm:$0xff]  }
  0x39   : > { %2335 = vmatprep.subr.bf16.mxu0 %v5339_v4  ;;  %v382_v4 = vrot.slane %v4313_v61, 1  ;;  %v5459_v61 = vld [vmem:[%s7699_s1 + $0x3f4] ss:$8 sps:$4 sm:$0xff]  }
  0x3a   : > { %v380_v5 = vrot.slane %v4312_v63, 1  ;;  %v5457_v63 = vld [vmem:[%s7699_s1 + $0x3f0] ss:$8 sps:$4 sm:$0xff]  }
  0x3b   : > { %743 = vmatpush1.bf16.msra.mxu1 %v5341_v7  ;;  %v5399_v7 = vld [vmem:[%s7699_s1 + $0x360] ss:$8 sps:$4 sm:$0xff]  }
  0x3c   : > { %2336 = vmatpush1.bf16.msra.mxu0 %v5342_v9  ;;  %744 = vmatprep.subr.bf16.mxu1 %v5343_v10  ;;  %v1926_v9 = vrot.slane %v4655_v2, 3  ;;  %v1924_v10 = vrot.slane %v4654_v3, 3  ;;  %v381_v13 = vsel %vm367_vm0, %v369_v23, %v380_v5  ;;  %v375_v3 = vrot.slane %v6269_v16, 1  ;;  %v5471_v5 = vld [vmem:[%s7699_s1 + $0x904] ss:$8 sps:$4 sm:$0xff]  }
  0x3d   : > { %2337 = vmatprep.subr.bf16.mxu0 %v5345_v11  ;;  %v5407_v11 = vld [vmem:[%s7699_s1 + $0x374] ss:$8 sps:$4 sm:$0xff]  }
  0x3e   : > { %v1927_v17 = vsel %vm1907_vm1, %v1918_v6, %v1926_v9  ;;  %v5405_v6 = vld [vmem:[%s7699_s1 + $0x370] ss:$8 sps:$4 sm:$0xff]   ;;  %v259_v9 = vld [vmem:[%s6178_s30 + $0x48] sm:$0x11] }
  0x3f   : > { %745 = vmatpush1.bf16.msra.mxu1 %v5347_v12  ;;  %v383_v12 = vsel %vm367_vm0, %v372_v59, %v382_v4  ;;  %v5467_v4 = vld [vmem:[%s7699_s1 + $0x4] ss:$8 sps:$4 sm:$0xff]  }
  0x40   : > { %2338 = vmatpush1.bf16.msra.mxu0 %v5348_v14  ;;  %746 = vmatprep.subr.bf16.mxu1 %v5349_v18  ;;  %v5410_v14 = vld [vmem:[%s7699_s1 + $0x874] ss:$8 sps:$4 sm:$0xff]   ;;  %v1925_v18 = vsel %vm1907_vm1, %v1915_v25, %v1924_v10  ;;  %v5416_v25 = vld [vmem:[%s7699_s1 + $0x884] ss:$8 sps:$4 sm:$0xff]   ;;  %v5469_v10 = vld [vmem:[%s7699_s1 + $0x900] ss:$8 sps:$4 sm:$0xff]  }
  0x41   : > { %2339 = vmatprep.subr.bf16.mxu0 %v5351_v19  ;;  %v6397_v19 = vld [vmem:[%s6178_s30 + $0x8] sm:$0xee] }
  0x42   : > { %v4307_v59 = vcombine.high %v6397_v19, %v6214_v56 }
  0x43   : > { %747 = vmatpush1.bf16.msra.mxu1 %v5353_v20  ;;  %v378_v20 = vrot.slane %v6229_v0, 1 }
  0x44   : > { %2340 = vmatpush1.bf16.msra.mxu0 %v5354_v21  ;;  %769 = vmatprep.subr.bf16.mxu1 %v5359_v26  ;;  %v4785_v21 = vcombine.high %v6193_v48, %v6196_v49  ;;  %v377_v23 = vrot.slane %v4307_v59, 1  ;;  %v5473_v59 = vld [vmem:[%s7699_s1 + $0x10] ss:$8 sps:$4 sm:$0xff]  }
  0x45   : > { %2779 = vmatprep.subr.bf16.mxu0 %v5364_v27  ;;  %v5411_v27 = vld [vmem:[%s7699_s1 + $0x380] ss:$8 sps:$4 sm:$0xff]  }
  0x46   : > { %749 = vmatmul.mubr.bf16.vlgmr.msra.gmra.mrb[0].mxu1 %v370_v30  ;;  %v379_v26 = vsel %vm367_vm0, %v377_v23, %v378_v20  ;;  %v5422_v30 = vld [vmem:[%s7699_s1 + $0x894] ss:$8 sps:$4 sm:$0xff]  }
  0x47   : > { %2342 = vmatmul.mubr.bf16.vlgmr.msra.gmra.mrb[0].mxu0 %v1916_v31  ;;  %770 = vmatpush1.bf16.msra.mxu1 %v5357_v28  ;;  %v5414_v28 = vld [vmem:[%s7699_s1 + $0x880] ss:$8 sps:$4 sm:$0xff]   ;;  %v5417_v31 = vld [vmem:[%s7699_s1 + $0x390] ss:$8 sps:$4 sm:$0xff]  }
  0x48   : > { %2780 = vmatpush1.bf16.msra.mxu0 %v5362_v29  ;;  %771 = vmatprep.subr.bf16.mxu1 %v5371_v32  ;;  %v5419_v29 = vld [vmem:[%s7699_s1 + $0x394] ss:$8 sps:$4 sm:$0xff]   ;;  %v5420_v32 = vld [vmem:[%s7699_s1 + $0x890] ss:$8 sps:$4 sm:$0xff]  }
  0x49   : > { %2781 = vmatprep.subr.bf16.mxu0 %v5374_v33  ;;  %758 = vmatprep.mubr.bf16.mxu1 %v383_v12  ;;  %v5425_v33 = vld [vmem:[%s7699_s1 + $0x3a4] ss:$8 sps:$4 sm:$0xff]   ;;  %v5475_v12 = vld [vmem:[%s7699_s1 + $0x14] ss:$8 sps:$4 sm:$0xff]  }
  0x4a   : > { %2351 = vmatprep.mubr.bf16.mxu0 %v1927_v17  ;;  %v4314_v17 = vcombine.low %v259_v9, %v259_v9 }
  0x4b   : > { %772 = vmatpush1.bf16.msra.mxu1 %v5369_v34  ;;  %v5428_v34 = vld [vmem:[%s7699_s1 + $0x8a4] ss:$8 sps:$4 sm:$0xff]  }
  0x4c   : > { %2782 = vmatpush1.bf16.msra.mxu0 %v5372_v35  ;;  %773 = vmatprep.subr.bf16.mxu1 %v5377_v36  ;;  %v5423_v35 = vld [vmem:[%s7699_s1 + $0x3a0] ss:$8 sps:$4 sm:$0xff]   ;;  %v384_v23 = vrot.slane %v4314_v17, 1  ;;  %v5545_v17 = vld [vmem:[%s7699_s1 + $0xd0] ss:$8 sps:$4 sm:$0xff]  }
  0x4d   : > { %2783 = vmatprep.subr.bf16.mxu0 %v5380_v37  ;;  %v5426_v36 = vld [vmem:[%s7699_s1 + $0x8a0] ss:$8 sps:$4 sm:$0xff]   ;;  %v5431_v37 = vld [vmem:[%s7699_s1 + $0x3b4] ss:$8 sps:$4 sm:$0xff]  }
  0x4e   : > { %759 = vmatmul.mubr.bf16.gmra.mrb[4].mxu1 %v381_v13  ;;  %v4315_v13 = vcombine.high %v259_v9, %v259_v9  ;;  %v5544_v9 = vld [vmem:[%s7699_s1 + $0x9c4] ss:$8 sps:$4 sm:$0xff]  }
  0x4f   : > { %774 = vmatpush1.bf16.msra.mxu1 %v5375_v38  ;;  %2352 = vmatmul.mubr.bf16.gmra.mrb[4].mxu0 %v1925_v18  ;;  %v5434_v38 = vld [vmem:[%s7699_s1 + $0x8b4] ss:$8 sps:$4 sm:$0xff]  }
  0x50   : > { %2784 = vmatpush1.bf16.msra.mxu0 %v5378_v39  ;;  %775 = vmatprep.subr.bf16.mxu1 %v5383_v40  ;;  %v5429_v39 = vld [vmem:[%s7699_s1 + $0x3b0] ss:$8 sps:$4 sm:$0xff]   ;;  %v386_v18 = vrot.slane %v4315_v13, 1  ;;  %v5550_v13 = vld [vmem:[%s7699_s1 + $0x9d4] ss:$8 sps:$4 sm:$0xff]  }
  0x51   : > { %2785 = vmatprep.subr.bf16.mxu0 %v5386_v41  ;;  %2811 = vmatprep.mubr.bf16.mxu0 %v4785_v21  ;;  %v5432_v40 = vld [vmem:[%s7699_s1 + $0x8b0] ss:$8 sps:$4 sm:$0xff]   ;;  %v5437_v41 = vld [vmem:[%s7699_s1 + $0x3c4] ss:$8 sps:$4 sm:$0xff]  }
  0x52   : > { %801 = vmatprep.mubr.bf16.mxu1 %v379_v26  ;;  %v5476_v21 = vld [vmem:[%s7699_s1 + $0x910] ss:$8 sps:$4 sm:$0xff]   ;;  %v5482_v26 = vld [vmem:[%s7699_s1 + $0x920] ss:$8 sps:$4 sm:$0xff]  }
  0x53   : > { %776 = vmatpush1.bf16.msra.mxu1 %v5381_v42  ;;  %v5440_v42 = vld [vmem:[%s7699_s1 + $0x8c4] ss:$8 sps:$4 sm:$0xff]  }
  0x54   : > { %2786 = vmatpush1.bf16.msra.mxu0 %v5384_v43  ;;  %777 = vmatprep.subr.bf16.mxu1 %v5389_v44  ;;  %v5435_v43 = vld [vmem:[%s7699_s1 + $0x3c0] ss:$8 sps:$4 sm:$0xff]  }
  0x55   : > { %2787 = vmatprep.subr.bf16.mxu0 %v5392_v45  ;;  %v5438_v44 = vld [vmem:[%s7699_s1 + $0x8c0] ss:$8 sps:$4 sm:$0xff]   ;;  %v5443_v45 = vld [vmem:[%s7699_s1 + $0x3d4] ss:$8 sps:$4 sm:$0xff]  }
  0x57   : > { %778 = vmatpush1.bf16.msra.mxu1 %v5387_v46  ;;  %v5446_v46 = vld [vmem:[%s7699_s1 + $0x8d4] ss:$8 sps:$4 sm:$0xff]  }
  0x58   : > { %2788 = vmatpush1.bf16.msra.mxu0 %v5390_v47  ;;  %779 = vmatprep.subr.bf16.mxu1 %v5395_v51  ;;  %v5441_v47 = vld [vmem:[%s7699_s1 + $0x3d0] ss:$8 sps:$4 sm:$0xff]  }
  0x59   : > { %2789 = vmatprep.subr.bf16.mxu0 %v5398_v52  ;;  %v5444_v51 = vld [vmem:[%s7699_s1 + $0x8d0] ss:$8 sps:$4 sm:$0xff]   ;;  %v5450_v52 = vld [vmem:[%s7699_s1 + $0x3e4] ss:$8 sps:$4 sm:$0xff]  }
  0x5b   : > { %780 = vmatpush1.bf16.msra.mxu1 %v5393_v53  ;;  %v5454_v53 = vld [vmem:[%s7699_s1 + $0x8e4] ss:$8 sps:$4 sm:$0xff]  }
  0x5c   : > { %2790 = vmatpush1.bf16.msra.mxu0 %v5396_v58  ;;  %781 = vmatprep.subr.bf16.mxu1 %v5401_v60  ;;  %v5452_v58 = vld [vmem:[%s7699_s1 + $0x8e0] ss:$8 sps:$4 sm:$0xff]   ;;  %v4306_v60 = vcombine.low %v6397_v19, %v6214_v56 }
  0x5d   : > { %2791 = vmatprep.subr.bf16.mxu0 %v5404_v1  ;;  %v5460_v1 = vld [vmem:[%s7699_s1 + $0x8f0] ss:$8 sps:$4 sm:$0xff]  }
  0x5e   : > { %v374_v2 = vrot.slane %v4306_v60, 1  ;;  %v5521_v60 = vld [vmem:[%s7699_s1 + $0x90] ss:$8 sps:$4 sm:$0xff]  }
  0x5f   : > { %782 = vmatpush1.bf16.msra.mxu1 %v5399_v7  ;;  %v5465_v7 = vld [vmem:[%s7699_s1] ss:$8 sps:$4 sm:$0xff]  }
  0x60   : > { %2792 = vmatpush1.bf16.msra.mxu0 %v5402_v8  ;;  %783 = vmatprep.subr.bf16.mxu1 %v5407_v11  ;;  %v4784_v8 = vcombine.low %v6193_v48, %v6196_v49  ;;  %v376_v11 = vsel %vm367_vm0, %v374_v2, %v375_v3  ;;  %v5478_v49 = vld [vmem:[%s7699_s1 + $0x914] ss:$8 sps:$4 sm:$0xff]   ;;  %v5530_v2 = vld [vmem:[%s7699_s1 + $0x9a0] ss:$8 sps:$4 sm:$0xff]  }
  0x61   : > { %2793 = vmatprep.subr.bf16.mxu0 %v5410_v14  ;;  %v6532_v14 = vld [vmem:[%s6178_s30 + $0x40] sm:$0xff] }
  0x62   : > { %v4789_v19 = vcombine.high %v6199_v50, %v6532_v14 }
  0x63   : > { %784 = vmatpush1.bf16.msra.mxu1 %v5405_v6  ;;  %v5481_v6 = vld [vmem:[%s7699_s1 + $0x24] ss:$8 sps:$4 sm:$0xff]  }
  0x64   : > { %2794 = vmatpush1.bf16.msra.mxu0 %v5408_v22  ;;  %785 = vmatprep.subr.bf16.mxu1 %v5413_v24  ;;  %v387_v22 = vsel %vm367_vm0, %v378_v20, %v386_v18  ;;  %v5484_v24 = vld [vmem:[%s7699_s1 + $0x924] ss:$8 sps:$4 sm:$0xff]   ;;  %v4788_v20 = vcombine.low %v6199_v50, %v6532_v14  ;;  %v4787_v50 = vcombine.high %v6214_v56, %v6217_v57  ;;  %v5491_v56 = vld [vmem:[%s7699_s1 + $0x40] ss:$8 sps:$4 sm:$0xff]  }
  0x65   : > { %2795 = vmatprep.subr.bf16.mxu0 %v5416_v25  ;;  %v5479_v25 = vld [vmem:[%s7699_s1 + $0x20] ss:$8 sps:$4 sm:$0xff]   ;;  %v5554_v18 = vld [vmem:[%s7699_s1 + $0xe4] ss:$8 sps:$4 sm:$0xff]  }
  0x66   : > { %v5494_v57 = vld [vmem:[%s7699_s1 + $0x940] ss:$8 sps:$4 sm:$0xff]  }
  0x67   : > { %786 = vmatpush1.bf16.msra.mxu1 %v5411_v27  ;;  %v6563_v27 = vld [vmem:[%s6178_s30] sm:$0xff] }
  0x68   : > { %2796 = vmatpush1.bf16.msra.mxu0 %v5414_v28  ;;  %787 = vmatprep.subr.bf16.mxu1 %v5419_v29  ;;  %v5487_v28 = vld [vmem:[%s7699_s1 + $0x34] ss:$8 sps:$4 sm:$0xff]   ;;  %v385_v29 = vsel %vm367_vm0, %v375_v3, %v384_v23  ;;  %v5561_v23 = vld [vmem:[%s7699_s1 + $0xf0] ss:$8 sps:$4 sm:$0xff]  }
  0x69   : > { %2797 = vmatprep.subr.bf16.mxu0 %v5422_v30  ;;  %v5490_v30 = vld [vmem:[%s7699_s1 + $0x934] ss:$8 sps:$4 sm:$0xff]  }
  0x6a   : > { %v5535_v3 = vld [vmem:[%s7699_s1 + $0xb4] ss:$8 sps:$4 sm:$0xff]  }
  0x6b   : > { %788 = vmatpush1.bf16.msra.mxu1 %v5417_v31  ;;  %v4381_v31 = vcombine.high %v6563_v27, %v6193_v48  ;;  %v5496_v48 = vld [vmem:[%s7699_s1 + $0x944] ss:$8 sps:$4 sm:$0xff]  }
  0x6c   : > { %2798 = vmatpush1.bf16.msra.mxu0 %v5420_v32  ;;  %789 = vmatprep.subr.bf16.mxu1 %v5425_v33  ;;  %v5485_v32 = vld [vmem:[%s7699_s1 + $0x30] ss:$8 sps:$4 sm:$0xff]  }
  0x6d   : > { %2799 = vmatprep.subr.bf16.mxu0 %v5428_v34  ;;  %v5488_v33 = vld [vmem:[%s7699_s1 + $0x930] ss:$8 sps:$4 sm:$0xff]   ;;  %v5493_v34 = vld [vmem:[%s7699_s1 + $0x44] ss:$8 sps:$4 sm:$0xff]  }
  0x6f   : > { %790 = vmatpush1.bf16.msra.mxu1 %v5423_v35  ;;  %v5499_v35 = vld [vmem:[%s7699_s1 + $0x54] ss:$8 sps:$4 sm:$0xff]  }
  0x70   : > { %2800 = vmatpush1.bf16.msra.mxu0 %v5426_v36  ;;  %791 = vmatprep.subr.bf16.mxu1 %v5431_v37  ;;  %v5502_v36 = vld [vmem:[%s7699_s1 + $0x954] ss:$8 sps:$4 sm:$0xff]   ;;  %v5497_v37 = vld [vmem:[%s7699_s1 + $0x50] ss:$8 sps:$4 sm:$0xff]  }
  0x71   : > { %2801 = vmatprep.subr.bf16.mxu0 %v5434_v38  ;;  %v5500_v38 = vld [vmem:[%s7699_s1 + $0x950] ss:$8 sps:$4 sm:$0xff]  }
  0x73   : > { %792 = vmatpush1.bf16.msra.mxu1 %v5429_v39  ;;  %v5505_v39 = vld [vmem:[%s7699_s1 + $0x64] ss:$8 sps:$4 sm:$0xff]  }
  0x74   : > { %2802 = vmatpush1.bf16.msra.mxu0 %v5432_v40  ;;  %793 = vmatprep.subr.bf16.mxu1 %v5437_v41  ;;  %v5508_v40 = vld [vmem:[%s7699_s1 + $0x964] ss:$8 sps:$4 sm:$0xff]   ;;  %v5503_v41 = vld [vmem:[%s7699_s1 + $0x60] ss:$8 sps:$4 sm:$0xff]  }
  0x75   : > { %2803 = vmatprep.subr.bf16.mxu0 %v5440_v42  ;;  %v5506_v42 = vld [vmem:[%s7699_s1 + $0x960] ss:$8 sps:$4 sm:$0xff]  }
  0x77   : > { %794 = vmatpush1.bf16.msra.mxu1 %v5435_v43  ;;  %v5511_v43 = vld [vmem:[%s7699_s1 + $0x74] ss:$8 sps:$4 sm:$0xff]  }
  0x78   : > { %2804 = vmatpush1.bf16.msra.mxu0 %v5438_v44  ;;  %795 = vmatprep.subr.bf16.mxu1 %v5443_v45  ;;  %v5514_v44 = vld [vmem:[%s7699_s1 + $0x974] ss:$8 sps:$4 sm:$0xff]   ;;  %v5509_v45 = vld [vmem:[%s7699_s1 + $0x70] ss:$8 sps:$4 sm:$0xff]  }
  0x79   : > { %2805 = vmatprep.subr.bf16.mxu0 %v5446_v46  ;;  %v5512_v46 = vld [vmem:[%s7699_s1 + $0x970] ss:$8 sps:$4 sm:$0xff]  }
  0x7b   : > { %796 = vmatpush1.bf16.msra.mxu1 %v5441_v47  ;;  %v5517_v47 = vld [vmem:[%s7699_s1 + $0x84] ss:$8 sps:$4 sm:$0xff]  }
  0x7c   : > { %2806 = vmatpush1.bf16.msra.mxu0 %v5444_v51  ;;  %797 = vmatprep.subr.bf16.mxu1 %v5450_v52  ;;  %v5520_v51 = vld [vmem:[%s7699_s1 + $0x984] ss:$8 sps:$4 sm:$0xff]   ;;  %v5515_v52 = vld [vmem:[%s7699_s1 + $0x80] ss:$8 sps:$4 sm:$0xff]  }
  0x7d   : > { %2807 = vmatprep.subr.bf16.mxu0 %v5454_v53  ;;  %v5518_v53 = vld [vmem:[%s7699_s1 + $0x980] ss:$8 sps:$4 sm:$0xff]  }
  0x7f   : > { %798 = vmatpush1.bf16.msra.mxu1 %v5448_v55  ;;  %v5523_v55 = vld [vmem:[%s7699_s1 + $0x94] ss:$8 sps:$4 sm:$0xff]  }
  0x80   : > { %2808 = vmatpush1.bf16.msra.mxu0 %v5452_v58  ;;  %799 = vmatprep.subr.bf16.mxu1 %v5459_v61  ;;  %v5526_v58 = vld [vmem:[%s7699_s1 + $0x994] ss:$8 sps:$4 sm:$0xff]   ;;  %v5524_v61 = vld [vmem:[%s7699_s1 + $0x990] ss:$8 sps:$4 sm:$0xff]  }
  0x81   : > { %2809 = vmatprep.subr.bf16.mxu0 %v5462_v62  ;;  %v5529_v62 = vld [vmem:[%s7699_s1 + $0xa4] ss:$8 sps:$4 sm:$0xff]  }
  0x83   : > { %800 = vmatpush1.bf16.msra.mxu1 %v5457_v63  ;;  %v5532_v63 = vld [vmem:[%s7699_s1 + $0x9a4] ss:$8 sps:$4 sm:$0xff]  }
  0x84   : > { %2810 = vmatpush1.bf16.msra.mxu0 %v5460_v1  ;;  %1160 = vmatprep.subr.bf16.mxu1 %v5467_v4  ;;  %v5527_v1 = vld [vmem:[%s7699_s1 + $0xa0] ss:$8 sps:$4 sm:$0xff]   ;;  %v5538_v4 = vld [vmem:[%s7699_s1 + $0x9b4] ss:$8 sps:$4 sm:$0xff]  }
  0x85   : > { %2832 = vmatprep.subr.bf16.mxu0 %v5471_v5  ;;  %v5533_v5 = vld [vmem:[%s7699_s1 + $0xb0] ss:$8 sps:$4 sm:$0xff]  }
  0x86   : > { %802 = vmatmul.mubr.bf16.vlgmr.msra.gmra.mrb[0].mxu1 %v376_v11  ;;  %v5542_v11 = vld [vmem:[%s7699_s1 + $0x9c0] ss:$8 sps:$4 sm:$0xff]  }
  0x87   : > { %2812 = vmatmul.mubr.bf16.vlgmr.msra.gmra.mrb[0].mxu0 %v4784_v8  ;;  %1161 = vmatpush1.bf16.msra.mxu1 %v5465_v7  ;;  %v5536_v7 = vld [vmem:[%s7699_s1 + $0x9b0] ss:$8 sps:$4 sm:$0xff]   ;;  %v5541_v8 = vld [vmem:[%s7699_s1 + $0xc4] ss:$8 sps:$4 sm:$0xff]  }
  0x88   : > { %2833 = vmatpush1.bf16.msra.mxu0 %v5469_v10  ;;  %1162 = vmatprep.subr.bf16.mxu1 %v5475_v12  ;;  %v5539_v10 = vld [vmem:[%s7699_s1 + $0xc0] ss:$8 sps:$4 sm:$0xff]   ;;  %v5547_v12 = vld [vmem:[%s7699_s1 + $0xd4] ss:$8 sps:$4 sm:$0xff]  }
  0x89   : > { %2834 = vmatprep.subr.bf16.mxu0 %v5478_v49  ;;  %811 = vmatprep.mubr.bf16.mxu1 %v387_v22  ;;  %v5548_v49 = vld [vmem:[%s7699_s1 + $0x9d0] ss:$8 sps:$4 sm:$0xff]   ;;  %v5566_v22 = vld [vmem:[%s7699_s1 + $0x9f4] ss:$8 sps:$4 sm:$0xff]  }
  0x8a   : > { %2821 = vmatprep.mubr.bf16.mxu0 %v4789_v19  ;;  %v5558_v19 = vld [vmem:[%s7699_s1 + $0x9e4] ss:$8 sps:$4 sm:$0xff]  }
  0x8b   : > { %1163 = vmatpush1.bf16.msra.mxu1 %v5473_v59  ;;  %v5552_v59 = vld [vmem:[%s7699_s1 + $0xe0] ss:$8 sps:$4 sm:$0xff]  }
  0x8c   : > { %2835 = vmatpush1.bf16.msra.mxu0 %v5476_v21  ;;  %1164 = vmatprep.subr.bf16.mxu1 %v5481_v6  ;;  %v5556_v21 = vld [vmem:[%s7699_s1 + $0x9e0] ss:$8 sps:$4 sm:$0xff]   ;;  %v5563_v6 = vld [vmem:[%s7699_s1 + $0xf4] ss:$8 sps:$4 sm:$0xff]  }
  0x8d   : > { %2836 = vmatprep.subr.bf16.mxu0 %v5484_v24  ;;  %v5564_v24 = vld [vmem:[%s7699_s1 + $0x9f0] ss:$8 sps:$4 sm:$0xff]  }
  0x8e   : > { %812 = vmatmul.mubr.bf16.gmra.mrb[4].mxu1 %v385_v29  ;;  %v6739_v29 = vld [vmem:[%s6178_s30 + $0x10] sm:$0xff] }
  0x8f   : > { %2822 = vmatmul.mubr.bf16.gmra.mrb[4].mxu0 %v4788_v20  ;;  %1165 = vmatpush1.bf16.msra.mxu1 %v5479_v25  ;;  %v5571_v25 = vld [vmem:[%s7699_s1 + $0x104] ss:$8 sps:$4 sm:$0xff]   ;;  %v5569_v20 = vld [vmem:[%s7699_s1 + $0x100] ss:$8 sps:$4 sm:$0xff]  }
  0x90   : > { %2837 = vmatpush1.bf16.msra.mxu0 %v5482_v26  ;;  %1166 = vmatprep.subr.bf16.mxu1 %v5487_v28  ;;  %v5575_v26 = vld [vmem:[%s7699_s1 + $0xa04] ss:$8 sps:$4 sm:$0xff]   ;;  %v5573_v28 = vld [vmem:[%s7699_s1 + $0xa00] ss:$8 sps:$4 sm:$0xff]  }
  0x91   : > { %2838 = vmatprep.subr.bf16.mxu0 %v5490_v30  ;;  %1192 = vmatprep.mubr.bf16.mxu1 %v4381_v31  ;;  %v4380_v30 = vcombine.low %v6563_v27, %v6739_v29  ;;  %v6744_v31 = vld [vmem:[%s6178_s30 + $0x18] sm:$0xff] }
  0x92   : > { %2864 = vmatprep.mubr.bf16.mxu0 %v4787_v50  ;;  %v5993_v50 = vld [vmem:[%s6178_s30 + $0x28] sm:$0xff]  ;;  %v5582_v27 = vld [vmem:[%s7699_s1 + $0xa14] ss:$8 sps:$4 sm:$0xff]  }
  0x93   : > { %1167 = vmatpush1.bf16.msra.mxu1 %v5485_v32  ;;  %v4786_v32 = vcombine.low %v6744_v31, %v5993_v50  ;;  %v5642_v50 = vld [vmem:[%s7699_s1 + $0xab4] ss:$8 sps:$4 sm:$0xff]  }
  0x94   : > { %2839 = vmatpush1.bf16.msra.mxu0 %v5488_v33  ;;  %1168 = vmatprep.subr.bf16.mxu1 %v5493_v34  ;;  %v5579_v33 = vld [vmem:[%s7699_s1 + $0x114] ss:$8 sps:$4 sm:$0xff]   ;;  %v6752_v34 = vld [vmem:[%s6178_s30 + $0x48] sm:$0xff] }
  0x95   : > { %2840 = vmatprep.subr.bf16.mxu0 %v5496_v48  ;;  %v6755_v48 = vld [vmem:[%s6178_s30 + $0x10] sm:$0xee] }
  0x97   : > { %1169 = vmatpush1.bf16.msra.mxu1 %v5491_v56  ;;  %v6758_v56 = vld [vmem:[%s6178_s30 + $0x20] sm:$0xff] }
  0x98   : > { %2841 = vmatpush1.bf16.msra.mxu0 %v5494_v57  ;;  %1170 = vmatprep.subr.bf16.mxu1 %v5499_v35  ;;  %v6761_v57 = vld [vmem:[%s6178_s30 + $0x30] sm:$0xff]  ;;  %v5994_v35 = vld [vmem:[%s6178_s30 + $0x38] sm:$0xff] }
  0x99   : > { %2842 = vmatprep.subr.bf16.mxu0 %v5502_v36  ;;  %v4791_v36 = vcombine.high %v5994_v35, %v6752_v34 }
  0x9b   : > { %1171 = vmatpush1.bf16.msra.mxu1 %v5497_v37  ;;  %v5577_v37 = vld [vmem:[%s7699_s1 + $0x110] ss:$8 sps:$4 sm:$0xff]  }
  0x9c   : > { %2843 = vmatpush1.bf16.msra.mxu0 %v5500_v38  ;;  %1172 = vmatprep.subr.bf16.mxu1 %v5505_v39  ;;  %v4921_v38 = vcombine.high %v6755_v48, %v6758_v56  ;;  %v6775_v39 = vcombine.high %v6761_v57, %v6532_v14 }
  0x9d   : > { %2844 = vmatprep.subr.bf16.mxu0 %v5508_v40  ;;  %v5580_v40 = vld [vmem:[%s7699_s1 + $0xa10] ss:$8 sps:$4 sm:$0xff]  }
  0x9f   : > { %1173 = vmatpush1.bf16.msra.mxu1 %v5503_v41  ;;  %v5585_v41 = vld [vmem:[%s7699_s1 + $0x124] ss:$8 sps:$4 sm:$0xff]  }
  0xa0   : > { %2845 = vmatpush1.bf16.msra.mxu0 %v5506_v42  ;;  %1174 = vmatprep.subr.bf16.mxu1 %v5511_v43  ;;  %v5588_v42 = vld [vmem:[%s7699_s1 + $0xa24] ss:$8 sps:$4 sm:$0xff]   ;;  %v5583_v43 = vld [vmem:[%s7699_s1 + $0x120] ss:$8 sps:$4 sm:$0xff]  }
  0xa1   : > { %2846 = vmatprep.subr.bf16.mxu0 %v5514_v44  ;;  %v4790_v44 = vcombine.low %v5994_v35, %v6752_v34  ;;  %v5648_v35 = vld [vmem:[%s7699_s1 + $0xac4] ss:$8 sps:$4 sm:$0xff]  }
  0xa3   : > { %1175 = vmatpush1.bf16.msra.mxu1 %v5509_v45  ;;  %v6792_v45 = vld [vmem:[%s6178_s30 + $0x8] sm:$0xff] }
  0xa4   : > { %2847 = vmatpush1.bf16.msra.mxu0 %v5512_v46  ;;  %1176 = vmatprep.subr.bf16.mxu1 %v5517_v47  ;;  %v3013_v46 = vrot.slane %v4921_v38, 1  ;;  %v3014_v47 = vrot.slane %v6775_v39, 1  ;;  %v5651_v38 = vld [vmem:[%s7699_s1 + $0x1d4] ss:$8 sps:$4 sm:$0xff]  }
  0xa5   : > { %2848 = vmatprep.subr.bf16.mxu0 %v5520_v51  ;;  %v5586_v51 = vld [vmem:[%s7699_s1 + $0xa20] ss:$8 sps:$4 sm:$0xff]  }
  0xa7   : > { %1177 = vmatpush1.bf16.msra.mxu1 %v5515_v52  ;;  %v5591_v52 = vld [vmem:[%s7699_s1 + $0x134] ss:$8 sps:$4 sm:$0xff]  }
  0xa8   : > { %2849 = vmatpush1.bf16.msra.mxu0 %v5518_v53  ;;  %1178 = vmatprep.subr.bf16.mxu1 %v5523_v55  ;;  %v5594_v53 = vld [vmem:[%s7699_s1 + $0xa34] ss:$8 sps:$4 sm:$0xff]   ;;  %v4383_v55 = vcombine.high %v6792_v45, %v6744_v31 }
  0xa9   : > { %2850 = vmatprep.subr.bf16.mxu0 %v5526_v58  ;;  %v5589_v58 = vld [vmem:[%s7699_s1 + $0x130] ss:$8 sps:$4 sm:$0xff]  }
  0xab   : > { %1179 = vmatpush1.bf16.msra.mxu1 %v5521_v60  ;;  %v3015_v60 = vsel %vm367_vm0, %v3013_v46, %v3014_v47  ;;  %v5655_v46 = vld [vmem:[%s7699_s1 + $0x1e0] ss:$8 sps:$4 sm:$0xff]  }
  0xac   : > { %2851 = vmatpush1.bf16.msra.mxu0 %v5524_v61  ;;  %1180 = vmatprep.subr.bf16.mxu1 %v5529_v62  ;;  %v5592_v61 = vld [vmem:[%s7699_s1 + $0xa30] ss:$8 sps:$4 sm:$0xff]   ;;  %v5597_v62 = vld [vmem:[%s7699_s1 + $0x144] ss:$8 sps:$4 sm:$0xff]  }
  0xad   : > { %2852 = vmatprep.subr.bf16.mxu0 %v5532_v63  ;;  %v5600_v63 = vld [vmem:[%s7699_s1 + $0xa44] ss:$8 sps:$4 sm:$0xff]  }
  0xaf   : > { %1181 = vmatpush1.bf16.msra.mxu1 %v5527_v1  ;;  %v5595_v1 = vld [vmem:[%s7699_s1 + $0x140] ss:$8 sps:$4 sm:$0xff]  }
  0xb0   : > { %2853 = vmatpush1.bf16.msra.mxu0 %v5530_v2  ;;  %1182 = vmatprep.subr.bf16.mxu1 %v5535_v3  ;;  %v5598_v2 = vld [vmem:[%s7699_s1 + $0xa40] ss:$8 sps:$4 sm:$0xff]   ;;  %v5603_v3 = vld [vmem:[%s7699_s1 + $0x154] ss:$8 sps:$4 sm:$0xff]  }
  0xb1   : > { %2854 = vmatprep.subr.bf16.mxu0 %v5538_v4  ;;  %v5606_v4 = vld [vmem:[%s7699_s1 + $0xa54] ss:$8 sps:$4 sm:$0xff]  }
  0xb3   : > { %1183 = vmatpush1.bf16.msra.mxu1 %v5533_v5  ;;  %v5601_v5 = vld [vmem:[%s7699_s1 + $0x150] ss:$8 sps:$4 sm:$0xff]  }
  0xb4   : > { %2855 = vmatpush1.bf16.msra.mxu0 %v5536_v7  ;;  %1184 = vmatprep.subr.bf16.mxu1 %v5541_v8  ;;  %v5604_v7 = vld [vmem:[%s7699_s1 + $0xa50] ss:$8 sps:$4 sm:$0xff]   ;;  %v5609_v8 = vld [vmem:[%s7699_s1 + $0x164] ss:$8 sps:$4 sm:$0xff]  }
  0xb5   : > { %2856 = vmatprep.subr.bf16.mxu0 %v5544_v9  ;;  %v5612_v9 = vld [vmem:[%s7699_s1 + $0xa64] ss:$8 sps:$4 sm:$0xff]  }
  0xb7   : > { %1185 = vmatpush1.bf16.msra.mxu1 %v5539_v10  ;;  %v5607_v10 = vld [vmem:[%s7699_s1 + $0x160] ss:$8 sps:$4 sm:$0xff]  }
  0xb8   : > { %2857 = vmatpush1.bf16.msra.mxu0 %v5542_v11  ;;  %1186 = vmatprep.subr.bf16.mxu1 %v5547_v12  ;;  %v5610_v11 = vld [vmem:[%s7699_s1 + $0xa60] ss:$8 sps:$4 sm:$0xff]   ;;  %v5615_v12 = vld [vmem:[%s7699_s1 + $0x174] ss:$8 sps:$4 sm:$0xff]  }
  0xb9   : > { %2858 = vmatprep.subr.bf16.mxu0 %v5550_v13  ;;  %v5618_v13 = vld [vmem:[%s7699_s1 + $0xa74] ss:$8 sps:$4 sm:$0xff]  }
  0xbb   : > { %1187 = vmatpush1.bf16.msra.mxu1 %v5545_v17  ;;  %v5613_v17 = vld [vmem:[%s7699_s1 + $0x170] ss:$8 sps:$4 sm:$0xff]  }
  0xbc   : > { %2859 = vmatpush1.bf16.msra.mxu0 %v5548_v49  ;;  %1188 = vmatprep.subr.bf16.mxu1 %v5554_v18  ;;  %v5616_v49 = vld [vmem:[%s7699_s1 + $0xa70] ss:$8 sps:$4 sm:$0xff]   ;;  %v5621_v18 = vld [vmem:[%s7699_s1 + $0x184] ss:$8 sps:$4 sm:$0xff]  }
  0xbd   : > { %2860 = vmatprep.subr.bf16.mxu0 %v5558_v19  ;;  %v5624_v19 = vld [vmem:[%s7699_s1 + $0xa84] ss:$8 sps:$4 sm:$0xff]  }
  0xbf   : > { %1189 = vmatpush1.bf16.msra.mxu1 %v5552_v59  ;;  %v5619_v59 = vld [vmem:[%s7699_s1 + $0x180] ss:$8 sps:$4 sm:$0xff]  }
  0xc0   : > { %2861 = vmatpush1.bf16.msra.mxu0 %v5556_v21  ;;  %1190 = vmatprep.subr.bf16.mxu1 %v5563_v6  ;;  %v5622_v21 = vld [vmem:[%s7699_s1 + $0xa80] ss:$8 sps:$4 sm:$0xff]   ;;  %v5627_v6 = vld [vmem:[%s7699_s1 + $0x194] ss:$8 sps:$4 sm:$0xff]  }
  0xc1   : > { %2862 = vmatprep.subr.bf16.mxu0 %v5566_v22  ;;  %v5630_v22 = vld [vmem:[%s7699_s1 + $0xa94] ss:$8 sps:$4 sm:$0xff]  }
  0xc3   : > { %1191 = vmatpush1.bf16.msra.mxu1 %v5561_v23  ;;  %v5625_v23 = vld [vmem:[%s7699_s1 + $0x190] ss:$8 sps:$4 sm:$0xff]  }
  0xc4   : > { %2863 = vmatpush1.bf16.msra.mxu0 %v5564_v24  ;;  %1213 = vmatprep.subr.bf16.mxu1 %v5571_v25  ;;  %v5628_v24 = vld [vmem:[%s7699_s1 + $0xa90] ss:$8 sps:$4 sm:$0xff]   ;;  %v5633_v25 = vld [vmem:[%s7699_s1 + $0x1a4] ss:$8 sps:$4 sm:$0xff]  }
  0xc5   : > { %3358 = vmatprep.subr.bf16.mxu0 %v5575_v26  ;;  %v5636_v26 = vld [vmem:[%s7699_s1 + $0xaa4] ss:$8 sps:$4 sm:$0xff]  }
  0xc6   : > { %1193 = vmatmul.mubr.bf16.vlgmr.msra.gmra.mrb[0].mxu1 %v4380_v30  ;;  %v5639_v30 = vld [vmem:[%s7699_s1 + $0x1b4] ss:$8 sps:$4 sm:$0xff]  }
  0xc7   : > { %2865 = vmatmul.mubr.bf16.vlgmr.msra.gmra.mrb[0].mxu0 %v4786_v32  ;;  %1214 = vmatpush1.bf16.msra.mxu1 %v5569_v20  ;;  %v5631_v20 = vld [vmem:[%s7699_s1 + $0x1a0] ss:$8 sps:$4 sm:$0xff]   ;;  %v5637_v32 = vld [vmem:[%s7699_s1 + $0x1b0] ss:$8 sps:$4 sm:$0xff]  }
  0xc8   : > { %3359 = vmatpush1.bf16.msra.mxu0 %v5573_v28  ;;  %1215 = vmatprep.subr.bf16.mxu1 %v5579_v33  ;;  %v5634_v28 = vld [vmem:[%s7699_s1 + $0xaa0] ss:$8 sps:$4 sm:$0xff]   ;;  %v5640_v33 = vld [vmem:[%s7699_s1 + $0xab0] ss:$8 sps:$4 sm:$0xff]  }
  0xc9   : > { %3360 = vmatprep.subr.bf16.mxu0 %v5582_v27  ;;  %1202 = vmatprep.mubr.bf16.mxu1 %v6208_v54  ;;  %v5645_v27 = vld [vmem:[%s7699_s1 + $0x1c4] ss:$8 sps:$4 sm:$0xff]  }
  0xca   : > { %2874 = vmatprep.mubr.bf16.mxu0 %v4791_v36  ;;  %v5643_v36 = vld [vmem:[%s7699_s1 + $0x1c0] ss:$8 sps:$4 sm:$0xff]  }
  0xcb   : > { %1216 = vmatpush1.bf16.msra.mxu1 %v5577_v37  ;;  %v5646_v37 = vld [vmem:[%s7699_s1 + $0xac0] ss:$8 sps:$4 sm:$0xff]  }
  0xcc   : > { %3361 = vmatpush1.bf16.msra.mxu0 %v5580_v40  ;;  %1217 = vmatprep.subr.bf16.mxu1 %v5585_v41  ;;  %v5654_v40 = vld [vmem:[%s7699_s1 + $0xad4] ss:$8 sps:$4 sm:$0xff]   ;;  %v5649_v41 = vld [vmem:[%s7699_s1 + $0x1d0] ss:$8 sps:$4 sm:$0xff]  }
  0xcd   : > { %3362 = vmatprep.subr.bf16.mxu0 %v5588_v42  ;;  %v5652_v42 = vld [vmem:[%s7699_s1 + $0xad0] ss:$8 sps:$4 sm:$0xff]  }
  0xce   : > { %1203 = vmatmul.mubr.bf16.gmra.mrb[4].mxu1 %v6266_v15 }
  0xcf   : > { %2875 = vmatmul.mubr.bf16.gmra.mrb[4].mxu0 %v4790_v44  ;;  %1218 = vmatpush1.bf16.msra.mxu1 %v5583_v43  ;;  %v5657_v43 = vld [vmem:[%s7699_s1 + $0x1e4] ss:$8 sps:$4 sm:$0xff]  }
  0xd0   : > { %3363 = vmatpush1.bf16.msra.mxu0 %v5586_v51  ;;  %1219 = vmatprep.subr.bf16.mxu1 %v5591_v52  ;;  %v5661_v44 = vld [vmem:[%s7699_s1 + $0xae4] ss:$8 sps:$4 sm:$0xff]   ;;  %v2901_v51 = vld [vmem:[%s6178_s30 + $0x50] sm:$0x11]  ;;  %v5659_v52 = vld [vmem:[%s7699_s1 + $0xae0] ss:$8 sps:$4 sm:$0xff]  }
  0xd1   : > { %3364 = vmatprep.subr.bf16.mxu0 %v5594_v53  ;;  %1245 = vmatprep.mubr.bf16.mxu1 %v4383_v55  ;;  %v4920_v53 = vcombine.low %v6755_v48, %v6758_v56  ;;  %v6953_v55 = vcombine.low %v6761_v57, %v6532_v14  ;;  %v5663_v48 = vld [vmem:[%s7699_s1 + $0x1f0] ss:$8 sps:$4 sm:$0xff]  }
  0xd2   : > { %3390 = vmatprep.mubr.bf16.mxu0 %v3015_v60  ;;  %v5668_v60 = vld [vmem:[%s7699_s1 + $0xaf4] ss:$8 sps:$4 sm:$0xff]   ;;  %v5666_v14 = vld [vmem:[%s7699_s1 + $0xaf0] ss:$8 sps:$4 sm:$0xff]  }
  0xd3   : > { %1220 = vmatpush1.bf16.msra.mxu1 %v5589_v58  ;;  %v5665_v58 = vld [vmem:[%s7699_s1 + $0x1f4] ss:$8 sps:$4 sm:$0xff]   ;;  %v3010_v57 = vrot.slane %v4920_v53, 1  ;;  %v5714_v53 = vld [vmem:[%s7699_s1 + $0xb60] ss:$8 sps:$4 sm:$0xff]  }
  0xd4   : > { %3365 = vmatpush1.bf16.msra.mxu0 %v5592_v61  ;;  %1221 = vmatprep.subr.bf16.mxu1 %v5597_v62  ;;  %v4929_v61 = vcombine.high %v2901_v51, %v2901_v51  ;;  %v3011_v62 = vrot.slane %v6953_v55, 1 }
  0xd5   : > { %3366 = vmatprep.subr.bf16.mxu0 %v5600_v63  ;;  %v5673_v63 = vld [vmem:[%s7699_s1 + $0x404] ss:$8 sps:$4 sm:$0xff]  }
  0xd7   : > { %1222 = vmatpush1.bf16.msra.mxu1 %v5595_v1  ;;  %v5680_v1 = vld [vmem:[%s7699_s1 + $0xb04] ss:$8 sps:$4 sm:$0xff]  }
  0xd8   : > { %3367 = vmatpush1.bf16.msra.mxu0 %v5598_v2  ;;  %1223 = vmatprep.subr.bf16.mxu1 %v5603_v3  ;;  %v5671_v2 = vld [vmem:[%s7699_s1 + $0x400] ss:$8 sps:$4 sm:$0xff]  }
  0xd9   : > { %3368 = vmatprep.subr.bf16.mxu0 %v5606_v4  ;;  %v5678_v3 = vld [vmem:[%s7699_s1 + $0xb00] ss:$8 sps:$4 sm:$0xff]   ;;  %v3024_v4 = vrot.slane %v4929_v61, 1  ;;  %v5717_v61 = vld [vmem:[%s7699_s1 + $0x470] ss:$8 sps:$4 sm:$0xff]  }
  0xdb   : > { %1224 = vmatpush1.bf16.msra.mxu1 %v5601_v5  ;;  %v6981_v5 = vld [vmem:[%s6178_s30] sm:$0xcc] }
  0xdc   : > { %3369 = vmatpush1.bf16.msra.mxu0 %v5604_v7  ;;  %1225 = vmatprep.subr.bf16.mxu1 %v5609_v8  ;;  %v6984_v7 = vld [vmem:[%s6178_s30 + $0x18] sm:$0xee]  ;;  %v4382_v8 = vcombine.low %v6792_v45, %v6744_v31  ;;  %v3025_v31 = vsel %vm367_vm0, %v3014_v47, %v3024_v4  ;;  %v4513_v45 = vcombine.high %v6981_v5, %v6739_v29 }
  0xdd   : > { %3370 = vmatprep.subr.bf16.mxu0 %v5612_v9  ;;  %v6989_v9 = vld [vmem:[%s6178_s30 + $0x28] sm:$0xff]  ;;  %v5684_v47 = vld [vmem:[%s7699_s1 + $0xb10] ss:$8 sps:$4 sm:$0xff]  }
  0xde   : > { %v5732_v4 = vld [vmem:[%s7699_s1 + $0xb90] ss:$8 sps:$4 sm:$0xff]  }
  0xdf   : > { %1226 = vmatpush1.bf16.msra.mxu1 %v5607_v10  ;;  %v3012_v10 = vsel %vm367_vm0, %v3010_v57, %v3011_v62  ;;  %v5728_v57 = vld [vmem:[%s7699_s1 + $0xb84] ss:$8 sps:$4 sm:$0xff]  }
  0xe0   : > { %3371 = vmatpush1.bf16.msra.mxu0 %v5610_v11  ;;  %1227 = vmatprep.subr.bf16.mxu1 %v5615_v12  ;;  %v4928_v11 = vcombine.low %v2901_v51, %v2901_v51  ;;  %v6993_v12 = vld [vmem:[%s6178_s30 + $0x38] sm:$0xff]  ;;  %v5716_v51 = vld [vmem:[%s7699_s1 + $0xb64] ss:$8 sps:$4 sm:$0xff]  }
  0xe1   : > { %3372 = vmatprep.subr.bf16.mxu0 %v5618_v13  ;;  %v5683_v13 = vld [vmem:[%s7699_s1 + $0x414] ss:$8 sps:$4 sm:$0xff]  }
  0xe3   : > { %1228 = vmatpush1.bf16.msra.mxu1 %v5613_v17  ;;  %v5686_v17 = vld [vmem:[%s7699_s1 + $0xb14] ss:$8 sps:$4 sm:$0xff]  }
  0xe4   : > { %3373 = vmatpush1.bf16.msra.mxu0 %v5616_v49  ;;  %1229 = vmatprep.subr.bf16.mxu1 %v5621_v18  ;;  %v4923_v49 = vcombine.high %v6984_v7, %v6989_v9  ;;  %v7010_v18 = vcombine.high %v6993_v12, %v6752_v34 }
  0xe5   : > { %3374 = vmatprep.subr.bf16.mxu0 %v5624_v19  ;;  %v5681_v19 = vld [vmem:[%s7699_s1 + $0x410] ss:$8 sps:$4 sm:$0xff]  }
  0xe7   : > { %1230 = vmatpush1.bf16.msra.mxu1 %v5619_v59  ;;  %v3022_v59 = vrot.slane %v4928_v11, 1  ;;  %v5735_v11 = vld [vmem:[%s7699_s1 + $0x4a0] ss:$8 sps:$4 sm:$0xff]  }
  0xe8   : > { %3375 = vmatpush1.bf16.msra.mxu0 %v5622_v21  ;;  %1231 = vmatprep.subr.bf16.mxu1 %v5627_v6  ;;  %v5689_v21 = vld [vmem:[%s7699_s1 + $0x424] ss:$8 sps:$4 sm:$0xff]  }
  0xe9   : > { %3376 = vmatprep.subr.bf16.mxu0 %v5630_v22  ;;  %v5692_v6 = vld [vmem:[%s7699_s1 + $0xb24] ss:$8 sps:$4 sm:$0xff]   ;;  %v5687_v22 = vld [vmem:[%s7699_s1 + $0x420] ss:$8 sps:$4 sm:$0xff]  }
  0xeb   : > { %1232 = vmatpush1.bf16.msra.mxu1 %v5625_v23  ;;  %v5690_v23 = vld [vmem:[%s7699_s1 + $0xb20] ss:$8 sps:$4 sm:$0xff]  }
  0xec   : > { %3377 = vmatpush1.bf16.msra.mxu0 %v5628_v24  ;;  %1233 = vmatprep.subr.bf16.mxu1 %v5633_v25  ;;  %v1359_v24 = vrot.slane %v4513_v45, 2  ;;  %v1360_v25 = vrot.slane %v6208_v54, 2  ;;  %v5741_v45 = vld [vmem:[%s7699_s1 + $0x4b0] ss:$8 sps:$4 sm:$0xff]  }
  0xed   : > { %3378 = vmatprep.subr.bf16.mxu0 %v5636_v26  ;;  %v3019_v26 = vrot.slane %v4923_v49, 1  ;;  %v5744_v49 = vld [vmem:[%s7699_s1 + $0xbb0] ss:$8 sps:$4 sm:$0xff]  }
  0xef   : > { %1234 = vmatpush1.bf16.msra.mxu1 %v5631_v20  ;;  %v3020_v20 = vrot.slane %v7010_v18, 1 }
  0xf0   : > { %3379 = vmatpush1.bf16.msra.mxu0 %v5634_v28  ;;  %1235 = vmatprep.subr.bf16.mxu1 %v5639_v30  ;;  %v5695_v28 = vld [vmem:[%s7699_s1 + $0x434] ss:$8 sps:$4 sm:$0xff]   ;;  %v3023_v30 = vsel %vm367_vm0, %v3011_v62, %v3022_v59  ;;  %v5723_v62 = vld [vmem:[%s7699_s1 + $0x480] ss:$8 sps:$4 sm:$0xff]  }
  0xf1   : > { %3380 = vmatprep.subr.bf16.mxu0 %v5642_v50  ;;  %v5698_v50 = vld [vmem:[%s7699_s1 + $0xb34] ss:$8 sps:$4 sm:$0xff]   ;;  %v5747_v59 = vld [vmem:[%s7699_s1 + $0x4c0] ss:$8 sps:$4 sm:$0xff]  }
  0xf3   : > { %1236 = vmatpush1.bf16.msra.mxu1 %v5637_v32  ;;  %v1361_v32 = vsel %vm1355_vm2, %v1359_v24, %v1360_v25  ;;  %v5756_v24 = vld [vmem:[%s7699_s1 + $0xbd0] ss:$8 sps:$4 sm:$0xff]  }
  0xf4   : > { %3381 = vmatpush1.bf16.msra.mxu0 %v5640_v33  ;;  %1237 = vmatprep.subr.bf16.mxu1 %v5645_v27  ;;  %v3021_v33 = vsel %vm367_vm0, %v3019_v26, %v3020_v20  ;;  %v5693_v27 = vld [vmem:[%s7699_s1 + $0x430] ss:$8 sps:$4 sm:$0xff]   ;;  %v5761_v26 = vld [vmem:[%s7699_s1 + $0x4e4] ss:$8 sps:$4 sm:$0xff]  }
  0xf5   : > { %3382 = vmatprep.subr.bf16.mxu0 %v5648_v35  ;;  %v5696_v35 = vld [vmem:[%s7699_s1 + $0xb30] ss:$8 sps:$4 sm:$0xff]  }
  0xf7   : > { %1238 = vmatpush1.bf16.msra.mxu1 %v5643_v36  ;;  %v5701_v36 = vld [vmem:[%s7699_s1 + $0x444] ss:$8 sps:$4 sm:$0xff]  }
  0xf8   : > { %3383 = vmatpush1.bf16.msra.mxu0 %v5646_v37  ;;  %1239 = vmatprep.subr.bf16.mxu1 %v5651_v38  ;;  %v5704_v37 = vld [vmem:[%s7699_s1 + $0xb44] ss:$8 sps:$4 sm:$0xff]   ;;  %v5699_v38 = vld [vmem:[%s7699_s1 + $0x440] ss:$8 sps:$4 sm:$0xff]  }
  0xf9   : > { %3384 = vmatprep.subr.bf16.mxu0 %v5654_v40  ;;  %v5702_v40 = vld [vmem:[%s7699_s1 + $0xb40] ss:$8 sps:$4 sm:$0xff]  }
  0xfb   : > { %1240 = vmatpush1.bf16.msra.mxu1 %v5649_v41  ;;  %v5707_v41 = vld [vmem:[%s7699_s1 + $0x454] ss:$8 sps:$4 sm:$0xff]  }
  0xfc   : > { %3385 = vmatpush1.bf16.msra.mxu0 %v5652_v42  ;;  %1241 = vmatprep.subr.bf16.mxu1 %v5657_v43  ;;  %v5710_v42 = vld [vmem:[%s7699_s1 + $0xb54] ss:$8 sps:$4 sm:$0xff]   ;;  %v5705_v43 = vld [vmem:[%s7699_s1 + $0x450] ss:$8 sps:$4 sm:$0xff]  }
  0xfd   : > { %3386 = vmatprep.subr.bf16.mxu0 %v5661_v44  ;;  %v5708_v44 = vld [vmem:[%s7699_s1 + $0xb50] ss:$8 sps:$4 sm:$0xff]  }
  0xff   : > { %1242 = vmatpush1.bf16.msra.mxu1 %v5655_v46  ;;  %v5713_v46 = vld [vmem:[%s7699_s1 + $0x464] ss:$8 sps:$4 sm:$0xff]  }
 0x100   : > { %3387 = vmatpush1.bf16.msra.mxu0 %v5659_v52  ;;  %1243 = vmatprep.subr.bf16.mxu1 %v5665_v58  ;;  %v5711_v52 = vld [vmem:[%s7699_s1 + $0x460] ss:$8 sps:$4 sm:$0xff]   ;;  %v5719_v58 = vld [vmem:[%s7699_s1 + $0x474] ss:$8 sps:$4 sm:$0xff]  }
 0x101   : > { %3388 = vmatprep.subr.bf16.mxu0 %v5668_v60  ;;  %v5722_v60 = vld [vmem:[%s7699_s1 + $0xb74] ss:$8 sps:$4 sm:$0xff]  }
 0x103   : > { %1244 = vmatpush1.bf16.msra.mxu1 %v5663_v48  ;;  %v5720_v48 = vld [vmem:[%s7699_s1 + $0xb70] ss:$8 sps:$4 sm:$0xff]  }
 0x104   : > { %3389 = vmatpush1.bf16.msra.mxu0 %v5666_v14  ;;  %1704 = vmatprep.subr.bf16.mxu1 %v5673_v63  ;;  %v5725_v14 = vld [vmem:[%s7699_s1 + $0x484] ss:$8 sps:$4 sm:$0xff]   ;;  %v5726_v63 = vld [vmem:[%s7699_s1 + $0xb80] ss:$8 sps:$4 sm:$0xff]  }
 0x105   : > { %3411 = vmatprep.subr.bf16.mxu0 %v5680_v1  ;;  %v5731_v1 = vld [vmem:[%s7699_s1 + $0x494] ss:$8 sps:$4 sm:$0xff]  }
 0x106   : > { %1246 = vmatmul.mubr.bf16.vlgmr.msra.gmra.mrb[0].mxu1 %v4382_v8  ;;  %v5737_v8 = vld [vmem:[%s7699_s1 + $0x4a4] ss:$8 sps:$4 sm:$0xff]  }
 0x107   : > { %3391 = vmatmul.mubr.bf16.vlgmr.msra.gmra.mrb[0].mxu0 %v3012_v10  ;;  %1705 = vmatpush1.bf16.msra.mxu1 %v5671_v2  ;;  %v5734_v2 = vld [vmem:[%s7699_s1 + $0xb94] ss:$8 sps:$4 sm:$0xff]   ;;  %v5740_v10 = vld [vmem:[%s7699_s1 + $0xba4] ss:$8 sps:$4 sm:$0xff]  }
 0x108   : > { %3412 = vmatpush1.bf16.msra.mxu0 %v5678_v3  ;;  %1706 = vmatprep.subr.bf16.mxu1 %v5683_v13  ;;  %v5729_v3 = vld [vmem:[%s7699_s1 + $0x490] ss:$8 sps:$4 sm:$0xff]   ;;  %v5738_v13 = vld [vmem:[%s7699_s1 + $0xba0] ss:$8 sps:$4 sm:$0xff]  }
 0x109   : > { %3413 = vmatprep.subr.bf16.mxu0 %v5686_v17  ;;  %1255 = vmatprep.mubr.bf16.mxu1 %v6229_v0  ;;  %v5743_v17 = vld [vmem:[%s7699_s1 + $0x4b4] ss:$8 sps:$4 sm:$0xff]  }
 0x10a   : > { %3400 = vmatprep.mubr.bf16.mxu0 %v3025_v31  ;;  %v5746_v31 = vld [vmem:[%s7699_s1 + $0xbb4] ss:$8 sps:$4 sm:$0xff]  }
 0x10b   : > { %1707 = vmatpush1.bf16.msra.mxu1 %v5681_v19  ;;  %v5749_v19 = vld [vmem:[%s7699_s1 + $0x4c4] ss:$8 sps:$4 sm:$0xff]  }
 0x10c   : > { %3414 = vmatpush1.bf16.msra.mxu0 %v5684_v47  ;;  %1708 = vmatprep.subr.bf16.mxu1 %v5689_v21  ;;  %v5752_v47 = vld [vmem:[%s7699_s1 + $0xbc4] ss:$8 sps:$4 sm:$0xff]   ;;  %v5750_v21 = vld [vmem:[%s7699_s1 + $0xbc0] ss:$8 sps:$4 sm:$0xff]  }
 0x10d   : > { %3415 = vmatprep.subr.bf16.mxu0 %v5692_v6  ;;  %v5755_v6 = vld [vmem:[%s7699_s1 + $0x4d4] ss:$8 sps:$4 sm:$0xff]  }
 0x10e   : > { %1256 = vmatmul.mubr.bf16.gmra.mrb[4].mxu1 %v6269_v16 }
 0x10f   : > { %3401 = vmatmul.mubr.bf16.gmra.mrb[4].mxu0 %v3023_v30  ;;  %1709 = vmatpush1.bf16.msra.mxu1 %v5687_v22  ;;  %v5758_v22 = vld [vmem:[%s7699_s1 + $0xbd4] ss:$8 sps:$4 sm:$0xff]   ;;  %v4512_v30 = vcombine.low %v6981_v5, %v6739_v29 }
 0x110   : > { %3416 = vmatpush1.bf16.msra.mxu0 %v5690_v23  ;;  %1710 = vmatprep.subr.bf16.mxu1 %v5695_v28  ;;  %v5753_v23 = vld [vmem:[%s7699_s1 + $0x4d0] ss:$8 sps:$4 sm:$0xff]   ;;  %v5765_v28 = vld [vmem:[%s7699_s1 + $0xbe4] ss:$8 sps:$4 sm:$0xff]   ;;  %v5769_v29 = vld [vmem:[%s7699_s1 + $0x4f4] ss:$8 sps:$4 sm:$0xff]  }
 0x111   : > { %3417 = vmatprep.subr.bf16.mxu0 %v5698_v50  ;;  %1736 = vmatprep.mubr.bf16.mxu1 %v1361_v32  ;;  %v1268_v50 = vld [vmem:[%s6178_s30 + $0x40] sm:$0x33]  ;;  %v5772_v5 = vld [vmem:[%s7699_s1 + $0xbf4] ss:$8 sps:$4 sm:$0xff]  }
 0x112   : > { %3443 = vmatprep.mubr.bf16.mxu0 %v3021_v33  ;;  %v5759_v32 = vld [vmem:[%s7699_s1 + $0x4e0] ss:$8 sps:$4 sm:$0xff]  }
 0x113   : > { %1711 = vmatpush1.bf16.msra.mxu1 %v5693_v27  ;;  %v5763_v33 = vld [vmem:[%s7699_s1 + $0xbe0] ss:$8 sps:$4 sm:$0xff]   ;;  %v4922_v27 = vcombine.low %v6984_v7, %v6989_v9 }
 0x114   : > { %3418 = vmatpush1.bf16.msra.mxu0 %v5696_v35  ;;  %1712 = vmatprep.subr.bf16.mxu1 %v5701_v36  ;;  %v7192_v35 = vcombine.low %v6993_v12, %v6752_v34  ;;  %v2902_v36 = vld [vmem:[%s6178_s30 + $0x58] sm:$0x11] }
 0x115   : > { %3419 = vmatprep.subr.bf16.mxu0 %v5704_v37  ;;  %v4517_v37 = vcombine.high %v1268_v50, %v1268_v50  ;;  %v4931_v7 = vcombine.high %v2902_v36, %v2902_v36  ;;  %v5767_v34 = vld [vmem:[%s7699_s1 + $0x4f0] ss:$8 sps:$4 sm:$0xff]  }
 0x116   : > { %v5770_v12 = vld [vmem:[%s7699_s1 + $0xbf0] ss:$8 sps:$4 sm:$0xff]  }
 0x117   : > { %1713 = vmatpush1.bf16.msra.mxu1 %v5699_v38  ;;  %v1356_v38 = vrot.slane %v4512_v30, 2  ;;  %v5805_v30 = vld [vmem:[%s7699_s1 + $0x544] ss:$8 sps:$4 sm:$0xff]  }
 0x118   : > { %3420 = vmatpush1.bf16.msra.mxu0 %v5702_v40  ;;  %1714 = vmatprep.subr.bf16.mxu1 %v5707_v41  ;;  %v1357_v40 = vrot.slane %v6266_v15, 2  ;;  %v3016_v41 = vrot.slane %v4922_v27, 1  ;;  %v5811_v27 = vld [vmem:[%s7699_s1 + $0x554] ss:$8 sps:$4 sm:$0xff]  }
 0x119   : > { %3421 = vmatprep.subr.bf16.mxu0 %v5710_v42  ;;  %v3017_v42 = vrot.slane %v7192_v35, 1 }
 0x11b   : > { %1715 = vmatpush1.bf16.msra.mxu1 %v5705_v43  ;;  %v5777_v43 = vld [vmem:[%s7699_s1 + $0x504] ss:$8 sps:$4 sm:$0xff]  }
 0x11c   : > { %3422 = vmatpush1.bf16.msra.mxu0 %v5708_v44  ;;  %1716 = vmatprep.subr.bf16.mxu1 %v5713_v46  ;;  %v5784_v44 = vld [vmem:[%s7699_s1 + $0xc04] ss:$8 sps:$4 sm:$0xff]   ;;  %v1370_v46 = vrot.slane %v4517_v37, 2 }
 0x11d   : > { %3423 = vmatprep.subr.bf16.mxu0 %v5716_v51  ;;  %v5775_v51 = vld [vmem:[%s7699_s1 + $0x500] ss:$8 sps:$4 sm:$0xff]   ;;  %v5817_v37 = vld [vmem:[%s7699_s1 + $0x564] ss:$8 sps:$4 sm:$0xff]  }
 0x11f   : > { %1717 = vmatpush1.bf16.msra.mxu1 %v5711_v52  ;;  %v1358_v52 = vsel %vm1355_vm2, %v1356_v38, %v1357_v40  ;;  %v5820_v38 = vld [vmem:[%s7699_s1 + $0xc64] ss:$8 sps:$4 sm:$0xff]  }
 0x120   : > { %3424 = vmatpush1.bf16.msra.mxu0 %v5714_v53  ;;  %1718 = vmatprep.subr.bf16.mxu1 %v5719_v58  ;;  %v3028_v53 = vrot.slane %v4931_v7, 1  ;;  %v5782_v58 = vld [vmem:[%s7699_s1 + $0xc00] ss:$8 sps:$4 sm:$0xff]  }
 0x121   : > { %3425 = vmatprep.subr.bf16.mxu0 %v5722_v60  ;;  %v3018_v60 = vsel %vm367_vm0, %v3016_v41, %v3017_v42  ;;  %v5818_v7 = vld [vmem:[%s7699_s1 + $0xc60] ss:$8 sps:$4 sm:$0xff]   ;;  %v5821_v41 = vld [vmem:[%s7699_s1 + $0x570] ss:$8 sps:$4 sm:$0xff]  }
 0x123   : > { %1719 = vmatpush1.bf16.msra.mxu1 %v5717_v61  ;;  %v4516_v61 = vcombine.low %v1268_v50, %v1268_v50  ;;  %v5808_v50 = vld [vmem:[%s7699_s1 + $0xc44] ss:$8 sps:$4 sm:$0xff]  }
 0x124   : > { %3426 = vmatpush1.bf16.msra.mxu0 %v5720_v48  ;;  %1720 = vmatprep.subr.bf16.mxu1 %v5725_v14  ;;  %v4930_v48 = vcombine.low %v2902_v36, %v2902_v36  ;;  %v7224_v14 = vld [vmem:[%s6178_s30 + $0x8] sm:$0xcc]  ;;  %v5814_v36 = vld [vmem:[%s7699_s1 + $0xc54] ss:$8 sps:$4 sm:$0xff]  }
 0x125   : > { %3427 = vmatprep.subr.bf16.mxu0 %v5728_v57  ;;  %v7227_v57 = vld [vmem:[%s6178_s30 + $0x10] sm:$0xcc] }
 0x127   : > { %1721 = vmatpush1.bf16.msra.mxu1 %v5723_v62  ;;  %v5787_v62 = vld [vmem:[%s7699_s1 + $0x514] ss:$8 sps:$4 sm:$0xff]  }
 0x128   : > { %3428 = vmatpush1.bf16.msra.mxu0 %v5726_v63  ;;  %1722 = vmatprep.subr.bf16.mxu1 %v5731_v1  ;;  %v5790_v63 = vld [vmem:[%s7699_s1 + $0xc14] ss:$8 sps:$4 sm:$0xff]   ;;  %v1371_v1 = vsel %vm1355_vm2, %v1360_v25, %v1370_v46  ;;  %v5785_v25 = vld [vmem:[%s7699_s1 + $0x510] ss:$8 sps:$4 sm:$0xff]   ;;  %v5827_v46 = vld [vmem:[%s7699_s1 + $0x580] ss:$8 sps:$4 sm:$0xff]  }
 0x129   : > { %3429 = vmatprep.subr.bf16.mxu0 %v5734_v2  ;;  %v3029_v2 = vsel %vm367_vm0, %v3020_v20, %v3028_v53  ;;  %v3026_v20 = vrot.slane %v4930_v48, 1  ;;  %v5838_v53 = vld [vmem:[%s7699_s1 + $0xc94] ss:$8 sps:$4 sm:$0xff]   ;;  %v5844_v48 = vld [vmem:[%s7699_s1 + $0xca4] ss:$8 sps:$4 sm:$0xff]  }
 0x12b   : > { %1723 = vmatpush1.bf16.msra.mxu1 %v5729_v3  ;;  %v7242_v3 = vld [vmem:[%s6178_s30 + $0x18] sm:$0xff] }
 0x12c   : > { %3430 = vmatpush1.bf16.msra.mxu0 %v5732_v4  ;;  %1724 = vmatprep.subr.bf16.mxu1 %v5737_v8  ;;  %v4515_v4 = vcombine.high %v7224_v14, %v7242_v3  ;;  %v5061_v8 = vcombine.high %v7227_v57, %v6758_v56  ;;  %v5796_v56 = vld [vmem:[%s7699_s1 + $0xc24] ss:$8 sps:$4 sm:$0xff]  }
 0x12d   : > { %3431 = vmatprep.subr.bf16.mxu0 %v5740_v10  ;;  %v5788_v10 = vld [vmem:[%s7699_s1 + $0xc10] ss:$8 sps:$4 sm:$0xff]  }
 0x12f   : > { %1725 = vmatpush1.bf16.msra.mxu1 %v5735_v11  ;;  %v1368_v11 = vrot.slane %v4516_v61, 2  ;;  %v5841_v61 = vld [vmem:[%s7699_s1 + $0x5a4] ss:$8 sps:$4 sm:$0xff]  }
 0x130   : > { %3432 = vmatpush1.bf16.msra.mxu0 %v5738_v13  ;;  %1726 = vmatprep.subr.bf16.mxu1 %v5743_v17  ;;  %v5793_v13 = vld [vmem:[%s7699_s1 + $0x524] ss:$8 sps:$4 sm:$0xff]   ;;  %v1365_v17 = vrot.slane %v4515_v4, 2  ;;  %v5845_v4 = vld [vmem:[%s7699_s1 + $0x5b0] ss:$8 sps:$4 sm:$0xff]  }
 0x131   : > { %3433 = vmatprep.subr.bf16.mxu0 %v5746_v31  ;;  %v1366_v31 = vrot.slane %v6229_v0, 2  ;;  %v5889_v0 = vld [vmem:[%s7699_s1 + $0x610] ss:$8 sps:$4 sm:$0xff]  }
 0x133   : > { %1727 = vmatpush1.bf16.msra.mxu1 %v5741_v45  ;;  %v3564_v45 = vrot.slane %v5061_v8, 2  ;;  %v5848_v8 = vld [vmem:[%s7699_s1 + $0xcb0] ss:$8 sps:$4 sm:$0xff]  }
 0x134   : > { %3434 = vmatpush1.bf16.msra.mxu0 %v5744_v49  ;;  %1728 = vmatprep.subr.bf16.mxu1 %v5749_v19  ;;  %v3565_v49 = vrot.slane %v6775_v39, 2  ;;  %v5791_v19 = vld [vmem:[%s7699_s1 + $0x520] ss:$8 sps:$4 sm:$0xff]   ;;  %v5892_v39 = vld [vmem:[%s7699_s1 + $0xd10] ss:$8 sps:$4 sm:$0xff]  }
 0x135   : > { %3435 = vmatprep.subr.bf16.mxu0 %v5752_v47  ;;  %v5794_v47 = vld [vmem:[%s7699_s1 + $0xc20] ss:$8 sps:$4 sm:$0xff]  }
 0x137   : > { %1729 = vmatpush1.bf16.msra.mxu1 %v5747_v59  ;;  %v1369_v59 = vsel %vm1355_vm2, %v1357_v40, %v1368_v11  ;;  %v5815_v40 = vld [vmem:[%s7699_s1 + $0x560] ss:$8 sps:$4 sm:$0xff]  }
 0x138   : > { %3436 = vmatpush1.bf16.msra.mxu0 %v5750_v21  ;;  %1730 = vmatprep.subr.bf16.mxu1 %v5755_v6  ;;  %v3027_v21 = vsel %vm367_vm0, %v3017_v42, %v3026_v20  ;;  %v5799_v6 = vld [vmem:[%s7699_s1 + $0x534] ss:$8 sps:$4 sm:$0xff]   ;;  %v5824_v42 = vld [vmem:[%s7699_s1 + $0xc70] ss:$8 sps:$4 sm:$0xff]   ;;  %v5851_v11 = vld [vmem:[%s7699_s1 + $0x5c0] ss:$8 sps:$4 sm:$0xff]  }
 0x139   : > { %3437 = vmatprep.subr.bf16.mxu0 %v5758_v22  ;;  %v5802_v22 = vld [vmem:[%s7699_s1 + $0xc34] ss:$8 sps:$4 sm:$0xff]   ;;  %v5854_v20 = vld [vmem:[%s7699_s1 + $0xcc0] ss:$8 sps:$4 sm:$0xff]  }
 0x13b   : > { %1731 = vmatpush1.bf16.msra.mxu1 %v5753_v23  ;;  %v1367_v23 = vsel %vm1355_vm2, %v1365_v17, %v1366_v31  ;;  %v5857_v17 = vld [vmem:[%s7699_s1 + $0x5d0] ss:$8 sps:$4 sm:$0xff]  }
 0x13c   : > { %3438 = vmatpush1.bf16.msra.mxu0 %v5756_v24  ;;  %1732 = vmatprep.subr.bf16.mxu1 %v5761_v26  ;;  %v3566_v24 = vsel %vm1355_vm2, %v3564_v45, %v3565_v49  ;;  %v5797_v26 = vld [vmem:[%s7699_s1 + $0x530] ss:$8 sps:$4 sm:$0xff]  }
 0x13d   : > { %3439 = vmatprep.subr.bf16.mxu0 %v5765_v28  ;;  %v5800_v28 = vld [vmem:[%s7699_s1 + $0xc30] ss:$8 sps:$4 sm:$0xff]  }
 0x13e   : > { %v5860_v45 = vld [vmem:[%s7699_s1 + $0xcd0] ss:$8 sps:$4 sm:$0xff]  }
 0x13f   : > { %1733 = vmatpush1.bf16.msra.mxu1 %v5759_v32  ;;  %v5803_v32 = vld [vmem:[%s7699_s1 + $0x540] ss:$8 sps:$4 sm:$0xff]  }
 0x140   : > { %3440 = vmatpush1.bf16.msra.mxu0 %v5763_v33  ;;  %1734 = vmatprep.subr.bf16.mxu1 %v5769_v29  ;;  %v5806_v33 = vld [vmem:[%s7699_s1 + $0xc40] ss:$8 sps:$4 sm:$0xff]   ;;  %v5809_v29 = vld [vmem:[%s7699_s1 + $0x550] ss:$8 sps:$4 sm:$0xff]  }
 0x141   : > { %3441 = vmatprep.subr.bf16.mxu0 %v5772_v5  ;;  %v5812_v5 = vld [vmem:[%s7699_s1 + $0xc50] ss:$8 sps:$4 sm:$0xff]  }
 0x143   : > { %1735 = vmatpush1.bf16.msra.mxu1 %v5767_v34  ;;  %v5823_v34 = vld [vmem:[%s7699_s1 + $0x574] ss:$8 sps:$4 sm:$0xff]  }
 0x144   : > { %3442 = vmatpush1.bf16.msra.mxu0 %v5770_v12  ;;  %1757 = vmatprep.subr.bf16.mxu1 %v5777_v43  ;;  %v5826_v12 = vld [vmem:[%s7699_s1 + $0xc74] ss:$8 sps:$4 sm:$0xff]   ;;  %v5829_v43 = vld [vmem:[%s7699_s1 + $0x584] ss:$8 sps:$4 sm:$0xff]  }
 0x145   : > { %3909 = vmatprep.subr.bf16.mxu0 %v5784_v44  ;;  %v5832_v44 = vld [vmem:[%s7699_s1 + $0xc84] ss:$8 sps:$4 sm:$0xff]  }
 0x146   : > { %1737 = vmatmul.mubr.bf16.vlgmr.msra.gmra.mrb[0].mxu1 %v1358_v52  ;;  %v5835_v52 = vld [vmem:[%s7699_s1 + $0x594] ss:$8 sps:$4 sm:$0xff]  }
 0x147   : > { %3444 = vmatmul.mubr.bf16.vlgmr.msra.gmra.mrb[0].mxu0 %v3018_v60  ;;  %1758 = vmatpush1.bf16.msra.mxu1 %v5775_v51  ;;  %v5830_v51 = vld [vmem:[%s7699_s1 + $0xc80] ss:$8 sps:$4 sm:$0xff]   ;;  %v5836_v60 = vld [vmem:[%s7699_s1 + $0xc90] ss:$8 sps:$4 sm:$0xff]  }
 0x148   : > { %3910 = vmatpush1.bf16.msra.mxu0 %v5782_v58  ;;  %1759 = vmatprep.subr.bf16.mxu1 %v5787_v62  ;;  %v5833_v58 = vld [vmem:[%s7699_s1 + $0x590] ss:$8 sps:$4 sm:$0xff]   ;;  %v5839_v62 = vld [vmem:[%s7699_s1 + $0x5a0] ss:$8 sps:$4 sm:$0xff]  }
 0x149   : > { %3911 = vmatprep.subr.bf16.mxu0 %v5790_v63  ;;  %1746 = vmatprep.mubr.bf16.mxu1 %v1371_v1  ;;  %v5842_v63 = vld [vmem:[%s7699_s1 + $0xca0] ss:$8 sps:$4 sm:$0xff]   ;;  %v5847_v1 = vld [vmem:[%s7699_s1 + $0x5b4] ss:$8 sps:$4 sm:$0xff]  }
 0x14a   : > { %3453 = vmatprep.mubr.bf16.mxu0 %v3029_v2  ;;  %v5850_v2 = vld [vmem:[%s7699_s1 + $0xcb4] ss:$8 sps:$4 sm:$0xff]  }
 0x14b   : > { %1760 = vmatpush1.bf16.msra.mxu1 %v5785_v25  ;;  %v5853_v25 = vld [vmem:[%s7699_s1 + $0x5c4] ss:$8 sps:$4 sm:$0xff]  }
 0x14c   : > { %3912 = vmatpush1.bf16.msra.mxu0 %v5788_v10  ;;  %1761 = vmatprep.subr.bf16.mxu1 %v5793_v13  ;;  %v5856_v10 = vld [vmem:[%s7699_s1 + $0xcc4] ss:$8 sps:$4 sm:$0xff]   ;;  %v5859_v13 = vld [vmem:[%s7699_s1 + $0x5d4] ss:$8 sps:$4 sm:$0xff]  }
 0x14d   : > { %3913 = vmatprep.subr.bf16.mxu0 %v5796_v56  ;;  %v5862_v56 = vld [vmem:[%s7699_s1 + $0xcd4] ss:$8 sps:$4 sm:$0xff]  }
 0x14e   : > { %1747 = vmatmul.mubr.bf16.gmra.mrb[4].mxu1 %v1369_v59  ;;  %v4514_v59 = vcombine.low %v7224_v14, %v7242_v3  ;;  %v5875_v14 = vld [vmem:[%s7699_s1 + $0x5f4] ss:$8 sps:$4 sm:$0xff]  }
 0x14f   : > { %3454 = vmatmul.mubr.bf16.gmra.mrb[4].mxu0 %v3027_v21  ;;  %1762 = vmatpush1.bf16.msra.mxu1 %v5791_v19  ;;  %v5866_v19 = vld [vmem:[%s7699_s1 + $0x5e4] ss:$8 sps:$4 sm:$0xff]   ;;  %v5878_v3 = vld [vmem:[%s7699_s1 + $0xcf4] ss:$8 sps:$4 sm:$0xff]  }
 0x150   : > { %3914 = vmatpush1.bf16.msra.mxu0 %v5794_v47  ;;  %1763 = vmatprep.subr.bf16.mxu1 %v5799_v6  ;;  %v5870_v47 = vld [vmem:[%s7699_s1 + $0xce4] ss:$8 sps:$4 sm:$0xff]   ;;  %v5864_v6 = vld [vmem:[%s7699_s1 + $0x5e0] ss:$8 sps:$4 sm:$0xff]  }
 0x151   : > { %3915 = vmatprep.subr.bf16.mxu0 %v5802_v22  ;;  %1789 = vmatprep.mubr.bf16.mxu1 %v1367_v23  ;;  %v1269_v21 = vld [vmem:[%s6178_s30 + $0x48] sm:$0x33]  ;;  %v5996_v23 = vld [vmem:[%s6178_s30 + $0x20] sm:$0xff] }
 0x152   : > { %3941 = vmatprep.mubr.bf16.mxu0 %v3566_v24  ;;  %v5868_v22 = vld [vmem:[%s7699_s1 + $0xce0] ss:$8 sps:$4 sm:$0xff]   ;;  %v5060_v24 = vcombine.low %v7227_v57, %v5996_v23  ;;  %v5873_v57 = vld [vmem:[%s7699_s1 + $0x5f0] ss:$8 sps:$4 sm:$0xff]   ;;  %v5921_v23 = vld [vmem:[%s7699_s1 + $0x664] ss:$8 sps:$4 sm:$0xff]  }
 0x153   : > { %1764 = vmatpush1.bf16.msra.mxu1 %v5797_v26  ;;  %v3474_v26 = vld [vmem:[%s6178_s30 + $0x50] sm:$0x33] }
 0x154   : > { %3916 = vmatpush1.bf16.msra.mxu0 %v5800_v28  ;;  %1765 = vmatprep.subr.bf16.mxu1 %v5805_v30  ;;  %v4519_v28 = vcombine.high %v1269_v21, %v1269_v21  ;;  %v1362_v30 = vrot.slane %v4514_v59, 2  ;;  %v5915_v59 = vld [vmem:[%s7699_s1 + $0x654] ss:$8 sps:$4 sm:$0xff]  }
 0x155   : > { %3917 = vmatprep.subr.bf16.mxu0 %v5808_v50  ;;  %v1363_v50 = vrot.slane %v6269_v16, 2  ;;  %v5883_v16 = vld [vmem:[%s7699_s1 + $0x604] ss:$8 sps:$4 sm:$0xff]  }
 0x157   : > { %1766 = vmatpush1.bf16.msra.mxu1 %v5803_v32  ;;  %v5065_v32 = vcombine.high %v3474_v26, %v3474_v26 }
 0x158   : > { %3918 = vmatpush1.bf16.msra.mxu0 %v5806_v33  ;;  %1767 = vmatprep.subr.bf16.mxu1 %v5811_v27  ;;  %v5876_v33 = vld [vmem:[%s7699_s1 + $0xcf0] ss:$8 sps:$4 sm:$0xff]   ;;  %v3561_v27 = vrot.slane %v5060_v24, 2  ;;  %v5924_v24 = vld [vmem:[%s7699_s1 + $0xd64] ss:$8 sps:$4 sm:$0xff]  }
 0x159   : > { %3919 = vmatprep.subr.bf16.mxu0 %v5814_v36  ;;  %v3562_v36 = vrot.slane %v6953_v55, 2  ;;  %v5886_v55 = vld [vmem:[%s7699_s1 + $0xd00] ss:$8 sps:$4 sm:$0xff]  }
 0x15b   : > { %1768 = vmatpush1.bf16.msra.mxu1 %v5809_v29  ;;  %v5888_v29 = vld [vmem:[%s7699_s1 + $0xd04] ss:$8 sps:$4 sm:$0xff]  }
 0x15c   : > { %3920 = vmatpush1.bf16.msra.mxu0 %v5812_v5  ;;  %1769 = vmatprep.subr.bf16.mxu1 %v5817_v37  ;;  %v1374_v5 = vrot.slane %v4519_v28, 2  ;;  %v5881_v37 = vld [vmem:[%s7699_s1 + $0x600] ss:$8 sps:$4 sm:$0xff]   ;;  %v5930_v28 = vld [vmem:[%s7699_s1 + $0xd74] ss:$8 sps:$4 sm:$0xff]  }
 0x15d   : > { %3921 = vmatprep.subr.bf16.mxu0 %v5820_v38  ;;  %v1364_v38 = vsel %vm1355_vm2, %v1362_v30, %v1363_v50  ;;  %v5925_v30 = vld [vmem:[%s7699_s1 + $0x670] ss:$8 sps:$4 sm:$0xff]  }
 0x15f   : > { %1770 = vmatpush1.bf16.msra.mxu1 %v5815_v40  ;;  %v3575_v40 = vrot.slane %v5065_v32, 2  ;;  %v5933_v32 = vld [vmem:[%s7699_s1 + $0x684] ss:$8 sps:$4 sm:$0xff]  }
 0x160   : > { %3922 = vmatpush1.bf16.msra.mxu0 %v5818_v7  ;;  %1771 = vmatprep.subr.bf16.mxu1 %v5823_v34  ;;  %v3563_v7 = vsel %vm1355_vm2, %v3561_v27, %v3562_v36  ;;  %v4518_v34 = vcombine.low %v1269_v21, %v1269_v21  ;;  %v5918_v21 = vld [vmem:[%s7699_s1 + $0xd54] ss:$8 sps:$4 sm:$0xff]   ;;  %v5934_v27 = vld [vmem:[%s7699_s1 + $0xd80] ss:$8 sps:$4 sm:$0xff]  }
 0x161   : > { %3923 = vmatprep.subr.bf16.mxu0 %v5826_v12  ;;  %v5064_v12 = vcombine.low %v3474_v26, %v3474_v26  ;;  %v5919_v26 = vld [vmem:[%s7699_s1 + $0x660] ss:$8 sps:$4 sm:$0xff]  }
 0x163   : > { %1772 = vmatpush1.bf16.msra.mxu1 %v5821_v41  ;;  %v7455_v41 = vld [vmem:[%s6178_s30] sm:$0x88] }
 0x164   : > { %3924 = vmatpush1.bf16.msra.mxu0 %v5824_v42  ;;  %1773 = vmatprep.subr.bf16.mxu1 %v5829_v43  ;;  %v7458_v42 = vld [vmem:[%s6178_s30 + $0x18] sm:$0xcc] }
 0x165   : > { %3925 = vmatprep.subr.bf16.mxu0 %v5832_v44  ;;  %v5891_v43 = vld [vmem:[%s7699_s1 + $0x614] ss:$8 sps:$4 sm:$0xff]  }
 0x166   : > { %v5894_v44 = vld [vmem:[%s7699_s1 + $0xd14] ss:$8 sps:$4 sm:$0xff]  }
 0x167   : > { %1774 = vmatpush1.bf16.msra.mxu1 %v5827_v46  ;;  %v1375_v46 = vsel %vm1355_vm2, %v1366_v31, %v1374_v5  ;;  %v1372_v31 = vrot.slane %v4518_v34, 2  ;;  %v5940_v5 = vld [vmem:[%s7699_s1 + $0xd90] ss:$8 sps:$4 sm:$0xff]   ;;  %v5954_v34 = vld [vmem:[%s7699_s1 + $0xdb4] ss:$8 sps:$4 sm:$0xff]  }
 0x168   : > { %3926 = vmatpush1.bf16.msra.mxu0 %v5830_v51  ;;  %1775 = vmatprep.subr.bf16.mxu1 %v5835_v52  ;;  %v3576_v51 = vsel %vm1355_vm2, %v3565_v49, %v3575_v40  ;;  %v7473_v52 = vld [vmem:[%s6178_s30 + $0x10] sm:$0xff]  ;;  %v3573_v49 = vrot.slane %v5064_v12, 2  ;;  %v5943_v40 = vld [vmem:[%s7699_s1 + $0x6a0] ss:$8 sps:$4 sm:$0xff]  }
 0x169   : > { %3927 = vmatprep.subr.bf16.mxu0 %v5838_v53  ;;  %v4649_v53 = vcombine.high %v7455_v41, %v7473_v52  ;;  %v5949_v12 = vld [vmem:[%s7699_s1 + $0x6b0] ss:$8 sps:$4 sm:$0xff]  }
 0x16b   : > { %1776 = vmatpush1.bf16.msra.mxu1 %v5833_v58  ;;  %v5063_v58 = vcombine.high %v7458_v42, %v6989_v9  ;;  %v5900_v9 = vld [vmem:[%s7699_s1 + $0xd24] ss:$8 sps:$4 sm:$0xff]  }
 0x16c   : > { %3928 = vmatpush1.bf16.msra.mxu0 %v5836_v60  ;;  %1777 = vmatprep.subr.bf16.mxu1 %v5841_v61  ;;  %v5897_v60 = vld [vmem:[%s7699_s1 + $0x624] ss:$8 sps:$4 sm:$0xff]   ;;  %v1911_v61 = vrot.slane %v4649_v53, 3  ;;  %v5958_v53 = vld [vmem:[%s7699_s1 + $0xdc0] ss:$8 sps:$4 sm:$0xff]  }
 0x16d   : > { %3929 = vmatprep.subr.bf16.mxu0 %v5844_v48  ;;  %v1912_v48 = vrot.slane %v6208_v54, 3 }
 0x16f   : > { %1778 = vmatpush1.bf16.msra.mxu1 %v5839_v62  ;;  %v3570_v62 = vrot.slane %v5063_v58, 2  ;;  %v5963_v58 = vld [vmem:[%s7699_s1 + $0x6d4] ss:$8 sps:$4 sm:$0xff]  }
 0x170   : > { %3930 = vmatpush1.bf16.msra.mxu0 %v5842_v63  ;;  %1779 = vmatprep.subr.bf16.mxu1 %v5847_v1  ;;  %v3571_v63 = vrot.slane %v7010_v18, 2  ;;  %v5895_v1 = vld [vmem:[%s7699_s1 + $0x620] ss:$8 sps:$4 sm:$0xff]  }
 0x171   : > { %3931 = vmatprep.subr.bf16.mxu0 %v5850_v2  ;;  %v5898_v2 = vld [vmem:[%s7699_s1 + $0xd20] ss:$8 sps:$4 sm:$0xff]  }
 0x173   : > { %1780 = vmatpush1.bf16.msra.mxu1 %v5845_v4  ;;  %v1373_v4 = vsel %vm1355_vm2, %v1363_v50, %v1372_v31  ;;  %v5928_v50 = vld [vmem:[%s7699_s1 + $0xd70] ss:$8 sps:$4 sm:$0xff]  }
 0x174   : > { %3932 = vmatpush1.bf16.msra.mxu0 %v5848_v8  ;;  %1781 = vmatprep.subr.bf16.mxu1 %v5853_v25  ;;  %v3574_v8 = vsel %vm1355_vm2, %v3562_v36, %v3573_v49  ;;  %v5903_v25 = vld [vmem:[%s7699_s1 + $0x634] ss:$8 sps:$4 sm:$0xff]   ;;  %v5964_v31 = vld [vmem:[%s7699_s1 + $0xdd0] ss:$8 sps:$4 sm:$0xff]   ;;  %v5972_v49 = vld [vmem:[%s7699_s1 + $0x6e4] ss:$8 sps:$4 sm:$0xff]  }
 0x175   : > { %3933 = vmatprep.subr.bf16.mxu0 %v5856_v10  ;;  %v5906_v10 = vld [vmem:[%s7699_s1 + $0xd34] ss:$8 sps:$4 sm:$0xff]  }
 0x176   : > { %v5939_v36 = vld [vmem:[%s7699_s1 + $0x694] ss:$8 sps:$4 sm:$0xff]  }
 0x177   : > { %1782 = vmatpush1.bf16.msra.mxu1 %v5851_v11  ;;  %v1913_v11 = vsel %vm1907_vm1, %v1911_v61, %v1912_v48  ;;  %v3475_v61 = vld [vmem:[%s6178_s30 + $0x58] sm:$0x33] }
 0x178   : > { %3934 = vmatpush1.bf16.msra.mxu0 %v5854_v20  ;;  %1783 = vmatprep.subr.bf16.mxu1 %v5859_v13  ;;  %v3572_v20 = vsel %vm1355_vm2, %v3570_v62, %v3571_v63  ;;  %v5901_v13 = vld [vmem:[%s7699_s1 + $0x630] ss:$8 sps:$4 sm:$0xff]   ;;  %v4648_v62 = vcombine.low %v7455_v41, %v7473_v52  ;;  %v5982_v41 = vld [vmem:[%s7699_s1 + $0xdf4] ss:$8 sps:$4 sm:$0xff]  }
 0x179   : > { %3935 = vmatprep.subr.bf16.mxu0 %v5862_v56  ;;  %v5904_v56 = vld [vmem:[%s7699_s1 + $0xd30] ss:$8 sps:$4 sm:$0xff]  }
 0x17b   : > { %1784 = vmatpush1.bf16.msra.mxu1 %v5857_v17  ;;  %v5909_v17 = vld [vmem:[%s7699_s1 + $0x644] ss:$8 sps:$4 sm:$0xff]  }
 0x17c   : > { %3936 = vmatpush1.bf16.msra.mxu0 %v5860_v45  ;;  %1785 = vmatprep.subr.bf16.mxu1 %v5866_v19  ;;  %v5912_v45 = vld [vmem:[%s7699_s1 + $0xd44] ss:$8 sps:$4 sm:$0xff]   ;;  %v5907_v19 = vld [vmem:[%s7699_s1 + $0x640] ss:$8 sps:$4 sm:$0xff]  }
 0x17d   : > { %3937 = vmatprep.subr.bf16.mxu0 %v5870_v47  ;;  %v5910_v47 = vld [vmem:[%s7699_s1 + $0xd40] ss:$8 sps:$4 sm:$0xff]  }
 0x17f   : > { %1786 = vmatpush1.bf16.msra.mxu1 %v5864_v6  ;;  %v5913_v6 = vld [vmem:[%s7699_s1 + $0x650] ss:$8 sps:$4 sm:$0xff]  }
 0x180   : > { %3938 = vmatpush1.bf16.msra.mxu0 %v5868_v22  ;;  %1787 = vmatprep.subr.bf16.mxu1 %v5875_v14  ;;  %v5916_v22 = vld [vmem:[%s7699_s1 + $0xd50] ss:$8 sps:$4 sm:$0xff]   ;;  %v5922_v14 = vld [vmem:[%s7699_s1 + $0xd60] ss:$8 sps:$4 sm:$0xff]  }
 0x181   : > { %3939 = vmatprep.subr.bf16.mxu0 %v5878_v3  ;;  %v5927_v3 = vld [vmem:[%s7699_s1 + $0x674] ss:$8 sps:$4 sm:$0xff]  }
 0x183   : > { %1788 = vmatpush1.bf16.msra.mxu1 %v5873_v57  ;;  %v5936_v57 = vld [vmem:[%s7699_s1 + $0xd84] ss:$8 sps:$4 sm:$0xff]  }
 0x184   : > { %3940 = vmatpush1.bf16.msra.mxu0 %v5876_v33  ;;  %2256 = vmatprep.subr.bf16.mxu1 %v5883_v16  ;;  %v5931_v33 = vld [vmem:[%s7699_s1 + $0x680] ss:$8 sps:$4 sm:$0xff]   ;;  %v5942_v16 = vld [vmem:[%s7699_s1 + $0xd94] ss:$8 sps:$4 sm:$0xff]  }
 0x185   : > { %3962 = vmatprep.subr.bf16.mxu0 %v5888_v29  ;;  %v5937_v29 = vld [vmem:[%s7699_s1 + $0x690] ss:$8 sps:$4 sm:$0xff]  }
 0x186   : > { %1790 = vmatmul.mubr.bf16.vlgmr.msra.gmra.mrb[0].mxu1 %v1364_v38  ;;  %v5948_v38 = vld [vmem:[%s7699_s1 + $0xda4] ss:$8 sps:$4 sm:$0xff]  }
 0x187   : > { %3942 = vmatmul.mubr.bf16.vlgmr.msra.gmra.mrb[0].mxu0 %v3563_v7  ;;  %2257 = vmatpush1.bf16.msra.mxu1 %v5881_v37  ;;  %v5945_v37 = vld [vmem:[%s7699_s1 + $0x6a4] ss:$8 sps:$4 sm:$0xff]   ;;  %v5951_v7 = vld [vmem:[%s7699_s1 + $0x6b4] ss:$8 sps:$4 sm:$0xff]  }
 0x188   : > { %3963 = vmatpush1.bf16.msra.mxu0 %v5886_v55  ;;  %2258 = vmatprep.subr.bf16.mxu1 %v5891_v43  ;;  %v5946_v55 = vld [vmem:[%s7699_s1 + $0xda0] ss:$8 sps:$4 sm:$0xff]   ;;  %v5952_v43 = vld [vmem:[%s7699_s1 + $0xdb0] ss:$8 sps:$4 sm:$0xff]  }
 0x189   : > { %3964 = vmatprep.subr.bf16.mxu0 %v5894_v44  ;;  %1799 = vmatprep.mubr.bf16.mxu1 %v1375_v46  ;;  %v5957_v44 = vld [vmem:[%s7699_s1 + $0x6c4] ss:$8 sps:$4 sm:$0xff]  }
 0x18a   : > { %3951 = vmatprep.mubr.bf16.mxu0 %v3576_v51  ;;  %v5960_v46 = vld [vmem:[%s7699_s1 + $0xdc4] ss:$8 sps:$4 sm:$0xff]   ;;  %v5955_v51 = vld [vmem:[%s7699_s1 + $0x6c0] ss:$8 sps:$4 sm:$0xff]  }
 0x18b   : > { %2259 = vmatpush1.bf16.msra.mxu1 %v5889_v0  ;;  %v5966_v0 = vld [vmem:[%s7699_s1 + $0xdd4] ss:$8 sps:$4 sm:$0xff]  }
 0x18c   : > { %3965 = vmatpush1.bf16.msra.mxu0 %v5892_v39  ;;  %2260 = vmatprep.subr.bf16.mxu1 %v5897_v60  ;;  %v5961_v39 = vld [vmem:[%s7699_s1 + $0x6d0] ss:$8 sps:$4 sm:$0xff]   ;;  %v5976_v60 = vld [vmem:[%s7699_s1 + $0xde4] ss:$8 sps:$4 sm:$0xff]  }
 0x18d   : > { %3966 = vmatprep.subr.bf16.mxu0 %v5900_v9  ;;  %v1820_v9 = vld [vmem:[%s6178_s30 + $0x40] sm:$0x77] }
 0x18e   : > { %1800 = vmatmul.mubr.bf16.gmra.mrb[4].mxu1 %v1373_v4  ;;  %v5998_v4 = vld [vmem:[%s6178_s30 + $0x28] sm:$0xff]  ;;  %v4653_v52 = vcombine.high %v1820_v9, %v1820_v9 }
 0x18f   : > { %3952 = vmatmul.mubr.bf16.gmra.mrb[4].mxu0 %v3574_v8  ;;  %2261 = vmatpush1.bf16.msra.mxu1 %v5895_v1  ;;  %v5970_v1 = vld [vmem:[%s7699_s1 + $0x6e0] ss:$8 sps:$4 sm:$0xff]   ;;  %v5062_v8 = vcombine.low %v7458_v42, %v5998_v4  ;;  %v5977_v42 = vld [vmem:[%s7699_s1 + $0x6f0] ss:$8 sps:$4 sm:$0xff]  }
 0x190   : > { %3967 = vmatpush1.bf16.msra.mxu0 %v5898_v2  ;;  %2262 = vmatprep.subr.bf16.mxu1 %v5903_v25  ;;  %v5974_v2 = vld [vmem:[%s7699_s1 + $0xde0] ss:$8 sps:$4 sm:$0xff]   ;;  %v5979_v25 = vld [vmem:[%s7699_s1 + $0x6f4] ss:$8 sps:$4 sm:$0xff]  }
 0x191   : > { %3968 = vmatprep.subr.bf16.mxu0 %v5906_v10  ;;  %2288 = vmatprep.mubr.bf16.mxu1 %v1913_v11  ;;  %v5067_v10 = vcombine.high %v3475_v61, %v3475_v61  ;;  %v1908_v11 = vrot.slane %v4648_v62, 3 }
 0x192   : > { %3994 = vmatprep.mubr.bf16.mxu0 %v3572_v20  ;;  %v1909_v20 = vrot.slane %v6266_v15, 3 }
 0x193   : > { %2263 = vmatpush1.bf16.msra.mxu1 %v5901_v13  ;;  %v5980_v13 = vld [vmem:[%s7699_s1 + $0xdf0] ss:$8 sps:$4 sm:$0xff]  }
 0x194   : > { %3969 = vmatpush1.bf16.msra.mxu0 %v5904_v56  ;;  %2264 = vmatprep.subr.bf16.mxu1 %v5909_v17  ;;  %v3567_v56 = vrot.slane %v5062_v8, 2  ;;  %v3568_v17 = vrot.slane %v7192_v35, 2 }
 0x195   : > { %3970 = vmatprep.subr.bf16.mxu0 %v5912_v45  ;;  %v1922_v45 = vrot.slane %v4653_v52, 3 }
 0x196   : > { %v3569_v15 = vsel %vm1355_vm2, %v3567_v56, %v3568_v17 }
 0x197   : > { %2265 = vmatpush1.bf16.msra.mxu1 %v5907_v19  ;;  %v3579_v19 = vrot.slane %v5067_v10, 2 }
 0x198   : > { %3971 = vmatpush1.bf16.msra.mxu0 %v5910_v47  ;;  %2266 = vmatprep.subr.bf16.mxu1 %v5915_v59  ;;  %v1910_v47 = vsel %vm1907_vm1, %v1908_v11, %v1909_v20  ;;  %v4652_v59 = vcombine.low %v1820_v9, %v1820_v9 }
 0x199   : > { %3972 = vmatprep.subr.bf16.mxu0 %v5918_v21  ;;  %v5066_v21 = vcombine.low %v3475_v61, %v3475_v61  ;;  %v3580_v35 = vsel %vm1355_vm2, %v3571_v63, %v3579_v19 }
 0x19b   : > { %2267 = vmatpush1.bf16.msra.mxu1 %v5913_v6  ;;  %v1923_v6 = vsel %vm1907_vm1, %v1912_v48, %v1922_v45 }
 0x19c   : > { %3973 = vmatpush1.bf16.msra.mxu0 %v5916_v22  ;;  %2268 = vmatprep.subr.bf16.mxu1 %v5921_v23  ;;  %v1920_v22 = vrot.slane %v4652_v59, 3  ;;  %v3577_v23 = vrot.slane %v5066_v21, 2  ;;  %v4105_v59 = vlaneseq }
 0x19d   : > { %3974 = vmatprep.subr.bf16.mxu0 %v5924_v24 }
 0x19e   : > { %v1921_v24 = vsel %vm1907_vm1, %v1909_v20, %v1920_v22  ;;  %vm4119_vm3 = vcmp.lt.s32.totalorder %v4105_v59, 256 }
 0x19f   : > { %2269 = vmatpush1.bf16.msra.mxu1 %v5919_v26  ;;  %v3578_v26 = vsel %vm1355_vm2, %v3568_v17, %v3577_v23 }
 0x1a0   : > { %3975 = vmatpush1.bf16.msra.mxu0 %v5922_v14  ;;  %2270 = vmatprep.subr.bf16.mxu1 %v5927_v3 }
 0x1a1   : > { %3976 = vmatprep.subr.bf16.mxu0 %v5930_v28 }
 0x1a3   : > { %2271 = vmatpush1.bf16.msra.mxu1 %v5925_v30 }
 0x1a4   : > { %3977 = vmatpush1.bf16.msra.mxu0 %v5928_v50  ;;  %2272 = vmatprep.subr.bf16.mxu1 %v5933_v32 }
 0x1a5   : > { %3978 = vmatprep.subr.bf16.mxu0 %v5936_v57 }
 0x1a7   : > { %2273 = vmatpush1.bf16.msra.mxu1 %v5931_v33 }
 0x1a8   : > { %3979 = vmatpush1.bf16.msra.mxu0 %v5934_v27  ;;  %2274 = vmatprep.subr.bf16.mxu1 %v5939_v36 }
 0x1a9   : > { %3980 = vmatprep.subr.bf16.mxu0 %v5942_v16 }
 0x1ab   : > { %2275 = vmatpush1.bf16.msra.mxu1 %v5937_v29 }
 0x1ac   : > { %3981 = vmatpush1.bf16.msra.mxu0 %v5940_v5  ;;  %2276 = vmatprep.subr.bf16.mxu1 %v5945_v37 }
 0x1ad   : > { %3982 = vmatprep.subr.bf16.mxu0 %v5948_v38 }
 0x1af   : > { %2277 = vmatpush1.bf16.msra.mxu1 %v5943_v40 }
 0x1b0   : > { %3983 = vmatpush1.bf16.msra.mxu0 %v5946_v55  ;;  %2278 = vmatprep.subr.bf16.mxu1 %v5951_v7 }
 0x1b1   : > { %3984 = vmatprep.subr.bf16.mxu0 %v5954_v34 }
 0x1b3   : > { %2279 = vmatpush1.bf16.msra.mxu1 %v5949_v12 }
 0x1b4   : > { %3985 = vmatpush1.bf16.msra.mxu0 %v5952_v43  ;;  %2280 = vmatprep.subr.bf16.mxu1 %v5957_v44 }
 0x1b5   : > { %3986 = vmatprep.subr.bf16.mxu0 %v5960_v46 }
 0x1b7   : > { %2281 = vmatpush1.bf16.msra.mxu1 %v5955_v51 }
 0x1b8   : > { %3987 = vmatpush1.bf16.msra.mxu0 %v5958_v53  ;;  %2282 = vmatprep.subr.bf16.mxu1 %v5963_v58 }
 0x1b9   : > { %3988 = vmatprep.subr.bf16.mxu0 %v5966_v0 }
 0x1bb   : > { %2283 = vmatpush1.bf16.msra.mxu1 %v5961_v39 }
 0x1bc   : > { %3989 = vmatpush1.bf16.msra.mxu0 %v5964_v31  ;;  %2284 = vmatprep.subr.bf16.mxu1 %v5972_v49 }
 0x1bd   : > { %3990 = vmatprep.subr.bf16.mxu0 %v5976_v60 }
 0x1bf   : > { %2285 = vmatpush1.bf16.msra.mxu1 %v5970_v1 }
 0x1c0   : > { %3991 = vmatpush1.bf16.msra.mxu0 %v5974_v2  ;;  %2286 = vmatprep.subr.bf16.mxu1 %v5979_v25 }
 0x1c1   : > { %3992 = vmatprep.subr.bf16.mxu0 %v5982_v41 }
 0x1c3   : > { %2287 = vmatpush1.bf16.msra.mxu1 %v5977_v42 }
 0x1c4   : > { %3993 = vmatpush1.bf16.msra.mxu0 %v5980_v13 }
 0x1c6   : > { %2289 = vmatmul.mubr.bf16.vlgmr.msra.gmra.mrb[0].mxu1 %v1910_v47  ;;  %v6007_v47 = vmov 1966171168  }
 0x1c7   : > { %3995 = vmatmul.mubr.bf16.vlgmr.msra.gmra.mrb[0].mxu0 %v3569_v15  ;;  %2298 = vmatprep.mubr.bf16.mxu1 %v1923_v6  ;;  %v4103_v15 = vunpack.c.l.s4 %v6007_v47 }
 0x1c8   : > { %4004 = vmatprep.mubr.bf16.mxu0 %v3580_v35 }
 0x1ce   : > { %2299 = vmatmul.mubr.bf16.gmra.mrb[4].mxu1 %v1921_v24 }
 0x1cf   : > { %4005 = vmatmul.mubr.bf16.gmra.mrb[4].mxu0 %v3578_v26 }
 0x299   : > { %v2290_v14 = vpop.f32.mrb[0].mxu1 }
 0x29a   : > { %v3996_v54 = vpop.f32.mrb[0].mxu0  ;;  %v2292_v3 = vpop.f32.mrb[1].mxu1 }
 0x29b   : > { %v5145_v48 = vadd.f32 %v3996_v54, %v2290_v14  ;;  %v3998_v18 = vpop.f32.mrb[1].mxu0  ;;  %v2294_v63 = vpop.f32.mrb[2].mxu1  ;;  %v4104_v54 = vunpack.c.0.s8 %v4103_v15 }
 0x29c   : > { %v5146_v28 = vadd.f32 %v3998_v18, %v2292_v3  ;;  %v4000_v30 = vpop.f32.mrb[2].mxu0  ;;  %v2296_v32 = vpop.f32.mrb[3].mxu1 }
 0x29d   : > { %v5147_v50 = vadd.f32 %v4000_v30, %v2294_v63  ;;  %v4002_v57 = vpop.f32.mrb[3].mxu0  ;;  %v4071_v36 = vmul.f32 %v5145_v48, %v5145_v48 }
 0x29e   : > { %v5141_v33 = vpack.c.bf16 %v5146_v28, %v5145_v48  ;;  %v5148_v27 = vadd.f32 %v4002_v57, %v2296_v32  ;;  %v4072_v5 = vmul.f32 %v5146_v28, %v5146_v28 }
 0x29f   : > { %v4051_v16 = vadd.f32 %v5147_v50, %v5145_v48  ;;  %v4073_v29 = vmul.f32 %v5147_v50, %v5147_v50  ;;  %v4106_v48 = vshrl.u32 %v4105_v59, 7 }
 0x2a0   : > { %4047 = vst [vmem:[%s7685_s24] sm:$0xff] %v5141_v33  ;;  %v5142_v37 = vpack.c.bf16 %v5148_v27, %v5147_v50  ;;  %v4060_v38 = vadd.f32 %v5148_v27, %v5146_v28  ;;  %v4074_v40 = vmul.f32 %v5148_v27, %v5148_v27 }
 0x2a1   : > { %v4079_v55 = vadd.f32 %v4073_v29, %v4071_v36  ;;  %v2300_v34 = vpop.f32.mrb[4].mxu1  ;;  %v4107_v33 = vsub.s32 %v4104_v54, %v4106_v48 }
 0x2a2   : > { %4048 = vst [vmem:[%s7685_s24 + $0x8] sm:$0xff] %v5142_v37  ;;  %v4088_v7 = vadd.f32 %v4074_v40, %v4072_v5  ;;  %v4006_v12 = vpop.f32.mrb[4].mxu0  ;;  %v2302_v44 = vpop.f32.mrb[5].mxu1 }
 0x2a3   : > { %v5149_v43 = vadd.f32 %v4006_v12, %v2300_v34  ;;  %v4008_v46 = vpop.f32.mrb[5].mxu0  ;;  %v2304_v53 = vpop.f32.mrb[6].mxu1 }
 0x2a4   : > { %v5150_v51 = vadd.f32 %v4008_v46, %v2302_v44  ;;  %v4010_v58 = vpop.f32.mrb[6].mxu0  ;;  %v2306_v49 = vpop.f32.mrb[7].mxu1 }
 0x2a5   : > { %v4052_v0 = vadd.f32 %v5149_v43, %v4051_v16  ;;  %v4075_v39 = vmul.f32 %v5149_v43, %v5149_v43  ;;  %v5151_v31 = vadd.f32 %v4010_v58, %v2304_v53  ;;  %v4012_v60 = vpop.f32.mrb[7].mxu0 }
 0x2a6   : > { %v5143_v9 = vpack.c.bf16 %v5150_v51, %v5149_v43  ;;  %v4061_v61 = vadd.f32 %v5150_v51, %v4060_v38  ;;  %v4076_v62 = vmul.f32 %v5150_v51, %v5150_v51  ;;  %v5152_v1 = vadd.f32 %v4012_v60, %v2306_v49 }
 0x2a7   : > { %v4080_v2 = vadd.f32 %v4079_v55, %v4075_v39  ;;  %v4053_v4 = vadd.f32 %v5151_v31, %v4052_v0  ;;  %v4077_v8 = vmul.f32 %v5151_v31, %v5151_v31 }
 0x2a8   : > { %4049 = vst [vmem:[%s7685_s24 + $0x10] sm:$0xff] %v5143_v9  ;;  %v4089_v25 = vadd.f32 %v4088_v7, %v4076_v62  ;;  %v5144_v41 = vpack.c.bf16 %v5152_v1, %v5151_v31  ;;  %v4062_v52 = vadd.f32 %v5152_v1, %v4061_v61  ;;  %v4078_v10 = vmul.f32 %v5152_v1, %v5152_v1 }
 0x2a9   : > { %v4054_v11 = vrot.slane %v4053_v4, 4  ;;  %v4081_v20 = vadd.f32 %v4080_v2, %v4077_v8 }
 0x2aa   : > { %4050 = vst [vmem:[%s7685_s24 + $0x18] sm:$0xff] %v5144_v41  ;;  %v4063_v42 = vrot.slane %v4062_v52, 4  ;;  %v4090_v13 = vadd.f32 %v4089_v25, %v4078_v10 }
 0x2ab   : > { %v4055_v56 = vadd.f32 %v4054_v11, %v4053_v4  ;;  %v4082_v17 = vrot.slane %v4081_v20, 4 }
 0x2ac   : > { %v4064_v45 = vadd.f32 %v4063_v42, %v4062_v52  ;;  %v4091_v19 = vrot.slane %v4090_v13, 4 }
 0x2ad   : > { %v4056_v21 = vrot.slane %v4055_v56, 2  ;;  %v4083_v6 = vadd.f32 %v4082_v17, %v4081_v20 }
 0x2ae   : > { %v4065_v35 = vrot.slane %v4064_v45, 2  ;;  %v4092_v22 = vadd.f32 %v4091_v19, %v4090_v13 }
 0x2af   : > { %v4057_v23 = vadd.f32 %v4056_v21, %v4055_v56  ;;  %v4084_v24 = vrot.slane %v4083_v6, 2 }
 0x2b0   : > { %v4066_v26 = vadd.f32 %v4065_v35, %v4064_v45  ;;  %v4093_v14 = vrot.slane %v4092_v22, 2 }
 0x2b1   : > { %v4058_v3 = vrot.slane %v4057_v23, 1  ;;  %v4085_v18 = vadd.f32 %v4084_v24, %v4083_v6 }
 0x2b2   : > { %v4067_v28 = vrot.slane %v4066_v26, 1  ;;  %v4094_v63 = vadd.f32 %v4093_v14, %v4092_v22 }
 0x2b3   : > { %v4059_v30 = vadd.f32 %v4058_v3, %v4057_v23  ;;  %v4086_v50 = vrot.slane %v4085_v18, 1 }
 0x2b4   : > { %v4068_v32 = vadd.f32 %v4067_v28, %v4066_v26  ;;  %v4095_v57 = vrot.slane %v4094_v63, 1 }
 0x2b5   : > { %v4087_v27 = vadd.f32 %v4086_v50, %v4085_v18 }
 0x2b6   : > { %v4096_v36 = vadd.f32 %v4095_v57, %v4094_v63  ;;  %v4101_v16 = vcombine.low %v4059_v30, %v4068_v32 }
 0x2b8   : > { %v4108_v29 = vrot.slane %v4101_v16, %v4107_v33  ;;  %v4124_v5 = vcombine.low %v4087_v27, %v4096_v36 }
 0x2ba   : > { %v4115_v37 = vrot.slane %v4108_v29, %v4107_v33  ;;  %v4131_v38 = vrot.slane %v4124_v5, %v4107_v33 }
 0x2bc   : > { %4121 = vst.msk [vmem:[%s183_s28] ss:$2 sm:$0x3] %vm4119_vm3, %v4115_v37  ;;  %v4138_v40 = vrot.slane %v4131_v38, %v4107_v33 }
 0x2be   : > { %5136 = vst.msk [vmem:[%s183_s28 + $0x1] ss:$2 sm:$0x3] %vm4119_vm3, %v4138_v40 }
 0x2bf PF: > { %s14_s12 = sadd.s32 1, %s6005_s12  }
 0x2c0   : > { %p11_p4 = scmp.ge.s32.totalorder %s14_s12, 4  }
 0x2c2   :  { %13 = sbr.rel (!%p11_p4) target bundleno = 1 (0x1), region = 77 }

// kernel: patchgan_forward.17
= control target key start
LH: loop header
LB: loop body
LE: loop exit
PB: predicated region body
PF: predicated region fallthrough
CT: control target
= control target key end

     0   :  { %s7895_s9 = smov 0   ;;  %s9496_s0 = inlined_call_operand.vmem [shape: bf16[2,18,1024], index: 0, kind: input, shape index: {}]   ;;  %s9497_s1 = inlined_call_operand.vmem [shape: bf16[7,1024,128], index: 1, kind: input, shape index: {}]   ;;  %s9498_s2 = inlined_call_operand.vmem [shape: f32[2,12,128], index: 2, kind: output, shape index: {}]  }
   0x1 LB: > { %s5496_s10 = sadd.s32 4294967295, %s7878_s9   ;;  %p5500_p0 = scmp.ge.s32.totalorder %s7878_s9, 1  ;;  %s7878_s9 = sphi %s7895_s9, %s12_s9  }
   0x2   : > { %p112_p1 = scmp.lt.s32.totalorder %s7878_s9, 3 }
   0x4   : > { %p113_p2 = pnand %p5500_p0, %p112_p1 }
   0x5   : > { %v7412_v0 = vld [vmem:[%s9497_s1 + $0x240] sm:$0xff] (!%p113_p2)   ;;  %v7416_v4 = vld [vmem:[%s9497_s1 + $0x248] sm:$0xff] (!%p113_p2)   ;;  %v7420_v8 = vld [vmem:[%s9497_s1 + $0x250] sm:$0xff] (!%p113_p2)   ;;  %p134_p3 = scmp.lt.s32.totalorder (!%p113_p2), %s5496_s10, 1  ;;  %vm4040_vm0 = vsmask.f32 (!%p113_p2), 5376 }
   0x6   : > { %116 = sbr.rel (%p113_p2) target bundleno = 690 (0x2b2), region = 28  ;;  %v7413_v1 = vld [vmem:[%s9497_s1 + $0x2c0] sm:$0xff] (!%p113_p2)   ;;  %6787 = vmatprep.subr.bf16.mxu0 (!%p113_p2), %v7412_v0  ;;  %v7417_v5 = vld [vmem:[%s9497_s1 + $0x2c8] sm:$0xff] (!%p113_p2)   ;;  %v7421_v9 = vld [vmem:[%s9497_s1 + $0x2d0] sm:$0xff] (!%p113_p2)   ;;  %vm4856_vm1 = vcmask (!%p113_p2), 1044480  }
   0x7   : > { %v7414_v2 = vld [vmem:[%s9497_s1 + $0x200] sm:$0xff] (!%p113_p2)   ;;  %6809 = vmatprep.subr.bf16.mxu1 (!%p113_p2), %v7413_v1  ;;  %v7418_v6 = vld [vmem:[%s9497_s1 + $0x208] sm:$0xff] (!%p113_p2)   ;;  %v7422_v10 = vld [vmem:[%s9497_s1 + $0x210] sm:$0xff] (!%p113_p2)  }
   0x8   : > { %v7415_v3 = vld [vmem:[%s9497_s1 + $0x280] sm:$0xff] (!%p113_p2)   ;;  %6788 = vmatpush3.bf16.msra.mxu0 (!%p113_p2), %v7414_v2  ;;  %v7419_v7 = vld [vmem:[%s9497_s1 + $0x288] sm:$0xff] (!%p113_p2)   ;;  %v7423_v11 = vld [vmem:[%s9497_s1 + $0x290] sm:$0xff] (!%p113_p2)  }
   0x9   : > { %6810 = vmatpush3.bf16.msra.mxu1 (!%p113_p2), %v7415_v3  ;;  %6789 = vmatprep.subr.bf16.mxu0 (!%p113_p2), %v7416_v4  ;;  %v7424_v12 = vld [vmem:[%s9497_s1 + $0x258] sm:$0xff] (!%p113_p2)   ;;  %v7428_v16 = vld [vmem:[%s9497_s1 + $0x260] sm:$0xff] (!%p113_p2)   ;;  %v7432_v20 = vld [vmem:[%s9497_s1 + $0x268] sm:$0xff] (!%p113_p2)  }
   0xa   : > { %6811 = vmatprep.subr.bf16.mxu1 (!%p113_p2), %v7417_v5  ;;  %v7425_v13 = vld [vmem:[%s9497_s1 + $0x2d8] sm:$0xff] (!%p113_p2)   ;;  %v7429_v17 = vld [vmem:[%s9497_s1 + $0x2e0] sm:$0xff] (!%p113_p2)   ;;  %v7433_v21 = vld [vmem:[%s9497_s1 + $0x2e8] sm:$0xff] (!%p113_p2)  }
   0xb   : > { %v7426_v14 = vld [vmem:[%s9497_s1 + $0x218] sm:$0xff] (!%p113_p2)   ;;  %v7430_v18 = vld [vmem:[%s9497_s1 + $0x220] sm:$0xff] (!%p113_p2)   ;;  %v7434_v22 = vld [vmem:[%s9497_s1 + $0x228] sm:$0xff] (!%p113_p2)  }
   0xc   : > { %6790 = vmatpush3.bf16.msra.mxu0 (!%p113_p2), %v7418_v6  ;;  %v7427_v15 = vld [vmem:[%s9497_s1 + $0x298] sm:$0xff] (!%p113_p2)   ;;  %v7431_v19 = vld [vmem:[%s9497_s1 + $0x2a0] sm:$0xff] (!%p113_p2)   ;;  %v7435_v23 = vld [vmem:[%s9497_s1 + $0x2a8] sm:$0xff] (!%p113_p2)  }
   0xd   : > { %6812 = vmatpush3.bf16.msra.mxu1 %v7419_v7  ;;  %6791 = vmatprep.subr.bf16.mxu0 %v7420_v8  ;;  %s9500_s10 = smov (!%p134_p3, %s5496_s10), 1  ;;  %v7436_v24 = vld [vmem:[%s9497_s1 + $0x270] sm:$0xff]   ;;  %v7440_v28 = vld [vmem:[%s9497_s1 + $0x278] sm:$0xff]   ;;  %v7444_v40 = vld [vmem:[%s9497_s1 + $0x340] sm:$0xff]  }
   0xe   : > { %6813 = vmatprep.subr.bf16.mxu1 %v7421_v9  ;;  %v7437_v25 = vld [vmem:[%s9497_s1 + $0x2f0] sm:$0xff]   ;;  %s7403_s11 = smul.u32 96, %s9500_s10  ;;  %v7441_v29 = vld [vmem:[%s9497_s1 + $0x2f8] sm:$0xff]   ;;  %v7445_v45 = vld [vmem:[%s9497_s1 + $0x3c0] sm:$0xff]  }
   0xf   : > { %v7438_v26 = vld [vmem:[%s9497_s1 + $0x230] sm:$0xff]   ;;  %v7442_v30 = vld [vmem:[%s9497_s1 + $0x238] sm:$0xff]   ;;  %v7446_v52 = vld [vmem:[%s9497_s1 + $0x300] sm:$0xff]  }
  0x10   : > { %6792 = vmatpush3.bf16.msra.mxu0 %v7422_v10  ;;  %v7439_v27 = vld [vmem:[%s9497_s1 + $0x2b0] sm:$0xff]   ;;  %s8003_s22 = scalar_lea.vmem %s9496_s0, %s7403_s11  ;;  %v7443_v31 = vld [vmem:[%s9497_s1 + $0x2b8] sm:$0xff]   ;;  %v7447_v55 = vld [vmem:[%s9497_s1 + $0x380] sm:$0xff]  }
  0x11   : > { %6814 = vmatpush3.bf16.msra.mxu1 %v7423_v11  ;;  %6793 = vmatprep.subr.bf16.mxu0 %v7424_v12  ;;  %v8012_v32 = vld [vmem:[%s8003_s22] sm:$0xff]  ;;  %v8016_v34 = vld [vmem:[%s8003_s22 + $0x8] sm:$0xff]  ;;  %v7452_v0 = vld [vmem:[%s9497_s1 + $0x350] sm:$0xff]  }
  0x12   : > { %6815 = vmatprep.subr.bf16.mxu1 %v7425_v13  ;;  %v281_v33 = vld [vmem:[%s8003_s22 + $0x20] sm:$0x77]  ;;  %v282_v36 = vld [vmem:[%s8003_s22 + $0x28] sm:$0x77]  ;;  %v7453_v1 = vld [vmem:[%s9497_s1 + $0x3d0] sm:$0xff]  }
  0x13   : > { %v5633_v35 = vcombine.high %v8012_v32, %v281_v33  ;;  %v5632_v37 = vcombine.low %v8012_v32, %v281_v33  ;;  %v5635_v38 = vcombine.high %v8016_v34, %v282_v36  ;;  %v5634_v39 = vcombine.low %v8016_v34, %v282_v36  ;;  %v7448_v56 = vld [vmem:[%s9497_s1 + $0x348] sm:$0xff]   ;;  %v7454_v2 = vld [vmem:[%s9497_s1 + $0x310] sm:$0xff]   ;;  %v7456_v4 = vld [vmem:[%s9497_s1 + $0x358] sm:$0xff]  }
  0x14   : > { %6794 = vmatpush3.bf16.msra.mxu0 %v7426_v14  ;;  %v7449_v61 = vld [vmem:[%s9497_s1 + $0x3c8] sm:$0xff]   ;;  %v7455_v3 = vld [vmem:[%s9497_s1 + $0x390] sm:$0xff]   ;;  %v7457_v5 = vld [vmem:[%s9497_s1 + $0x3d8] sm:$0xff]  }
  0x15   : > { %6816 = vmatpush3.bf16.msra.mxu1 %v7427_v15  ;;  %6795 = vmatprep.subr.bf16.mxu0 %v7428_v16  ;;  %v454_v41 = vshrl.u32 %v5633_v35, 16  ;;  %v456_v42 = vshll.u32 %v5633_v35, 16  ;;  %v447_v43 = vshrl.u32 %v5632_v37, 16  ;;  %v449_v44 = vshll.u32 %v5632_v37, 16  ;;  %v7450_v62 = vld [vmem:[%s9497_s1 + $0x308] sm:$0xff]   ;;  %v7458_v6 = vld [vmem:[%s9497_s1 + $0x318] sm:$0xff]  }
  0x16   : > { %6817 = vmatprep.subr.bf16.mxu1 %v7429_v17  ;;  %v468_v46 = vshrl.u32 %v5635_v38, 16  ;;  %v470_v47 = vshll.u32 %v5635_v38, 16  ;;  %v461_v48 = vshrl.u32 %v5634_v39, 16  ;;  %v463_v49 = vshll.u32 %v5634_v39, 16  ;;  %v7451_v63 = vld [vmem:[%s9497_s1 + $0x388] sm:$0xff]   ;;  %v7459_v7 = vld [vmem:[%s9497_s1 + $0x398] sm:$0xff]  }
  0x17   : > { %v458_v50 = vrot.slane %v456_v42, 1  ;;  %v451_v51 = vrot.slane %v449_v44, 1  ;;  %v7460_v8 = vld [vmem:[%s9497_s1 + $0x360] sm:$0xff]   ;;  %v7464_v12 = vld [vmem:[%s9497_s1 + $0x368] sm:$0xff]   ;;  %v7468_v16 = vld [vmem:[%s9497_s1 + $0x370] sm:$0xff]  }
  0x18   : > { %6796 = vmatpush3.bf16.msra.mxu0 %v7430_v18  ;;  %v472_v53 = vrot.slane %v470_v47, 1  ;;  %v465_v54 = vrot.slane %v463_v49, 1  ;;  %v7461_v9 = vld [vmem:[%s9497_s1 + $0x3e0] sm:$0xff]   ;;  %v7465_v13 = vld [vmem:[%s9497_s1 + $0x3e8] sm:$0xff]   ;;  %v7469_v17 = vld [vmem:[%s9497_s1 + $0x3f0] sm:$0xff]  }
  0x19   : > { %6818 = vmatpush3.bf16.msra.mxu1 %v7431_v19  ;;  %6797 = vmatprep.subr.bf16.mxu0 %v7432_v20  ;;  %v459_v57 = vor.u32 %v458_v50, %v454_v41  ;;  %v452_v58 = vor.u32 %v451_v51, %v447_v43  ;;  %v7462_v10 = vld [vmem:[%s9497_s1 + $0x320] sm:$0xff]   ;;  %v7466_v14 = vld [vmem:[%s9497_s1 + $0x328] sm:$0xff]   ;;  %v7470_v18 = vld [vmem:[%s9497_s1 + $0x330] sm:$0xff]  }
  0x1a   : > { %6819 = vmatprep.subr.bf16.mxu1 %v7433_v21  ;;  %v473_v59 = vor.u32 %v472_v53, %v468_v46  ;;  %v466_v60 = vor.u32 %v465_v54, %v461_v48  ;;  %v7463_v11 = vld [vmem:[%s9497_s1 + $0x3a0] sm:$0xff]   ;;  %v7467_v15 = vld [vmem:[%s9497_s1 + $0x3a8] sm:$0xff]   ;;  %v7471_v19 = vld [vmem:[%s9497_s1 + $0x3b0] sm:$0xff]  }
  0x1b   : > { %926 = vmatprep.mubr.bf16.mxu0 %v459_v57  ;;  %v7472_v20 = vld [vmem:[%s9497_s1 + $0x378] sm:$0xff]   ;;  %v7477_v35 = vld [vmem:[%s9497_s1 + $0xc0] sm:$0xff]   ;;  %v7483_v57 = vld [vmem:[%s9497_s1 + $0x88] sm:$0xff]  }
  0x1c   : > { %6798 = vmatpush3.bf16.msra.mxu0 %v7434_v22  ;;  %967 = vmatprep.mubr.bf16.mxu1 %v473_v59  ;;  %v7473_v21 = vld [vmem:[%s9497_s1 + $0x3f8] sm:$0xff]   ;;  %v7478_v46 = vld [vmem:[%s9497_s1] sm:$0xff]   ;;  %v7485_v59 = vld [vmem:[%s9497_s1 + $0xd0] sm:$0xff]  }
  0x1d   : > { %6820 = vmatpush3.bf16.msra.mxu1 %v7435_v23  ;;  %6799 = vmatprep.subr.bf16.mxu0 %v7436_v24  ;;  %v7474_v22 = vld [vmem:[%s9497_s1 + $0x338] sm:$0xff]   ;;  %v8120_v24 = vld [vmem:[%s8003_s22 + $0x10] sm:$0xff]  ;;  %v7479_v47 = vld [vmem:[%s9497_s1 + $0x80] sm:$0xff]  }
  0x1e   : > { %6821 = vmatprep.subr.bf16.mxu1 %v7437_v25  ;;  %v7475_v23 = vld [vmem:[%s9497_s1 + $0x3b8] sm:$0xff]   ;;  %v283_v25 = vld [vmem:[%s8003_s22 + $0x30] sm:$0x77] }
  0x20   : > { %6800 = vmatpush3.bf16.msra.mxu0 %v7438_v26  ;;  %v8124_v26 = vld [vmem:[%s8003_s22 + $0x18] sm:$0xff] }
  0x21   : > { %6822 = vmatpush3.bf16.msra.mxu1 %v7439_v27  ;;  %6801 = vmatprep.subr.bf16.mxu0 %v7440_v28  ;;  %v284_v27 = vld [vmem:[%s8003_s22 + $0x38] sm:$0x77]  ;;  %v5637_v28 = vcombine.high %v8120_v24, %v283_v25 }
  0x22   : > { %6823 = vmatprep.subr.bf16.mxu1 %v7441_v29  ;;  %v5639_v29 = vcombine.high %v8124_v26, %v284_v27  ;;  %v5638_v33 = vcombine.low %v8124_v26, %v284_v27 }
  0x23   : > { %v482_v36 = vshrl.u32 %v5637_v28, 16  ;;  %v484_v37 = vshll.u32 %v5637_v28, 16  ;;  %v7510_v28 = vld [vmem:[%s9497_s1 + $0x100] sm:$0xff]  }
  0x24   : > { %6802 = vmatpush3.bf16.msra.mxu0 %v7442_v30  ;;  %v5636_v30 = vcombine.low %v8120_v24, %v283_v25  ;;  %v496_v38 = vshrl.u32 %v5639_v29, 16  ;;  %v498_v39 = vshll.u32 %v5639_v29, 16  ;;  %v489_v42 = vshrl.u32 %v5638_v33, 16  ;;  %v7511_v29 = vld [vmem:[%s9497_s1 + $0x180] sm:$0xff]  }
  0x25   : > { %6824 = vmatpush3.bf16.msra.mxu1 %v7443_v31  ;;  %6831 = vmatprep.subr.bf16.mxu0 %v7444_v40  ;;  %v7476_v31 = vld [vmem:[%s9497_s1 + $0x40] sm:$0xff]   ;;  %v491_v43 = vshll.u32 %v5638_v33, 16  ;;  %v486_v44 = vrot.slane %v484_v37, 1  ;;  %v7516_v33 = vld [vmem:[%s9497_s1 + $0x150] sm:$0xff]  }
  0x26   : > { %6853 = vmatprep.subr.bf16.mxu1 %v7445_v45  ;;  %v475_v40 = vshrl.u32 %v5636_v30, 16  ;;  %v477_v41 = vshll.u32 %v5636_v30, 16  ;;  %v500_v45 = vrot.slane %v498_v39, 1  ;;  %v7512_v30 = vld [vmem:[%s9497_s1 + $0x148] sm:$0xff]   ;;  %v7519_v37 = vld [vmem:[%s9497_s1 + $0x190] sm:$0xff]   ;;  %v7521_v39 = vld [vmem:[%s9497_s1 + $0x1d8] sm:$0xff]  }
  0x27   : > { %927 = vmatmul.mubr.bf16.vlgmr.msra.gmra.mrb[0].mxu0 %v452_v58  ;;  %v493_v49 = vrot.slane %v491_v43, 1  ;;  %v487_v50 = vor.u32 %v486_v44, %v482_v36  ;;  %v7484_v58 = vld [vmem:[%s9497_s1 + $0x50] sm:$0xff]   ;;  %v7525_v43 = vld [vmem:[%s9497_s1 + $0x1e0] sm:$0xff]  }
  0x28   : > { %968 = vmatmul.mubr.bf16.vlgmr.msra.gmra.mrb[0].mxu1 %v466_v60  ;;  %6832 = vmatpush3.bf16.msra.mxu0 %v7446_v52  ;;  %v479_v48 = vrot.slane %v477_v41, 1  ;;  %v501_v51 = vor.u32 %v500_v45, %v496_v38  ;;  %v7480_v52 = vld [vmem:[%s9497_s1 + $0x48] sm:$0xff]   ;;  %v7486_v60 = vld [vmem:[%s9497_s1 + $0x10] sm:$0xff]   ;;  %v7520_v38 = vld [vmem:[%s9497_s1 + $0x158] sm:$0xff]  }
  0x29   : > { %6854 = vmatpush3.bf16.msra.mxu1 %v7447_v55  ;;  %6833 = vmatprep.subr.bf16.mxu0 %v7448_v56  ;;  %v494_v54 = vor.u32 %v493_v49, %v489_v42  ;;  %v7481_v55 = vld [vmem:[%s9497_s1 + $0xc8] sm:$0xff]   ;;  %v7518_v36 = vld [vmem:[%s9497_s1 + $0x110] sm:$0xff]   ;;  %v7523_v41 = vld [vmem:[%s9497_s1 + $0x198] sm:$0xff]  }
  0x2a   : > { %6855 = vmatprep.subr.bf16.mxu1 %v7449_v61  ;;  %v480_v53 = vor.u32 %v479_v48, %v475_v40  ;;  %1008 = vmatprep.mubr.bf16.mxu0 %v487_v50  ;;  %v7482_v56 = vld [vmem:[%s9497_s1 + $0x8] sm:$0xff]   ;;  %v7487_v61 = vld [vmem:[%s9497_s1 + $0x90] sm:$0xff]   ;;  %v7522_v40 = vld [vmem:[%s9497_s1 + $0x118] sm:$0xff]  }
  0x2b   : > { %1049 = vmatprep.mubr.bf16.mxu1 %v501_v51  ;;  %v7524_v42 = vld [vmem:[%s9497_s1 + $0x160] sm:$0xff]   ;;  %v7530_v48 = vld [vmem:[%s9497_s1 + $0x128] sm:$0xff]   ;;  %v7532_v50 = vld [vmem:[%s9497_s1 + $0x170] sm:$0xff]  }
  0x2c   : > { %6834 = vmatpush3.bf16.msra.mxu0 %v7450_v62  ;;  %v7488_v62 = vld [vmem:[%s9497_s1 + $0x58] sm:$0xff]   ;;  %v7526_v44 = vld [vmem:[%s9497_s1 + $0x120] sm:$0xff]   ;;  %v7531_v49 = vld [vmem:[%s9497_s1 + $0x1a8] sm:$0xff]  }
  0x2d   : > { %6856 = vmatpush3.bf16.msra.mxu1 %v7451_v63  ;;  %6835 = vmatprep.subr.bf16.mxu0 %v7452_v0  ;;  %v7489_v63 = vld [vmem:[%s9497_s1 + $0xd8] sm:$0xff]   ;;  %v7527_v45 = vld [vmem:[%s9497_s1 + $0x1a0] sm:$0xff]   ;;  %v7533_v51 = vld [vmem:[%s9497_s1 + $0x1f0] sm:$0xff]  }
  0x2e   : > { %6857 = vmatprep.subr.bf16.mxu1 %v7453_v1  ;;  %v7490_v0 = vld [vmem:[%s9497_s1 + $0x18] sm:$0xff]  }
  0x2f   : > { %v7491_v1 = vld [vmem:[%s9497_s1 + $0x98] sm:$0xff]  }
  0x30   : > { %6836 = vmatpush3.bf16.msra.mxu0 %v7454_v2  ;;  %v7492_v2 = vld [vmem:[%s9497_s1 + $0x60] sm:$0xff]  }
  0x31   : > { %6858 = vmatpush3.bf16.msra.mxu1 %v7455_v3  ;;  %6837 = vmatprep.subr.bf16.mxu0 %v7456_v4  ;;  %v7493_v3 = vld [vmem:[%s9497_s1 + $0xe0] sm:$0xff]  }
  0x32   : > { %6859 = vmatprep.subr.bf16.mxu1 %v7457_v5  ;;  %v7494_v4 = vld [vmem:[%s9497_s1 + $0x20] sm:$0xff]  }
  0x33   : > { %v7495_v5 = vld [vmem:[%s9497_s1 + $0xa0] sm:$0xff]  }
  0x34   : > { %6838 = vmatpush3.bf16.msra.mxu0 %v7458_v6  ;;  %v7496_v6 = vld [vmem:[%s9497_s1 + $0x68] sm:$0xff]  }
  0x35   : > { %6860 = vmatpush3.bf16.msra.mxu1 %v7459_v7  ;;  %6839 = vmatprep.subr.bf16.mxu0 %v7460_v8  ;;  %v7497_v7 = vld [vmem:[%s9497_s1 + $0xe8] sm:$0xff]  }
  0x36   : > { %6861 = vmatprep.subr.bf16.mxu1 %v7461_v9  ;;  %v7498_v8 = vld [vmem:[%s9497_s1 + $0x28] sm:$0xff]  }
  0x37   : > { %v7499_v9 = vld [vmem:[%s9497_s1 + $0xa8] sm:$0xff]  }
  0x38   : > { %6840 = vmatpush3.bf16.msra.mxu0 %v7462_v10  ;;  %v7500_v10 = vld [vmem:[%s9497_s1 + $0x70] sm:$0xff]  }
  0x39   : > { %6862 = vmatpush3.bf16.msra.mxu1 %v7463_v11  ;;  %6841 = vmatprep.subr.bf16.mxu0 %v7464_v12  ;;  %v7501_v11 = vld [vmem:[%s9497_s1 + $0xf0] sm:$0xff]  }
  0x3a   : > { %6863 = vmatprep.subr.bf16.mxu1 %v7465_v13  ;;  %v7502_v12 = vld [vmem:[%s9497_s1 + $0x30] sm:$0xff]  }
  0x3b   : > { %v7503_v13 = vld [vmem:[%s9497_s1 + $0xb0] sm:$0xff]  }
  0x3c   : > { %6842 = vmatpush3.bf16.msra.mxu0 %v7466_v14  ;;  %v7504_v14 = vld [vmem:[%s9497_s1 + $0x78] sm:$0xff]  }
  0x3d   : > { %6864 = vmatpush3.bf16.msra.mxu1 %v7467_v15  ;;  %6843 = vmatprep.subr.bf16.mxu0 %v7468_v16  ;;  %v7505_v15 = vld [vmem:[%s9497_s1 + $0xf8] sm:$0xff]  }
  0x3e   : > { %6865 = vmatprep.subr.bf16.mxu1 %v7469_v17  ;;  %v7506_v16 = vld [vmem:[%s9497_s1 + $0x38] sm:$0xff]  }
  0x3f   : > { %v7507_v17 = vld [vmem:[%s9497_s1 + $0xb8] sm:$0xff]  }
  0x40   : > { %6844 = vmatpush3.bf16.msra.mxu0 %v7470_v18  ;;  %v149_v18 = vld [vmem:[%s8003_s22 + $0x20] sm:$0x33] }
  0x41   : > { %6866 = vmatpush3.bf16.msra.mxu1 %v7471_v19  ;;  %6845 = vmatprep.subr.bf16.mxu0 %v7472_v20  ;;  %v5705_v19 = vcombine.high %v8012_v32, %v149_v18  ;;  %v150_v20 = vld [vmem:[%s8003_s22 + $0x28] sm:$0x33]  ;;  %v5704_v25 = vcombine.low %v8012_v32, %v149_v18 }
  0x42   : > { %6867 = vmatprep.subr.bf16.mxu1 %v7473_v21  ;;  %v5707_v21 = vcombine.high %v8016_v34, %v150_v20  ;;  %v5706_v27 = vcombine.low %v8016_v34, %v150_v20  ;;  %v7513_v32 = vld [vmem:[%s9497_s1 + $0x1c8] sm:$0xff]  }
  0x43   : > { %v7514_v34 = vld [vmem:[%s9497_s1 + $0x108] sm:$0xff]  }
  0x44   : > { %6846 = vmatpush3.bf16.msra.mxu0 %v7474_v22  ;;  %v7508_v22 = vld [vmem:[%s9497_s1 + $0x140] sm:$0xff]   ;;  %v7560_v18 = vld [vmem:[%s9497_s1 + $0x468] sm:$0xff]  }
  0x45   : > { %6868 = vmatpush3.bf16.msra.mxu1 %v7475_v23  ;;  %6875 = vmatprep.subr.bf16.mxu0 %v7476_v31  ;;  %v7509_v23 = vld [vmem:[%s9497_s1 + $0x1c0] sm:$0xff]   ;;  %v7515_v31 = vld [vmem:[%s9497_s1 + $0x188] sm:$0xff]  }
  0x46   : > { %6897 = vmatprep.subr.bf16.mxu1 %v7477_v35  ;;  %v7517_v35 = vld [vmem:[%s9497_s1 + $0x1d0] sm:$0xff]   ;;  %v7562_v20 = vld [vmem:[%s9497_s1 + $0x428] sm:$0xff]  }
  0x47   : > { %1009 = vmatmul.mubr.bf16.vlgmr.msra.gmra.mrb[4].mxu0 %v480_v53  ;;  %v7535_v53 = vld [vmem:[%s9497_s1 + $0x1b0] sm:$0xff]  }
  0x48   : > { %1050 = vmatmul.mubr.bf16.vlgmr.msra.gmra.mrb[4].mxu1 %v494_v54  ;;  %6876 = vmatpush3.bf16.msra.mxu0 %v7478_v46  ;;  %v7528_v46 = vld [vmem:[%s9497_s1 + $0x168] sm:$0xff]   ;;  %v7536_v54 = vld [vmem:[%s9497_s1 + $0x178] sm:$0xff]  }
  0x49   : > { %6898 = vmatpush3.bf16.msra.mxu1 %v7479_v47  ;;  %6877 = vmatprep.subr.bf16.mxu0 %v7480_v52  ;;  %v7529_v47 = vld [vmem:[%s9497_s1 + $0x1e8] sm:$0xff]   ;;  %v7534_v52 = vld [vmem:[%s9497_s1 + $0x130] sm:$0xff]  }
  0x4a   : > { %6899 = vmatprep.subr.bf16.mxu1 %v7481_v55  ;;  %1502 = vmatprep.mubr.bf16.mxu0 %v5705_v19  ;;  %v7537_v55 = vld [vmem:[%s9497_s1 + $0x1f8] sm:$0xff]   ;;  %v7561_v19 = vld [vmem:[%s9497_s1 + $0x4e8] sm:$0xff]  }
  0x4b   : > { %1543 = vmatprep.mubr.bf16.mxu1 %v5707_v21  ;;  %v7563_v21 = vld [vmem:[%s9497_s1 + $0x4a8] sm:$0xff]  }
  0x4c   : > { %6878 = vmatpush3.bf16.msra.mxu0 %v7482_v56  ;;  %v7538_v56 = vld [vmem:[%s9497_s1 + $0x138] sm:$0xff]  }
  0x4d   : > { %6900 = vmatpush3.bf16.msra.mxu1 %v7483_v57  ;;  %6879 = vmatprep.subr.bf16.mxu0 %v7484_v58  ;;  %v7539_v57 = vld [vmem:[%s9497_s1 + $0x1b8] sm:$0xff]   ;;  %v151_v58 = vld [vmem:[%s8003_s22 + $0x30] sm:$0x33] }
  0x4e   : > { %6901 = vmatprep.subr.bf16.mxu1 %v7485_v59  ;;  %v152_v59 = vld [vmem:[%s8003_s22 + $0x38] sm:$0x33] }
  0x50   : > { %6880 = vmatpush3.bf16.msra.mxu0 %v7486_v60  ;;  %v5709_v60 = vcombine.high %v8120_v24, %v151_v58 }
  0x51   : > { %6902 = vmatpush3.bf16.msra.mxu1 %v7487_v61  ;;  %6881 = vmatprep.subr.bf16.mxu0 %v7488_v62  ;;  %v7540_v61 = vld [vmem:[%s9497_s1 + $0x440] sm:$0xff]   ;;  %v5711_v62 = vcombine.high %v8124_v26, %v152_v59 }
  0x52   : > { %6903 = vmatprep.subr.bf16.mxu1 %v7489_v63  ;;  %v7541_v63 = vld [vmem:[%s9497_s1 + $0x4c0] sm:$0xff]  }
  0x54   : > { %6882 = vmatpush3.bf16.msra.mxu0 %v7490_v0  ;;  %v5708_v0 = vcombine.low %v8120_v24, %v151_v58  ;;  %v7545_v24 = vld [vmem:[%s9497_s1 + $0x4c8] sm:$0xff]   ;;  %v7586_v58 = vld [vmem:[%s9497_s1 + $0x518] sm:$0xff]  }
  0x55   : > { %6904 = vmatpush3.bf16.msra.mxu1 %v7491_v1  ;;  %6883 = vmatprep.subr.bf16.mxu0 %v7492_v2  ;;  %v5710_v1 = vcombine.low %v8124_v26, %v152_v59  ;;  %v7542_v2 = vld [vmem:[%s9497_s1 + $0x400] sm:$0xff]   ;;  %v7546_v26 = vld [vmem:[%s9497_s1 + $0x408] sm:$0xff]   ;;  %v7587_v59 = vld [vmem:[%s9497_s1 + $0x598] sm:$0xff]  }
  0x56   : > { %6905 = vmatprep.subr.bf16.mxu1 %v7493_v3  ;;  %v7543_v3 = vld [vmem:[%s9497_s1 + $0x480] sm:$0xff]  }
  0x58   : > { %6884 = vmatpush3.bf16.msra.mxu0 %v7494_v4  ;;  %v7544_v4 = vld [vmem:[%s9497_s1 + $0x448] sm:$0xff]  }
  0x59   : > { %6906 = vmatpush3.bf16.msra.mxu1 %v7495_v5  ;;  %6885 = vmatprep.subr.bf16.mxu0 %v7496_v6  ;;  %v7547_v5 = vld [vmem:[%s9497_s1 + $0x488] sm:$0xff]   ;;  %v7548_v6 = vld [vmem:[%s9497_s1 + $0x450] sm:$0xff]  }
  0x5a   : > { %6907 = vmatprep.subr.bf16.mxu1 %v7497_v7  ;;  %v7549_v7 = vld [vmem:[%s9497_s1 + $0x4d0] sm:$0xff]  }
  0x5c   : > { %6886 = vmatpush3.bf16.msra.mxu0 %v7498_v8  ;;  %v7550_v8 = vld [vmem:[%s9497_s1 + $0x410] sm:$0xff]  }
  0x5d   : > { %6908 = vmatpush3.bf16.msra.mxu1 %v7499_v9  ;;  %6887 = vmatprep.subr.bf16.mxu0 %v7500_v10  ;;  %v7551_v9 = vld [vmem:[%s9497_s1 + $0x490] sm:$0xff]   ;;  %v7552_v10 = vld [vmem:[%s9497_s1 + $0x458] sm:$0xff]  }
  0x5e   : > { %6909 = vmatprep.subr.bf16.mxu1 %v7501_v11  ;;  %v7553_v11 = vld [vmem:[%s9497_s1 + $0x4d8] sm:$0xff]  }
  0x60   : > { %6888 = vmatpush3.bf16.msra.mxu0 %v7502_v12  ;;  %v7554_v12 = vld [vmem:[%s9497_s1 + $0x418] sm:$0xff]  }
  0x61   : > { %6910 = vmatpush3.bf16.msra.mxu1 %v7503_v13  ;;  %6889 = vmatprep.subr.bf16.mxu0 %v7504_v14  ;;  %v7555_v13 = vld [vmem:[%s9497_s1 + $0x498] sm:$0xff]   ;;  %v7556_v14 = vld [vmem:[%s9497_s1 + $0x460] sm:$0xff]  }
  0x62   : > { %6911 = vmatprep.subr.bf16.mxu1 %v7505_v15  ;;  %v7557_v15 = vld [vmem:[%s9497_s1 + $0x4e0] sm:$0xff]  }
  0x64   : > { %6890 = vmatpush3.bf16.msra.mxu0 %v7506_v16  ;;  %v7558_v16 = vld [vmem:[%s9497_s1 + $0x420] sm:$0xff]  }
  0x65   : > { %6912 = vmatpush3.bf16.msra.mxu1 %v7507_v17  ;;  %6919 = vmatprep.subr.bf16.mxu0 %v7508_v22  ;;  %v7559_v17 = vld [vmem:[%s9497_s1 + $0x4a0] sm:$0xff]   ;;  %v7564_v22 = vld [vmem:[%s9497_s1 + $0x470] sm:$0xff]  }
  0x66   : > { %6941 = vmatprep.subr.bf16.mxu1 %v7509_v23  ;;  %v7565_v23 = vld [vmem:[%s9497_s1 + $0x4f0] sm:$0xff]  }
  0x67   : > { %1503 = vmatmul.mubr.bf16.vlgmr.msra.gmra.mrb[8].mxu0 %v5704_v25  ;;  %v7566_v25 = vld [vmem:[%s9497_s1 + $0x430] sm:$0xff]  }
  0x68   : > { %1544 = vmatmul.mubr.bf16.vlgmr.msra.gmra.mrb[8].mxu1 %v5706_v27  ;;  %6920 = vmatpush3.bf16.msra.mxu0 %v7510_v28  ;;  %v7567_v27 = vld [vmem:[%s9497_s1 + $0x4b0] sm:$0xff]   ;;  %v7568_v28 = vld [vmem:[%s9497_s1 + $0x478] sm:$0xff]  }
  0x69   : > { %6942 = vmatpush3.bf16.msra.mxu1 %v7511_v29  ;;  %6921 = vmatprep.subr.bf16.mxu0 %v7512_v30  ;;  %v7569_v29 = vld [vmem:[%s9497_s1 + $0x4f8] sm:$0xff]  }
  0x6a   : > { %6943 = vmatprep.subr.bf16.mxu1 %v7513_v32  ;;  %1584 = vmatprep.mubr.bf16.mxu0 %v5709_v60  ;;  %v7570_v30 = vld [vmem:[%s9497_s1 + $0x438] sm:$0xff]   ;;  %v7588_v60 = vld [vmem:[%s9497_s1 + $0x560] sm:$0xff]  }
  0x6b   : > { %1625 = vmatprep.mubr.bf16.mxu1 %v5711_v62  ;;  %v7571_v32 = vld [vmem:[%s9497_s1 + $0x4b8] sm:$0xff]   ;;  %v7590_v62 = vld [vmem:[%s9497_s1 + $0x520] sm:$0xff]  }
  0x6c   : > { %6922 = vmatpush3.bf16.msra.mxu0 %v7514_v34  ;;  %v8432_v34 = vld [vmem:[%s8003_s22] sm:$0xee] }
  0x6d   : > { %6944 = vmatpush3.bf16.msra.mxu1 %v7515_v31  ;;  %6923 = vmatprep.subr.bf16.mxu0 %v7516_v33  ;;  %v8435_v31 = vld [vmem:[%s8003_s22 + $0x8] sm:$0xee]  ;;  %v7868_v33 = vld [vmem:[%s8003_s22 + $0x20] sm:$0x77] }
  0x6e   : > { %6945 = vmatprep.subr.bf16.mxu1 %v7517_v35  ;;  %v5905_v35 = vcombine.high %v8432_v34, %v7868_v33 }
  0x70   : > { %6924 = vmatpush3.bf16.msra.mxu0 %v7518_v36  ;;  %v7869_v36 = vld [vmem:[%s8003_s22 + $0x28] sm:$0x77] }
  0x71   : > { %6946 = vmatpush3.bf16.msra.mxu1 %v7519_v37  ;;  %6925 = vmatprep.subr.bf16.mxu0 %v7520_v38  ;;  %v5907_v37 = vcombine.high %v8435_v31, %v7869_v36  ;;  %v5904_v38 = vcombine.low %v8432_v34, %v7868_v33  ;;  %v7612_v33 = vld [vmem:[%s9497_s1 + $0x650] sm:$0xff]  }
  0x72   : > { %6947 = vmatprep.subr.bf16.mxu1 %v7521_v39  ;;  %v5906_v39 = vcombine.low %v8435_v31, %v7869_v36  ;;  %v7614_v36 = vld [vmem:[%s9497_s1 + $0x610] sm:$0xff]  }
  0x74   : > { %6926 = vmatpush3.bf16.msra.mxu0 %v7522_v40  ;;  %v7572_v40 = vld [vmem:[%s9497_s1 + $0x540] sm:$0xff]  }
  0x75   : > { %6948 = vmatpush3.bf16.msra.mxu1 %v7523_v41  ;;  %6927 = vmatprep.subr.bf16.mxu0 %v7524_v42  ;;  %v7573_v41 = vld [vmem:[%s9497_s1 + $0x5c0] sm:$0xff]   ;;  %v1788_v42 = vrot.slane %v5905_v35, 1  ;;  %v7613_v35 = vld [vmem:[%s9497_s1 + $0x6d0] sm:$0xff]  }
  0x76   : > { %6949 = vmatprep.subr.bf16.mxu1 %v7525_v43  ;;  %v1790_v43 = vrot.slane %v5907_v37, 1  ;;  %v7615_v37 = vld [vmem:[%s9497_s1 + $0x690] sm:$0xff]  }
  0x78   : > { %6928 = vmatpush3.bf16.msra.mxu0 %v7526_v44  ;;  %v1787_v44 = vrot.slane %v5904_v38, 1  ;;  %v7616_v38 = vld [vmem:[%s9497_s1 + $0x658] sm:$0xff]  }
  0x79   : > { %6950 = vmatpush3.bf16.msra.mxu1 %v7527_v45  ;;  %6929 = vmatprep.subr.bf16.mxu0 %v7528_v46  ;;  %v1789_v45 = vrot.slane %v5906_v39, 1  ;;  %v7574_v46 = vld [vmem:[%s9497_s1 + $0x500] sm:$0xff]   ;;  %v7617_v39 = vld [vmem:[%s9497_s1 + $0x6d8] sm:$0xff]  }
  0x7a   : > { %6951 = vmatprep.subr.bf16.mxu1 %v7529_v47  ;;  %v7575_v47 = vld [vmem:[%s9497_s1 + $0x580] sm:$0xff]  }
  0x7c   : > { %6930 = vmatpush3.bf16.msra.mxu0 %v7530_v48  ;;  %v7576_v48 = vld [vmem:[%s9497_s1 + $0x548] sm:$0xff]  }
  0x7d   : > { %6952 = vmatpush3.bf16.msra.mxu1 %v7531_v49  ;;  %6931 = vmatprep.subr.bf16.mxu0 %v7532_v50  ;;  %v7577_v49 = vld [vmem:[%s9497_s1 + $0x5c8] sm:$0xff]  }
  0x7e   : > { %6953 = vmatprep.subr.bf16.mxu1 %v7533_v51  ;;  %v7578_v50 = vld [vmem:[%s9497_s1 + $0x508] sm:$0xff]  }
  0x7f   : > { %v7579_v51 = vld [vmem:[%s9497_s1 + $0x588] sm:$0xff]  }
  0x80   : > { %6932 = vmatpush3.bf16.msra.mxu0 %v7534_v52  ;;  %v7580_v52 = vld [vmem:[%s9497_s1 + $0x550] sm:$0xff]  }
  0x81   : > { %6954 = vmatpush3.bf16.msra.mxu1 %v7535_v53  ;;  %6933 = vmatprep.subr.bf16.mxu0 %v7536_v54  ;;  %v7581_v53 = vld [vmem:[%s9497_s1 + $0x5d0] sm:$0xff]  }
  0x82   : > { %6955 = vmatprep.subr.bf16.mxu1 %v7537_v55  ;;  %v7582_v54 = vld [vmem:[%s9497_s1 + $0x510] sm:$0xff]  }
  0x83   : > { %v7583_v55 = vld [vmem:[%s9497_s1 + $0x590] sm:$0xff]  }
  0x84   : > { %6934 = vmatpush3.bf16.msra.mxu0 %v7538_v56  ;;  %v7584_v56 = vld [vmem:[%s9497_s1 + $0x558] sm:$0xff]  }
  0x85   : > { %6956 = vmatpush3.bf16.msra.mxu1 %v7539_v57  ;;  %6963 = vmatprep.subr.bf16.mxu0 %v7540_v61  ;;  %v7585_v57 = vld [vmem:[%s9497_s1 + $0x5d8] sm:$0xff]   ;;  %v7589_v61 = vld [vmem:[%s9497_s1 + $0x5e0] sm:$0xff]  }
  0x86   : > { %6985 = vmatprep.subr.bf16.mxu1 %v7541_v63  ;;  %v7591_v63 = vld [vmem:[%s9497_s1 + $0x5a0] sm:$0xff]  }
  0x87   : > { %1585 = vmatmul.mubr.bf16.vlgmr.msra.gmra.mrb[12].mxu0 %v5708_v0  ;;  %v7592_v0 = vld [vmem:[%s9497_s1 + $0x568] sm:$0xff]  }
  0x88   : > { %1626 = vmatmul.mubr.bf16.vlgmr.msra.gmra.mrb[12].mxu1 %v5710_v1  ;;  %6964 = vmatpush3.bf16.msra.mxu0 %v7542_v2  ;;  %v7593_v1 = vld [vmem:[%s9497_s1 + $0x5e8] sm:$0xff]  }
  0x89   : > { %6986 = vmatpush3.bf16.msra.mxu1 %v7543_v3  ;;  %6965 = vmatprep.subr.bf16.mxu0 %v7544_v4  ;;  %v7594_v2 = vld [vmem:[%s9497_s1 + $0x528] sm:$0xff]   ;;  %v7596_v4 = vld [vmem:[%s9497_s1 + $0x570] sm:$0xff]  }
  0x8a   : > { %6987 = vmatprep.subr.bf16.mxu1 %v7545_v24  ;;  %2219 = vmatprep.mubr.bf16.mxu0 %v1788_v42  ;;  %v7595_v3 = vld [vmem:[%s9497_s1 + $0x5a8] sm:$0xff]   ;;  %v7597_v24 = vld [vmem:[%s9497_s1 + $0x5f0] sm:$0xff]   ;;  %v7620_v42 = vld [vmem:[%s9497_s1 + $0x660] sm:$0xff]  }
  0x8b   : > { %2260 = vmatprep.mubr.bf16.mxu1 %v1790_v43  ;;  %v7621_v43 = vld [vmem:[%s9497_s1 + $0x6e0] sm:$0xff]  }
  0x8c   : > { %6966 = vmatpush3.bf16.msra.mxu0 %v7546_v26  ;;  %v7598_v26 = vld [vmem:[%s9497_s1 + $0x530] sm:$0xff]  }
  0x8d   : > { %6988 = vmatpush3.bf16.msra.mxu1 %v7547_v5  ;;  %6967 = vmatprep.subr.bf16.mxu0 %v7548_v6  ;;  %v7599_v5 = vld [vmem:[%s9497_s1 + $0x5b0] sm:$0xff]   ;;  %v7600_v6 = vld [vmem:[%s9497_s1 + $0x578] sm:$0xff]  }
  0x8e   : > { %6989 = vmatprep.subr.bf16.mxu1 %v7549_v7  ;;  %v7601_v7 = vld [vmem:[%s9497_s1 + $0x5f8] sm:$0xff]  }
  0x90   : > { %6968 = vmatpush3.bf16.msra.mxu0 %v7550_v8  ;;  %v7602_v8 = vld [vmem:[%s9497_s1 + $0x538] sm:$0xff]  }
  0x91   : > { %6990 = vmatpush3.bf16.msra.mxu1 %v7551_v9  ;;  %6969 = vmatprep.subr.bf16.mxu0 %v7552_v10  ;;  %v7603_v9 = vld [vmem:[%s9497_s1 + $0x5b8] sm:$0xff]   ;;  %v8540_v10 = vld [vmem:[%s8003_s22 + $0x10] sm:$0xee] }
  0x92   : > { %6991 = vmatprep.subr.bf16.mxu1 %v7553_v11  ;;  %v8543_v11 = vld [vmem:[%s8003_s22 + $0x18] sm:$0xee] }
  0x94   : > { %6970 = vmatpush3.bf16.msra.mxu0 %v7554_v12  ;;  %v7870_v12 = vld [vmem:[%s8003_s22 + $0x30] sm:$0x77] }
  0x95   : > { %6992 = vmatpush3.bf16.msra.mxu1 %v7555_v13  ;;  %6971 = vmatprep.subr.bf16.mxu0 %v7556_v14  ;;  %v5909_v13 = vcombine.high %v8540_v10, %v7870_v12  ;;  %v7871_v14 = vld [vmem:[%s8003_s22 + $0x38] sm:$0x77] }
  0x96   : > { %6993 = vmatprep.subr.bf16.mxu1 %v7557_v15  ;;  %v5911_v15 = vcombine.high %v8543_v11, %v7871_v14 }
  0x98   : > { %6972 = vmatpush3.bf16.msra.mxu0 %v7558_v16  ;;  %v5908_v16 = vcombine.low %v8540_v10, %v7870_v12  ;;  %v7638_v12 = vld [vmem:[%s9497_s1 + $0x700] sm:$0xff]  }
  0x99   : > { %6994 = vmatpush3.bf16.msra.mxu1 %v7559_v17  ;;  %6973 = vmatprep.subr.bf16.mxu0 %v7560_v18  ;;  %v5910_v17 = vcombine.low %v8543_v11, %v7871_v14  ;;  %v7604_v18 = vld [vmem:[%s9497_s1 + $0x640] sm:$0xff]  }
  0x9a   : > { %6995 = vmatprep.subr.bf16.mxu1 %v7561_v19  ;;  %v7605_v19 = vld [vmem:[%s9497_s1 + $0x6c0] sm:$0xff]  }
  0x9c   : > { %6974 = vmatpush3.bf16.msra.mxu0 %v7562_v20  ;;  %v1792_v20 = vrot.slane %v5909_v13, 1 }
  0x9d   : > { %6996 = vmatpush3.bf16.msra.mxu1 %v7563_v21  ;;  %6975 = vmatprep.subr.bf16.mxu0 %v7564_v22  ;;  %v1794_v21 = vrot.slane %v5911_v15, 1  ;;  %v1791_v22 = vrot.slane %v5908_v16, 1 }
  0x9e   : > { %6997 = vmatprep.subr.bf16.mxu1 %v7565_v23  ;;  %v1793_v23 = vrot.slane %v5910_v17, 1 }
  0xa0   : > { %6976 = vmatpush3.bf16.msra.mxu0 %v7566_v25  ;;  %v7606_v25 = vld [vmem:[%s9497_s1 + $0x600] sm:$0xff]  }
  0xa1   : > { %6998 = vmatpush3.bf16.msra.mxu1 %v7567_v27  ;;  %6977 = vmatprep.subr.bf16.mxu0 %v7568_v28  ;;  %v7607_v27 = vld [vmem:[%s9497_s1 + $0x680] sm:$0xff]   ;;  %v7608_v28 = vld [vmem:[%s9497_s1 + $0x648] sm:$0xff]  }
  0xa2   : > { %6999 = vmatprep.subr.bf16.mxu1 %v7569_v29  ;;  %v7609_v29 = vld [vmem:[%s9497_s1 + $0x6c8] sm:$0xff]  }
  0xa4   : > { %6978 = vmatpush3.bf16.msra.mxu0 %v7570_v30  ;;  %v7610_v30 = vld [vmem:[%s9497_s1 + $0x608] sm:$0xff]  }
  0xa5   : > { %7000 = vmatpush3.bf16.msra.mxu1 %v7571_v32  ;;  %7007 = vmatprep.subr.bf16.mxu0 %v7572_v40  ;;  %v7611_v32 = vld [vmem:[%s9497_s1 + $0x688] sm:$0xff]   ;;  %v7618_v40 = vld [vmem:[%s9497_s1 + $0x618] sm:$0xff]  }
  0xa6   : > { %7029 = vmatprep.subr.bf16.mxu1 %v7573_v41  ;;  %v7619_v41 = vld [vmem:[%s9497_s1 + $0x698] sm:$0xff]  }
  0xa7   : > { %2220 = vmatmul.mubr.bf16.vlgmr.msra.gmra.mrb[16].mxu0 %v1787_v44  ;;  %v7622_v44 = vld [vmem:[%s9497_s1 + $0x620] sm:$0xff]  }
  0xa8   : > { %2261 = vmatmul.mubr.bf16.vlgmr.msra.gmra.mrb[16].mxu1 %v1789_v45  ;;  %7008 = vmatpush3.bf16.msra.mxu0 %v7574_v46  ;;  %v7623_v45 = vld [vmem:[%s9497_s1 + $0x6a0] sm:$0xff]   ;;  %v7624_v46 = vld [vmem:[%s9497_s1 + $0x668] sm:$0xff]  }
  0xa9   : > { %7030 = vmatpush3.bf16.msra.mxu1 %v7575_v47  ;;  %7009 = vmatprep.subr.bf16.mxu0 %v7576_v48  ;;  %v7625_v47 = vld [vmem:[%s9497_s1 + $0x6e8] sm:$0xff]  }
  0xaa   : > { %7031 = vmatprep.subr.bf16.mxu1 %v7577_v49  ;;  %2301 = vmatprep.mubr.bf16.mxu0 %v1792_v20  ;;  %v7626_v48 = vld [vmem:[%s9497_s1 + $0x628] sm:$0xff]  }
  0xab   : > { %2342 = vmatprep.mubr.bf16.mxu1 %v1794_v21  ;;  %v7627_v49 = vld [vmem:[%s9497_s1 + $0x6a8] sm:$0xff]  }
  0xac   : > { %7010 = vmatpush3.bf16.msra.mxu0 %v7578_v50  ;;  %v7628_v50 = vld [vmem:[%s9497_s1 + $0x670] sm:$0xff]  }
  0xad   : > { %7032 = vmatpush3.bf16.msra.mxu1 %v7579_v51  ;;  %7011 = vmatprep.subr.bf16.mxu0 %v7580_v52  ;;  %v7629_v51 = vld [vmem:[%s9497_s1 + $0x6f0] sm:$0xff]  }
  0xae   : > { %7033 = vmatprep.subr.bf16.mxu1 %v7581_v53  ;;  %v7630_v52 = vld [vmem:[%s9497_s1 + $0x630] sm:$0xff]  }
  0xaf   : > { %v7631_v53 = vld [vmem:[%s9497_s1 + $0x6b0] sm:$0xff]  }
  0xb0   : > { %7012 = vmatpush3.bf16.msra.mxu0 %v7582_v54  ;;  %v7632_v54 = vld [vmem:[%s9497_s1 + $0x678] sm:$0xff]  }
  0xb1   : > { %7034 = vmatpush3.bf16.msra.mxu1 %v7583_v55  ;;  %7013 = vmatprep.subr.bf16.mxu0 %v7584_v56  ;;  %v7633_v55 = vld [vmem:[%s9497_s1 + $0x6f8] sm:$0xff]  }
  0xb2   : > { %7035 = vmatprep.subr.bf16.mxu1 %v7585_v57  ;;  %v7634_v56 = vld [vmem:[%s9497_s1 + $0x638] sm:$0xff]  }
  0xb3   : > { %v7635_v57 = vld [vmem:[%s9497_s1 + $0x6b8] sm:$0xff]  }
  0xb4   : > { %7014 = vmatpush3.bf16.msra.mxu0 %v7586_v58  ;;  %v8648_v58 = vld [vmem:[%s8003_s22 + $0x20] sm:$0xff] }
  0xb5   : > { %7036 = vmatpush3.bf16.msra.mxu1 %v7587_v59  ;;  %7015 = vmatprep.subr.bf16.mxu0 %v7588_v60  ;;  %v6105_v59 = vcombine.high %v8432_v34, %v8648_v58  ;;  %v8653_v60 = vld [vmem:[%s8003_s22 + $0x28] sm:$0xff] }
  0xb6   : > { %7037 = vmatprep.subr.bf16.mxu1 %v7589_v61  ;;  %v6104_v61 = vcombine.low %v8432_v34, %v8648_v58  ;;  %v7637_v34 = vld [vmem:[%s9497_s1 + $0x7c0] sm:$0xff]  }
  0xb8   : > { %7016 = vmatpush3.bf16.msra.mxu0 %v7590_v62  ;;  %v6107_v62 = vcombine.high %v8435_v31, %v8653_v60 }
  0xb9   : > { %7038 = vmatpush3.bf16.msra.mxu1 %v7591_v63  ;;  %7017 = vmatprep.subr.bf16.mxu0 %v7592_v0  ;;  %v6106_v63 = vcombine.low %v8435_v31, %v8653_v60  ;;  %v7636_v0 = vld [vmem:[%s9497_s1 + $0x740] sm:$0xff]  }
  0xba   : > { %7039 = vmatprep.subr.bf16.mxu1 %v7593_v1  ;;  %v2515_v1 = vshrl.u32 %v6105_v59, 16 }
  0xbc   : > { %7018 = vmatpush3.bf16.msra.mxu0 %v7594_v2  ;;  %v2518_v2 = vshll.u32 %v6105_v59, 16 }
  0xbd   : > { %7040 = vmatpush3.bf16.msra.mxu1 %v7595_v3  ;;  %7019 = vmatprep.subr.bf16.mxu0 %v7596_v4  ;;  %v2507_v3 = vshrl.u32 %v6104_v61, 16  ;;  %v2510_v4 = vshll.u32 %v6104_v61, 16  ;;  %v7660_v61 = vld [vmem:[%s9497_s1 + $0x770] sm:$0xff]  }
  0xbe   : > { %7041 = vmatprep.subr.bf16.mxu1 %v7597_v24  ;;  %v2531_v24 = vshrl.u32 %v6107_v62, 16 }
  0xbf   : > { %v2509_v31 = vrot.slane %v2507_v3, 1  ;;  %v7665_v3 = vld [vmem:[%s9497_s1 + $0x7f8] sm:$0xff]  }
  0xc0   : > { %7020 = vmatpush3.bf16.msra.mxu0 %v7598_v26  ;;  %v2534_v26 = vshll.u32 %v6107_v62, 16  ;;  %v2533_v13 = vrot.slane %v2531_v24, 1  ;;  %v7661_v62 = vld [vmem:[%s9497_s1 + $0x7f0] sm:$0xff]  }
  0xc1   : > { %7042 = vmatpush3.bf16.msra.mxu1 %v7599_v5  ;;  %7021 = vmatprep.subr.bf16.mxu0 %v7600_v6  ;;  %v2523_v5 = vshrl.u32 %v6106_v63, 16  ;;  %v2526_v6 = vshll.u32 %v6106_v63, 16  ;;  %v8762_v24 = vld [vmem:[%s8003_s22 + $0x30] sm:$0xff] }
  0xc2   : > { %7043 = vmatprep.subr.bf16.mxu1 %v7601_v7  ;;  %v2517_v7 = vrot.slane %v2515_v1, 1  ;;  %v2536_v14 = vrot.slane %v2534_v26, 2  ;;  %v7663_v1 = vld [vmem:[%s9497_s1 + $0x7b0] sm:$0xff]   ;;  %v6109_v26 = vcombine.high %v8540_v10, %v8762_v24 }
  0xc3   : > { %v2525_v15 = vrot.slane %v2523_v5, 1  ;;  %v2528_v16 = vrot.slane %v2526_v6, 2  ;;  %v8767_v5 = vld [vmem:[%s8003_s22 + $0x38] sm:$0xff]  ;;  %v6108_v6 = vcombine.low %v8540_v10, %v8762_v24 }
  0xc4   : > { %7022 = vmatpush3.bf16.msra.mxu0 %v7602_v8  ;;  %v2520_v8 = vrot.slane %v2518_v2, 2  ;;  %v2537_v20 = vor.u32 %v2536_v14, %v2533_v13  ;;  %v7664_v2 = vld [vmem:[%s9497_s1 + $0x778] sm:$0xff]  }
  0xc5   : > { %7044 = vmatpush3.bf16.msra.mxu1 %v7603_v9  ;;  %7051 = vmatprep.subr.bf16.mxu0 %v7604_v18  ;;  %v2512_v9 = vrot.slane %v2510_v4, 2  ;;  %v2529_v21 = vor.u32 %v2528_v16, %v2525_v15  ;;  %v7666_v4 = vld [vmem:[%s9497_s1 + $0x738] sm:$0xff]   ;;  %v2539_v13 = vshrl.u32 %v6108_v6, 16  ;;  %v2542_v14 = vshll.u32 %v6108_v6, 16  ;;  %v7669_v15 = vld [vmem:[%s9497_s1 + $0x8c0] sm:$0xff]  }
  0xc6   : > { %7073 = vmatprep.subr.bf16.mxu1 %v7605_v19  ;;  %v2521_v17 = vor.u32 %v2520_v8, %v2517_v7  ;;  %v7639_v19 = vld [vmem:[%s9497_s1 + $0x780] sm:$0xff]   ;;  %v6111_v7 = vcombine.high %v8543_v11, %v8767_v5  ;;  %v6110_v8 = vcombine.low %v8543_v11, %v8767_v5 }
  0xc7   : > { %2302 = vmatmul.mubr.bf16.vlgmr.msra.gmra.mrb[20].mxu0 %v1791_v22  ;;  %v2513_v18 = vor.u32 %v2512_v9, %v2509_v31  ;;  %v7640_v22 = vld [vmem:[%s9497_s1 + $0x748] sm:$0xff]   ;;  %v7668_v31 = vld [vmem:[%s9497_s1 + $0x840] sm:$0xff]   ;;  %v2547_v9 = vshrl.u32 %v6109_v26, 16 }
  0xc8   : > { %2343 = vmatmul.mubr.bf16.vlgmr.msra.gmra.mrb[20].mxu1 %v1793_v23  ;;  %7052 = vmatpush3.bf16.msra.mxu0 %v7606_v25  ;;  %v7641_v23 = vld [vmem:[%s9497_s1 + $0x7c8] sm:$0xff]   ;;  %v2563_v10 = vshrl.u32 %v6111_v7, 16  ;;  %v2566_v16 = vshll.u32 %v6111_v7, 16 }
  0xc9   : > { %7074 = vmatpush3.bf16.msra.mxu1 %v7607_v27  ;;  %7053 = vmatprep.subr.bf16.mxu0 %v7608_v28  ;;  %v7642_v25 = vld [vmem:[%s9497_s1 + $0x708] sm:$0xff]   ;;  %v7644_v28 = vld [vmem:[%s9497_s1 + $0x750] sm:$0xff]  }
  0xca   : > { %7075 = vmatprep.subr.bf16.mxu1 %v7609_v29  ;;  %2994 = vmatprep.mubr.bf16.mxu0 %v2521_v17  ;;  %v7643_v27 = vld [vmem:[%s9497_s1 + $0x788] sm:$0xff]   ;;  %v7645_v29 = vld [vmem:[%s9497_s1 + $0x7d0] sm:$0xff]   ;;  %v2555_v17 = vshrl.u32 %v6110_v8, 16 }
  0xcb   : > { %3035 = vmatprep.mubr.bf16.mxu1 %v2537_v20  ;;  %v2541_v20 = vrot.slane %v2539_v13, 1 }
  0xcc   : > { %7054 = vmatpush3.bf16.msra.mxu0 %v7610_v30  ;;  %v7646_v30 = vld [vmem:[%s9497_s1 + $0x710] sm:$0xff]  }
  0xcd   : > { %7076 = vmatpush3.bf16.msra.mxu1 %v7611_v32  ;;  %7055 = vmatprep.subr.bf16.mxu0 %v7612_v33  ;;  %v7647_v32 = vld [vmem:[%s9497_s1 + $0x790] sm:$0xff]   ;;  %v7648_v33 = vld [vmem:[%s9497_s1 + $0x758] sm:$0xff]  }
  0xce   : > { %7077 = vmatprep.subr.bf16.mxu1 %v7613_v35  ;;  %v7649_v35 = vld [vmem:[%s9497_s1 + $0x7d8] sm:$0xff]  }
  0xd0   : > { %7056 = vmatpush3.bf16.msra.mxu0 %v7614_v36  ;;  %v7650_v36 = vld [vmem:[%s9497_s1 + $0x718] sm:$0xff]  }
  0xd1   : > { %7078 = vmatpush3.bf16.msra.mxu1 %v7615_v37  ;;  %7057 = vmatprep.subr.bf16.mxu0 %v7616_v38  ;;  %v7651_v37 = vld [vmem:[%s9497_s1 + $0x798] sm:$0xff]   ;;  %v7652_v38 = vld [vmem:[%s9497_s1 + $0x760] sm:$0xff]  }
  0xd2   : > { %7079 = vmatprep.subr.bf16.mxu1 %v7617_v39 }
  0xd4   : > { %7058 = vmatpush3.bf16.msra.mxu0 %v7618_v40  ;;  %v7653_v40 = vld [vmem:[%s9497_s1 + $0x7e0] sm:$0xff]  }
  0xd5   : > { %7080 = vmatpush3.bf16.msra.mxu1 %v7619_v41  ;;  %7059 = vmatprep.subr.bf16.mxu0 %v7620_v42  ;;  %v7654_v42 = vld [vmem:[%s9497_s1 + $0x720] sm:$0xff]  }
  0xd6   : > { %7081 = vmatprep.subr.bf16.mxu1 %v7621_v43 }
  0xd8   : > { %7060 = vmatpush3.bf16.msra.mxu0 %v7622_v44  ;;  %v7655_v44 = vld [vmem:[%s9497_s1 + $0x7a0] sm:$0xff]  }
  0xd9   : > { %7082 = vmatpush3.bf16.msra.mxu1 %v7623_v45  ;;  %7061 = vmatprep.subr.bf16.mxu0 %v7624_v46 }
  0xda   : > { %7083 = vmatprep.subr.bf16.mxu1 %v7625_v47 }
  0xdc   : > { %7062 = vmatpush3.bf16.msra.mxu0 %v7626_v48  ;;  %v7656_v48 = vld [vmem:[%s9497_s1 + $0x768] sm:$0xff]  }
  0xdd   : > { %7084 = vmatpush3.bf16.msra.mxu1 %v7627_v49  ;;  %7063 = vmatprep.subr.bf16.mxu0 %v7628_v50  ;;  %v7657_v50 = vld [vmem:[%s9497_s1 + $0x7e8] sm:$0xff]  }
  0xde   : > { %7085 = vmatprep.subr.bf16.mxu1 %v7629_v51 }
  0xe0   : > { %7064 = vmatpush3.bf16.msra.mxu0 %v7630_v52 }
  0xe1   : > { %7086 = vmatpush3.bf16.msra.mxu1 %v7631_v53  ;;  %7065 = vmatprep.subr.bf16.mxu0 %v7632_v54  ;;  %v7658_v53 = vld [vmem:[%s9497_s1 + $0x728] sm:$0xff]  }
  0xe2   : > { %7087 = vmatprep.subr.bf16.mxu1 %v7633_v55  ;;  %v7659_v55 = vld [vmem:[%s9497_s1 + $0x7a8] sm:$0xff]  }
  0xe4   : > { %7066 = vmatpush3.bf16.msra.mxu0 %v7634_v56 }
  0xe5   : > { %7088 = vmatpush3.bf16.msra.mxu1 %v7635_v57  ;;  %7095 = vmatprep.subr.bf16.mxu0 %v7636_v0  ;;  %v7662_v0 = vld [vmem:[%s9497_s1 + $0x730] sm:$0xff]  }
  0xe6   : > { %7117 = vmatprep.subr.bf16.mxu1 %v7637_v34  ;;  %v7667_v34 = vld [vmem:[%s9497_s1 + $0x7b8] sm:$0xff]  }
  0xe7   : > { %2995 = vmatmul.mubr.bf16.vlgmr.msra.gmra.mrb[24].mxu0 %v2513_v18  ;;  %v2558_v18 = vshll.u32 %v6110_v8, 16  ;;  %v7692_v8 = vld [vmem:[%s9497_s1 + $0x870] sm:$0xff]  }
  0xe8   : > { %3036 = vmatmul.mubr.bf16.vlgmr.msra.gmra.mrb[24].mxu1 %v2529_v21  ;;  %7096 = vmatpush3.bf16.msra.mxu0 %v7638_v12  ;;  %v2550_v12 = vshll.u32 %v6109_v26, 16  ;;  %v2544_v21 = vrot.slane %v2542_v14, 2  ;;  %v7691_v26 = vld [vmem:[%s9497_s1 + $0x8a8] sm:$0xff]   ;;  %v7695_v14 = vld [vmem:[%s9497_s1 + $0x8b0] sm:$0xff]  }
  0xe9   : > { %7118 = vmatpush3.bf16.msra.mxu1 %v7639_v19  ;;  %7097 = vmatprep.subr.bf16.mxu0 %v7640_v22  ;;  %v2549_v19 = vrot.slane %v2547_v9, 1  ;;  %v7670_v22 = vld [vmem:[%s9497_s1 + $0x800] sm:$0xff]   ;;  %v7693_v9 = vld [vmem:[%s9497_s1 + $0x8f0] sm:$0xff]  }
  0xea   : > { %7119 = vmatprep.subr.bf16.mxu1 %v7641_v23  ;;  %v2552_v11 = vrot.slane %v2550_v12, 2  ;;  %v2565_v23 = vrot.slane %v2563_v10, 1  ;;  %v7694_v12 = vld [vmem:[%s9497_s1 + $0x830] sm:$0xff]   ;;  %v7698_v10 = vld [vmem:[%s9497_s1 + $0x838] sm:$0xff]  }
  0xec   : > { %7098 = vmatpush3.bf16.msra.mxu0 %v7642_v25  ;;  %v2568_v25 = vrot.slane %v2566_v16, 2  ;;  %v7699_v16 = vld [vmem:[%s9497_s1 + $0x8b8] sm:$0xff]  }
  0xed   : > { %7120 = vmatpush3.bf16.msra.mxu1 %v7643_v27  ;;  %7099 = vmatprep.subr.bf16.mxu0 %v7644_v28  ;;  %v2557_v27 = vrot.slane %v2555_v17, 1  ;;  %v2560_v28 = vrot.slane %v2558_v18, 2  ;;  %v3128_v17 = vld [vmem:[%s8003_s22] sm:$0xcc] }
  0xee   : > { %7121 = vmatprep.subr.bf16.mxu1 %v7645_v29  ;;  %v2553_v29 = vor.u32 %v2552_v11, %v2549_v19  ;;  %v6304_v18 = vcombine.low %v3128_v17, %v8648_v58  ;;  %v6305_v19 = vcombine.high %v3128_v17, %v8648_v58  ;;  %v3129_v11 = vld [vmem:[%s8003_s22 + $0x8] sm:$0xcc]  ;;  %v7702_v58 = vld [vmem:[%s9497_s1 + $0x900] sm:$0xff]  }
  0xf0   : > { %7100 = vmatpush3.bf16.msra.mxu0 %v7646_v30  ;;  %v2545_v30 = vor.u32 %v2544_v21, %v2541_v20  ;;  %3076 = vmatprep.mubr.bf16.mxu0 %v2553_v29  ;;  %v6306_v20 = vcombine.low %v3129_v11, %v8653_v60  ;;  %v6307_v21 = vcombine.high %v3129_v11, %v8653_v60  ;;  %v7703_v60 = vld [vmem:[%s9497_s1 + $0x980] sm:$0xff]  }
  0xf1   : > { %7122 = vmatpush3.bf16.msra.mxu1 %v7647_v32  ;;  %7101 = vmatprep.subr.bf16.mxu0 %v7648_v33  ;;  %v7671_v32 = vld [vmem:[%s9497_s1 + $0x880] sm:$0xff]   ;;  %v2569_v33 = vor.u32 %v2568_v25, %v2565_v23  ;;  %v3281_v23 = vrot.slane %v6304_v18, 2  ;;  %v3282_v25 = vrot.slane %v6305_v19, 2 }
  0xf2   : > { %7123 = vmatprep.subr.bf16.mxu1 %v7649_v35  ;;  %v2561_v35 = vor.u32 %v2560_v28, %v2557_v27  ;;  %v7701_v27 = vld [vmem:[%s9497_s1 + $0x9c0] sm:$0xff]   ;;  %v3283_v28 = vrot.slane %v6306_v20, 2  ;;  %v3284_v29 = vrot.slane %v6307_v21, 2 }
  0xf3   : > { %3117 = vmatprep.mubr.bf16.mxu1 %v2569_v33  ;;  %v7706_v33 = vld [vmem:[%s9497_s1 + $0x908] sm:$0xff]   ;;  %v7732_v19 = vld [vmem:[%s9497_s1 + $0xa40] sm:$0xff]  }
  0xf4   : > { %7102 = vmatpush3.bf16.msra.mxu0 %v7650_v36  ;;  %v7672_v36 = vld [vmem:[%s9497_s1 + $0x848] sm:$0xff]   ;;  %v7733_v21 = vld [vmem:[%s9497_s1 + $0xac0] sm:$0xff]  }
  0xf5   : > { %7124 = vmatpush3.bf16.msra.mxu1 %v7651_v37  ;;  %7103 = vmatprep.subr.bf16.mxu0 %v7652_v38  ;;  %v7673_v37 = vld [vmem:[%s9497_s1 + $0x8c8] sm:$0xff]  }
  0xf6   : > { %7125 = vmatprep.subr.bf16.mxu1 %v7653_v40  ;;  %v7674_v38 = vld [vmem:[%s9497_s1 + $0x808] sm:$0xff]   ;;  %v7676_v40 = vld [vmem:[%s9497_s1 + $0x850] sm:$0xff]  }
  0xf8   : > { %7104 = vmatpush3.bf16.msra.mxu0 %v7654_v42  ;;  %v7678_v42 = vld [vmem:[%s9497_s1 + $0x810] sm:$0xff]  }
  0xf9   : > { %7126 = vmatpush3.bf16.msra.mxu1 %v7655_v44  ;;  %7105 = vmatprep.subr.bf16.mxu0 %v7656_v48  ;;  %v7680_v44 = vld [vmem:[%s9497_s1 + $0x858] sm:$0xff]   ;;  %v7684_v48 = vld [vmem:[%s9497_s1 + $0x860] sm:$0xff]  }
  0xfa   : > { %v6803_v39 = vpop.f32.mrb[0].mxu0  ;;  %7127 = vmatprep.subr.bf16.mxu1 %v7657_v50  ;;  %v7685_v50 = vld [vmem:[%s9497_s1 + $0x8e0] sm:$0xff]  }
  0xfb   : > { %v6825_v41 = vpop.f32.mrb[0].mxu1  ;;  %v6804_v43 = vpop.f32.mrb[1].mxu0 }
  0xfc   : > { %v6805_v45 = vadd.f32 %v6804_v43, %v6803_v39  ;;  %v6826_v46 = vpop.f32.mrb[1].mxu1  ;;  %v6806_v49 = vpop.f32.mrb[2].mxu0  ;;  %7106 = vmatpush3.bf16.msra.mxu0 %v7658_v53  ;;  %v7675_v39 = vld [vmem:[%s9497_s1 + $0x888] sm:$0xff]   ;;  %v7679_v43 = vld [vmem:[%s9497_s1 + $0x890] sm:$0xff]   ;;  %v7686_v53 = vld [vmem:[%s9497_s1 + $0x820] sm:$0xff]  }
  0xfd   : > { %v6827_v47 = vadd.f32 %v6826_v46, %v6825_v41  ;;  %v6828_v51 = vpop.f32.mrb[2].mxu1  ;;  %v6807_v54 = vpop.f32.mrb[3].mxu0  ;;  %7128 = vmatpush3.bf16.msra.mxu1 %v7659_v55  ;;  %7107 = vmatprep.subr.bf16.mxu0 %v7660_v61  ;;  %v7677_v41 = vld [vmem:[%s9497_s1 + $0x8d0] sm:$0xff]   ;;  %v7682_v46 = vld [vmem:[%s9497_s1 + $0x818] sm:$0xff]   ;;  %v7687_v55 = vld [vmem:[%s9497_s1 + $0x8a0] sm:$0xff]  }
  0xfe   : > { %v6808_v56 = vadd.f32 %v6807_v54, %v6806_v49  ;;  %v6829_v57 = vpop.f32.mrb[3].mxu1  ;;  %7129 = vmatprep.subr.bf16.mxu1 %v7661_v62  ;;  %v7688_v61 = vld [vmem:[%s9497_s1 + $0x868] sm:$0xff]  }
  0xff   : > { %v8727_v52 = vadd.f32 %v6827_v47, %v6805_v45  ;;  %v6830_v59 = vadd.f32 %v6829_v57, %v6828_v51  ;;  %v7681_v45 = vld [vmem:[%s9497_s1 + $0x8d8] sm:$0xff]  }
 0x100   : > { %7108 = vmatpush3.bf16.msra.mxu0 %v7662_v0  ;;  %v7683_v47 = vld [vmem:[%s9497_s1 + $0x898] sm:$0xff]  }
 0x101   : > { %v8741_v63 = vadd.f32 %v6830_v59, %v6808_v56  ;;  %7130 = vmatpush3.bf16.msra.mxu1 %v7663_v1  ;;  %7109 = vmatprep.subr.bf16.mxu0 %v7664_v2  ;;  %v7689_v1 = vld [vmem:[%s9497_s1 + $0x8e8] sm:$0xff]  }
 0x102   : > { %7131 = vmatprep.subr.bf16.mxu1 %v7665_v3  ;;  %v7690_v3 = vld [vmem:[%s9497_s1 + $0x828] sm:$0xff]  }
 0x104   : > { %7110 = vmatpush3.bf16.msra.mxu0 %v7666_v4 }
 0x105   : > { %7132 = vmatpush3.bf16.msra.mxu1 %v7667_v34  ;;  %7139 = vmatprep.subr.bf16.mxu0 %v7668_v31 }
 0x106   : > { %7161 = vmatprep.subr.bf16.mxu1 %v7669_v15  ;;  %v7697_v15 = vld [vmem:[%s9497_s1 + $0x8f8] sm:$0xff]  }
 0x107   : > { %3077 = vmatmul.mubr.bf16.vlgmr.msra.gmra.mrb[28].mxu0 %v2545_v30  ;;  %v7704_v30 = vld [vmem:[%s9497_s1 + $0x948] sm:$0xff]  }
 0x108   : > { %3118 = vmatmul.mubr.bf16.vlgmr.msra.gmra.mrb[28].mxu1 %v2561_v35  ;;  %7140 = vmatpush3.bf16.msra.mxu0 %v7670_v22  ;;  %v7700_v22 = vld [vmem:[%s9497_s1 + $0x940] sm:$0xff]   ;;  %v7707_v35 = vld [vmem:[%s9497_s1 + $0x988] sm:$0xff]  }
 0x109   : > { %7162 = vmatpush3.bf16.msra.mxu1 %v7671_v32  ;;  %7141 = vmatprep.subr.bf16.mxu0 %v7672_v36  ;;  %v7705_v32 = vld [vmem:[%s9497_s1 + $0x9c8] sm:$0xff]   ;;  %v7708_v36 = vld [vmem:[%s9497_s1 + $0x950] sm:$0xff]  }
 0x10a   : > { %7163 = vmatprep.subr.bf16.mxu1 %v7673_v37  ;;  %3713 = vmatprep.mubr.bf16.mxu0 %v3282_v25  ;;  %v7709_v37 = vld [vmem:[%s9497_s1 + $0x9d0] sm:$0xff]   ;;  %v7736_v25 = vld [vmem:[%s9497_s1 + $0xa48] sm:$0xff]  }
 0x10b   : > { %3754 = vmatprep.mubr.bf16.mxu1 %v3284_v29  ;;  %v7740_v29 = vld [vmem:[%s9497_s1 + $0xa50] sm:$0xff]  }
 0x10c   : > { %7142 = vmatpush3.bf16.msra.mxu0 %v7674_v38  ;;  %v7710_v38 = vld [vmem:[%s9497_s1 + $0x910] sm:$0xff]  }
 0x10d   : > { %7164 = vmatpush3.bf16.msra.mxu1 %v7675_v39  ;;  %7143 = vmatprep.subr.bf16.mxu0 %v7676_v40  ;;  %v7711_v39 = vld [vmem:[%s9497_s1 + $0x990] sm:$0xff]   ;;  %v7712_v40 = vld [vmem:[%s9497_s1 + $0x958] sm:$0xff]  }
 0x10e   : > { %7165 = vmatprep.subr.bf16.mxu1 %v7677_v41  ;;  %v7713_v41 = vld [vmem:[%s9497_s1 + $0x9d8] sm:$0xff]  }
 0x110   : > { %7144 = vmatpush3.bf16.msra.mxu0 %v7678_v42  ;;  %v7714_v42 = vld [vmem:[%s9497_s1 + $0x918] sm:$0xff]  }
 0x111   : > { %7166 = vmatpush3.bf16.msra.mxu1 %v7679_v43  ;;  %7145 = vmatprep.subr.bf16.mxu0 %v7680_v44  ;;  %v7715_v43 = vld [vmem:[%s9497_s1 + $0x998] sm:$0xff]  }
 0x112   : > { %7167 = vmatprep.subr.bf16.mxu1 %v7681_v45  ;;  %v7716_v45 = vld [vmem:[%s9497_s1 + $0x960] sm:$0xff]  }
 0x114   : > { %7146 = vmatpush3.bf16.msra.mxu0 %v7682_v46 }
 0x115   : > { %7168 = vmatpush3.bf16.msra.mxu1 %v7683_v47  ;;  %7147 = vmatprep.subr.bf16.mxu0 %v7684_v48  ;;  %v7717_v47 = vld [vmem:[%s9497_s1 + $0x9e0] sm:$0xff]  }
 0x116   : > { %7169 = vmatprep.subr.bf16.mxu1 %v7685_v50 }
 0x118   : > { %7148 = vmatpush3.bf16.msra.mxu0 %v7686_v53  ;;  %v7719_v53 = vld [vmem:[%s9497_s1 + $0x9a0] sm:$0xff]  }
 0x119   : > { %7170 = vmatpush3.bf16.msra.mxu1 %v7687_v55  ;;  %7149 = vmatprep.subr.bf16.mxu0 %v7688_v61  ;;  %v7721_v61 = vld [vmem:[%s9497_s1 + $0x9e8] sm:$0xff]  }
 0x11a   : > { %v6847_v49 = vpop.f32.mrb[4].mxu0  ;;  %7171 = vmatprep.subr.bf16.mxu1 %v7689_v1  ;;  %v7722_v1 = vld [vmem:[%s9497_s1 + $0x928] sm:$0xff]  }
 0x11b   : > { %v6869_v51 = vpop.f32.mrb[4].mxu1  ;;  %v6848_v54 = vpop.f32.mrb[5].mxu0 }
 0x11c   : > { %v6849_v56 = vadd.f32 %v6848_v54, %v6847_v49  ;;  %v6870_v57 = vpop.f32.mrb[5].mxu1  ;;  %v6850_v62 = vpop.f32.mrb[6].mxu0  ;;  %7150 = vmatpush3.bf16.msra.mxu0 %v7690_v3  ;;  %v7718_v49 = vld [vmem:[%s9497_s1 + $0x920] sm:$0xff]  }
 0x11d   : > { %v6871_v59 = vadd.f32 %v6870_v57, %v6869_v51  ;;  %v6872_v2 = vpop.f32.mrb[6].mxu1  ;;  %v6851_v4 = vpop.f32.mrb[7].mxu0  ;;  %7172 = vmatpush3.bf16.msra.mxu1 %v7691_v26  ;;  %7151 = vmatprep.subr.bf16.mxu0 %v7692_v8  ;;  %v7720_v57 = vld [vmem:[%s9497_s1 + $0x968] sm:$0xff]   ;;  %v7726_v8 = vld [vmem:[%s9497_s1 + $0x930] sm:$0xff]  }
 0x11e   : > { %v1011_v0 = vadd.f32 %v6849_v56, %v8727_v52  ;;  %v6852_v6 = vadd.f32 %v6851_v4, %v6850_v62  ;;  %v6873_v7 = vpop.f32.mrb[7].mxu1  ;;  %7173 = vmatprep.subr.bf16.mxu1 %v7693_v9  ;;  %v7723_v4 = vld [vmem:[%s9497_s1 + $0x9a8] sm:$0xff]   ;;  %v7728_v9 = vld [vmem:[%s9497_s1 + $0x978] sm:$0xff]  }
 0x11f   : > { %v6874_v52 = vadd.f32 %v6873_v7, %v6872_v2  ;;  %v7725_v7 = vld [vmem:[%s9497_s1 + $0x9f0] sm:$0xff]  }
 0x120   : > { %v8845_v34 = vadd.f32 %v6871_v59, %v1011_v0  ;;  %v1014_v31 = vadd.f32 %v6852_v6, %v8741_v63  ;;  %v7696_v63 = vld [vmem:[%s9497_s1 + $0x878] sm:$0xff]   ;;  %7152 = vmatpush3.bf16.msra.mxu0 %v7694_v12  ;;  %v7724_v6 = vld [vmem:[%s9497_s1 + $0x970] sm:$0xff]  }
 0x121   : > { %7174 = vmatpush3.bf16.msra.mxu1 %v7695_v14  ;;  %7153 = vmatprep.subr.bf16.mxu0 %v7696_v63  ;;  %v7729_v12 = vld [vmem:[%s9497_s1 + $0x9f8] sm:$0xff]   ;;  %v3130_v63 = vld [vmem:[%s8003_s22 + $0x10] sm:$0xcc] }
 0x122   : > { %v8860_v13 = vadd.f32 %v6874_v52, %v1014_v31  ;;  %7175 = vmatprep.subr.bf16.mxu1 %v7697_v15  ;;  %v7727_v31 = vld [vmem:[%s9497_s1 + $0x9b0] sm:$0xff]   ;;  %v7731_v14 = vld [vmem:[%s9497_s1 + $0x9b8] sm:$0xff]   ;;  %v6308_v15 = vcombine.low %v3130_v63, %v8762_v24 }
 0x124   : > { %7154 = vmatpush3.bf16.msra.mxu0 %v7698_v10  ;;  %v6309_v10 = vcombine.high %v3130_v63, %v8762_v24  ;;  %v3285_v11 = vrot.slane %v6308_v15, 2  ;;  %v7734_v24 = vld [vmem:[%s9497_s1 + $0xa00] sm:$0xff]   ;;  %v9103_v63 = vld [vmem:[%s8003_s22 + $0x28] sm:$0xff] }
 0x125   : > { %7176 = vmatpush3.bf16.msra.mxu1 %v7699_v16  ;;  %7183 = vmatprep.subr.bf16.mxu0 %v7700_v22  ;;  %v3131_v16 = vld [vmem:[%s8003_s22 + $0x18] sm:$0xcc]  ;;  %v3856_v15 = vld [vmem:[%s8003_s22 + $0x48] sm:$0x11] }
 0x126   : > { %7205 = vmatprep.subr.bf16.mxu1 %v7701_v27  ;;  %v6310_v17 = vcombine.low %v3131_v16, %v8767_v5  ;;  %v6311_v18 = vcombine.high %v3131_v16, %v8767_v5  ;;  %v3286_v20 = vrot.slane %v6309_v10, 2  ;;  %v7735_v5 = vld [vmem:[%s9497_s1 + $0xa80] sm:$0xff]   ;;  %v7737_v27 = vld [vmem:[%s9497_s1 + $0xac8] sm:$0xff]  }
 0x127   : > { %3714 = vmatmul.mubr.bf16.vlgmr.msra.gmra.mrb[32].mxu0 %v3281_v23 }
 0x128   : > { %3755 = vmatmul.mubr.bf16.vlgmr.msra.gmra.mrb[32].mxu1 %v3283_v28  ;;  %7184 = vmatpush3.bf16.msra.mxu0 %v7702_v58  ;;  %v3287_v22 = vrot.slane %v6310_v17, 2  ;;  %v3288_v23 = vrot.slane %v6311_v18, 2  ;;  %v7738_v58 = vld [vmem:[%s9497_s1 + $0xa08] sm:$0xff]   ;;  %v9110_v18 = vcombine.high %v3856_v15, %v3856_v15 }
 0x129   : > { %7206 = vmatpush3.bf16.msra.mxu1 %v7703_v60  ;;  %7185 = vmatprep.subr.bf16.mxu0 %v7704_v30  ;;  %v7739_v28 = vld [vmem:[%s9497_s1 + $0xa88] sm:$0xff]   ;;  %v7741_v60 = vld [vmem:[%s9497_s1 + $0xad0] sm:$0xff]  }
 0x12a   : > { %7207 = vmatprep.subr.bf16.mxu1 %v7705_v32  ;;  %3795 = vmatprep.mubr.bf16.mxu0 %v3286_v20  ;;  %v7742_v30 = vld [vmem:[%s9497_s1 + $0xa10] sm:$0xff]   ;;  %v7768_v20 = vld [vmem:[%s9497_s1 + $0xb40] sm:$0xff]  }
 0x12b   : > { %3836 = vmatprep.mubr.bf16.mxu1 %v3288_v23  ;;  %v7743_v32 = vld [vmem:[%s9497_s1 + $0xa90] sm:$0xff]  }
 0x12c   : > { %7186 = vmatpush3.bf16.msra.mxu0 %v7706_v33  ;;  %v7744_v33 = vld [vmem:[%s9497_s1 + $0xa58] sm:$0xff]  }
 0x12d   : > { %7208 = vmatpush3.bf16.msra.mxu1 %v7707_v35  ;;  %7187 = vmatprep.subr.bf16.mxu0 %v7708_v36  ;;  %v7745_v35 = vld [vmem:[%s9497_s1 + $0xad8] sm:$0xff]  }
 0x12e   : > { %7209 = vmatprep.subr.bf16.mxu1 %v7709_v37  ;;  %v7746_v36 = vld [vmem:[%s9497_s1 + $0xa18] sm:$0xff]  }
 0x130   : > { %7188 = vmatpush3.bf16.msra.mxu0 %v7710_v38  ;;  %v7747_v38 = vld [vmem:[%s9497_s1 + $0xa98] sm:$0xff]  }
 0x131   : > { %7210 = vmatpush3.bf16.msra.mxu1 %v7711_v39  ;;  %7189 = vmatprep.subr.bf16.mxu0 %v7712_v40  ;;  %v7748_v40 = vld [vmem:[%s9497_s1 + $0xa60] sm:$0xff]  }
 0x132   : > { %7211 = vmatprep.subr.bf16.mxu1 %v7713_v41 }
 0x134   : > { %7190 = vmatpush3.bf16.msra.mxu0 %v7714_v42  ;;  %v7749_v42 = vld [vmem:[%s9497_s1 + $0xae0] sm:$0xff]  }
 0x135   : > { %7212 = vmatpush3.bf16.msra.mxu1 %v7715_v43  ;;  %7191 = vmatprep.subr.bf16.mxu0 %v7716_v45  ;;  %v7750_v45 = vld [vmem:[%s9497_s1 + $0xa20] sm:$0xff]  }
 0x136   : > { %7213 = vmatprep.subr.bf16.mxu1 %v7717_v47 }
 0x138   : > { %7192 = vmatpush3.bf16.msra.mxu0 %v7718_v49 }
 0x139   : > { %7214 = vmatpush3.bf16.msra.mxu1 %v7719_v53  ;;  %7193 = vmatprep.subr.bf16.mxu0 %v7720_v57 }
 0x13a   : > { %v6891_v44 = vpop.f32.mrb[8].mxu0  ;;  %7215 = vmatprep.subr.bf16.mxu1 %v7721_v61 }
 0x13b   : > { %v6913_v46 = vpop.f32.mrb[8].mxu1  ;;  %v6892_v48 = vpop.f32.mrb[9].mxu0 }
 0x13c   : > { %v6893_v50 = vadd.f32 %v6892_v48, %v6891_v44  ;;  %v6914_v51 = vpop.f32.mrb[9].mxu1  ;;  %v6894_v55 = vpop.f32.mrb[10].mxu0  ;;  %7194 = vmatpush3.bf16.msra.mxu0 %v7722_v1  ;;  %v7751_v48 = vld [vmem:[%s9497_s1 + $0xaa0] sm:$0xff]   ;;  %v7756_v1 = vld [vmem:[%s9497_s1 + $0xa70] sm:$0xff]  }
 0x13d   : > { %v6915_v54 = vadd.f32 %v6914_v51, %v6913_v46  ;;  %v6916_v59 = vpop.f32.mrb[10].mxu1  ;;  %v6895_v62 = vpop.f32.mrb[11].mxu0  ;;  %7216 = vmatpush3.bf16.msra.mxu1 %v7723_v4  ;;  %7195 = vmatprep.subr.bf16.mxu0 %v7724_v6  ;;  %v7752_v51 = vld [vmem:[%s9497_s1 + $0xa68] sm:$0xff]   ;;  %v7758_v4 = vld [vmem:[%s9497_s1 + $0xa30] sm:$0xff]   ;;  %v7761_v6 = vld [vmem:[%s9497_s1 + $0xaf8] sm:$0xff]  }
 0x13e   : > { %v1505_v56 = vadd.f32 %v6893_v50, %v8845_v34  ;;  %v6896_v2 = vadd.f32 %v6895_v62, %v6894_v55  ;;  %v6917_v3 = vpop.f32.mrb[11].mxu1  ;;  %7217 = vmatprep.subr.bf16.mxu1 %v7725_v7  ;;  %v7753_v55 = vld [vmem:[%s9497_s1 + $0xae8] sm:$0xff]   ;;  %v7762_v7 = vld [vmem:[%s9497_s1 + $0xa38] sm:$0xff]  }
 0x13f   : > { %v6918_v34 = vadd.f32 %v6917_v3, %v6916_v59  ;;  %v7754_v59 = vld [vmem:[%s9497_s1 + $0xa28] sm:$0xff]   ;;  %v7757_v3 = vld [vmem:[%s9497_s1 + $0xaf0] sm:$0xff]  }
 0x140   : > { %v8950_v0 = vadd.f32 %v6915_v54, %v1505_v56  ;;  %v1508_v26 = vadd.f32 %v6896_v2, %v8860_v13  ;;  %7196 = vmatpush3.bf16.msra.mxu0 %v7726_v8  ;;  %v7730_v13 = vld [vmem:[%s9497_s1 + $0x938] sm:$0xff]   ;;  %v7755_v62 = vld [vmem:[%s9497_s1 + $0xaa8] sm:$0xff]   ;;  %v3847_v8 = vld [vmem:[%s8003_s22] sm:$0xcc] }
 0x141   : > { %7218 = vmatpush3.bf16.msra.mxu1 %v7727_v31  ;;  %7197 = vmatprep.subr.bf16.mxu0 %v7728_v9  ;;  %v9095_v31 = vld [vmem:[%s8003_s22 + $0x20] sm:$0xff] }
 0x142   : > { %v8965_v52 = vadd.f32 %v6918_v34, %v1508_v26  ;;  %7219 = vmatprep.subr.bf16.mxu1 %v7729_v12  ;;  %v7759_v34 = vld [vmem:[%s9497_s1 + $0xab0] sm:$0xff]   ;;  %v7760_v26 = vld [vmem:[%s9497_s1 + $0xa78] sm:$0xff]   ;;  %v3855_v9 = vld [vmem:[%s8003_s22 + $0x40] sm:$0x11]  ;;  %v6504_v10 = vcombine.low %v3847_v8, %v9095_v31 }
 0x143   : > { %v3848_v12 = vld [vmem:[%s8003_s22 + $0x8] sm:$0xcc]  ;;  %v9107_v16 = vcombine.low %v3855_v9, %v3855_v9 }
 0x144   : > { %7198 = vmatpush3.bf16.msra.mxu0 %v7730_v13  ;;  %v6505_v13 = vcombine.high %v3847_v8, %v9095_v31  ;;  %v6507_v17 = vcombine.high %v3848_v12, %v9103_v63  ;;  %v4042_v23 = vshrl.u32 %v6504_v10, 16 }
 0x145   : > { %7220 = vmatpush3.bf16.msra.mxu1 %v7731_v14  ;;  %7227 = vmatprep.subr.bf16.mxu0 %v7732_v19  ;;  %v9100_v14 = vcombine.high %v3855_v9, %v3855_v9  ;;  %v6506_v19 = vcombine.low %v3848_v12, %v9103_v63  ;;  %v7780_v9 = vld [vmem:[%s9497_s1 + $0xb58] sm:$0xff]  }
 0x146   : > { %7249 = vmatprep.subr.bf16.mxu1 %v7733_v21  ;;  %v4055_v21 = vshrl.u32 %v6505_v13, 16 }
 0x147   : > { %3796 = vmatmul.mubr.bf16.vlgmr.msra.gmra.mrb[36].mxu0 %v3285_v11  ;;  %v9113_v11 = vcombine.low %v3856_v15, %v3856_v15  ;;  %v7781_v15 = vld [vmem:[%s9497_s1 + $0xbd8] sm:$0xff]  }
 0x148   : > { %3837 = vmatmul.mubr.bf16.vlgmr.msra.gmra.mrb[36].mxu1 %v3287_v22  ;;  %7228 = vmatpush3.bf16.msra.mxu0 %v7734_v24  ;;  %v4058_v24 = vshll.u32 %v6505_v13, 16  ;;  %v4063_v22 = vshll.u32 %v9100_v14, 16 }
 0x149   : > { %7250 = vmatpush3.bf16.msra.mxu1 %v7735_v5  ;;  %7229 = vmatprep.subr.bf16.mxu0 %v7736_v25  ;;  %v4081_v5 = vshrl.u32 %v6507_v17, 16  ;;  %v4084_v25 = vshll.u32 %v6507_v17, 16  ;;  %v7782_v17 = vld [vmem:[%s9497_s1 + $0xb18] sm:$0xff]  }
 0x14a   : > { %7251 = vmatprep.subr.bf16.mxu1 %v7737_v27  ;;  %v4089_v27 = vshll.u32 %v9110_v18, 16 }
 0x14c   : > { %7230 = vmatpush3.bf16.msra.mxu0 %v7738_v58  ;;  %v4045_v58 = vshll.u32 %v6504_v10, 16 }
 0x14d   : > { %7252 = vmatpush3.bf16.msra.mxu1 %v7739_v28  ;;  %7231 = vmatprep.subr.bf16.mxu0 %v7740_v29  ;;  %v7769_v28 = vld [vmem:[%s9497_s1 + $0xbc0] sm:$0xff]   ;;  %v4057_v29 = vrot.slane %v4055_v21, 2  ;;  %v7783_v21 = vld [vmem:[%s9497_s1 + $0xb98] sm:$0xff]  }
 0x14e   : > { %7253 = vmatprep.subr.bf16.mxu1 %v7741_v60  ;;  %v4060_v60 = vrot.slane %v4058_v24, 3 }
 0x150   : > { %7232 = vmatpush3.bf16.msra.mxu0 %v7742_v30  ;;  %v4065_v30 = vrot.slane %v4063_v22, 3 }
 0x151   : > { %7254 = vmatpush3.bf16.msra.mxu1 %v7743_v32  ;;  %7233 = vmatprep.subr.bf16.mxu0 %v7744_v33  ;;  %v4044_v32 = vrot.slane %v4042_v23, 2  ;;  %v4083_v33 = vrot.slane %v4081_v5, 2  ;;  %v7784_v23 = vld [vmem:[%s9497_s1 + $0xb60] sm:$0xff]  }
 0x152   : > { %7255 = vmatprep.subr.bf16.mxu1 %v7745_v35  ;;  %v4086_v35 = vrot.slane %v4084_v25, 3  ;;  %v7785_v25 = vld [vmem:[%s9497_s1 + $0xbe0] sm:$0xff]  }
 0x154   : > { %7234 = vmatpush3.bf16.msra.mxu0 %v7746_v36  ;;  %v4091_v36 = vrot.slane %v4089_v27, 3  ;;  %v7786_v27 = vld [vmem:[%s9497_s1 + $0xb20] sm:$0xff]  }
 0x155   : > { %7256 = vmatpush3.bf16.msra.mxu1 %v7747_v38  ;;  %7235 = vmatprep.subr.bf16.mxu0 %v7748_v40  ;;  %v4061_v38 = vor.u32 %v4060_v60, %v4057_v29  ;;  %v4068_v40 = vshrl.u32 %v6506_v19, 16  ;;  %v7788_v29 = vld [vmem:[%s9497_s1 + $0xb68] sm:$0xff]  }
 0x156   : > { %7257 = vmatprep.subr.bf16.mxu1 %v7749_v42  ;;  %v4087_v42 = vor.u32 %v4086_v35, %v4083_v33  ;;  %v7789_v60 = vld [vmem:[%s9497_s1 + $0xbe8] sm:$0xff]   ;;  %v7792_v33 = vld [vmem:[%s9497_s1 + $0xb70] sm:$0xff]  }
 0x157   : > { %v7793_v35 = vld [vmem:[%s9497_s1 + $0xbf0] sm:$0xff]  }
 0x158   : > { %7236 = vmatpush3.bf16.msra.mxu0 %v7750_v45  ;;  %v7770_v45 = vld [vmem:[%s9497_s1 + $0xb00] sm:$0xff]  }
 0x159   : > { %7258 = vmatpush3.bf16.msra.mxu1 %v7751_v48  ;;  %7237 = vmatprep.subr.bf16.mxu0 %v7752_v51  ;;  %v4070_v48 = vrot.slane %v4068_v40, 2  ;;  %v7772_v51 = vld [vmem:[%s9497_s1 + $0xb48] sm:$0xff]   ;;  %v7798_v40 = vld [vmem:[%s9497_s1 + $0xb38] sm:$0xff]  }
 0x15a   : > { %v6935_v37 = vpop.f32.mrb[12].mxu0  ;;  %7259 = vmatprep.subr.bf16.mxu1 %v7753_v55 }
 0x15b   : > { %v6957_v39 = vpop.f32.mrb[12].mxu1  ;;  %v6936_v41 = vpop.f32.mrb[13].mxu0 }
 0x15c   : > { %v6937_v43 = vadd.f32 %v6936_v41, %v6935_v37  ;;  %v6958_v44 = vpop.f32.mrb[13].mxu1  ;;  %v6938_v47 = vpop.f32.mrb[14].mxu0  ;;  %7238 = vmatpush3.bf16.msra.mxu0 %v7754_v59  ;;  %v4047_v37 = vrot.slane %v4045_v58, 3  ;;  %v4071_v41 = vshll.u32 %v6506_v19, 16 }
 0x15d   : > { %v6959_v46 = vadd.f32 %v6958_v44, %v6957_v39  ;;  %v6960_v50 = vpop.f32.mrb[14].mxu1  ;;  %v6939_v53 = vpop.f32.mrb[15].mxu0  ;;  %7260 = vmatpush3.bf16.msra.mxu1 %v7755_v62  ;;  %7239 = vmatprep.subr.bf16.mxu0 %v7756_v1  ;;  %v4050_v39 = vshll.u32 %v9107_v16, 16  ;;  %v4076_v44 = vshll.u32 %v9113_v11, 16  ;;  %v7776_v1 = vld [vmem:[%s9497_s1 + $0xb50] sm:$0xff]  }
 0x15e   : > { %v1587_v49 = vadd.f32 %v6937_v43, %v8950_v0  ;;  %v6940_v56 = vadd.f32 %v6939_v53, %v6938_v47  ;;  %v6961_v57 = vpop.f32.mrb[15].mxu1  ;;  %7261 = vmatprep.subr.bf16.mxu1 %v7757_v3  ;;  %v4048_v43 = vor.u32 %v4047_v37, %v4044_v32  ;;  %v4092_v53 = vsel %vm4040_vm0, %v4087_v42, %v4091_v36  ;;  %v7791_v32 = vld [vmem:[%s9497_s1 + $0xba8] sm:$0xff]   ;;  %v7794_v36 = vld [vmem:[%s9497_s1 + $0xb30] sm:$0xff]   ;;  %v7799_v42 = vld [vmem:[%s9497_s1 + $0xbb8] sm:$0xff]  }
 0x15f   : > { %v6962_v61 = vadd.f32 %v6961_v57, %v6960_v50  ;;  %v4052_v47 = vrot.slane %v4050_v39, 3  ;;  %v7771_v50 = vld [vmem:[%s9497_s1 + $0xb80] sm:$0xff]   ;;  %v4078_v55 = vrot.slane %v4076_v44, 3  ;;  %4610 = vmatprep.mubr.bf16.mxu1 %v4092_v53  ;;  %v7795_v37 = vld [vmem:[%s9497_s1 + $0xbb0] sm:$0xff]   ;;  %v7797_v39 = vld [vmem:[%s9497_s1 + $0xbf8] sm:$0xff]  }
 0x160   : > { %v9055_v54 = vadd.f32 %v6959_v46, %v1587_v49  ;;  %v1590_v0 = vadd.f32 %v6940_v56, %v8965_v52  ;;  %7240 = vmatpush3.bf16.msra.mxu0 %v7758_v4  ;;  %v7763_v52 = vld [vmem:[%s9497_s1 + $0xab8] sm:$0xff]   ;;  %v4066_v46 = vsel %vm4040_vm0, %v4061_v38, %v4065_v30  ;;  %v4073_v49 = vrot.slane %v4071_v41, 3  ;;  %v7773_v56 = vld [vmem:[%s9497_s1 + $0xbc8] sm:$0xff]   ;;  %v7777_v4 = vld [vmem:[%s9497_s1 + $0xbd0] sm:$0xff]  }
 0x161   : > { %7262 = vmatpush3.bf16.msra.mxu1 %v7759_v34  ;;  %7241 = vmatprep.subr.bf16.mxu0 %v7760_v26  ;;  %v4053_v57 = vsel %vm4040_vm0, %v4048_v43, %v4052_v47  ;;  %v7778_v26 = vld [vmem:[%s9497_s1 + $0xb10] sm:$0xff]   ;;  %v7790_v30 = vld [vmem:[%s9497_s1 + $0xb28] sm:$0xff]   ;;  %v7796_v38 = vld [vmem:[%s9497_s1 + $0xb78] sm:$0xff]  }
 0x162   : > { %v9070_v2 = vadd.f32 %v6962_v61, %v1590_v0  ;;  %7263 = vmatprep.subr.bf16.mxu1 %v7761_v6  ;;  %4569 = vmatprep.mubr.bf16.mxu0 %v4066_v46  ;;  %v4074_v59 = vor.u32 %v4073_v49, %v4070_v48  ;;  %v7774_v61 = vld [vmem:[%s9497_s1 + $0xb08] sm:$0xff]   ;;  %v3849_v41 = vld [vmem:[%s8003_s22 + $0x10] sm:$0xcc]  ;;  %v3857_v44 = vld [vmem:[%s8003_s22 + $0x50] sm:$0x11] }
 0x163   : > { %v7775_v0 = vld [vmem:[%s9497_s1 + $0xb88] sm:$0xff]   ;;  %v9225_v43 = vld [vmem:[%s8003_s22 + $0x30] sm:$0xff]  ;;  %v9230_v47 = vcombine.high %v3857_v44, %v3857_v44  ;;  %v9233_v48 = vld [vmem:[%s8003_s22 + $0x38] sm:$0xff] }
 0x164   : > { %7242 = vmatpush3.bf16.msra.mxu0 %v7762_v7  ;;  %v4079_v62 = vsel %vm4040_vm0, %v4074_v59, %v4078_v55  ;;  %v7779_v7 = vld [vmem:[%s9497_s1 + $0xb90] sm:$0xff]   ;;  %v6509_v46 = vcombine.high %v3849_v41, %v9225_v43  ;;  %v3858_v49 = vld [vmem:[%s8003_s22 + $0x58] sm:$0x11]  ;;  %v7804_v59 = vld [vmem:[%s9497_s1 + $0xc40] sm:$0xff]  }
 0x165   : > { %7264 = vmatpush3.bf16.msra.mxu1 %v7763_v52  ;;  %7271 = vmatprep.subr.bf16.mxu0 %v7768_v20  ;;  %v9240_v55 = vcombine.high %v3858_v49, %v3858_v49 }
 0x166   : > { %7293 = vmatprep.subr.bf16.mxu1 %v7769_v28  ;;  %v7787_v28 = vld [vmem:[%s9497_s1 + $0xba0] sm:$0xff]  }
 0x167   : > { %4570 = vmatmul.mubr.bf16.vlgmr.msra.gmra.mrb[40].mxu0 %v4053_v57  ;;  %v9243_v57 = vcombine.low %v3858_v49, %v3858_v49  ;;  %v7813_v49 = vld [vmem:[%s9497_s1 + $0xcd0] sm:$0xff]  }
 0x168   : > { %7272 = vmatpush3.bf16.msra.mxu0 %v7770_v45  ;;  %4611 = vmatmul.mubr.bf16.vlgmr.msra.gmra.mrb[40].mxu1 %v4079_v62  ;;  %v3850_v45 = vld [vmem:[%s8003_s22 + $0x18] sm:$0xcc]  ;;  %v4110_v62 = vshll.u32 %v6509_v46, 16 }
 0x169   : > { %7273 = vmatprep.subr.bf16.mxu0 %v7772_v51  ;;  %7294 = vmatpush3.bf16.msra.mxu1 %v7771_v50  ;;  %v6508_v50 = vcombine.low %v3849_v41, %v9225_v43  ;;  %v9237_v51 = vcombine.low %v3857_v44, %v3857_v44  ;;  %v6511_v53 = vcombine.high %v3850_v45, %v9233_v48 }
 0x16a   : > { %7295 = vmatprep.subr.bf16.mxu1 %v7773_v56  ;;  %v6510_v56 = vcombine.low %v3850_v45, %v9233_v48  ;;  %v7812_v45 = vld [vmem:[%s9497_s1 + $0xc50] sm:$0xff]  }
 0x16c   : > { %7274 = vmatpush3.bf16.msra.mxu0 %v7774_v61  ;;  %v4107_v61 = vshrl.u32 %v6509_v46, 16 }
 0x16d   : > { %7275 = vmatprep.subr.bf16.mxu0 %v7776_v1  ;;  %7296 = vmatpush3.bf16.msra.mxu1 %v7775_v0  ;;  %v4115_v0 = vshll.u32 %v9230_v47, 16  ;;  %v4094_v1 = vshrl.u32 %v6508_v50, 16 }
 0x16e   : > { %7297 = vmatprep.subr.bf16.mxu1 %v7777_v4  ;;  %v4136_v4 = vshll.u32 %v6511_v53, 16 }
 0x170   : > { %7276 = vmatpush3.bf16.msra.mxu0 %v7778_v26  ;;  %v4097_v26 = vshll.u32 %v6508_v50, 16 }
 0x171   : > { %7277 = vmatprep.subr.bf16.mxu0 %v7780_v9  ;;  %7298 = vmatpush3.bf16.msra.mxu1 %v7779_v7  ;;  %v4109_v7 = vrot.slane %v4107_v61, 2  ;;  %v4096_v9 = vrot.slane %v4094_v1, 2 }
 0x172   : > { %7299 = vmatprep.subr.bf16.mxu1 %v7781_v15 }
 0x174   : > { %7278 = vmatpush3.bf16.msra.mxu0 %v7782_v17 }
 0x175   : > { %7279 = vmatprep.subr.bf16.mxu0 %v7784_v23  ;;  %7300 = vmatpush3.bf16.msra.mxu1 %v7783_v21  ;;  %v4120_v21 = vshrl.u32 %v6510_v56, 16 }
 0x176   : > { %7301 = vmatprep.subr.bf16.mxu1 %v7785_v25  ;;  %v7806_v25 = vld [vmem:[%s9497_s1 + $0xc00] sm:$0xff]  }
 0x178   : > { %7280 = vmatpush3.bf16.msra.mxu0 %v7786_v27 }
 0x179   : > { %7281 = vmatprep.subr.bf16.mxu0 %v7788_v29  ;;  %7302 = vmatpush3.bf16.msra.mxu1 %v7787_v28  ;;  %v4122_v29 = vrot.slane %v4120_v21, 2  ;;  %v7825_v21 = vld [vmem:[%s9497_s1 + $0xce8] sm:$0xff]  }
 0x17a   : > { %v6979_v3 = vpop.f32.mrb[16].mxu0  ;;  %7303 = vmatprep.subr.bf16.mxu1 %v7789_v60 }
 0x17b   : > { %v7001_v34 = vpop.f32.mrb[16].mxu1  ;;  %v6980_v6 = vpop.f32.mrb[17].mxu0 }
 0x17c   : > { %v6981_v52 = vadd.f32 %v6980_v6, %v6979_v3  ;;  %v7002_v8 = vpop.f32.mrb[17].mxu1  ;;  %v6982_v13 = vpop.f32.mrb[18].mxu0  ;;  %7282 = vmatpush3.bf16.msra.mxu0 %v7790_v30  ;;  %v4133_v3 = vshrl.u32 %v6511_v53, 16  ;;  %v7805_v6 = vld [vmem:[%s9497_s1 + $0xcc0] sm:$0xff]  }
 0x17d   : > { %v7003_v12 = vadd.f32 %v7002_v8, %v7001_v34  ;;  %v7004_v10 = vpop.f32.mrb[18].mxu1  ;;  %v6983_v20 = vpop.f32.mrb[19].mxu0  ;;  %7283 = vmatprep.subr.bf16.mxu0 %v7792_v33  ;;  %7304 = vmatpush3.bf16.msra.mxu1 %v7791_v32  ;;  %v4141_v34 = vshll.u32 %v9240_v55, 16  ;;  %v4117_v8 = vrot.slane %v4115_v0, 3  ;;  %v7807_v30 = vld [vmem:[%s9497_s1 + $0xc80] sm:$0xff]   ;;  %v7808_v32 = vld [vmem:[%s9497_s1 + $0xc48] sm:$0xff]  }
 0x17e   : > { %v6984_v24 = vadd.f32 %v6983_v20, %v6982_v13  ;;  %v7005_v22 = vpop.f32.mrb[19].mxu1  ;;  %7305 = vmatprep.subr.bf16.mxu1 %v7793_v35  ;;  %v4138_v13 = vrot.slane %v4136_v4, 3  ;;  %v4102_v20 = vshll.u32 %v9237_v51, 16 }
 0x17f   : > { %v9168_v19 = vadd.f32 %v7003_v12, %v6981_v52  ;;  %v7006_v5 = vadd.f32 %v7005_v22, %v7004_v10  ;;  %v4112_v52 = vrot.slane %v4110_v62, 3  ;;  %v4135_v12 = vrot.slane %v4133_v3, 2  ;;  %v7815_v62 = vld [vmem:[%s9497_s1 + $0xc90] sm:$0xff]   ;;  %v7816_v3 = vld [vmem:[%s9497_s1 + $0xc58] sm:$0xff]  }
 0x180   : > { %7284 = vmatpush3.bf16.msra.mxu0 %v7794_v36  ;;  %v4143_v15 = vrot.slane %v4141_v34, 3  ;;  %v4099_v10 = vrot.slane %v4097_v26, 3  ;;  %v4104_v28 = vrot.slane %v4102_v20, 3  ;;  %v7809_v36 = vld [vmem:[%s9497_s1 + $0xcc8] sm:$0xff]   ;;  %v7817_v34 = vld [vmem:[%s9497_s1 + $0xcd8] sm:$0xff]  }
 0x181   : > { %v9182_v58 = vadd.f32 %v7006_v5, %v6984_v24  ;;  %7285 = vmatprep.subr.bf16.mxu0 %v7796_v38  ;;  %7306 = vmatpush3.bf16.msra.mxu1 %v7795_v37  ;;  %v4113_v17 = vor.u32 %v4112_v52, %v4109_v7  ;;  %v4123_v24 = vshll.u32 %v6510_v56, 16  ;;  %v4139_v22 = vor.u32 %v4138_v13, %v4135_v12  ;;  %v7814_v56 = vld [vmem:[%s9497_s1 + $0xc10] sm:$0xff]   ;;  %v7820_v13 = vld [vmem:[%s9497_s1 + $0xc60] sm:$0xff]   ;;  %v7824_v20 = vld [vmem:[%s9497_s1 + $0xc68] sm:$0xff]  }
 0x182   : > { %7307 = vmatprep.subr.bf16.mxu1 %v7797_v39  ;;  %v4100_v23 = vor.u32 %v4099_v10, %v4096_v9  ;;  %v4128_v5 = vshll.u32 %v9243_v57, 16  ;;  %v7810_v39 = vld [vmem:[%s9497_s1 + $0xc08] sm:$0xff]  }
 0x183   : > { %v4118_v27 = vsel %vm4040_vm0, %v4113_v17, %v4117_v8  ;;  %v4125_v60 = vrot.slane %v4123_v24, 3  ;;  %v4144_v33 = vsel %vm4040_vm0, %v4139_v22, %v4143_v15  ;;  %v7819_v8 = vld [vmem:[%s9497_s1 + $0xc98] sm:$0xff]   ;;  %v7821_v15 = vld [vmem:[%s9497_s1 + $0xce0] sm:$0xff]   ;;  %v7826_v24 = vld [vmem:[%s9497_s1 + $0xc28] sm:$0xff]  }
 0x184   : > { %7286 = vmatpush3.bf16.msra.mxu0 %v7798_v40  ;;  %4651 = vmatprep.mubr.bf16.mxu0 %v4118_v27  ;;  %v4130_v35 = vrot.slane %v4128_v5, 3  ;;  %v4105_v37 = vsel %vm4040_vm0, %v4100_v23, %v4104_v28  ;;  %v7822_v17 = vld [vmem:[%s9497_s1 + $0xc20] sm:$0xff]   ;;  %v7828_v22 = vld [vmem:[%s9497_s1 + $0xc70] sm:$0xff]   ;;  %v7832_v27 = vld [vmem:[%s9497_s1 + $0xc78] sm:$0xff]   ;;  %v4861_v28 = vrot.slane %v9100_v14, 3 }
 0x185   : > { %7315 = vmatprep.subr.bf16.mxu0 %v7804_v59  ;;  %7308 = vmatpush3.bf16.msra.mxu1 %v7799_v42  ;;  %v4126_v38 = vor.u32 %v4125_v60, %v4122_v29  ;;  %v7811_v42 = vld [vmem:[%s9497_s1 + $0xc88] sm:$0xff]   ;;  %v7829_v23 = vld [vmem:[%s9497_s1 + $0xcf0] sm:$0xff]   ;;  %v7833_v29 = vld [vmem:[%s9497_s1 + $0xcf8] sm:$0xff]   ;;  %v4867_v60 = vrot.slane %v9110_v18, 3  ;;  %v4864_v18 = vrot.slane %v9113_v11, 3 }
 0x186   : > { %7337 = vmatprep.subr.bf16.mxu1 %v7805_v6  ;;  %4692 = vmatprep.mubr.bf16.mxu1 %v4144_v33  ;;  %v7830_v5 = vld [vmem:[%s9497_s1 + $0xc30] sm:$0xff]   ;;  %v4858_v33 = vrot.slane %v9107_v16, 3  ;;  %v7835_v16 = vld [vmem:[%s9497_s1 + $0xcb8] sm:$0xff]  }
 0x187   : > { %4652 = vmatmul.mubr.bf16.vlgmr.msra.gmra.mrb[44].mxu0 %v4105_v37  ;;  %v4131_v41 = vsel %vm4040_vm0, %v4126_v38, %v4130_v35 }
 0x188   : > { %7316 = vmatpush3.bf16.msra.mxu0 %v7806_v25  ;;  %4693 = vmatmul.mubr.bf16.vlgmr.msra.gmra.mrb[44].mxu1 %v4131_v41  ;;  %v7831_v25 = vld [vmem:[%s9497_s1 + $0xcb0] sm:$0xff]  }
 0x189   : > { %7317 = vmatprep.subr.bf16.mxu0 %v7808_v32  ;;  %7338 = vmatpush3.bf16.msra.mxu1 %v7807_v30  ;;  %v7834_v30 = vld [vmem:[%s9497_s1 + $0xc38] sm:$0xff]   ;;  %v4703_v32 = vld [vmem:[%s8003_s22] sm:$0x88] }
 0x18a   : > { %7339 = vmatprep.subr.bf16.mxu1 %v7809_v36  ;;  %v6713_v35 = vcombine.high %v4703_v32, %v9095_v31  ;;  %v4704_v36 = vld [vmem:[%s8003_s22 + $0x8] sm:$0x88]  ;;  %v6712_v14 = vcombine.low %v4703_v32, %v9095_v31  ;;  %v7837_v31 = vld [vmem:[%s9497_s1 + $0xdc0] sm:$0xff]   ;;  %v7861_v32 = vld [vmem:[%s9497_s1 + $0xdf0] sm:$0xff]  }
 0x18b   : > { %v6715_v37 = vcombine.high %v4704_v36, %v9103_v63  ;;  %v6714_v38 = vcombine.low %v4704_v36, %v9103_v63  ;;  %v7863_v36 = vld [vmem:[%s9497_s1 + $0xdb0] sm:$0xff]  }
 0x18c   : > { %7318 = vmatpush3.bf16.msra.mxu0 %v7810_v39  ;;  %v7836_v39 = vld [vmem:[%s9497_s1 + $0xd40] sm:$0xff]   ;;  %v4857_v41 = vrot.slane %v6712_v14, 3  ;;  %v7865_v14 = vld [vmem:[%s9497_s1 + $0xdf8] sm:$0xff]  }
 0x18d   : > { %7319 = vmatprep.subr.bf16.mxu0 %v7812_v45  ;;  %7340 = vmatpush3.bf16.msra.mxu1 %v7811_v42  ;;  %v4866_v42 = vrot.slane %v6715_v37, 3  ;;  %v4863_v63 = vrot.slane %v6714_v38, 3  ;;  %v7838_v45 = vld [vmem:[%s9497_s1 + $0xd00] sm:$0xff]   ;;  %v7866_v37 = vld [vmem:[%s9497_s1 + $0xd38] sm:$0xff]   ;;  %v4705_v38 = vld [vmem:[%s8003_s22 + $0x10] sm:$0x88] }
 0x18e   : > { %7341 = vmatprep.subr.bf16.mxu1 %v7813_v49  ;;  %v7840_v49 = vld [vmem:[%s9497_s1 + $0xd48] sm:$0xff]  }
 0x190   : > { %7320 = vmatpush3.bf16.msra.mxu0 %v7814_v56  ;;  %v7841_v56 = vld [vmem:[%s9497_s1 + $0xdc8] sm:$0xff]  }
 0x191   : > { %7321 = vmatprep.subr.bf16.mxu0 %v7816_v3  ;;  %7342 = vmatpush3.bf16.msra.mxu1 %v7815_v62  ;;  %v7843_v62 = vld [vmem:[%s9497_s1 + $0xd88] sm:$0xff]  }
 0x192   : > { %7343 = vmatprep.subr.bf16.mxu1 %v7817_v34 }
 0x195   : > { %7344 = vmatpush3.bf16.msra.mxu1 %v7819_v8 }
 0x196   : > { %7345 = vmatprep.subr.bf16.mxu1 %v7821_v15  ;;  %v7850_v15 = vld [vmem:[%s9497_s1 + $0xd18] sm:$0xff]  }
 0x19a   : > { %v7023_v40 = vpop.f32.mrb[20].mxu0 }
 0x19b   : > { %v7045_v44 = vpop.f32.mrb[20].mxu1  ;;  %v7024_v46 = vpop.f32.mrb[21].mxu0 }
 0x19c   : > { %v7025_v50 = vadd.f32 %v7024_v46, %v7023_v40  ;;  %v7046_v53 = vpop.f32.mrb[21].mxu1  ;;  %v7026_v61 = vpop.f32.mrb[22].mxu0  ;;  %v4860_v40 = vrot.slane %v6713_v35, 3  ;;  %v4868_v46 = vsel %vm4856_vm1, %v4866_v42, %v4867_v60  ;;  %v7860_v60 = vld [vmem:[%s9497_s1 + $0xd70] sm:$0xff]   ;;  %v7864_v35 = vld [vmem:[%s9497_s1 + $0xd78] sm:$0xff]  }
 0x19d   : > { %v7047_v59 = vadd.f32 %v7046_v53, %v7045_v44  ;;  %v7048_v1 = vpop.f32.mrb[22].mxu1  ;;  %v7027_v4 = vpop.f32.mrb[23].mxu0  ;;  %v4859_v44 = vsel %vm4856_vm1, %v4857_v41, %v4858_v33  ;;  %5346 = vmatprep.mubr.bf16.mxu1 %v4868_v46  ;;  %v7839_v53 = vld [vmem:[%s9497_s1 + $0xd80] sm:$0xff]   ;;  %v7862_v33 = vld [vmem:[%s9497_s1 + $0xd30] sm:$0xff]   ;;  %v4870_v41 = vrot.slane %v9237_v51, 3 }
 0x19e   : > { %v2304_v0 = vadd.f32 %v7025_v50, %v9168_v19  ;;  %v7028_v6 = vadd.f32 %v7027_v4, %v7026_v61  ;;  %v7049_v7 = vpop.f32.mrb[23].mxu1  ;;  %v7818_v19 = vld [vmem:[%s9497_s1 + $0xc18] sm:$0xff]   ;;  %v4862_v11 = vsel %vm4856_vm1, %v4860_v40, %v4861_v28  ;;  %v4865_v50 = vsel %vm4856_vm1, %v4863_v63, %v4864_v18  ;;  %v7844_v61 = vld [vmem:[%s9497_s1 + $0xd50] sm:$0xff]   ;;  %v7857_v28 = vld [vmem:[%s9497_s1 + $0xde8] sm:$0xff]  }
 0x19f   : > { %v7050_v52 = vadd.f32 %v7049_v7, %v7048_v1  ;;  %7322 = vmatpush3.bf16.msra.mxu0 %v7818_v19  ;;  %5305 = vmatprep.mubr.bf16.mxu0 %v4862_v11  ;;  %v7845_v1 = vld [vmem:[%s9497_s1 + $0xdd0] sm:$0xff]   ;;  %v6717_v18 = vcombine.high %v4705_v38, %v9225_v43  ;;  %v6716_v40 = vcombine.low %v4705_v38, %v9225_v43  ;;  %v4879_v63 = vrot.slane %v9240_v55, 3 }
 0x1a0   : > { %v2345_v26 = vadd.f32 %v7047_v59, %v2304_v0  ;;  %v2307_v12 = vadd.f32 %v7028_v6, %v9182_v58  ;;  %7323 = vmatprep.subr.bf16.mxu0 %v7820_v13  ;;  %v7842_v59 = vld [vmem:[%s9497_s1 + $0xd08] sm:$0xff]   ;;  %v7846_v4 = vld [vmem:[%s9497_s1 + $0xd10] sm:$0xff]  }
 0x1a1   : > { %v7847_v19 = vld [vmem:[%s9497_s1 + $0xd90] sm:$0xff]  }
 0x1a2   : > { %v9303_v9 = vadd.f32 %v2345_v26, %v9055_v54  ;;  %v2348_v10 = vadd.f32 %v7050_v52, %v2307_v12  ;;  %v7823_v54 = vld [vmem:[%s9497_s1 + $0xca0] sm:$0xff]   ;;  %v7848_v26 = vld [vmem:[%s9497_s1 + $0xd58] sm:$0xff]  }
 0x1a3   : > { %7324 = vmatpush3.bf16.msra.mxu0 %v7822_v17  ;;  %7346 = vmatpush3.bf16.msra.mxu1 %v7823_v54  ;;  %v7849_v12 = vld [vmem:[%s9497_s1 + $0xdd8] sm:$0xff]   ;;  %v7852_v54 = vld [vmem:[%s9497_s1 + $0xd60] sm:$0xff]  }
 0x1a4   : > { %v9319_v58 = vadd.f32 %v2348_v10, %v9070_v2  ;;  %v7827_v2 = vld [vmem:[%s9497_s1 + $0xca8] sm:$0xff]   ;;  %7325 = vmatprep.subr.bf16.mxu0 %v7824_v20  ;;  %7347 = vmatprep.subr.bf16.mxu1 %v7825_v21 }
 0x1a7   : > { %7326 = vmatpush3.bf16.msra.mxu0 %v7826_v24  ;;  %7348 = vmatpush3.bf16.msra.mxu1 %v7827_v2  ;;  %v7851_v24 = vld [vmem:[%s9497_s1 + $0xd98] sm:$0xff]  }
 0x1a8   : > { %7327 = vmatprep.subr.bf16.mxu0 %v7828_v22  ;;  %7349 = vmatprep.subr.bf16.mxu1 %v7829_v23  ;;  %v7853_v22 = vld [vmem:[%s9497_s1 + $0xde0] sm:$0xff]  }
 0x1a9   : > { %v7854_v23 = vld [vmem:[%s9497_s1 + $0xd20] sm:$0xff]  }
 0x1ab   : > { %7328 = vmatpush3.bf16.msra.mxu0 %v7830_v5  ;;  %7350 = vmatpush3.bf16.msra.mxu1 %v7831_v25  ;;  %v7856_v25 = vld [vmem:[%s9497_s1 + $0xd68] sm:$0xff]  }
 0x1ac   : > { %7329 = vmatprep.subr.bf16.mxu0 %v7832_v27  ;;  %7351 = vmatprep.subr.bf16.mxu1 %v7833_v29  ;;  %v7855_v27 = vld [vmem:[%s9497_s1 + $0xda0] sm:$0xff]   ;;  %v7858_v29 = vld [vmem:[%s9497_s1 + $0xd28] sm:$0xff]  }
 0x1af   : > { %7330 = vmatpush3.bf16.msra.mxu0 %v7834_v30  ;;  %7352 = vmatpush3.bf16.msra.mxu1 %v7835_v16  ;;  %v7859_v30 = vld [vmem:[%s9497_s1 + $0xda8] sm:$0xff]   ;;  %v4706_v16 = vld [vmem:[%s8003_s22 + $0x18] sm:$0x88]  ;;  %s6786_s22 = sshll.u32 %s9500_s10, 4 }
 0x1b0   : > { %7359 = vmatprep.subr.bf16.mxu0 %v7836_v39  ;;  %7381 = vmatprep.subr.bf16.mxu1 %v7837_v31  ;;  %v4873_v39 = vrot.slane %v9230_v47, 3  ;;  %v7867_v31 = vld [vmem:[%s9497_s1 + $0xdb8] sm:$0xff]   ;;  %v6719_v42 = vcombine.high %v4706_v16, %v9233_v48  ;;  %v6718_v11 = vcombine.low %v4706_v16, %v9233_v48  ;;  %v4872_v47 = vrot.slane %v6717_v18, 3  ;;  %s143_s8 = scalar_lea.vmem %s9498_s2, %s6786_s22 }
 0x1b2   : > { %5306 = vmatmul.mubr.bf16.vlgmr.msra.gmra.mrb[48].mxu0 %v4859_v44  ;;  %5347 = vmatmul.mubr.bf16.vlgmr.msra.gmra.mrb[48].mxu1 %v4865_v50  ;;  %v4876_v44 = vrot.slane %v9243_v57, 3  ;;  %v4878_v43 = vrot.slane %v6719_v42, 3  ;;  %v4875_v46 = vrot.slane %v6718_v11, 3  ;;  %v4874_v51 = vsel %vm4856_vm1, %v4872_v47, %v4873_v39 }
 0x1b3   : > { %7360 = vmatpush3.bf16.msra.mxu0 %v7838_v45  ;;  %7382 = vmatpush3.bf16.msra.mxu1 %v7839_v53  ;;  %v4869_v45 = vrot.slane %v6716_v40, 3 }
 0x1b4   : > { %7361 = vmatprep.subr.bf16.mxu0 %v7840_v49  ;;  %7383 = vmatprep.subr.bf16.mxu1 %v7841_v56  ;;  %v4880_v50 = vsel %vm4856_vm1, %v4878_v43, %v4879_v63  ;;  %v4877_v55 = vsel %vm4856_vm1, %v4875_v46, %v4876_v44 }
 0x1b5   : > { %v4871_v49 = vsel %vm4856_vm1, %v4869_v45, %v4870_v41  ;;  %5387 = vmatprep.mubr.bf16.mxu0 %v4874_v51  ;;  %5428 = vmatprep.mubr.bf16.mxu1 %v4880_v50 }
 0x1b7   : > { %7362 = vmatpush3.bf16.msra.mxu0 %v7842_v59  ;;  %7384 = vmatpush3.bf16.msra.mxu1 %v7843_v62 }
 0x1b8   : > { %7363 = vmatprep.subr.bf16.mxu0 %v7844_v61  ;;  %7385 = vmatprep.subr.bf16.mxu1 %v7845_v1 }
 0x1ba   : > { %v7067_v0 = vpop.f32.mrb[24].mxu0 }
 0x1bb   : > { %v7089_v3 = vpop.f32.mrb[24].mxu1  ;;  %v7068_v34 = vpop.f32.mrb[25].mxu0  ;;  %7364 = vmatpush3.bf16.msra.mxu0 %v7846_v4  ;;  %7386 = vmatpush3.bf16.msra.mxu1 %v7847_v19 }
 0x1bc   : > { %v7069_v6 = vadd.f32 %v7068_v34, %v7067_v0  ;;  %v7090_v7 = vpop.f32.mrb[25].mxu1  ;;  %v7070_v8 = vpop.f32.mrb[26].mxu0  ;;  %7365 = vmatprep.subr.bf16.mxu0 %v7848_v26  ;;  %7387 = vmatprep.subr.bf16.mxu1 %v7849_v12 }
 0x1bd   : > { %v7091_v52 = vadd.f32 %v7090_v7, %v7089_v3  ;;  %v7092_v13 = vpop.f32.mrb[26].mxu1  ;;  %v7071_v17 = vpop.f32.mrb[27].mxu0 }
 0x1be   : > { %v7072_v20 = vadd.f32 %v7071_v17, %v7070_v8  ;;  %v7093_v21 = vpop.f32.mrb[27].mxu1 }
 0x1bf   : > { %v9416_v10 = vadd.f32 %v7091_v52, %v7069_v6  ;;  %v7094_v2 = vadd.f32 %v7093_v21, %v7092_v13  ;;  %7366 = vmatpush3.bf16.msra.mxu0 %v7850_v15  ;;  %7388 = vmatpush3.bf16.msra.mxu1 %v7851_v24 }
 0x1c0   : > { %7367 = vmatprep.subr.bf16.mxu0 %v7852_v54  ;;  %7389 = vmatprep.subr.bf16.mxu1 %v7853_v22 }
 0x1c1   : > { %v9430_v5 = vadd.f32 %v7094_v2, %v7072_v20 }
 0x1c3   : > { %7368 = vmatpush3.bf16.msra.mxu0 %v7854_v23  ;;  %7390 = vmatpush3.bf16.msra.mxu1 %v7855_v27 }
 0x1c4   : > { %7369 = vmatprep.subr.bf16.mxu0 %v7856_v25  ;;  %7391 = vmatprep.subr.bf16.mxu1 %v7857_v28 }
 0x1c7   : > { %7370 = vmatpush3.bf16.msra.mxu0 %v7858_v29  ;;  %7392 = vmatpush3.bf16.msra.mxu1 %v7859_v30 }
 0x1c8   : > { %7371 = vmatprep.subr.bf16.mxu0 %v7860_v60  ;;  %7393 = vmatprep.subr.bf16.mxu1 %v7861_v32 }
 0x1cb   : > { %7372 = vmatpush3.bf16.msra.mxu0 %v7862_v33  ;;  %7394 = vmatpush3.bf16.msra.mxu1 %v7863_v36 }
 0x1cc   : > { %7373 = vmatprep.subr.bf16.mxu0 %v7864_v35  ;;  %7395 = vmatprep.subr.bf16.mxu1 %v7865_v14 }
 0x1cf   : > { %7374 = vmatpush3.bf16.msra.mxu0 %v7866_v37  ;;  %7396 = vmatpush3.bf16.msra.mxu1 %v7867_v31 }
 0x1d2   : > { %5388 = vmatmul.mubr.bf16.vlgmr.msra.gmra.mrb[52].mxu0 %v4871_v49  ;;  %5429 = vmatmul.mubr.bf16.vlgmr.msra.gmra.mrb[52].mxu1 %v4877_v55 }
 0x1da   : > { %v7111_v48 = vpop.f32.mrb[28].mxu0 }
 0x1db   : > { %v7133_v57 = vpop.f32.mrb[28].mxu1  ;;  %v7112_v53 = vpop.f32.mrb[29].mxu0 }
 0x1dc   : > { %v7113_v56 = vadd.f32 %v7112_v53, %v7111_v48  ;;  %v7134_v59 = vpop.f32.mrb[29].mxu1  ;;  %v7114_v61 = vpop.f32.mrb[30].mxu0 }
 0x1dd   : > { %v7135_v62 = vadd.f32 %v7134_v59, %v7133_v57  ;;  %v7136_v0 = vpop.f32.mrb[30].mxu1  ;;  %v7115_v1 = vpop.f32.mrb[31].mxu0 }
 0x1de   : > { %v3079_v3 = vadd.f32 %v7113_v56, %v9416_v10  ;;  %v7116_v4 = vadd.f32 %v7115_v1, %v7114_v61  ;;  %v7137_v34 = vpop.f32.mrb[31].mxu1 }
 0x1df   : > { %v7138_v26 = vadd.f32 %v7137_v34, %v7136_v0 }
 0x1e0   : > { %v3120_v6 = vadd.f32 %v7135_v62, %v3079_v3  ;;  %v3082_v7 = vadd.f32 %v7116_v4, %v9430_v5 }
 0x1e2   : > { %v3126_v19 = vadd.f32 %v3120_v6, %v9303_v9  ;;  %v3123_v52 = vadd.f32 %v7138_v26, %v3082_v7 }
 0x1e4   : > { %v3127_v8 = vadd.f32 %v3123_v52, %v9319_v58 }
 0x1fa   : > { %v7155_v12 = vpop.f32.mrb[32].mxu0 }
 0x1fb   : > { %v7177_v13 = vpop.f32.mrb[32].mxu1  ;;  %v7156_v15 = vpop.f32.mrb[33].mxu0 }
 0x1fc   : > { %v7157_v17 = vadd.f32 %v7156_v15, %v7155_v12  ;;  %v7178_v54 = vpop.f32.mrb[33].mxu1  ;;  %v7158_v20 = vpop.f32.mrb[34].mxu0 }
 0x1fd   : > { %v7179_v21 = vadd.f32 %v7178_v54, %v7177_v13  ;;  %v7180_v24 = vpop.f32.mrb[34].mxu1  ;;  %v7159_v10 = vpop.f32.mrb[35].mxu0 }
 0x1fe   : > { %v7160_v2 = vadd.f32 %v7159_v10, %v7158_v20  ;;  %v7181_v22 = vpop.f32.mrb[35].mxu1 }
 0x1ff   : > { %v3757_v23 = vadd.f32 %v7179_v21, %v7157_v17  ;;  %v7182_v25 = vadd.f32 %v7181_v22, %v7180_v24 }
 0x201   : > { %v3760_v27 = vadd.f32 %v7182_v25, %v7160_v2 }
 0x21a   : > { %v7199_v5 = vpop.f32.mrb[36].mxu0 }
 0x21b   : > { %v7221_v28 = vpop.f32.mrb[36].mxu1  ;;  %v7200_v9 = vpop.f32.mrb[37].mxu0 }
 0x21c   : > { %v7201_v29 = vadd.f32 %v7200_v9, %v7199_v5  ;;  %v7222_v60 = vpop.f32.mrb[37].mxu1  ;;  %v7202_v58 = vpop.f32.mrb[38].mxu0 }
 0x21d   : > { %v7223_v30 = vadd.f32 %v7222_v60, %v7221_v28  ;;  %v7224_v32 = vpop.f32.mrb[38].mxu1  ;;  %v7203_v33 = vpop.f32.mrb[39].mxu0 }
 0x21e   : > { %v3798_v35 = vadd.f32 %v7201_v29, %v3757_v23  ;;  %v7204_v36 = vadd.f32 %v7203_v33, %v7202_v58  ;;  %v7225_v14 = vpop.f32.mrb[39].mxu1 }
 0x21f   : > { %v7226_v37 = vadd.f32 %v7225_v14, %v7224_v32 }
 0x220   : > { %v3839_v38 = vadd.f32 %v7223_v30, %v3798_v35  ;;  %v3801_v18 = vadd.f32 %v7204_v36, %v3760_v27 }
 0x222   : > { %v3845_v39 = vadd.f32 %v3839_v38, %v3126_v19  ;;  %v3842_v16 = vadd.f32 %v7226_v37, %v3801_v18 }
 0x224   : > { %v3846_v40 = vadd.f32 %v3842_v16, %v3127_v8 }
 0x23a   : > { %v7243_v41 = vpop.f32.mrb[40].mxu0 }
 0x23b   : > { %v7244_v31 = vpop.f32.mrb[41].mxu0  ;;  %v7265_v42 = vpop.f32.mrb[40].mxu1 }
 0x23c   : > { %v7245_v63 = vadd.f32 %v7244_v31, %v7243_v41  ;;  %v7246_v11 = vpop.f32.mrb[42].mxu0  ;;  %v7266_v44 = vpop.f32.mrb[41].mxu1 }
 0x23d   : > { %v7247_v47 = vpop.f32.mrb[43].mxu0  ;;  %v7267_v45 = vadd.f32 %v7266_v44, %v7265_v42  ;;  %v7268_v43 = vpop.f32.mrb[42].mxu1 }
 0x23e   : > { %v7248_v46 = vadd.f32 %v7247_v47, %v7246_v11  ;;  %v7269_v51 = vpop.f32.mrb[43].mxu1 }
 0x23f   : > { %v4613_v49 = vadd.f32 %v7267_v45, %v7245_v63  ;;  %v7270_v50 = vadd.f32 %v7269_v51, %v7268_v43 }
 0x241   : > { %v4616_v55 = vadd.f32 %v7270_v50, %v7248_v46 }
 0x25a   : > { %v7287_v48 = vpop.f32.mrb[44].mxu0 }
 0x25b   : > { %v7288_v57 = vpop.f32.mrb[45].mxu0  ;;  %v7309_v53 = vpop.f32.mrb[44].mxu1 }
 0x25c   : > { %v7289_v56 = vadd.f32 %v7288_v57, %v7287_v48  ;;  %v7290_v59 = vpop.f32.mrb[46].mxu0  ;;  %v7310_v61 = vpop.f32.mrb[45].mxu1 }
 0x25d   : > { %v7291_v62 = vpop.f32.mrb[47].mxu0  ;;  %v7311_v1 = vadd.f32 %v7310_v61, %v7309_v53  ;;  %v7312_v3 = vpop.f32.mrb[46].mxu1 }
 0x25e   : > { %v4654_v0 = vadd.f32 %v7289_v56, %v4613_v49  ;;  %v7292_v4 = vadd.f32 %v7291_v62, %v7290_v59  ;;  %v7313_v34 = vpop.f32.mrb[47].mxu1 }
 0x25f   : > { %v7314_v7 = vadd.f32 %v7313_v34, %v7312_v3 }
 0x260   : > { %v4695_v26 = vadd.f32 %v7311_v1, %v4654_v0  ;;  %v4657_v6 = vadd.f32 %v7292_v4, %v4616_v55 }
 0x262   : > { %v4701_v19 = vadd.f32 %v4695_v26, %v3845_v39  ;;  %v4698_v52 = vadd.f32 %v7314_v7, %v4657_v6 }
 0x264   : > { %v4702_v8 = vadd.f32 %v4698_v52, %v3846_v40 }
 0x285   : > { %v7331_v12 = vpop.f32.mrb[48].mxu0  ;;  %v7353_v15 = vpop.f32.mrb[48].mxu1 }
 0x286   : > { %v7332_v13 = vpop.f32.mrb[49].mxu0  ;;  %v7354_v20 = vpop.f32.mrb[49].mxu1 }
 0x287   : > { %v7333_v17 = vadd.f32 %v7332_v13, %v7331_v12  ;;  %v7334_v54 = vpop.f32.mrb[50].mxu0  ;;  %v7355_v24 = vadd.f32 %v7354_v20, %v7353_v15  ;;  %v7356_v10 = vpop.f32.mrb[50].mxu1 }
 0x288   : > { %v7335_v21 = vpop.f32.mrb[51].mxu0  ;;  %v7357_v22 = vpop.f32.mrb[51].mxu1 }
 0x289   : > { %v7336_v2 = vadd.f32 %v7335_v21, %v7334_v54  ;;  %v5349_v23 = vadd.f32 %v7355_v24, %v7333_v17  ;;  %v7358_v25 = vadd.f32 %v7357_v22, %v7356_v10 }
 0x28b   : > { %v5352_v27 = vadd.f32 %v7358_v25, %v7336_v2 }
 0x2a5   : > { %v7375_v5 = vpop.f32.mrb[52].mxu0  ;;  %v7397_v9 = vpop.f32.mrb[52].mxu1 }
 0x2a6   : > { %v7376_v28 = vpop.f32.mrb[53].mxu0  ;;  %v7398_v58 = vpop.f32.mrb[53].mxu1 }
 0x2a7   : > { %v7377_v29 = vadd.f32 %v7376_v28, %v7375_v5  ;;  %v7378_v60 = vpop.f32.mrb[54].mxu0  ;;  %v7399_v33 = vadd.f32 %v7398_v58, %v7397_v9  ;;  %v7400_v35 = vpop.f32.mrb[54].mxu1 }
 0x2a8   : > { %v7379_v30 = vpop.f32.mrb[55].mxu0  ;;  %v7401_v14 = vpop.f32.mrb[55].mxu1 }
 0x2a9   : > { %v5390_v32 = vadd.f32 %v7377_v29, %v5349_v23  ;;  %v7380_v36 = vadd.f32 %v7379_v30, %v7378_v60  ;;  %v7402_v18 = vadd.f32 %v7401_v14, %v7400_v35 }
 0x2ab   : > { %v5431_v37 = vadd.f32 %v7399_v33, %v5390_v32  ;;  %v5393_v38 = vadd.f32 %v7380_v36, %v5352_v27 }
 0x2ad   : > { %v5437_v39 = vadd.f32 %v5431_v37, %v4701_v19  ;;  %v5434_v16 = vadd.f32 %v7402_v18, %v5393_v38 }
 0x2af   : > { %5439 = vst [vmem:[%s143_s8] sm:$0xff] %v5437_v39  ;;  %v5438_v40 = vadd.f32 %v5434_v16, %v4702_v8 }
 0x2b1   : > { %5440 = vst [vmem:[%s143_s8 + $0x8] sm:$0xf] %v5438_v40 }
 0x2b2 PF: > { %s12_s9 = sadd.s32 1, %s7878_s9  }
 0x2b3   : > { %p9_p4 = scmp.ge.s32.totalorder %s12_s9, 4  }
 0x2b5   :  { %11 = sbr.rel (!%p9_p4) target bundleno = 1 (0x1), region = 64 }

</bundles_post_ra>
